<compile_context>
chip_gen: v7x
topology: tpu7x:2x2x1
jax: 0.10.0
libtpu: 0.0.40
codegen_flags: <defaults>
</compile_context>

<pallas_src>
import functools

import jax
import jax.numpy as jnp
from jax.experimental import pallas as pl
from jax.experimental.pallas import tpu as pltpu


def _vmem_limit_bytes():
    """Generation-aware scoped-VMEM budget (3/4 of physical, capped at 100 MiB)."""
    try:
        cap = int(pltpu.get_tpu_info().vmem_capacity_bytes)
    except Exception:
        cap = 64 * 1024 * 1024
    return min((cap * 3) // 4, 100 * 1024 * 1024)


_VMEM_LIMIT = _vmem_limit_bytes()


def _tile(dim, target, align=1):
    """Largest divisor of `dim` that is <= target, preferring multiples of `align`."""
    if dim <= target:
        return dim
    fallback = None
    for t in range(target, 0, -1):
        if dim % t == 0:
            if t % align == 0:
                return t
            if fallback is None:
                fallback = t
    return fallback if fallback is not None else dim


def _gelu(y):
    # TODO(synk): tanh-approx GELU; HF BERT default is the exact erf form (~1e-3 diff).
    c = jnp.float32(0.7978845608028654)  # sqrt(2/pi)
    return 0.5 * y * (1.0 + jnp.tanh(c * (y + 0.044715 * y * y * y)))


# ----------------------------- Pallas kernels ------------------------------

def _matmul_kernel(x_ref, w_ref, b_ref, o_ref, *, activation):
    """Single-K-step y = act(x @ w + b); bf16 inputs, f32 accumulation, no scratch."""
    y = jnp.dot(x_ref[...], w_ref[...], preferred_element_type=jnp.float32)
    y = y + b_ref[...]
    if activation == "gelu":
        y = _gelu(y)
    o_ref[...] = y.astype(o_ref.dtype)


def pallas_matmul(x, w, b, activation="none", tm=512, tn=512):
    """y = act(x @ w + b). x:(M,K), w:(K,N), b:(N,). K kept whole (K<=3072 here)."""
    M, K = x.shape
    N = w.shape[1]
    tm = _tile(M, tm, 8)
    tn = _tile(N, tn, 128)
    x = x.astype(jnp.bfloat16)
    w = w.astype(jnp.bfloat16)
    b2 = b.reshape(1, N).astype(jnp.float32)
    kernel = functools.partial(_matmul_kernel, activation=activation)
    return pl.pallas_call(
        kernel,
        out_shape=jax.ShapeDtypeStruct((M, N), jnp.bfloat16),
        grid=(M // tm, N // tn),
        in_specs=[
            pl.BlockSpec((tm, K), lambda i, j: (i, 0)),
            pl.BlockSpec((K, tn), lambda i, j: (0, j)),
            pl.BlockSpec((1, tn), lambda i, j: (0, j)),
        ],
        out_specs=pl.BlockSpec((tm, tn), lambda i, j: (i, j)),
        compiler_params=pltpu.CompilerParams(
            dimension_semantics=("parallel", "parallel"),
            vmem_limit_bytes=_VMEM_LIMIT,
        ),
    )(x, w, b2)


def _linear_res_ln_kernel(x_ref, w_ref, b_ref, r_ref, g_ref, be_ref, o_ref, *, eps):
    """Single-K-step y = LayerNorm(x @ w + b + residual) over a full output row block."""
    y = jnp.dot(x_ref[...], w_ref[...], preferred_element_type=jnp.float32)
    y = y + b_ref[...] + r_ref[...].astype(jnp.float32)
    mean = jnp.mean(y, axis=-1, keepdims=True)
    var = jnp.mean(jnp.square(y - mean), axis=-1, keepdims=True)
    yn = (y - mean) * jax.lax.rsqrt(var + eps)
    o_ref[...] = (yn * g_ref[...] + be_ref[...]).astype(o_ref.dtype)


def pallas_linear_residual_ln(x, w, b, residual, gamma, beta, eps=1e-12, tm=256):
    """LayerNorm(x @ w + b + residual); weight stays VMEM-resident across row tiles."""
    M, K = x.shape
    N = w.shape[1]
    tm = _tile(M, tm, 8)
    x = x.astype(jnp.bfloat16)
    w = w.astype(jnp.bfloat16)
    residual = residual.astype(jnp.bfloat16)
    b2 = b.reshape(1, N).astype(jnp.float32)
    g2 = gamma.reshape(1, N).astype(jnp.float32)
    be2 = beta.reshape(1, N).astype(jnp.float32)
    kernel = functools.partial(_linear_res_ln_kernel, eps=eps)
    return pl.pallas_call(
        kernel,
        out_shape=jax.ShapeDtypeStruct((M, N), jnp.bfloat16),
        grid=(M // tm,),
        in_specs=[
            pl.BlockSpec((tm, K), lambda i: (i, 0)),
            pl.BlockSpec((K, N), lambda i: (0, 0)),   # resident weight (fetched once)
            pl.BlockSpec((1, N), lambda i: (0, 0)),
            pl.BlockSpec((tm, N), lambda i: (i, 0)),  # residual
            pl.BlockSpec((1, N), lambda i: (0, 0)),
            pl.BlockSpec((1, N), lambda i: (0, 0)),
        ],
        out_specs=pl.BlockSpec((tm, N), lambda i: (i, 0)),
        compiler_params=pltpu.CompilerParams(
            dimension_semantics=("parallel",),
            vmem_limit_bytes=_VMEM_LIMIT,
        ),
    )(x, w, b2, residual, g2, be2)


def _embed_ln_kernel(w_ref, p_ref, t_ref, g_ref, b_ref, o_ref, *, eps):
    """Fused word+pos+type add followed by LayerNorm (bf16 in, f32 stats)."""
    x = (w_ref[...].astype(jnp.float32) + p_ref[...].astype(jnp.float32)
         + t_ref[...].astype(jnp.float32))
    mean = jnp.mean(x, axis=-1, keepdims=True)
    var = jnp.mean(jnp.square(x - mean), axis=-1, keepdims=True)
    y = (x - mean) * jax.lax.rsqrt(var + eps)
    o_ref[...] = (y * g_ref[...] + b_ref[...]).astype(o_ref.dtype)


def pallas_embed_layernorm(word, pos, tok, gamma, beta, seq_len, eps=1e-12, tm=256):
    """LayerNorm(word + pos + type) with the adds done inside the kernel."""
    M, H = word.shape                     # M = B*S
    S = seq_len
    tm = _tile(S, tm, 8)                  # tm | S so a row block never crosses batches
    n_pos_blocks = S // tm
    word = word.astype(jnp.bfloat16)
    pos = pos.astype(jnp.bfloat16)
    tok2 = tok.reshape(1, H).astype(jnp.bfloat16)
    g2 = gamma.reshape(1, H).astype(jnp.float32)
    b2 = beta.reshape(1, H).astype(jnp.float32)
    kernel = functools.partial(_embed_ln_kernel, eps=eps)
    return pl.pallas_call(
        kernel,
        out_shape=jax.ShapeDtypeStruct((M, H), jnp.bfloat16),
        grid=(M // tm,),
        in_specs=[
            pl.BlockSpec((tm, H), lambda i: (i, 0)),
            pl.BlockSpec((tm, H), lambda i: (i % n_pos_blocks, 0)),
            pl.BlockSpec((1, H), lambda i: (0, 0)),
            pl.BlockSpec((1, H), lambda i: (0, 0)),
            pl.BlockSpec((1, H), lambda i: (0, 0)),
        ],
        out_specs=pl.BlockSpec((tm, H), lambda i: (i, 0)),
        compiler_params=pltpu.CompilerParams(
            dimension_semantics=("parallel",),
            vmem_limit_bytes=_VMEM_LIMIT,
        ),
    )(word, pos, tok2, g2, b2)


def _flash_attn_kernel(q_ref, k_ref, v_ref, o_ref, m_ref, l_ref, acc_ref, *, scale):
    ki = pl.program_id(2)

    @pl.when(ki == 0)
    def _():
        m_ref[...] = jnp.full_like(m_ref, -jnp.inf)
        l_ref[...] = jnp.zeros_like(l_ref)
        acc_ref[...] = jnp.zeros_like(acc_ref)

    # Fold the softmax scale into q (tq*D muls) instead of scaling the (tq,tkv) scores.
    q = q_ref[0, 0] * scale    # (tq, D) bf16
    k = k_ref[0, 0]            # (tkv, D) bf16
    v = v_ref[0, 0]            # (tkv, D) bf16
    # QK^T via contracting dims (no in-kernel transpose of K), f32 scores.
    s = jax.lax.dot_general(q, k, (((1,), (1,)), ((), ())),
                            preferred_element_type=jnp.float32)
    m_prev = m_ref[...]
    m_new = jnp.maximum(m_prev, jnp.max(s, axis=-1, keepdims=True))
    alpha = jnp.exp(m_prev - m_new)
    p = jnp.exp(s - m_new)
    l_ref[...] = alpha * l_ref[...] + jnp.sum(p, axis=-1, keepdims=True)
    acc_ref[...] = alpha * acc_ref[...] + jnp.dot(
        p.astype(v.dtype), v, preferred_element_type=jnp.float32)
    m_ref[...] = m_new

    @pl.when(ki == pl.num_programs(2) - 1)
    def _():
        inv_l = pl.reciprocal(l_ref[...], approx=True)
        o_ref[0, :, :] = (acc_ref[...] * inv_l).astype(o_ref.dtype)


def pallas_flash_attention(qkvt, tq=256, tkv=256):
    """Flash-style attention. qkvt: (3, batch*heads, seq, head_dim) packed q|k|v.
    The q/k/v parts are selected by the BlockSpec index maps (no per-tensor slices).
    TODO(synk): no padding mask (forward only receives input_ids -> all-ones mask)."""
    _, BH, S, D = qkvt.shape
    tq = _tile(S, tq, 8)
    tkv = _tile(S, tkv, 128)
    scale = 1.0 / float(D) ** 0.5
    kernel = functools.partial(_flash_attn_kernel, scale=scale)
    return pl.pallas_call(
        kernel,
        out_shape=jax.ShapeDtypeStruct((BH, S, D), jnp.bfloat16),
        grid=(BH, S // tq, S // tkv),
        in_specs=[
            pl.BlockSpec((1, 1, tq, D), lambda b, qi, ki: (0, b, qi, 0)),
            pl.BlockSpec((1, 1, tkv, D), lambda b, qi, ki: (1, b, ki, 0)),
            pl.BlockSpec((1, 1, tkv, D), lambda b, qi, ki: (2, b, ki, 0)),
        ],
        out_specs=pl.BlockSpec((1, tq, D), lambda b, qi, ki: (b, qi, 0)),
        scratch_shapes=[
            pltpu.VMEM((tq, 1), jnp.float32),   # running max
            pltpu.VMEM((tq, 1), jnp.float32),   # running denom
            pltpu.VMEM((tq, D), jnp.float32),   # output accumulator
        ],
        compiler_params=pltpu.CompilerParams(
            dimension_semantics=("parallel", "parallel", "arbitrary"),
            vmem_limit_bytes=_VMEM_LIMIT,
        ),
    )(qkvt, qkvt, qkvt)   # same buffer passed thrice; BlockSpecs pick the part


def _pooler_head_kernel(cls_ref, wp_ref, bp_ref, wf_ref, bf_ref, o_ref):
    x = cls_ref[...].astype(jnp.float32)
    pooled = jnp.tanh(jnp.dot(x, wp_ref[...],
                              preferred_element_type=jnp.float32) + bp_ref[...])
    o_ref[...] = (jnp.dot(pooled, wf_ref[...],
                          preferred_element_type=jnp.float32) + bf_ref[...]
                  ).astype(o_ref.dtype)


def pallas_pooler_head(cls, wp, bp, wf, bf):
    """Fused BERT pooler (tanh(cls @ Wp + bp)) + 2-class classifier head."""
    B, H = cls.shape
    C = wf.shape[1]
    bp2 = bp.reshape(1, H)
    bf2 = bf.reshape(1, C)
    return pl.pallas_call(
        _pooler_head_kernel,
        out_shape=jax.ShapeDtypeStruct((B, C), jnp.float32),
        grid=(1,),
        in_specs=[
            pl.BlockSpec((B, H), lambda i: (0, 0)),
            pl.BlockSpec((H, H), lambda i: (0, 0)),
            pl.BlockSpec((1, H), lambda i: (0, 0)),
            pl.BlockSpec((H, C), lambda i: (0, 0)),
            pl.BlockSpec((1, C), lambda i: (0, 0)),
        ],
        out_specs=pl.BlockSpec((B, C), lambda i: (0, 0)),
        compiler_params=pltpu.CompilerParams(vmem_limit_bytes=_VMEM_LIMIT),
    )(cls, wp, bp2, wf, bf2)


# ----------------------------- model (glue) --------------------------------

def init_params(key, vocab, hidden, n_layers, inter, max_pos, n_types, n_classes):
    # TODO(synk): pretrained 'bert-base-uncased' weights cannot be loaded here;
    # deterministic N(0, 0.02) init at a small BERT config is used instead.
    keys = iter(jax.random.split(key, 64))

    def w(shape):
        return 0.02 * jax.random.normal(next(keys), shape, jnp.float32)

    zeros = lambda n: jnp.zeros((n,), jnp.float32)
    ones = lambda n: jnp.ones((n,), jnp.float32)

    params = {
        "word_emb": w((vocab, hidden)),
        "pos_emb": w((max_pos, hidden)),
        "type_emb": w((n_types, hidden)),
        "emb_ln_g": ones(hidden), "emb_ln_b": zeros(hidden),
        "layers": [],
        "pooler_w": w((hidden, hidden)), "pooler_b": zeros(hidden),
        "fc_w": w((hidden, n_classes)), "fc_b": zeros(n_classes),
    }
    for _ in range(n_layers):
        params["layers"].append({
            # Fused Q|K|V projection (concatenated along the output dim).
            "wqkv": w((hidden, 3 * hidden)), "bqkv": zeros(3 * hidden),
            "wo": w((hidden, hidden)), "bo": zeros(hidden),
            "ln1_g": ones(hidden), "ln1_b": zeros(hidden),
            "w1": w((hidden, inter)), "b1": zeros(inter),
            "w2": w((inter, hidden)), "b2": zeros(hidden),
            "ln2_g": ones(hidden), "ln2_b": zeros(hidden),
        })
    return params


def text_classifier_forward(params, input_ids, n_heads):
    B, S = input_ids.shape
    hidden = params["word_emb"].shape[1]
    head_dim = hidden // n_heads

    # --- BERT embeddings: gather is glue, add + LayerNorm fused in one kernel ---
    word = jnp.take(params["word_emb"], input_ids.reshape(-1), axis=0)  # (B*S, H)
    pos = params["pos_emb"][:S]                                         # (S, H)
    tok = params["type_emb"][0]                                         # token_type_ids = 0
    h = pallas_embed_layernorm(word.astype(jnp.bfloat16), pos, tok,
                               params["emb_ln_g"], params["emb_ln_b"], seq_len=S)
    # dropout: eval-mode no-op

    # --- encoder layers ---
    for layer in params["layers"]:
        qkv = pallas_matmul(h, layer["wqkv"], layer["bqkv"])            # (B*S, 3H)
        # One transpose packs q|k|v for all heads; the attention BlockSpecs select
        # q/k/v and the head, so there are no per-tensor slices.
        qkvt = (qkv.reshape(B, S, 3, n_heads, head_dim)
                   .transpose(2, 0, 3, 1, 4)
                   .reshape(3, B * n_heads, S, head_dim))
        ctx = pallas_flash_attention(qkvt)                              # (B*heads, S, D)
        ctx = (ctx.reshape(B, n_heads, S, head_dim)
                  .transpose(0, 2, 1, 3)
                  .reshape(B * S, hidden))

        # attention output projection fused with residual-add + LayerNorm
        h = pallas_linear_residual_ln(ctx, layer["wo"], layer["bo"],
                                      h, layer["ln1_g"], layer["ln1_b"])

        ffn = pallas_matmul(h, layer["w1"], layer["b1"], activation="gelu")
        h = pallas_linear_residual_ln(ffn, layer["w2"], layer["b2"],
                                      h, layer["ln2_g"], layer["ln2_b"])

    # --- pooler (CLS token -> dense -> tanh) + classification head (fused) ---
    cls = h.reshape(B, S, hidden)[:, 0, :]                              # (B, H)
    logits = pallas_pooler_head(cls, params["pooler_w"], params["pooler_b"],
                                params["fc_w"], params["fc_b"])
    return logits


if __name__ == "__main__":
    # Small but TPU-friendly config (head_dim=64 like bert-base).
    VOCAB, HIDDEN, LAYERS, HEADS = 1000, 128, 2, 2
    INTER, MAXPOS, NTYPES, NCLASSES = 512, 128, 2, 2
    B, S = 2, 128

    key = jax.random.PRNGKey(0)
    pkey, dkey = jax.random.split(key)
    params = init_params(pkey, VOCAB, HIDDEN, LAYERS, INTER, MAXPOS, NTYPES, NCLASSES)
    input_ids = jax.random.randint(dkey, (B, S), 0, VOCAB, dtype=jnp.int32)

    fwd = jax.jit(functools.partial(text_classifier_forward, n_heads=HEADS))
    logits = fwd(params, input_ids)
    jax.block_until_ready(logits)
    assert logits.shape == (B, NCLASSES) and logits.dtype == jnp.float32
    print("KERNEL_OK")
</pallas_src>

<mosaic_0001>
module attributes {stable_mosaic.version = 11 : i64} {
  func.func @_embed_ln_kernel(%arg0: i32, %arg1: memref<128x128xbf16, #tpu.memory_space<vmem>>, %arg2: memref<128x128xbf16, #tpu.memory_space<vmem>>, %arg3: memref<1x128xbf16, #tpu.memory_space<vmem>>, %arg4: memref<1x128xf32, #tpu.memory_space<vmem>>, %arg5: memref<1x128xf32, #tpu.memory_space<vmem>>, %arg6: memref<128x128xbf16, #tpu.memory_space<vmem>>) attributes {dimension_semantics = [#tpu.dimension_semantics<parallel>], iteration_bounds = array<i64: 2>, scalar_prefetch = 0 : i64, scratch_operands = 0 : i64, tpu.core_type = #tpu.core_type<tc>, window_params = [{transform_indices = @transform_0, window_bounds = array<i64: 128, 128>}, {transform_indices = @transform_1, window_bounds = array<i64: 128, 128>}, {pipeline_mode = #tpu.pipeline_mode<synchronous>, transform_indices = @transform_2, window_bounds = array<i64: 1, 128>}, {pipeline_mode = #tpu.pipeline_mode<synchronous>, transform_indices = @transform_3, window_bounds = array<i64: 1, 128>}, {pipeline_mode = #tpu.pipeline_mode<synchronous>, transform_indices = @transform_4, window_bounds = array<i64: 1, 128>}, {transform_indices = @transform_5, window_bounds = array<i64: 128, 128>}]} {
    %c0 = arith.constant 0 : index
    %c0_0 = arith.constant 0 : index
    %0 = vector.load %arg1[%c0, %c0_0] : memref<128x128xbf16, #tpu.memory_space<vmem>>, vector<128x128xbf16>
    %1 = arith.extf %0 : vector<128x128xbf16> to vector<128x128xf32>
    %c0_1 = arith.constant 0 : index
    %c0_2 = arith.constant 0 : index
    %2 = vector.load %arg2[%c0_1, %c0_2] : memref<128x128xbf16, #tpu.memory_space<vmem>>, vector<128x128xbf16>
    %3 = arith.extf %2 : vector<128x128xbf16> to vector<128x128xf32>
    %4 = arith.addf %1, %3 : vector<128x128xf32>
    %c0_3 = arith.constant 0 : index
    %c0_4 = arith.constant 0 : index
    %5 = vector.load %arg3[%c0_3, %c0_4] : memref<1x128xbf16, #tpu.memory_space<vmem>>, vector<1x128xbf16>
    %6 = arith.extf %5 : vector<1x128xbf16> to vector<1x128xf32>
    %7 = vector.broadcast %6 : vector<1x128xf32> to vector<128x128xf32>
    %8 = arith.addf %4, %7 : vector<128x128xf32>
    %cst = arith.constant dense<0.000000e+00> : vector<128xf32>
    %9 = vector.multi_reduction <add>, %8, %cst [1] : vector<128x128xf32> to vector<128xf32>
    %10 = vector.shape_cast %9 : vector<128xf32> to vector<128x1xf32>
    %cst_5 = arith.constant 1.280000e+02 : f32
    %11 = vector.broadcast %cst_5 : f32 to vector<128x1xf32>
    %12 = arith.divf %10, %11 : vector<128x1xf32>
    %13 = vector.broadcast %12 : vector<128x1xf32> to vector<128x128xf32>
    %14 = arith.subf %8, %13 : vector<128x128xf32>
    %15 = arith.mulf %14, %14 : vector<128x128xf32>
    %cst_6 = arith.constant dense<0.000000e+00> : vector<128xf32>
    %16 = vector.multi_reduction <add>, %15, %cst_6 [1] : vector<128x128xf32> to vector<128xf32>
    %17 = vector.shape_cast %16 : vector<128xf32> to vector<128x1xf32>
    %cst_7 = arith.constant 1.280000e+02 : f32
    %18 = vector.broadcast %cst_7 : f32 to vector<128x1xf32>
    %19 = arith.divf %17, %18 : vector<128x1xf32>
    %20 = vector.broadcast %12 : vector<128x1xf32> to vector<128x128xf32>
    %21 = arith.subf %8, %20 : vector<128x128xf32>
    %cst_8 = arith.constant 9.99999996E-13 : f32
    %22 = vector.broadcast %cst_8 : f32 to vector<128x1xf32>
    %23 = arith.addf %19, %22 : vector<128x1xf32>
    %24 = math.rsqrt %23 : vector<128x1xf32>
    %25 = vector.broadcast %24 : vector<128x1xf32> to vector<128x128xf32>
    %26 = arith.mulf %21, %25 : vector<128x128xf32>
    %c0_9 = arith.constant 0 : index
    %c0_10 = arith.constant 0 : index
    %27 = vector.load %arg4[%c0_9, %c0_10] : memref<1x128xf32, #tpu.memory_space<vmem>>, vector<1x128xf32>
    %28 = vector.broadcast %27 : vector<1x128xf32> to vector<128x128xf32>
    %29 = arith.mulf %26, %28 : vector<128x128xf32>
    %c0_11 = arith.constant 0 : index
    %c0_12 = arith.constant 0 : index
    %30 = vector.load %arg5[%c0_11, %c0_12] : memref<1x128xf32, #tpu.memory_space<vmem>>, vector<1x128xf32>
    %31 = vector.broadcast %30 : vector<1x128xf32> to vector<128x128xf32>
    %32 = arith.addf %29, %31 : vector<128x128xf32>
    %33 = arith.truncf %32 : vector<128x128xf32> to vector<128x128xbf16>
    %c0_13 = arith.constant 0 : index
    %c0_14 = arith.constant 0 : index
    %34 = vector.load %arg6[%c0_13, %c0_14] : memref<128x128xbf16, #tpu.memory_space<vmem>>, vector<128x128xbf16>
    tpu.vector_store %arg6[%c0_13, %c0_14], %33 {strides = array<i32>} : memref<128x128xbf16, #tpu.memory_space<vmem>>, vector<128x128xbf16>,
    return
  }
  func.func @transform_0(%arg0: i32) -> (i32, i32) {
    %c0_i32 = arith.constant 0 : i32
    %c0_i32_0 = arith.constant 0 : i32
    return %arg0, %c0_i32 : i32, i32
  }
  func.func @transform_1(%arg0: i32) -> (i32, i32) {
    %c1_i32 = arith.constant 1 : i32
    %c0_i32 = arith.constant 0 : i32
    %0 = arith.cmpi eq, %c1_i32, %c0_i32 : i32
    %c1_i32_0 = arith.constant 1 : i32
    %1 = arith.select %0, %c1_i32_0, %c1_i32 : i32
    %2 = arith.remsi %arg0, %1 : i32
    %c0_i32_1 = arith.constant 0 : i32
    %3 = arith.cmpi ne, %2, %c0_i32_1 : i32
    %c0_i32_2 = arith.constant 0 : i32
    %4 = arith.cmpi slt, %2, %c0_i32_2 : i32
    %c0_i32_3 = arith.constant 0 : i32
    %5 = arith.cmpi slt, %1, %c0_i32_3 : i32
    %6 = arith.xori %4, %5 : i1
    %7 = arith.andi %6, %3 : i1
    %8 = arith.addi %2, %1 : i32
    %9 = arith.select %7, %8, %2 : i32
    %c0_i32_4 = arith.constant 0 : i32
    %c0_i32_5 = arith.constant 0 : i32
    return %9, %c0_i32_4 : i32, i32
  }
  func.func @transform_2(%arg0: i32) -> (i32, i32) {
    %c0_i32 = arith.constant 0 : i32
    %c0_i32_0 = arith.constant 0 : i32
    %c0_i32_1 = arith.constant 0 : i32
    return %c0_i32, %c0_i32_0 : i32, i32
  }
  func.func @transform_3(%arg0: i32) -> (i32, i32) {
    %c0_i32 = arith.constant 0 : i32
    %c0_i32_0 = arith.constant 0 : i32
    %c0_i32_1 = arith.constant 0 : i32
    return %c0_i32, %c0_i32_0 : i32, i32
  }
  func.func @transform_4(%arg0: i32) -> (i32, i32) {
    %c0_i32 = arith.constant 0 : i32
    %c0_i32_0 = arith.constant 0 : i32
    %c0_i32_1 = arith.constant 0 : i32
    return %c0_i32, %c0_i32_0 : i32, i32
  }
  func.func @transform_5(%arg0: i32) -> (i32, i32) {
    %c0_i32 = arith.constant 0 : i32
    %c0_i32_0 = arith.constant 0 : i32
    return %arg0, %c0_i32 : i32, i32
  }
}

module attributes {stable_mosaic.version = 11 : i64} {
  func.func @_matmul_kernel(%arg0: i32, %arg1: i32, %arg2: memref<256x128xbf16, #tpu.memory_space<vmem>>, %arg3: memref<128x384xbf16, #tpu.memory_space<vmem>>, %arg4: memref<1x384xf32, #tpu.memory_space<vmem>>, %arg5: memref<256x384xbf16, #tpu.memory_space<vmem>>) attributes {dimension_semantics = [#tpu.dimension_semantics<parallel>, #tpu.dimension_semantics<parallel>], iteration_bounds = array<i64: 1, 1>, scalar_prefetch = 0 : i64, scratch_operands = 0 : i64, tpu.core_type = #tpu.core_type<tc>, window_params = [{transform_indices = @transform_0, window_bounds = array<i64: 256, 128>}, {transform_indices = @transform_1, window_bounds = array<i64: 128, 384>}, {transform_indices = @transform_2, window_bounds = array<i64: 1, 384>}, {transform_indices = @transform_3, window_bounds = array<i64: 256, 384>}]} {
    %c0 = arith.constant 0 : index
    %c0_0 = arith.constant 0 : index
    %0 = vector.load %arg2[%c0, %c0_0] : memref<256x128xbf16, #tpu.memory_space<vmem>>, vector<256x128xbf16>
    %c0_1 = arith.constant 0 : index
    %c0_2 = arith.constant 0 : index
    %1 = vector.load %arg3[%c0_1, %c0_2] : memref<128x384xbf16, #tpu.memory_space<vmem>>, vector<128x384xbf16>
    %cst = arith.constant dense<0.000000e+00> : vector<256x384xf32>
    %2 = tpu.matmul %0, %1, %cst {dimension_numbers = #tpu.dot_dimension_numbers<[1], [0], [0], [1], [0, 0, 1, 1], [], []>} : vector<256x128xbf16>, vector<128x384xbf16>, vector<256x384xf32> -> vector<256x384xf32>
    %c0_3 = arith.constant 0 : index
    %c0_4 = arith.constant 0 : index
    %3 = vector.load %arg4[%c0_3, %c0_4] : memref<1x384xf32, #tpu.memory_space<vmem>>, vector<1x384xf32>
    %4 = vector.broadcast %3 : vector<1x384xf32> to vector<256x384xf32>
    %5 = arith.addf %2, %4 : vector<256x384xf32>
    %6 = arith.truncf %5 : vector<256x384xf32> to vector<256x384xbf16>
    %c0_5 = arith.constant 0 : index
    %c0_6 = arith.constant 0 : index
    %7 = vector.load %arg5[%c0_5, %c0_6] : memref<256x384xbf16, #tpu.memory_space<vmem>>, vector<256x384xbf16>
    tpu.vector_store %arg5[%c0_5, %c0_6], %6 {strides = array<i32>} : memref<256x384xbf16, #tpu.memory_space<vmem>>, vector<256x384xbf16>,
    return
  }
  func.func @transform_0(%arg0: i32, %arg1: i32) -> (i32, i32) {
    %c0_i32 = arith.constant 0 : i32
    %c0_i32_0 = arith.constant 0 : i32
    return %arg0, %c0_i32 : i32, i32
  }
  func.func @transform_1(%arg0: i32, %arg1: i32) -> (i32, i32) {
    %c0_i32 = arith.constant 0 : i32
    %c0_i32_0 = arith.constant 0 : i32
    return %c0_i32, %arg1 : i32, i32
  }
  func.func @transform_2(%arg0: i32, %arg1: i32) -> (i32, i32) {
    %c0_i32 = arith.constant 0 : i32
    %c0_i32_0 = arith.constant 0 : i32
    return %c0_i32, %arg1 : i32, i32
  }
  func.func @transform_3(%arg0: i32, %arg1: i32) -> (i32, i32) {
    %c0_i32 = arith.constant 0 : i32
    return %arg0, %arg1 : i32, i32
  }
}

module attributes {stable_mosaic.version = 11 : i64} {
  func.func @_flash_attn_kernel(%arg0: i32, %arg1: i32, %arg2: i32, %arg3: memref<1x1x128x64xbf16, #tpu.memory_space<vmem>>, %arg4: memref<1x1x128x64xbf16, #tpu.memory_space<vmem>>, %arg5: memref<1x1x128x64xbf16, #tpu.memory_space<vmem>>, %arg6: memref<1x128x64xbf16, #tpu.memory_space<vmem>>, %arg7: memref<128x1xf32, #tpu.memory_space<vmem>>, %arg8: memref<128x1xf32, #tpu.memory_space<vmem>>, %arg9: memref<128x64xf32, #tpu.memory_space<vmem>>) attributes {dimension_semantics = [#tpu.dimension_semantics<parallel>, #tpu.dimension_semantics<parallel>, #tpu.dimension_semantics<arbitrary>], iteration_bounds = array<i64: 4, 1, 1>, scalar_prefetch = 0 : i64, scratch_operands = 3 : i64, tpu.core_type = #tpu.core_type<tc>, window_params = [{transform_indices = @transform_0, window_bounds = array<i64: 1, 1, 128, 64>}, {transform_indices = @transform_1, window_bounds = array<i64: 1, 1, 128, 64>}, {transform_indices = @transform_2, window_bounds = array<i64: 1, 1, 128, 64>}, {transform_indices = @transform_3, window_bounds = array<i64: 1, 128, 64>}]} {
    %c0_i32 = arith.constant 0 : i32
    %0 = arith.cmpi eq, %arg2, %c0_i32 : i32
    %1 = arith.extui %0 : i1 to i32
    %c0_i32_0 = arith.constant 0 : i32
    %2 = arith.cmpi ne, %1, %c0_i32_0 : i32
    scf.if %2 {
      %cst_30 = arith.constant 0xFF800000 : f32
      %38 = vector.broadcast %cst_30 : f32 to vector<128x1xf32>
      %c0_31 = arith.constant 0 : index
      %c0_32 = arith.constant 0 : index
      %39 = vector.load %arg7[%c0_31, %c0_32] : memref<128x1xf32, #tpu.memory_space<vmem>>, vector<128x1xf32>
      tpu.vector_store %arg7[%c0_31, %c0_32], %38 {strides = array<i32>} : memref<128x1xf32, #tpu.memory_space<vmem>>, vector<128x1xf32>,
      %cst_33 = arith.constant 0.000000e+00 : f32
      %40 = vector.broadcast %cst_33 : f32 to vector<128x1xf32>
      %c0_34 = arith.constant 0 : index
      %c0_35 = arith.constant 0 : index
      %41 = vector.load %arg8[%c0_34, %c0_35] : memref<128x1xf32, #tpu.memory_space<vmem>>, vector<128x1xf32>
      tpu.vector_store %arg8[%c0_34, %c0_35], %40 {strides = array<i32>} : memref<128x1xf32, #tpu.memory_space<vmem>>, vector<128x1xf32>,
      %cst_36 = arith.constant 0.000000e+00 : f32
      %42 = vector.broadcast %cst_36 : f32 to vector<128x64xf32>
      %c0_37 = arith.constant 0 : index
      %c0_38 = arith.constant 0 : index
      %43 = vector.load %arg9[%c0_37, %c0_38] : memref<128x64xf32, #tpu.memory_space<vmem>>, vector<128x64xf32>
      tpu.vector_store %arg9[%c0_37, %c0_38], %42 {strides = array<i32>} : memref<128x64xf32, #tpu.memory_space<vmem>>, vector<128x64xf32>,
    } else {
    }
    %c0 = arith.constant 0 : index
    %c0_1 = arith.constant 0 : index
    %c0_2 = arith.constant 0 : index
    %c0_3 = arith.constant 0 : index
    %3 = vector.load %arg3[%c0, %c0_1, %c0_2, %c0_3] : memref<1x1x128x64xbf16, #tpu.memory_space<vmem>>, vector<1x1x128x64xbf16>
    %4 = vector.shape_cast %3 : vector<1x1x128x64xbf16> to vector<128x64xbf16>
    %cst = arith.constant 1.250000e-01 : bf16
    %5 = vector.broadcast %cst : bf16 to vector<128x64xbf16>
    %6 = arith.mulf %4, %5 : vector<128x64xbf16>
    %c0_4 = arith.constant 0 : index
    %c0_5 = arith.constant 0 : index
    %c0_6 = arith.constant 0 : index
    %c0_7 = arith.constant 0 : index
    %7 = vector.load %arg4[%c0_4, %c0_5, %c0_6, %c0_7] : memref<1x1x128x64xbf16, #tpu.memory_space<vmem>>, vector<1x1x128x64xbf16>
    %8 = vector.shape_cast %7 : vector<1x1x128x64xbf16> to vector<128x64xbf16>
    %c0_8 = arith.constant 0 : index
    %c0_9 = arith.constant 0 : index
    %c0_10 = arith.constant 0 : index
    %c0_11 = arith.constant 0 : index
    %9 = vector.load %arg5[%c0_8, %c0_9, %c0_10, %c0_11] : memref<1x1x128x64xbf16, #tpu.memory_space<vmem>>, vector<1x1x128x64xbf16>
    %10 = vector.shape_cast %9 : vector<1x1x128x64xbf16> to vector<128x64xbf16>
    %cst_12 = arith.constant dense<0.000000e+00> : vector<128x128xf32>
    %11 = tpu.matmul %6, %8, %cst_12 {dimension_numbers = #tpu.dot_dimension_numbers<[1], [1], [0], [0], [0, 0, 1, 0], [], []>} : vector<128x64xbf16>, vector<128x64xbf16>, vector<128x128xf32> -> vector<128x128xf32>
    %c0_13 = arith.constant 0 : index
    %c0_14 = arith.constant 0 : index
    %12 = vector.load %arg7[%c0_13, %c0_14] : memref<128x1xf32, #tpu.memory_space<vmem>>, vector<128x1xf32>
    %cst_15 = arith.constant dense<0xFF800000> : vector<128xf32>
    %13 = vector.multi_reduction <maximumf>, %11, %cst_15 [1] : vector<128x128xf32> to vector<128xf32>
    %14 = vector.shape_cast %13 : vector<128xf32> to vector<128x1xf32>
    %15 = arith.maximumf %12, %14 : vector<128x1xf32>
    %16 = arith.subf %12, %15 : vector<128x1xf32>
    %17 = math.exp %16 : vector<128x1xf32>
    %18 = vector.broadcast %15 : vector<128x1xf32> to vector<128x128xf32>
    %19 = arith.subf %11, %18 : vector<128x128xf32>
    %20 = math.exp %19 : vector<128x128xf32>
    %c0_16 = arith.constant 0 : index
    %c0_17 = arith.constant 0 : index
    %21 = vector.load %arg8[%c0_16, %c0_17] : memref<128x1xf32, #tpu.memory_space<vmem>>, vector<128x1xf32>
    %22 = arith.mulf %17, %21 : vector<128x1xf32>
    %cst_18 = arith.constant dense<0.000000e+00> : vector<128xf32>
    %23 = vector.multi_reduction <add>, %20, %cst_18 [1] : vector<128x128xf32> to vector<128xf32>
    %24 = vector.shape_cast %23 : vector<128xf32> to vector<128x1xf32>
    %25 = arith.addf %22, %24 : vector<128x1xf32>
    %c0_19 = arith.constant 0 : index
    %c0_20 = arith.constant 0 : index
    %26 = vector.load %arg8[%c0_19, %c0_20] : memref<128x1xf32, #tpu.memory_space<vmem>>, vector<128x1xf32>
    tpu.vector_store %arg8[%c0_19, %c0_20], %25 {strides = array<i32>} : memref<128x1xf32, #tpu.memory_space<vmem>>, vector<128x1xf32>,
    %c0_21 = arith.constant 0 : index
    %c0_22 = arith.constant 0 : index
    %27 = vector.load %arg9[%c0_21, %c0_22] : memref<128x64xf32, #tpu.memory_space<vmem>>, vector<128x64xf32>
    %28 = vector.broadcast %17 : vector<128x1xf32> to vector<128x64xf32>
    %29 = arith.mulf %28, %27 : vector<128x64xf32>
    %30 = arith.truncf %20 : vector<128x128xf32> to vector<128x128xbf16>
    %cst_23 = arith.constant dense<0.000000e+00> : vector<128x64xf32>
    %31 = tpu.matmul %30, %10, %cst_23 {dimension_numbers = #tpu.dot_dimension_numbers<[1], [0], [0], [1], [0, 0, 1, 1], [], []>} : vector<128x128xbf16>, vector<128x64xbf16>, vector<128x64xf32> -> vector<128x64xf32>
    %32 = arith.addf %29, %31 : vector<128x64xf32>
    %c0_24 = arith.constant 0 : index
    %c0_25 = arith.constant 0 : index
    %33 = vector.load %arg9[%c0_24, %c0_25] : memref<128x64xf32, #tpu.memory_space<vmem>>, vector<128x64xf32>
    tpu.vector_store %arg9[%c0_24, %c0_25], %32 {strides = array<i32>} : memref<128x64xf32, #tpu.memory_space<vmem>>, vector<128x64xf32>,
    %c0_26 = arith.constant 0 : index
    %c0_27 = arith.constant 0 : index
    %34 = vector.load %arg7[%c0_26, %c0_27] : memref<128x1xf32, #tpu.memory_space<vmem>>, vector<128x1xf32>
    tpu.vector_store %arg7[%c0_26, %c0_27], %15 {strides = array<i32>} : memref<128x1xf32, #tpu.memory_space<vmem>>, vector<128x1xf32>,
    %c0_i32_28 = arith.constant 0 : i32
    %35 = arith.cmpi eq, %arg2, %c0_i32_28 : i32
    %36 = arith.extui %35 : i1 to i32
    %c0_i32_29 = arith.constant 0 : i32
    %37 = arith.cmpi ne, %36, %c0_i32_29 : i32
    scf.if %37 {
      %c0_30 = arith.constant 0 : index
      %c0_31 = arith.constant 0 : index
      %38 = vector.load %arg8[%c0_30, %c0_31] : memref<128x1xf32, #tpu.memory_space<vmem>>, vector<128x1xf32>
      %39 = tpu.reciprocal %38 {approx = true} : vector<128x1xf32> -> vector<128x1xf32>
      %c0_32 = arith.constant 0 : index
      %c0_33 = arith.constant 0 : index
      %40 = vector.load %arg9[%c0_32, %c0_33] : memref<128x64xf32, #tpu.memory_space<vmem>>, vector<128x64xf32>
      %41 = vector.broadcast %39 : vector<128x1xf32> to vector<128x64xf32>
      %42 = arith.mulf %40, %41 : vector<128x64xf32>
      %43 = arith.truncf %42 : vector<128x64xf32> to vector<128x64xbf16>
      %c0_34 = arith.constant 0 : index
      %c0_35 = arith.constant 0 : index
      %c0_36 = arith.constant 0 : index
      %44 = vector.load %arg6[%c0_34, %c0_35, %c0_36] : memref<1x128x64xbf16, #tpu.memory_space<vmem>>, vector<1x128x64xbf16>
      %45 = vector.shape_cast %44 : vector<1x128x64xbf16> to vector<128x64xbf16>
      %46 = vector.shape_cast %43 : vector<128x64xbf16> to vector<1x128x64xbf16>
      tpu.vector_store %arg6[%c0_34, %c0_35, %c0_36], %46 {strides = array<i32>} : memref<1x128x64xbf16, #tpu.memory_space<vmem>>, vector<1x128x64xbf16>,
    } else {
    }
    return
  }
  func.func @transform_0(%arg0: i32, %arg1: i32, %arg2: i32) -> (i32, i32, i32, i32) {
    %c0_i32 = arith.constant 0 : i32
    %c0_i32_0 = arith.constant 0 : i32
    %c0_i32_1 = arith.constant 0 : i32
    return %c0_i32, %arg0, %arg1, %c0_i32_0 : i32, i32, i32, i32
  }
  func.func @transform_1(%arg0: i32, %arg1: i32, %arg2: i32) -> (i32, i32, i32, i32) {
    %c1_i32 = arith.constant 1 : i32
    %c0_i32 = arith.constant 0 : i32
    %c0_i32_0 = arith.constant 0 : i32
    return %c1_i32, %arg0, %arg2, %c0_i32 : i32, i32, i32, i32
  }
  func.func @transform_2(%arg0: i32, %arg1: i32, %arg2: i32) -> (i32, i32, i32, i32) {
    %c2_i32 = arith.constant 2 : i32
    %c0_i32 = arith.constant 0 : i32
    %c0_i32_0 = arith.constant 0 : i32
    return %c2_i32, %arg0, %arg2, %c0_i32 : i32, i32, i32, i32
  }
  func.func @transform_3(%arg0: i32, %arg1: i32, %arg2: i32) -> (i32, i32, i32) {
    %c0_i32 = arith.constant 0 : i32
    %c0_i32_0 = arith.constant 0 : i32
    return %arg0, %arg1, %c0_i32 : i32, i32, i32
  }
}

module attributes {stable_mosaic.version = 11 : i64} {
  func.func @_linear_res_ln_kernel(%arg0: i32, %arg1: memref<256x128xbf16, #tpu.memory_space<vmem>>, %arg2: memref<128x128xbf16, #tpu.memory_space<vmem>>, %arg3: memref<1x128xf32, #tpu.memory_space<vmem>>, %arg4: memref<256x128xbf16, #tpu.memory_space<vmem>>, %arg5: memref<1x128xf32, #tpu.memory_space<vmem>>, %arg6: memref<1x128xf32, #tpu.memory_space<vmem>>, %arg7: memref<256x128xbf16, #tpu.memory_space<vmem>>) attributes {dimension_semantics = [#tpu.dimension_semantics<parallel>], iteration_bounds = array<i64: 1>, scalar_prefetch = 0 : i64, scratch_operands = 0 : i64, tpu.core_type = #tpu.core_type<tc>, window_params = [{transform_indices = @transform_0, window_bounds = array<i64: 256, 128>}, {pipeline_mode = #tpu.pipeline_mode<synchronous>, transform_indices = @transform_1, window_bounds = array<i64: 128, 128>}, {pipeline_mode = #tpu.pipeline_mode<synchronous>, transform_indices = @transform_2, window_bounds = array<i64: 1, 128>}, {transform_indices = @transform_3, window_bounds = array<i64: 256, 128>}, {pipeline_mode = #tpu.pipeline_mode<synchronous>, transform_indices = @transform_4, window_bounds = array<i64: 1, 128>}, {pipeline_mode = #tpu.pipeline_mode<synchronous>, transform_indices = @transform_5, window_bounds = array<i64: 1, 128>}, {transform_indices = @transform_6, window_bounds = array<i64: 256, 128>}]} {
    %c0 = arith.constant 0 : index
    %c0_0 = arith.constant 0 : index
    %0 = vector.load %arg1[%c0, %c0_0] : memref<256x128xbf16, #tpu.memory_space<vmem>>, vector<256x128xbf16>
    %c0_1 = arith.constant 0 : index
    %c0_2 = arith.constant 0 : index
    %1 = vector.load %arg2[%c0_1, %c0_2] : memref<128x128xbf16, #tpu.memory_space<vmem>>, vector<128x128xbf16>
    %cst = arith.constant dense<0.000000e+00> : vector<256x128xf32>
    %2 = tpu.matmul %0, %1, %cst {dimension_numbers = #tpu.dot_dimension_numbers<[1], [0], [0], [1], [0, 0, 1, 1], [], []>} : vector<256x128xbf16>, vector<128x128xbf16>, vector<256x128xf32> -> vector<256x128xf32>
    %c0_3 = arith.constant 0 : index
    %c0_4 = arith.constant 0 : index
    %3 = vector.load %arg3[%c0_3, %c0_4] : memref<1x128xf32, #tpu.memory_space<vmem>>, vector<1x128xf32>
    %4 = vector.broadcast %3 : vector<1x128xf32> to vector<256x128xf32>
    %5 = arith.addf %2, %4 : vector<256x128xf32>
    %c0_5 = arith.constant 0 : index
    %c0_6 = arith.constant 0 : index
    %6 = vector.load %arg4[%c0_5, %c0_6] : memref<256x128xbf16, #tpu.memory_space<vmem>>, vector<256x128xbf16>
    %7 = arith.extf %6 : vector<256x128xbf16> to vector<256x128xf32>
    %8 = arith.addf %5, %7 : vector<256x128xf32>
    %cst_7 = arith.constant dense<0.000000e+00> : vector<256xf32>
    %9 = vector.multi_reduction <add>, %8, %cst_7 [1] : vector<256x128xf32> to vector<256xf32>
    %10 = vector.shape_cast %9 : vector<256xf32> to vector<256x1xf32>
    %cst_8 = arith.constant 1.280000e+02 : f32
    %11 = vector.broadcast %cst_8 : f32 to vector<256x1xf32>
    %12 = arith.divf %10, %11 : vector<256x1xf32>
    %13 = vector.broadcast %12 : vector<256x1xf32> to vector<256x128xf32>
    %14 = arith.subf %8, %13 : vector<256x128xf32>
    %15 = arith.mulf %14, %14 : vector<256x128xf32>
    %cst_9 = arith.constant dense<0.000000e+00> : vector<256xf32>
    %16 = vector.multi_reduction <add>, %15, %cst_9 [1] : vector<256x128xf32> to vector<256xf32>
    %17 = vector.shape_cast %16 : vector<256xf32> to vector<256x1xf32>
    %cst_10 = arith.constant 1.280000e+02 : f32
    %18 = vector.broadcast %cst_10 : f32 to vector<256x1xf32>
    %19 = arith.divf %17, %18 : vector<256x1xf32>
    %20 = vector.broadcast %12 : vector<256x1xf32> to vector<256x128xf32>
    %21 = arith.subf %8, %20 : vector<256x128xf32>
    %cst_11 = arith.constant 9.99999996E-13 : f32
    %22 = vector.broadcast %cst_11 : f32 to vector<256x1xf32>
    %23 = arith.addf %19, %22 : vector<256x1xf32>
    %24 = math.rsqrt %23 : vector<256x1xf32>
    %25 = vector.broadcast %24 : vector<256x1xf32> to vector<256x128xf32>
    %26 = arith.mulf %21, %25 : vector<256x128xf32>
    %c0_12 = arith.constant 0 : index
    %c0_13 = arith.constant 0 : index
    %27 = vector.load %arg5[%c0_12, %c0_13] : memref<1x128xf32, #tpu.memory_space<vmem>>, vector<1x128xf32>
    %28 = vector.broadcast %27 : vector<1x128xf32> to vector<256x128xf32>
    %29 = arith.mulf %26, %28 : vector<256x128xf32>
    %c0_14 = arith.constant 0 : index
    %c0_15 = arith.constant 0 : index
    %30 = vector.load %arg6[%c0_14, %c0_15] : memref<1x128xf32, #tpu.memory_space<vmem>>, vector<1x128xf32>
    %31 = vector.broadcast %30 : vector<1x128xf32> to vector<256x128xf32>
    %32 = arith.addf %29, %31 : vector<256x128xf32>
    %33 = arith.truncf %32 : vector<256x128xf32> to vector<256x128xbf16>
    %c0_16 = arith.constant 0 : index
    %c0_17 = arith.constant 0 : index
    %34 = vector.load %arg7[%c0_16, %c0_17] : memref<256x128xbf16, #tpu.memory_space<vmem>>, vector<256x128xbf16>
    tpu.vector_store %arg7[%c0_16, %c0_17], %33 {strides = array<i32>} : memref<256x128xbf16, #tpu.memory_space<vmem>>, vector<256x128xbf16>,
    return
  }
  func.func @transform_0(%arg0: i32) -> (i32, i32) {
    %c0_i32 = arith.constant 0 : i32
    %c0_i32_0 = arith.constant 0 : i32
    return %arg0, %c0_i32 : i32, i32
  }
  func.func @transform_1(%arg0: i32) -> (i32, i32) {
    %c0_i32 = arith.constant 0 : i32
    %c0_i32_0 = arith.constant 0 : i32
    %c0_i32_1 = arith.constant 0 : i32
    return %c0_i32, %c0_i32_0 : i32, i32
  }
  func.func @transform_2(%arg0: i32) -> (i32, i32) {
    %c0_i32 = arith.constant 0 : i32
    %c0_i32_0 = arith.constant 0 : i32
    %c0_i32_1 = arith.constant 0 : i32
    return %c0_i32, %c0_i32_0 : i32, i32
  }
  func.func @transform_3(%arg0: i32) -> (i32, i32) {
    %c0_i32 = arith.constant 0 : i32
    %c0_i32_0 = arith.constant 0 : i32
    return %arg0, %c0_i32 : i32, i32
  }
  func.func @transform_4(%arg0: i32) -> (i32, i32) {
    %c0_i32 = arith.constant 0 : i32
    %c0_i32_0 = arith.constant 0 : i32
    %c0_i32_1 = arith.constant 0 : i32
    return %c0_i32, %c0_i32_0 : i32, i32
  }
  func.func @transform_5(%arg0: i32) -> (i32, i32) {
    %c0_i32 = arith.constant 0 : i32
    %c0_i32_0 = arith.constant 0 : i32
    %c0_i32_1 = arith.constant 0 : i32
    return %c0_i32, %c0_i32_0 : i32, i32
  }
  func.func @transform_6(%arg0: i32) -> (i32, i32) {
    %c0_i32 = arith.constant 0 : i32
    %c0_i32_0 = arith.constant 0 : i32
    return %arg0, %c0_i32 : i32, i32
  }
}

module attributes {stable_mosaic.version = 11 : i64} {
  func.func @_matmul_kernel(%arg0: i32, %arg1: i32, %arg2: memref<256x128xbf16, #tpu.memory_space<vmem>>, %arg3: memref<128x512xbf16, #tpu.memory_space<vmem>>, %arg4: memref<1x512xf32, #tpu.memory_space<vmem>>, %arg5: memref<256x512xbf16, #tpu.memory_space<vmem>>) attributes {dimension_semantics = [#tpu.dimension_semantics<parallel>, #tpu.dimension_semantics<parallel>], iteration_bounds = array<i64: 1, 1>, scalar_prefetch = 0 : i64, scratch_operands = 0 : i64, tpu.core_type = #tpu.core_type<tc>, window_params = [{transform_indices = @transform_0, window_bounds = array<i64: 256, 128>}, {transform_indices = @transform_1, window_bounds = array<i64: 128, 512>}, {transform_indices = @transform_2, window_bounds = array<i64: 1, 512>}, {transform_indices = @transform_3, window_bounds = array<i64: 256, 512>}]} {
    %c0 = arith.constant 0 : index
    %c0_0 = arith.constant 0 : index
    %0 = vector.load %arg2[%c0, %c0_0] : memref<256x128xbf16, #tpu.memory_space<vmem>>, vector<256x128xbf16>
    %c0_1 = arith.constant 0 : index
    %c0_2 = arith.constant 0 : index
    %1 = vector.load %arg3[%c0_1, %c0_2] : memref<128x512xbf16, #tpu.memory_space<vmem>>, vector<128x512xbf16>
    %cst = arith.constant dense<0.000000e+00> : vector<256x512xf32>
    %2 = tpu.matmul %0, %1, %cst {dimension_numbers = #tpu.dot_dimension_numbers<[1], [0], [0], [1], [0, 0, 1, 1], [], []>} : vector<256x128xbf16>, vector<128x512xbf16>, vector<256x512xf32> -> vector<256x512xf32>
    %c0_3 = arith.constant 0 : index
    %c0_4 = arith.constant 0 : index
    %3 = vector.load %arg4[%c0_3, %c0_4] : memref<1x512xf32, #tpu.memory_space<vmem>>, vector<1x512xf32>
    %4 = vector.broadcast %3 : vector<1x512xf32> to vector<256x512xf32>
    %5 = arith.addf %2, %4 : vector<256x512xf32>
    %cst_5 = arith.constant 5.000000e-01 : f32
    %6 = vector.broadcast %cst_5 : f32 to vector<256x512xf32>
    %7 = arith.mulf %6, %5 : vector<256x512xf32>
    %cst_6 = arith.constant 4.471500e-02 : f32
    %8 = vector.broadcast %cst_6 : f32 to vector<256x512xf32>
    %9 = arith.mulf %8, %5 : vector<256x512xf32>
    %10 = arith.mulf %9, %5 : vector<256x512xf32>
    %11 = arith.mulf %10, %5 : vector<256x512xf32>
    %12 = arith.addf %5, %11 : vector<256x512xf32>
    %cst_7 = arith.constant 0.797884583 : f32
    %13 = vector.broadcast %cst_7 : f32 to vector<256x512xf32>
    %14 = arith.mulf %13, %12 : vector<256x512xf32>
    %15 = math.tanh %14 : vector<256x512xf32>
    %cst_8 = arith.constant 1.000000e+00 : f32
    %16 = vector.broadcast %cst_8 : f32 to vector<256x512xf32>
    %17 = arith.addf %16, %15 : vector<256x512xf32>
    %18 = arith.mulf %7, %17 : vector<256x512xf32>
    %19 = arith.truncf %18 : vector<256x512xf32> to vector<256x512xbf16>
    %c0_9 = arith.constant 0 : index
    %c0_10 = arith.constant 0 : index
    %20 = vector.load %arg5[%c0_9, %c0_10] : memref<256x512xbf16, #tpu.memory_space<vmem>>, vector<256x512xbf16>
    tpu.vector_store %arg5[%c0_9, %c0_10], %19 {strides = array<i32>} : memref<256x512xbf16, #tpu.memory_space<vmem>>, vector<256x512xbf16>,
    return
  }
  func.func @transform_0(%arg0: i32, %arg1: i32) -> (i32, i32) {
    %c0_i32 = arith.constant 0 : i32
    %c0_i32_0 = arith.constant 0 : i32
    return %arg0, %c0_i32 : i32, i32
  }
  func.func @transform_1(%arg0: i32, %arg1: i32) -> (i32, i32) {
    %c0_i32 = arith.constant 0 : i32
    %c0_i32_0 = arith.constant 0 : i32
    return %c0_i32, %arg1 : i32, i32
  }
  func.func @transform_2(%arg0: i32, %arg1: i32) -> (i32, i32) {
    %c0_i32 = arith.constant 0 : i32
    %c0_i32_0 = arith.constant 0 : i32
    return %c0_i32, %arg1 : i32, i32
  }
  func.func @transform_3(%arg0: i32, %arg1: i32) -> (i32, i32) {
    %c0_i32 = arith.constant 0 : i32
    return %arg0, %arg1 : i32, i32
  }
}

module attributes {stable_mosaic.version = 11 : i64} {
  func.func @_linear_res_ln_kernel(%arg0: i32, %arg1: memref<256x512xbf16, #tpu.memory_space<vmem>>, %arg2: memref<512x128xbf16, #tpu.memory_space<vmem>>, %arg3: memref<1x128xf32, #tpu.memory_space<vmem>>, %arg4: memref<256x128xbf16, #tpu.memory_space<vmem>>, %arg5: memref<1x128xf32, #tpu.memory_space<vmem>>, %arg6: memref<1x128xf32, #tpu.memory_space<vmem>>, %arg7: memref<256x128xbf16, #tpu.memory_space<vmem>>) attributes {dimension_semantics = [#tpu.dimension_semantics<parallel>], iteration_bounds = array<i64: 1>, scalar_prefetch = 0 : i64, scratch_operands = 0 : i64, tpu.core_type = #tpu.core_type<tc>, window_params = [{transform_indices = @transform_0, window_bounds = array<i64: 256, 512>}, {pipeline_mode = #tpu.pipeline_mode<synchronous>, transform_indices = @transform_1, window_bounds = array<i64: 512, 128>}, {pipeline_mode = #tpu.pipeline_mode<synchronous>, transform_indices = @transform_2, window_bounds = array<i64: 1, 128>}, {transform_indices = @transform_3, window_bounds = array<i64: 256, 128>}, {pipeline_mode = #tpu.pipeline_mode<synchronous>, transform_indices = @transform_4, window_bounds = array<i64: 1, 128>}, {pipeline_mode = #tpu.pipeline_mode<synchronous>, transform_indices = @transform_5, window_bounds = array<i64: 1, 128>}, {transform_indices = @transform_6, window_bounds = array<i64: 256, 128>}]} {
    %c0 = arith.constant 0 : index
    %c0_0 = arith.constant 0 : index
    %0 = vector.load %arg1[%c0, %c0_0] : memref<256x512xbf16, #tpu.memory_space<vmem>>, vector<256x512xbf16>
    %c0_1 = arith.constant 0 : index
    %c0_2 = arith.constant 0 : index
    %1 = vector.load %arg2[%c0_1, %c0_2] : memref<512x128xbf16, #tpu.memory_space<vmem>>, vector<512x128xbf16>
    %cst = arith.constant dense<0.000000e+00> : vector<256x128xf32>
    %2 = tpu.matmul %0, %1, %cst {dimension_numbers = #tpu.dot_dimension_numbers<[1], [0], [0], [1], [0, 0, 1, 1], [], []>} : vector<256x512xbf16>, vector<512x128xbf16>, vector<256x128xf32> -> vector<256x128xf32>
    %c0_3 = arith.constant 0 : index
    %c0_4 = arith.constant 0 : index
    %3 = vector.load %arg3[%c0_3, %c0_4] : memref<1x128xf32, #tpu.memory_space<vmem>>, vector<1x128xf32>
    %4 = vector.broadcast %3 : vector<1x128xf32> to vector<256x128xf32>
    %5 = arith.addf %2, %4 : vector<256x128xf32>
    %c0_5 = arith.constant 0 : index
    %c0_6 = arith.constant 0 : index
    %6 = vector.load %arg4[%c0_5, %c0_6] : memref<256x128xbf16, #tpu.memory_space<vmem>>, vector<256x128xbf16>
    %7 = arith.extf %6 : vector<256x128xbf16> to vector<256x128xf32>
    %8 = arith.addf %5, %7 : vector<256x128xf32>
    %cst_7 = arith.constant dense<0.000000e+00> : vector<256xf32>
    %9 = vector.multi_reduction <add>, %8, %cst_7 [1] : vector<256x128xf32> to vector<256xf32>
    %10 = vector.shape_cast %9 : vector<256xf32> to vector<256x1xf32>
    %cst_8 = arith.constant 1.280000e+02 : f32
    %11 = vector.broadcast %cst_8 : f32 to vector<256x1xf32>
    %12 = arith.divf %10, %11 : vector<256x1xf32>
    %13 = vector.broadcast %12 : vector<256x1xf32> to vector<256x128xf32>
    %14 = arith.subf %8, %13 : vector<256x128xf32>
    %15 = arith.mulf %14, %14 : vector<256x128xf32>
    %cst_9 = arith.constant dense<0.000000e+00> : vector<256xf32>
    %16 = vector.multi_reduction <add>, %15, %cst_9 [1] : vector<256x128xf32> to vector<256xf32>
    %17 = vector.shape_cast %16 : vector<256xf32> to vector<256x1xf32>
    %cst_10 = arith.constant 1.280000e+02 : f32
    %18 = vector.broadcast %cst_10 : f32 to vector<256x1xf32>
    %19 = arith.divf %17, %18 : vector<256x1xf32>
    %20 = vector.broadcast %12 : vector<256x1xf32> to vector<256x128xf32>
    %21 = arith.subf %8, %20 : vector<256x128xf32>
    %cst_11 = arith.constant 9.99999996E-13 : f32
    %22 = vector.broadcast %cst_11 : f32 to vector<256x1xf32>
    %23 = arith.addf %19, %22 : vector<256x1xf32>
    %24 = math.rsqrt %23 : vector<256x1xf32>
    %25 = vector.broadcast %24 : vector<256x1xf32> to vector<256x128xf32>
    %26 = arith.mulf %21, %25 : vector<256x128xf32>
    %c0_12 = arith.constant 0 : index
    %c0_13 = arith.constant 0 : index
    %27 = vector.load %arg5[%c0_12, %c0_13] : memref<1x128xf32, #tpu.memory_space<vmem>>, vector<1x128xf32>
    %28 = vector.broadcast %27 : vector<1x128xf32> to vector<256x128xf32>
    %29 = arith.mulf %26, %28 : vector<256x128xf32>
    %c0_14 = arith.constant 0 : index
    %c0_15 = arith.constant 0 : index
    %30 = vector.load %arg6[%c0_14, %c0_15] : memref<1x128xf32, #tpu.memory_space<vmem>>, vector<1x128xf32>
    %31 = vector.broadcast %30 : vector<1x128xf32> to vector<256x128xf32>
    %32 = arith.addf %29, %31 : vector<256x128xf32>
    %33 = arith.truncf %32 : vector<256x128xf32> to vector<256x128xbf16>
    %c0_16 = arith.constant 0 : index
    %c0_17 = arith.constant 0 : index
    %34 = vector.load %arg7[%c0_16, %c0_17] : memref<256x128xbf16, #tpu.memory_space<vmem>>, vector<256x128xbf16>
    tpu.vector_store %arg7[%c0_16, %c0_17], %33 {strides = array<i32>} : memref<256x128xbf16, #tpu.memory_space<vmem>>, vector<256x128xbf16>,
    return
  }
  func.func @transform_0(%arg0: i32) -> (i32, i32) {
    %c0_i32 = arith.constant 0 : i32
    %c0_i32_0 = arith.constant 0 : i32
    return %arg0, %c0_i32 : i32, i32
  }
  func.func @transform_1(%arg0: i32) -> (i32, i32) {
    %c0_i32 = arith.constant 0 : i32
    %c0_i32_0 = arith.constant 0 : i32
    %c0_i32_1 = arith.constant 0 : i32
    return %c0_i32, %c0_i32_0 : i32, i32
  }
  func.func @transform_2(%arg0: i32) -> (i32, i32) {
    %c0_i32 = arith.constant 0 : i32
    %c0_i32_0 = arith.constant 0 : i32
    %c0_i32_1 = arith.constant 0 : i32
    return %c0_i32, %c0_i32_0 : i32, i32
  }
  func.func @transform_3(%arg0: i32) -> (i32, i32) {
    %c0_i32 = arith.constant 0 : i32
    %c0_i32_0 = arith.constant 0 : i32
    return %arg0, %c0_i32 : i32, i32
  }
  func.func @transform_4(%arg0: i32) -> (i32, i32) {
    %c0_i32 = arith.constant 0 : i32
    %c0_i32_0 = arith.constant 0 : i32
    %c0_i32_1 = arith.constant 0 : i32
    return %c0_i32, %c0_i32_0 : i32, i32
  }
  func.func @transform_5(%arg0: i32) -> (i32, i32) {
    %c0_i32 = arith.constant 0 : i32
    %c0_i32_0 = arith.constant 0 : i32
    %c0_i32_1 = arith.constant 0 : i32
    return %c0_i32, %c0_i32_0 : i32, i32
  }
  func.func @transform_6(%arg0: i32) -> (i32, i32) {
    %c0_i32 = arith.constant 0 : i32
    %c0_i32_0 = arith.constant 0 : i32
    return %arg0, %c0_i32 : i32, i32
  }
}

module attributes {stable_mosaic.version = 11 : i64} {
  func.func @_pooler_head_kernel(%arg0: i32, %arg1: memref<2x128xbf16, #tpu.memory_space<vmem>>, %arg2: memref<128x128xf32, #tpu.memory_space<vmem>>, %arg3: memref<1x128xf32, #tpu.memory_space<vmem>>, %arg4: memref<128x2xf32, #tpu.memory_space<vmem>>, %arg5: memref<1x2xf32, #tpu.memory_space<vmem>>, %arg6: memref<2x2xf32, #tpu.memory_space<vmem>>) attributes {dimension_semantics = [#tpu.dimension_semantics<arbitrary>], iteration_bounds = array<i64: 1>, scalar_prefetch = 0 : i64, scratch_operands = 0 : i64, tpu.core_type = #tpu.core_type<tc>, window_params = [{pipeline_mode = #tpu.pipeline_mode<synchronous>, transform_indices = @transform_0, window_bounds = array<i64: 2, 128>}, {pipeline_mode = #tpu.pipeline_mode<synchronous>, transform_indices = @transform_1, window_bounds = array<i64: 128, 128>}, {pipeline_mode = #tpu.pipeline_mode<synchronous>, transform_indices = @transform_2, window_bounds = array<i64: 1, 128>}, {pipeline_mode = #tpu.pipeline_mode<synchronous>, transform_indices = @transform_3, window_bounds = array<i64: 128, 2>}, {pipeline_mode = #tpu.pipeline_mode<synchronous>, transform_indices = @transform_4, window_bounds = array<i64: 1, 2>}, {pipeline_mode = #tpu.pipeline_mode<synchronous>, transform_indices = @transform_5, window_bounds = array<i64: 2, 2>}]} {
    %c0 = arith.constant 0 : index
    %c0_0 = arith.constant 0 : index
    %0 = vector.load %arg1[%c0, %c0_0] : memref<2x128xbf16, #tpu.memory_space<vmem>>, vector<2x128xbf16>
    %1 = arith.extf %0 : vector<2x128xbf16> to vector<2x128xf32>
    %c0_1 = arith.constant 0 : index
    %c0_2 = arith.constant 0 : index
    %2 = vector.load %arg2[%c0_1, %c0_2] : memref<128x128xf32, #tpu.memory_space<vmem>>, vector<128x128xf32>
    %cst = arith.constant dense<0.000000e+00> : vector<2x128xf32>
    %3 = tpu.matmul %1, %2, %cst {dimension_numbers = #tpu.dot_dimension_numbers<[1], [0], [0], [1], [0, 0, 1, 1], [], []>} : vector<2x128xf32>, vector<128x128xf32>, vector<2x128xf32> -> vector<2x128xf32>
    %c0_3 = arith.constant 0 : index
    %c0_4 = arith.constant 0 : index
    %4 = vector.load %arg3[%c0_3, %c0_4] : memref<1x128xf32, #tpu.memory_space<vmem>>, vector<1x128xf32>
    %5 = vector.broadcast %4 : vector<1x128xf32> to vector<2x128xf32>
    %6 = arith.addf %3, %5 : vector<2x128xf32>
    %7 = math.tanh %6 : vector<2x128xf32>
    %c0_5 = arith.constant 0 : index
    %c0_6 = arith.constant 0 : index
    %8 = vector.load %arg4[%c0_5, %c0_6] : memref<128x2xf32, #tpu.memory_space<vmem>>, vector<128x2xf32>
    %cst_7 = arith.constant dense<0.000000e+00> : vector<2x2xf32>
    %9 = tpu.matmul %7, %8, %cst_7 {dimension_numbers = #tpu.dot_dimension_numbers<[1], [0], [0], [1], [0, 0, 1, 1], [], []>} : vector<2x128xf32>, vector<128x2xf32>, vector<2x2xf32> -> vector<2x2xf32>
    %c0_8 = arith.constant 0 : index
    %c0_9 = arith.constant 0 : index
    %10 = vector.load %arg5[%c0_8, %c0_9] : memref<1x2xf32, #tpu.memory_space<vmem>>, vector<1x2xf32>
    %11 = vector.broadcast %10 : vector<1x2xf32> to vector<2x2xf32>
    %12 = arith.addf %9, %11 : vector<2x2xf32>
    %c0_10 = arith.constant 0 : index
    %c0_11 = arith.constant 0 : index
    %13 = vector.load %arg6[%c0_10, %c0_11] : memref<2x2xf32, #tpu.memory_space<vmem>>, vector<2x2xf32>
    tpu.vector_store %arg6[%c0_10, %c0_11], %12 {strides = array<i32>} : memref<2x2xf32, #tpu.memory_space<vmem>>, vector<2x2xf32>,
    return
  }
  func.func @transform_0(%arg0: i32) -> (i32, i32) {
    %c0_i32 = arith.constant 0 : i32
    %c0_i32_0 = arith.constant 0 : i32
    %c0_i32_1 = arith.constant 0 : i32
    return %c0_i32, %c0_i32_0 : i32, i32
  }
  func.func @transform_1(%arg0: i32) -> (i32, i32) {
    %c0_i32 = arith.constant 0 : i32
    %c0_i32_0 = arith.constant 0 : i32
    %c0_i32_1 = arith.constant 0 : i32
    return %c0_i32, %c0_i32_0 : i32, i32
  }
  func.func @transform_2(%arg0: i32) -> (i32, i32) {
    %c0_i32 = arith.constant 0 : i32
    %c0_i32_0 = arith.constant 0 : i32
    %c0_i32_1 = arith.constant 0 : i32
    return %c0_i32, %c0_i32_0 : i32, i32
  }
  func.func @transform_3(%arg0: i32) -> (i32, i32) {
    %c0_i32 = arith.constant 0 : i32
    %c0_i32_0 = arith.constant 0 : i32
    %c0_i32_1 = arith.constant 0 : i32
    return %c0_i32, %c0_i32_0 : i32, i32
  }
  func.func @transform_4(%arg0: i32) -> (i32, i32) {
    %c0_i32 = arith.constant 0 : i32
    %c0_i32_0 = arith.constant 0 : i32
    %c0_i32_1 = arith.constant 0 : i32
    return %c0_i32, %c0_i32_0 : i32, i32
  }
  func.func @transform_5(%arg0: i32) -> (i32, i32) {
    %c0_i32 = arith.constant 0 : i32
    %c0_i32_0 = arith.constant 0 : i32
    %c0_i32_1 = arith.constant 0 : i32
    return %c0_i32, %c0_i32_0 : i32, i32
  }
}

</mosaic_0001>

<bundles_post_ra>
// kernel: text_classifier_forward.12
= control target key start
LH: loop header
LB: loop body
LE: loop exit
PB: predicated region body
PF: predicated region fallthrough
CT: control target
= control target key end

     0   :  { %s937_s18 = smov 0   ;;  %s1212_s0 = inlined_call_operand.vmem [shape: bf16[256,128], index: 0, kind: input, shape index: {}]   ;;  %s1213_s1 = inlined_call_operand.vmem [shape: bf16[128,128], index: 1, kind: input, shape index: {}]   ;;  %s1214_s2 = inlined_call_operand.vmem [shape: bf16[1,128], index: 2, kind: input, shape index: {}]   ;;  %s1215_s3 = inlined_call_operand.vmem [shape: f32[1,128], index: 3, kind: input, shape index: {}]   ;;  %s1216_s4 = inlined_call_operand.vmem [shape: f32[1,128], index: 4, kind: input, shape index: {}]   ;;  %s1217_s5 = inlined_call_operand.vmem [shape: bf16[256,128], index: 5, kind: output, shape index: {}]  }
   0x1 LB: > { %s689_s19 = sadd.s32 4294967295, %s905_s18   ;;  %p693_p0 = scmp.ge.s32.totalorder %s905_s18, 1  ;;  %s905_s18 = sphi %s937_s18, %s15_s18  }
   0x2   : > { %p188_p1 = scmp.lt.s32.totalorder %s905_s18, 3 }
   0x4   : > { %p189_p2 = pnand %p693_p0, %p188_p1 }
   0x5   : > { %s694_s20 = sshll.u32 (!%p189_p2), %s689_s19, 4  ;;  %v308_v0 = vld [vmem:[%s1214_s2] sm:$0x1] (!%p189_p2)  ;;  %v310_v1 = vlaneseq (!%p189_p2)  ;;  %v845_v5 = vld [vmem:[%s1213_s1 + $0x8] sm:$0xff] (!%p189_p2)   ;;  %v846_v11 = vld [vmem:[%s1213_s1 + $0x10] sm:$0xff] (!%p189_p2)  }
   0x6   : > { %192 = sbr.rel (%p189_p2) target bundleno = 369 (0x171), region = 40  ;;  %p217_p3 = scmp.lt.s32.totalorder (!%p189_p2), %s694_s20, 31  ;;  %v767_v3 = vld [vmem:[%s1213_s1] sm:$0xff] (!%p189_p2)   ;;  %v309_v4 = vunpack.c.l.bf16 (!%p189_p2), %v308_v0  ;;  %v772_v8 = vunpack.c.l.bf16 (!%p189_p2), %v845_v5  ;;  %v773_v10 = vunpack.c.h.bf16 (!%p189_p2), %v845_v5  ;;  %v776_v21 = vunpack.c.l.bf16 (!%p189_p2), %v846_v11  ;;  %v847_v24 = vld [vmem:[%s1213_s1 + $0x18] sm:$0xff] (!%p189_p2)   ;;  %v849_v51 = vld [vmem:[%s1213_s1 + $0x28] sm:$0xff] (!%p189_p2)  }
   0x7   : > { %v311_v2 = vshrl.u32 (!%p189_p2), %v310_v1, 7  ;;  %v768_v7 = vunpack.c.l.bf16 (!%p189_p2), %v767_v3  ;;  %v769_v9 = vunpack.c.h.bf16 (!%p189_p2), %v767_v3  ;;  %v777_v23 = vunpack.c.h.bf16 (!%p189_p2), %v846_v11  ;;  %v848_v40 = vld [vmem:[%s1213_s1 + $0x20] sm:$0xff] (!%p189_p2)   ;;  %v850_v61 = vld [vmem:[%s1213_s1 + $0x30] sm:$0xff] (!%p189_p2)  }
   0x8   : > { %v780_v32 = vunpack.c.l.bf16 (!%p189_p2), %v847_v24  ;;  %v781_v36 = vunpack.c.h.bf16 (!%p189_p2), %v847_v24  ;;  %v784_v44 = vunpack.c.l.bf16 (!%p189_p2), %v848_v40  ;;  %v785_v45 = vunpack.c.h.bf16 (!%p189_p2), %v848_v40 }
   0x9   : > { %v312_v6 = vsub.s32 (!%p189_p2), 0, %v311_v2  ;;  %v788_v54 = vunpack.c.l.bf16 (!%p189_p2), %v849_v51  ;;  %v789_v55 = vunpack.c.h.bf16 (!%p189_p2), %v849_v51  ;;  %v792_v0 = vunpack.c.l.bf16 (!%p189_p2), %v850_v61 }
   0xa   : > { %v793_v1 = vunpack.c.h.bf16 (!%p189_p2), %v850_v61 }
   0xb   : > { %v968_v13 = vrot.slane (!%p189_p2), %v309_v4, %v312_v6 }
   0xd   : > { %s1219_s20 = smov (!%p217_p3, %s694_s20), 31 }
   0xe   : > { %s695_s27 = sshll.u32 %s1219_s20, 2 }
   0xf   : > { %s962_s30 = scalar_lea.vmem %s1212_s0, %s695_s27  ;;  %s1160_s26 = scalar_lea.vmem %s1217_s5, %s695_s27 }
  0x10   : > { %v735_v12 = vld [vmem:[%s962_s30] sm:$0xff]   ;;  %v838_v14 = vld [vmem:[%s962_s30 + $0x8] sm:$0xff]   ;;  %v839_v15 = vld [vmem:[%s962_s30 + $0x10] sm:$0xff]  }
  0x11   : > { %v736_v16 = vunpack.c.l.bf16 %v735_v12  ;;  %v740_v17 = vunpack.c.l.bf16 %v838_v14  ;;  %v737_v18 = vunpack.c.h.bf16 %v735_v12  ;;  %v741_v19 = vunpack.c.h.bf16 %v838_v14  ;;  %v840_v29 = vld [vmem:[%s962_s30 + $0x18] sm:$0xff]   ;;  %v841_v41 = vld [vmem:[%s962_s30 + $0x20] sm:$0xff]   ;;  %v842_v50 = vld [vmem:[%s962_s30 + $0x28] sm:$0xff]  }
  0x12   : > { %v744_v20 = vunpack.c.l.bf16 %v839_v15  ;;  %v745_v22 = vunpack.c.h.bf16 %v839_v15  ;;  %v748_v34 = vunpack.c.l.bf16 %v840_v29  ;;  %v749_v35 = vunpack.c.h.bf16 %v840_v29  ;;  %v843_v60 = vld [vmem:[%s962_s30 + $0x30] sm:$0xff]   ;;  %v844_v6 = vld [vmem:[%s962_s30 + $0x38] sm:$0xff]  }
  0x13   : > { %v292_v25 = vadd.f32 %v768_v7, %v736_v16  ;;  %v294_v26 = vadd.f32 %v772_v8, %v740_v17  ;;  %v293_v27 = vadd.f32 %v769_v9, %v737_v18  ;;  %v295_v28 = vadd.f32 %v773_v10, %v741_v19  ;;  %v851_v7 = vld [vmem:[%s1213_s1 + $0x38] sm:$0xff]  }
  0x14   : > { %v296_v33 = vadd.f32 %v776_v21, %v744_v20  ;;  %v297_v39 = vadd.f32 %v777_v23, %v745_v22  ;;  %v298_v42 = vadd.f32 %v780_v32, %v748_v34  ;;  %v299_v43 = vadd.f32 %v781_v36, %v749_v35 }
  0x15   : > { %v977_v30 = vadd.f32 %v968_v13, %v292_v25  ;;  %v980_v31 = vadd.f32 %v968_v13, %v294_v26  ;;  %v985_v37 = vadd.f32 %v968_v13, %v293_v27  ;;  %v988_v38 = vadd.f32 %v968_v13, %v295_v28 }
  0x16   : > { %v997_v46 = vadd.f32 %v968_v13, %v296_v33  ;;  %v1000_v47 = vadd.f32 %v968_v13, %v297_v39  ;;  %v752_v48 = vunpack.c.l.bf16 %v841_v41  ;;  %v753_v49 = vunpack.c.h.bf16 %v841_v41 }
  0x17   : > { %330 = vadd.xlane.f32.xlu0 %v977_v30  ;;  %334 = vadd.xlane.f32.xlu1 %v980_v31  ;;  %v1007_v52 = vadd.f32 %v968_v13, %v298_v42  ;;  %v756_v53 = vunpack.c.l.bf16 %v842_v50  ;;  %v1012_v56 = vadd.f32 %v968_v13, %v299_v43  ;;  %v757_v59 = vunpack.c.h.bf16 %v842_v50 }
  0x18   : > { %v300_v57 = vadd.f32 %v784_v44, %v752_v48  ;;  %v301_v58 = vadd.f32 %v785_v45, %v753_v49  ;;  %v760_v63 = vunpack.c.l.bf16 %v843_v60  ;;  %v761_v5 = vunpack.c.h.bf16 %v843_v60 }
  0x19   : > { %v302_v62 = vadd.f32 %v788_v54, %v756_v53  ;;  %v303_v4 = vadd.f32 %v789_v55, %v757_v59  ;;  %v764_v9 = vunpack.c.l.bf16 %v844_v6  ;;  %v796_v10 = vunpack.c.l.bf16 %v851_v7 }
  0x1a   : > { %v1021_v2 = vadd.f32 %v968_v13, %v300_v57  ;;  %v1024_v3 = vadd.f32 %v968_v13, %v301_v58  ;;  %v304_v8 = vadd.f32 %v792_v0, %v760_v63  ;;  %v797_v11 = vunpack.c.h.bf16 %v851_v7 }
  0x1b   : > { %332 = vadd.xlane.f32.xlu0 %v985_v37  ;;  %336 = vadd.xlane.f32.xlu1 %v988_v38  ;;  %v1033_v12 = vadd.f32 %v968_v13, %v302_v62  ;;  %v1036_v14 = vadd.f32 %v968_v13, %v303_v4  ;;  %v305_v15 = vadd.f32 %v793_v1, %v761_v5  ;;  %v765_v16 = vunpack.c.h.bf16 %v844_v6 }
  0x1c   : > { %v306_v17 = vadd.f32 %v796_v10, %v764_v9  ;;  %v1041_v18 = vadd.f32 %v968_v13, %v304_v8 }
  0x1d   : > { %v1044_v19 = vadd.f32 %v968_v13, %v305_v15  ;;  %v307_v20 = vadd.f32 %v797_v11, %v765_v16 }
  0x1e   : > { %v1049_v21 = vadd.f32 %v968_v13, %v306_v17 }
  0x1f   : > { %338 = vadd.xlane.f32.xlu0 %v997_v46  ;;  %340 = vadd.xlane.f32.xlu1 %v1000_v47  ;;  %v1052_v22 = vadd.f32 %v968_v13, %v307_v20 }
  0x23   : > { %342 = vadd.xlane.f32.xlu0 %v1007_v52  ;;  %344 = vadd.xlane.f32.xlu1 %v1012_v56 }
  0x27   : > { %346 = vadd.xlane.f32.xlu0 %v1021_v2  ;;  %348 = vadd.xlane.f32.xlu1 %v1024_v3 }
  0x2b   : > { %350 = vadd.xlane.f32.xlu0 %v1033_v12  ;;  %352 = vadd.xlane.f32.xlu1 %v1036_v14 }
  0x2f   : > { %354 = vadd.xlane.f32.xlu0 %v1041_v18  ;;  %356 = vadd.xlane.f32.xlu1 %v1044_v19 }
  0x33   : > { %358 = vadd.xlane.f32.xlu0 %v1049_v21  ;;  %360 = vadd.xlane.f32.xlu1 %v1052_v22 }
  0xa4   : > { %v331_v23 = vpop.xlane.xlu0 %330  ;;  %v335_v24 = vpop.xlane.xlu1 %334 }
  0xa5   : > { %v363_v25 = vmul.f32 0.0078125, %v331_v23  ;;  %v365_v26 = vmul.f32 0.0078125, %v335_v24 }
  0xa7   : > { %v1057_v27 = vsub.f32 %v977_v30, %v363_v25  ;;  %v1060_v28 = vsub.f32 %v980_v31, %v365_v26 }
  0xa8   : > { %v333_v29 = vpop.xlane.xlu0 %332  ;;  %v337_v32 = vpop.xlane.xlu1 %336 }
  0xa9   : > { %v364_v33 = vmul.f32 0.0078125, %v333_v29  ;;  %v395_v13 = vmul.f32 %v1057_v27, %v1057_v27  ;;  %v366_v34 = vmul.f32 0.0078125, %v337_v32  ;;  %v397_v30 = vmul.f32 %v1060_v28, %v1060_v28 }
  0xab   : > { %v1065_v35 = vsub.f32 %v985_v37, %v364_v33  ;;  %411 = vadd.xlane.f32.xlu0 %v395_v13  ;;  %v1068_v36 = vsub.f32 %v988_v38, %v366_v34 }
  0xac   : > { %v339_v39 = vpop.xlane.xlu0 %338  ;;  %v341_v31 = vpop.xlane.xlu1 %340 }
  0xad   : > { %v367_v40 = vmul.f32 0.0078125, %v339_v39  ;;  %v396_v41 = vmul.f32 %v1065_v35, %v1065_v35  ;;  %v368_v42 = vmul.f32 0.0078125, %v341_v31  ;;  %v398_v38 = vmul.f32 %v1068_v36, %v1068_v36 }
  0xaf   : > { %v1075_v43 = vsub.f32 %v997_v46, %v367_v40  ;;  %415 = vadd.xlane.f32.xlu0 %v397_v30  ;;  %413 = vadd.xlane.f32.xlu1 %v396_v41  ;;  %v1078_v37 = vsub.f32 %v1000_v47, %v368_v42 }
  0xb0   : > { %v343_v44 = vpop.xlane.xlu0 %342  ;;  %v345_v45 = vpop.xlane.xlu1 %344 }
  0xb1   : > { %v369_v48 = vmul.f32 0.0078125, %v343_v44  ;;  %v399_v49 = vmul.f32 %v1075_v43, %v1075_v43  ;;  %v370_v50 = vmul.f32 0.0078125, %v345_v45  ;;  %v400_v47 = vmul.f32 %v1078_v37, %v1078_v37 }
  0xb3   : > { %v1085_v51 = vsub.f32 %v1007_v52, %v369_v48  ;;  %417 = vadd.xlane.f32.xlu1 %v398_v38  ;;  %419 = vadd.xlane.f32.xlu0 %v399_v49  ;;  %v1088_v46 = vsub.f32 %v1012_v56, %v370_v50 }
  0xb4   : > { %v347_v53 = vpop.xlane.xlu0 %346  ;;  %v349_v54 = vpop.xlane.xlu1 %348 }
  0xb5   : > { %v371_v55 = vmul.f32 0.0078125, %v347_v53  ;;  %v401_v57 = vmul.f32 %v1085_v51, %v1085_v51  ;;  %v372_v58 = vmul.f32 0.0078125, %v349_v54  ;;  %v402_v56 = vmul.f32 %v1088_v46, %v1088_v46 }
  0xb7   : > { %v1095_v59 = vsub.f32 %v1021_v2, %v371_v55  ;;  %421 = vadd.xlane.f32.xlu1 %v400_v47  ;;  %423 = vadd.xlane.f32.xlu0 %v401_v57  ;;  %v1098_v52 = vsub.f32 %v1024_v3, %v372_v58  ;;  %v1140_v57 = vld [vmem:[%s1215_s3] ss:$0 sm:$0xff] }
  0xb8   : > { %v351_v60 = vpop.xlane.xlu0 %350  ;;  %v353_v61 = vpop.xlane.xlu1 %352 }
  0xb9   : > { %v373_v62 = vmul.f32 0.0078125, %v351_v60  ;;  %v403_v63 = vmul.f32 %v1095_v59, %v1095_v59  ;;  %v374_v0 = vmul.f32 0.0078125, %v353_v61  ;;  %v404_v3 = vmul.f32 %v1098_v52, %v1098_v52 }
  0xbb   : > { %v1105_v1 = vsub.f32 %v1033_v12, %v373_v62  ;;  %425 = vadd.xlane.f32.xlu1 %v402_v56  ;;  %427 = vadd.xlane.f32.xlu0 %v403_v63  ;;  %v1108_v2 = vsub.f32 %v1036_v14, %v374_v0 }
  0xbc   : > { %v355_v4 = vpop.xlane.xlu0 %354  ;;  %v357_v5 = vpop.xlane.xlu1 %356 }
  0xbd   : > { %v375_v6 = vmul.f32 0.0078125, %v355_v4  ;;  %v405_v7 = vmul.f32 %v1105_v1, %v1105_v1  ;;  %v376_v8 = vmul.f32 0.0078125, %v357_v5  ;;  %v406_v11 = vmul.f32 %v1108_v2, %v1108_v2  ;;  %v1147_v5 = vld [vmem:[%s1216_s4] ss:$0 sm:$0xff] }
  0xbf   : > { %v1115_v9 = vsub.f32 %v1041_v18, %v375_v6  ;;  %429 = vadd.xlane.f32.xlu1 %v404_v3  ;;  %431 = vadd.xlane.f32.xlu0 %v405_v7  ;;  %v1118_v10 = vsub.f32 %v1044_v19, %v376_v8 }
  0xc0   : > { %v359_v12 = vpop.xlane.xlu0 %358  ;;  %v361_v14 = vpop.xlane.xlu1 %360 }
  0xc1   : > { %v377_v15 = vmul.f32 0.0078125, %v359_v12  ;;  %v407_v16 = vmul.f32 %v1115_v9, %v1115_v9  ;;  %v378_v17 = vmul.f32 0.0078125, %v361_v14  ;;  %v408_v19 = vmul.f32 %v1118_v10, %v1118_v10 }
  0xc3   : > { %v1125_v20 = vsub.f32 %v1049_v21, %v377_v15  ;;  %433 = vadd.xlane.f32.xlu1 %v406_v11  ;;  %435 = vadd.xlane.f32.xlu0 %v407_v16  ;;  %v1128_v18 = vsub.f32 %v1052_v22, %v378_v17 }
  0xc5   : > { %v409_v23 = vmul.f32 %v1125_v20, %v1125_v20  ;;  %v410_v24 = vmul.f32 %v1128_v18, %v1128_v18 }
  0xc7   : > { %437 = vadd.xlane.f32.xlu1 %v408_v19  ;;  %439 = vadd.xlane.f32.xlu0 %v409_v23 }
  0xcb   : > { %441 = vadd.xlane.f32.xlu1 %v410_v24 }
 0x138   : > { %v412_v25 = vpop.xlane.xlu0 %411 }
 0x139   : > { %v443_v21 = vmul.f32 0.0078125, %v412_v25 }
 0x13b   : > { %v459_v26 = vadd.f32 1e-12, %v443_v21 }
 0x13c   : > { %v414_v29 = vpop.xlane.xlu1 %413  ;;  %v416_v32 = vpop.xlane.xlu0 %415 }
 0x13d   : > { %867 = vrsqrt.f32 %v459_v26  ;;  %v444_v22 = vmul.f32 0.0078125, %v414_v29  ;;  %v445_v33 = vmul.f32 0.0078125, %v416_v32 }
 0x13f   : > { %v460_v13 = vadd.f32 1e-12, %v444_v22  ;;  %v461_v34 = vadd.f32 1e-12, %v445_v33 }
 0x140   : > { %v418_v30 = vpop.xlane.xlu1 %417  ;;  %v420_v39 = vpop.xlane.xlu0 %419 }
 0x141   : > { %869 = vrsqrt.f32 %v460_v13  ;;  %v446_v31 = vmul.f32 0.0078125, %v418_v30  ;;  %v447_v40 = vmul.f32 0.0078125, %v420_v39 }
 0x142   : > { %871 = vrsqrt.f32 %v461_v34 }
 0x143   : > { %v462_v41 = vadd.f32 1e-12, %v446_v31  ;;  %v463_v42 = vadd.f32 1e-12, %v447_v40 }
 0x144   : > { %v422_v38 = vpop.xlane.xlu1 %421  ;;  %v424_v44 = vpop.xlane.xlu0 %423 }
 0x145   : > { %873 = vrsqrt.f32 %v462_v41  ;;  %v448_v45 = vmul.f32 0.0078125, %v422_v38  ;;  %v449_v48 = vmul.f32 0.0078125, %v424_v44 }
 0x146   : > { %875 = vrsqrt.f32 %v463_v42 }
 0x147   : > { %v868_v49 = vpop.eup %867  ;;  %v464_v50 = vadd.f32 1e-12, %v448_v45  ;;  %v465_v47 = vadd.f32 1e-12, %v449_v48 }
 0x148   : > { %v491_v53 = vmul.f32 %v868_v49, %v1057_v27  ;;  %v426_v54 = vpop.xlane.xlu1 %425  ;;  %v428_v55 = vpop.xlane.xlu0 %427 }
 0x149   : > { %877 = vrsqrt.f32 %v464_v50  ;;  %v450_v58 = vmul.f32 0.0078125, %v426_v54  ;;  %v451_v56 = vmul.f32 0.0078125, %v428_v55 }
 0x14a   : > { %879 = vrsqrt.f32 %v465_v47  ;;  %v514_v0 = vmul.f32 %v1140_v57, %v491_v53 }
 0x14b   : > { %v870_v60 = vpop.eup %869  ;;  %v466_v61 = vadd.f32 1e-12, %v450_v58  ;;  %v467_v62 = vadd.f32 1e-12, %v451_v56 }
 0x14c   : > { %v872_v63 = vpop.eup %871  ;;  %v492_v3 = vmul.f32 %v870_v60, %v1065_v35  ;;  %v430_v27 = vpop.xlane.xlu1 %429  ;;  %v537_v16 = vadd.f32 %v1147_v5, %v514_v0 }
 0x14d   : > { %v432_v4 = vpop.xlane.xlu0 %431  ;;  %v493_v6 = vmul.f32 %v872_v63, %v1060_v28  ;;  %881 = vrsqrt.f32 %v466_v61  ;;  %v452_v7 = vmul.f32 0.0078125, %v430_v27 }
 0x14e   : > { %v453_v8 = vmul.f32 0.0078125, %v432_v4  ;;  %v515_v11 = vmul.f32 %v1140_v57, %v492_v3  ;;  %883 = vrsqrt.f32 %v467_v62 }
 0x14f   : > { %v874_v12 = vpop.eup %873  ;;  %v468_v14 = vadd.f32 1e-12, %v452_v7  ;;  %v516_v19 = vmul.f32 %v1140_v57, %v493_v6 }
 0x150   : > { %v469_v15 = vadd.f32 1e-12, %v453_v8  ;;  %v876_v35 = vpop.eup %875  ;;  %v538_v17 = vadd.f32 %v1147_v5, %v515_v11  ;;  %v494_v23 = vmul.f32 %v874_v12, %v1068_v36  ;;  %v434_v28 = vpop.xlane.xlu1 %433 }
 0x151   : > { %v436_v24 = vpop.xlane.xlu0 %435  ;;  %v495_v25 = vmul.f32 %v876_v35, %v1075_v43  ;;  %885 = vrsqrt.f32 %v468_v14  ;;  %v454_v21 = vmul.f32 0.0078125, %v434_v28  ;;  %v539_v34 = vadd.f32 %v1147_v5, %v516_v19 }
 0x152   : > { %v801_v26 = vpack.c.bf16 %v538_v17, %v537_v16  ;;  %v517_v29 = vmul.f32 %v1140_v57, %v494_v23  ;;  %887 = vrsqrt.f32 %v469_v15  ;;  %v455_v32 = vmul.f32 0.0078125, %v436_v24 }
 0x153   : > { %v878_v22 = vpop.eup %877  ;;  %v518_v36 = vmul.f32 %v1140_v57, %v495_v25  ;;  %v470_v33 = vadd.f32 1e-12, %v454_v21 }
 0x154   : > { %v880_v13 = vpop.eup %879  ;;  %802 = vst [vmem:[%s1160_s26] sm:$0xff] %v801_v26   ;;  %v540_v30 = vadd.f32 %v1147_v5, %v517_v29  ;;  %v496_v43 = vmul.f32 %v878_v22, %v1078_v37  ;;  %v471_v39 = vadd.f32 1e-12, %v455_v32  ;;  %v438_v31 = vpop.xlane.xlu1 %437 }
 0x155   : > { %v440_v40 = vpop.xlane.xlu0 %439  ;;  %v497_v41 = vmul.f32 %v880_v13, %v1085_v51  ;;  %889 = vrsqrt.f32 %v470_v33  ;;  %v456_v42 = vmul.f32 0.0078125, %v438_v31  ;;  %v541_v49 = vadd.f32 %v1147_v5, %v518_v36 }
 0x156   : > { %v806_v38 = vpack.c.bf16 %v540_v30, %v539_v34  ;;  %v519_v44 = vmul.f32 %v1140_v57, %v496_v43  ;;  %891 = vrsqrt.f32 %v471_v39  ;;  %v457_v45 = vmul.f32 0.0078125, %v440_v40 }
 0x157   : > { %v882_v48 = vpop.eup %881  ;;  %v472_v50 = vadd.f32 1e-12, %v456_v42  ;;  %v520_v53 = vmul.f32 %v1140_v57, %v497_v41 }
 0x158   : > { %v884_v47 = vpop.eup %883  ;;  %852 = vst [vmem:[%s1160_s26 + $0x8] sm:$0xff] %v806_v38   ;;  %v542_v37 = vadd.f32 %v1147_v5, %v519_v44  ;;  %v498_v51 = vmul.f32 %v882_v48, %v1088_v46  ;;  %v473_v54 = vadd.f32 1e-12, %v457_v45  ;;  %v442_v55 = vpop.xlane.xlu1 %441 }
 0x159   : > { %v499_v58 = vmul.f32 %v884_v47, %v1095_v59  ;;  %893 = vrsqrt.f32 %v472_v50  ;;  %v458_v56 = vmul.f32 0.0078125, %v442_v55  ;;  %v543_v3 = vadd.f32 %v1147_v5, %v520_v53 }
 0x15a   : > { %v811_v60 = vpack.c.bf16 %v542_v37, %v541_v49  ;;  %v521_v61 = vmul.f32 %v1140_v57, %v498_v51  ;;  %895 = vrsqrt.f32 %v473_v54 }
 0x15b   : > { %v886_v62 = vpop.eup %885  ;;  %v474_v63 = vadd.f32 1e-12, %v458_v56  ;;  %v522_v46 = vmul.f32 %v1140_v57, %v499_v58 }
 0x15c   : > { %v888_v0 = vpop.eup %887  ;;  %853 = vst [vmem:[%s1160_s26 + $0x10] sm:$0xff] %v811_v60   ;;  %v544_v27 = vadd.f32 %v1147_v5, %v521_v61  ;;  %v500_v4 = vmul.f32 %v886_v62, %v1098_v52 }
 0x15d   : > { %v501_v59 = vmul.f32 %v888_v0, %v1105_v1  ;;  %897 = vrsqrt.f32 %v474_v63  ;;  %v545_v12 = vadd.f32 %v1147_v5, %v522_v46 }
 0x15e   : > { %v816_v6 = vpack.c.bf16 %v544_v27, %v543_v3  ;;  %v523_v7 = vmul.f32 %v1140_v57, %v500_v4 }
 0x15f   : > { %v890_v8 = vpop.eup %889  ;;  %v524_v15 = vmul.f32 %v1140_v57, %v501_v59 }
 0x160   : > { %v892_v11 = vpop.eup %891  ;;  %854 = vst [vmem:[%s1160_s26 + $0x18] sm:$0xff] %v816_v6   ;;  %v546_v14 = vadd.f32 %v1147_v5, %v523_v7  ;;  %v502_v35 = vmul.f32 %v890_v8, %v1108_v2 }
 0x161   : > { %v503_v52 = vmul.f32 %v892_v11, %v1115_v9  ;;  %v547_v23 = vadd.f32 %v1147_v5, %v524_v15 }
 0x162   : > { %v821_v1 = vpack.c.bf16 %v546_v14, %v545_v12  ;;  %v525_v16 = vmul.f32 %v1140_v57, %v502_v35 }
 0x163   : > { %v894_v17 = vpop.eup %893  ;;  %v526_v24 = vmul.f32 %v1140_v57, %v503_v52 }
 0x164   : > { %v896_v19 = vpop.eup %895  ;;  %855 = vst [vmem:[%s1160_s26 + $0x20] sm:$0xff] %v821_v1   ;;  %v548_v28 = vadd.f32 %v1147_v5, %v525_v16  ;;  %v504_v25 = vmul.f32 %v894_v17, %v1118_v10 }
 0x165   : > { %v505_v2 = vmul.f32 %v896_v19, %v1125_v20  ;;  %v549_v29 = vadd.f32 %v1147_v5, %v526_v24 }
 0x166   : > { %v826_v21 = vpack.c.bf16 %v548_v28, %v547_v23  ;;  %v527_v9 = vmul.f32 %v1140_v57, %v504_v25 }
 0x167   : > { %v898_v26 = vpop.eup %897  ;;  %v528_v22 = vmul.f32 %v1140_v57, %v505_v2 }
 0x168   : > { %856 = vst [vmem:[%s1160_s26 + $0x28] sm:$0xff] %v826_v21   ;;  %v550_v32 = vadd.f32 %v1147_v5, %v527_v9  ;;  %v506_v36 = vmul.f32 %v898_v26, %v1128_v18 }
 0x169   : > { %v551_v10 = vadd.f32 %v1147_v5, %v528_v22 }
 0x16a   : > { %v831_v33 = vpack.c.bf16 %v550_v32, %v549_v29  ;;  %v529_v13 = vmul.f32 %v1140_v57, %v506_v36 }
 0x16c   : > { %857 = vst [vmem:[%s1160_s26 + $0x30] sm:$0xff] %v831_v33   ;;  %v552_v20 = vadd.f32 %v1147_v5, %v529_v13 }
 0x16e   : > { %v836_v34 = vpack.c.bf16 %v552_v20, %v551_v10 }
 0x170   : > { %858 = vst [vmem:[%s1160_s26 + $0x38] sm:$0xff] %v836_v34  }
 0x171 PF: > { %s15_s18 = sadd.s32 1, %s905_s18  }
 0x172   : > { %p12_p4 = scmp.ge.s32.totalorder %s15_s18, 4  }
 0x174   :  { %14 = sbr.rel (!%p12_p4) target bundleno = 1 (0x1), region = 70 }

// kernel: text_classifier_forward.13
= control target key start
LH: loop header
LB: loop body
LE: loop exit
PB: predicated region body
PF: predicated region fallthrough
CT: control target
= control target key end

     0   :  { %v1367_v1 = vmov 0   ;;  %v81_v41 = vlaneseq  ;;  %s1839_s1 = inlined_call_operand.vmem [shape: bf16[128,384], index: 1, kind: input, shape index: {}]   ;;  %s1840_s0 = inlined_call_operand.vmem [shape: bf16[256,128], index: 0, kind: input, shape index: {}]   ;;  %s1841_s2 = inlined_call_operand.vmem [shape: f32[1,384], index: 2, kind: input, shape index: {}]   ;;  %s1842_s3 = inlined_call_operand.vmem [shape: bf16[256,384], index: 3, kind: output, shape index: {}]  }
   0x1   :  { %v1319_v0 = vld [vmem:[%s1839_s1 + $0x4] ss:$12 sps:$4 sm:$0xff]   ;;  %352 = vmatprep.mubr.bf16.mxu0 %v1367_v1  ;;  %472 = vmatprep.mubr.bf16.mxu1 %v1367_v1  ;;  %v1321_v2 = vld [vmem:[%s1839_s1] ss:$12 sps:$4 sm:$0xff]   ;;  %v1322_v3 = vld [vmem:[%s1839_s1 + $0x1c] ss:$12 sps:$4 sm:$0xff]  }
   0x2   :  { %320 = vmatprep.subr.bf16.mxu0 %v1319_v0  ;;  %1302 = vmatprep.subr.bf16.mxu1 %v1319_v0  ;;  %v1324_v4 = vld [vmem:[%s1839_s1 + $0x18] ss:$12 sps:$4 sm:$0xff]   ;;  %v1325_v5 = vld [vmem:[%s1839_s1 + $0x34] ss:$12 sps:$4 sm:$0xff]   ;;  %v1327_v6 = vld [vmem:[%s1839_s1 + $0x30] ss:$12 sps:$4 sm:$0xff]  }
   0x3   :  { %321 = vmatpush1.bf16.msra.mxu0 %v1321_v2  ;;  %1310 = vmatpush1.bf16.msra.mxu1 %v1321_v2  ;;  %v1328_v7 = vld [vmem:[%s1839_s1 + $0x4c] ss:$12 sps:$4 sm:$0xff]   ;;  %v1330_v8 = vld [vmem:[%s1839_s1 + $0x48] ss:$12 sps:$4 sm:$0xff]   ;;  %v1331_v9 = vld [vmem:[%s1839_s1 + $0x64] ss:$12 sps:$4 sm:$0xff]  }
   0x4   :  { %322 = vmatprep.subr.bf16.mxu0 %v1322_v3  ;;  %1303 = vmatprep.subr.bf16.mxu1 %v1322_v3  ;;  %v1333_v10 = vld [vmem:[%s1839_s1 + $0x60] ss:$12 sps:$4 sm:$0xff]   ;;  %v1334_v11 = vld [vmem:[%s1839_s1 + $0x7c] ss:$12 sps:$4 sm:$0xff]   ;;  %v1336_v12 = vld [vmem:[%s1839_s1 + $0x78] ss:$12 sps:$4 sm:$0xff]  }
   0x5   :  { %v1337_v13 = vld [vmem:[%s1839_s1 + $0x94] ss:$12 sps:$4 sm:$0xff]   ;;  %v1339_v14 = vld [vmem:[%s1839_s1 + $0x90] ss:$12 sps:$4 sm:$0xff]   ;;  %v1340_v15 = vld [vmem:[%s1839_s1 + $0xac] ss:$12 sps:$4 sm:$0xff]  }
   0x6   :  { %v1342_v16 = vld [vmem:[%s1839_s1 + $0xa8] ss:$12 sps:$4 sm:$0xff]   ;;  %v1343_v18 = vld [vmem:[%s1840_s0] sm:$0xff]   ;;  %v1350_v24 = vld [vmem:[%s1839_s1 + $0x50] ss:$12 sps:$4 sm:$0xff]   ;;  %v1532_v42 = vshrl.u32 %v81_v41, 7 }
   0x7   :  { %323 = vmatpush1.bf16.msra.mxu0 %v1324_v4  ;;  %1311 = vmatpush1.bf16.msra.mxu1 %v1324_v4  ;;  %v1345_v17 = vld [vmem:[%s1839_s1 + $0x8] ss:$12 sps:$4 sm:$0xff]   ;;  %v1447_v19 = vld [vmem:[%s1840_s0 + $0x60] sm:$0xff]   ;;  %v1355_v30 = vld [vmem:[%s1840_s0 + $0x18] sm:$0xff]  }
   0x8   :  { %324 = vmatprep.subr.bf16.mxu0 %v1325_v5  ;;  %1304 = vmatprep.subr.bf16.mxu1 %v1325_v5  ;;  %v1346_v20 = vld [vmem:[%s1839_s1 + $0x20] ss:$12 sps:$4 sm:$0xff]   ;;  %v1349_v21 = vld [vmem:[%s1839_s1 + $0x38] ss:$12 sps:$4 sm:$0xff]   ;;  %v1353_v25 = vld [vmem:[%s1839_s1 + $0x68] ss:$12 sps:$4 sm:$0xff]  }
   0x9   :  { %v1347_v22 = vld [vmem:[%s1840_s0 + $0x8] sm:$0xff]   ;;  %v1351_v26 = vld [vmem:[%s1840_s0 + $0x10] sm:$0xff]   ;;  %v1357_v29 = vld [vmem:[%s1839_s1 + $0x98] ss:$12 sps:$4 sm:$0xff]   ;;  %v83_v43 = vsub.s32 0, %v1532_v42  ;;  %v87_v45 = vsub.s32 1, %v1532_v42 }
   0xa   :  { %v1464_v23 = vld [vmem:[%s1840_s0 + $0x68] sm:$0xff]   ;;  %v1352_v27 = vld [vmem:[%s1840_s0 + $0x70] sm:$0xff]   ;;  %v1356_v31 = vld [vmem:[%s1840_s0 + $0x78] sm:$0xff]  }
   0xb   :  { %325 = vmatpush1.bf16.msra.mxu0 %v1327_v6  ;;  %1312 = vmatpush1.bf16.msra.mxu1 %v1327_v6  ;;  %v1354_v28 = vld [vmem:[%s1839_s1 + $0x80] ss:$12 sps:$4 sm:$0xff]   ;;  %v1358_v32 = vld [vmem:[%s1839_s1 + $0xb0] ss:$12 sps:$4 sm:$0xff]  }
   0xc   :  { %326 = vmatprep.subr.bf16.mxu0 %v1328_v7  ;;  %1305 = vmatprep.subr.bf16.mxu1 %v1328_v7  ;;  %v1359_v33 = vld [vmem:[%s1840_s0 + $0x20] sm:$0xff]   ;;  %v1360_v34 = vld [vmem:[%s1840_s0 + $0x28] sm:$0xff]   ;;  %v1361_v35 = vld [vmem:[%s1840_s0 + $0x30] sm:$0xff]  }
   0xd   :  { %v1362_v36 = vld [vmem:[%s1840_s0 + $0x38] sm:$0xff]   ;;  %v1363_v37 = vld [vmem:[%s1840_s0 + $0x40] sm:$0xff]   ;;  %v1364_v38 = vld [vmem:[%s1840_s0 + $0x48] sm:$0xff]  }
   0xe   :  { %v1365_v39 = vld [vmem:[%s1840_s0 + $0x50] sm:$0xff]   ;;  %v1366_v40 = vld [vmem:[%s1840_s0 + $0x58] sm:$0xff]   ;;  %v1538_v44 = vld [vmem:[%s1841_s2] sm:$0x7] }
   0xf   :  { %327 = vmatpush1.bf16.msra.mxu0 %v1330_v8  ;;  %1313 = vmatpush1.bf16.msra.mxu1 %v1330_v8  ;;  %v1542_v46 = vrot.slane %v1538_v44, %v83_v43  ;;  %v1545_v47 = vrot.slane %v1538_v44, %v87_v45 }
  0x10   :  { %328 = vmatprep.subr.bf16.mxu0 %v1331_v9  ;;  %1306 = vmatprep.subr.bf16.mxu1 %v1331_v9 }
  0x13   :  { %329 = vmatpush1.bf16.msra.mxu0 %v1333_v10  ;;  %1314 = vmatpush1.bf16.msra.mxu1 %v1333_v10 }
  0x14   :  { %330 = vmatprep.subr.bf16.mxu0 %v1334_v11  ;;  %1307 = vmatprep.subr.bf16.mxu1 %v1334_v11 }
  0x17   :  { %331 = vmatpush1.bf16.msra.mxu0 %v1336_v12  ;;  %1315 = vmatpush1.bf16.msra.mxu1 %v1336_v12 }
  0x18   :  { %332 = vmatprep.subr.bf16.mxu0 %v1337_v13  ;;  %1308 = vmatprep.subr.bf16.mxu1 %v1337_v13 }
  0x1b   :  { %333 = vmatpush1.bf16.msra.mxu0 %v1339_v14  ;;  %1316 = vmatpush1.bf16.msra.mxu1 %v1339_v14 }
  0x1c   :  { %334 = vmatprep.subr.bf16.mxu0 %v1340_v15  ;;  %1309 = vmatprep.subr.bf16.mxu1 %v1340_v15 }
  0x1f   :  { %335 = vmatpush1.bf16.msra.mxu0 %v1342_v16  ;;  %1317 = vmatpush1.bf16.msra.mxu1 %v1342_v16 }
  0x20   :  { %1254 = vmatprep.subr.bf16.mxu1 %v1345_v17 }
  0x22   :  { %353 = vmatmul.mubr.bf16.vlgmr.msra.gmra.mrb[0].mxu0 %v1343_v18  ;;  %473 = vmatmul.mubr.bf16.vlgmr.msra.gmra.mrb[0].mxu1 %v1447_v19 }
  0x23   :  { %1255 = vmatpush3.bf16.msra.mxu1 %v1345_v17  ;;  %362 = vmatprep.mubr.bf16.mxu0 %v1367_v1 }
  0x24   :  { %1256 = vmatprep.subr.bf16.mxu1 %v1346_v20  ;;  %482 = vmatprep.mubr.bf16.mxu1 %v1367_v1 }
  0x27   :  { %1257 = vmatpush3.bf16.msra.mxu1 %v1346_v20 }
  0x28   :  { %1258 = vmatprep.subr.bf16.mxu1 %v1349_v21 }
  0x2a   :  { %363 = vmatmul.mubr.bf16.gmra.mrb[4].mxu0 %v1347_v22  ;;  %483 = vmatmul.mubr.bf16.gmra.mrb[4].mxu1 %v1464_v23 }
  0x2b   :  { %1259 = vmatpush3.bf16.msra.mxu1 %v1349_v21  ;;  %372 = vmatprep.mubr.bf16.mxu0 %v1367_v1 }
  0x2c   :  { %1260 = vmatprep.subr.bf16.mxu1 %v1350_v24  ;;  %492 = vmatprep.mubr.bf16.mxu1 %v1367_v1 }
  0x2f   :  { %1261 = vmatpush3.bf16.msra.mxu1 %v1350_v24 }
  0x30   :  { %1262 = vmatprep.subr.bf16.mxu1 %v1353_v25 }
  0x32   :  { %373 = vmatmul.mubr.bf16.gmra.mrb[8].mxu0 %v1351_v26  ;;  %493 = vmatmul.mubr.bf16.gmra.mrb[8].mxu1 %v1352_v27 }
  0x33   :  { %1263 = vmatpush3.bf16.msra.mxu1 %v1353_v25  ;;  %382 = vmatprep.mubr.bf16.mxu0 %v1367_v1 }
  0x34   :  { %1264 = vmatprep.subr.bf16.mxu1 %v1354_v28  ;;  %502 = vmatprep.mubr.bf16.mxu1 %v1367_v1 }
  0x37   :  { %1265 = vmatpush3.bf16.msra.mxu1 %v1354_v28 }
  0x38   :  { %1266 = vmatprep.subr.bf16.mxu1 %v1357_v29 }
  0x3a   :  { %383 = vmatmul.mubr.bf16.gmra.mrb[12].mxu0 %v1355_v30  ;;  %503 = vmatmul.mubr.bf16.gmra.mrb[12].mxu1 %v1356_v31 }
  0x3b   :  { %1267 = vmatpush3.bf16.msra.mxu1 %v1357_v29  ;;  %392 = vmatprep.mubr.bf16.mxu0 %v1367_v1 }
  0x3c   :  { %1268 = vmatprep.subr.bf16.mxu1 %v1358_v32  ;;  %1270 = vmatprep.mubr.bf16.mxu1 %v1343_v18 }
  0x3f   :  { %1269 = vmatpush3.bf16.msra.mxu1 %v1358_v32 }
  0x42   :  { %393 = vmatmul.mubr.bf16.gmra.mrb[16].mxu0 %v1359_v33  ;;  %1271 = vmatmul.mubr.bf16.vlgmr.msra.gmra.mrb[16].mxu1 %v1347_v22 }
  0x43   :  { %402 = vmatprep.mubr.bf16.mxu0 %v1367_v1  ;;  %1274 = vmatprep.mubr.bf16.mxu1 %v1351_v26 }
  0x4a   :  { %403 = vmatmul.mubr.bf16.gmra.mrb[20].mxu0 %v1360_v34  ;;  %1275 = vmatmul.mubr.bf16.gmra.mrb[20].mxu1 %v1355_v30 }
  0x4b   :  { %412 = vmatprep.mubr.bf16.mxu0 %v1367_v1  ;;  %1278 = vmatprep.mubr.bf16.mxu1 %v1359_v33 }
  0x52   :  { %413 = vmatmul.mubr.bf16.gmra.mrb[24].mxu0 %v1361_v35  ;;  %1279 = vmatmul.mubr.bf16.gmra.mrb[24].mxu1 %v1360_v34 }
  0x53   :  { %422 = vmatprep.mubr.bf16.mxu0 %v1367_v1  ;;  %1282 = vmatprep.mubr.bf16.mxu1 %v1361_v35 }
  0x5a   :  { %423 = vmatmul.mubr.bf16.gmra.mrb[28].mxu0 %v1362_v36  ;;  %1283 = vmatmul.mubr.bf16.gmra.mrb[28].mxu1 %v1362_v36 }
  0x5b   :  { %432 = vmatprep.mubr.bf16.mxu0 %v1367_v1  ;;  %1286 = vmatprep.mubr.bf16.mxu1 %v1363_v37 }
  0x62   :  { %433 = vmatmul.mubr.bf16.gmra.mrb[32].mxu0 %v1363_v37  ;;  %1287 = vmatmul.mubr.bf16.gmra.mrb[32].mxu1 %v1364_v38 }
  0x63   :  { %442 = vmatprep.mubr.bf16.mxu0 %v1367_v1  ;;  %1290 = vmatprep.mubr.bf16.mxu1 %v1365_v39 }
  0x6a   :  { %443 = vmatmul.mubr.bf16.gmra.mrb[36].mxu0 %v1364_v38  ;;  %1291 = vmatmul.mubr.bf16.gmra.mrb[36].mxu1 %v1366_v40 }
  0x6b   :  { %452 = vmatprep.mubr.bf16.mxu0 %v1367_v1  ;;  %1294 = vmatprep.mubr.bf16.mxu1 %v1447_v19 }
  0x72   :  { %453 = vmatmul.mubr.bf16.gmra.mrb[40].mxu0 %v1365_v39  ;;  %1295 = vmatmul.mubr.bf16.gmra.mrb[40].mxu1 %v1464_v23 }
  0x73   :  { %462 = vmatprep.mubr.bf16.mxu0 %v1367_v1  ;;  %1298 = vmatprep.mubr.bf16.mxu1 %v1352_v27 }
  0x7a   :  { %463 = vmatmul.mubr.bf16.gmra.mrb[44].mxu0 %v1366_v40  ;;  %1299 = vmatmul.mubr.bf16.gmra.mrb[44].mxu1 %v1356_v31 }
  0xf5   :  { %v354_v48 = vpop.f32.mrb[0].mxu0  ;;  %v474_v49 = vpop.f32.mrb[0].mxu1 }
  0xf6   :  { %v355_v50 = vadd.f32 %v354_v48, %v1542_v46  ;;  %v475_v51 = vadd.f32 %v474_v49, %v1542_v46  ;;  %v356_v52 = vpop.f32.mrb[1].mxu0  ;;  %v476_v53 = vpop.f32.mrb[1].mxu1 }
  0xf7   :  { %v357_v54 = vadd.f32 %v356_v52, %v1545_v47  ;;  %v477_v55 = vadd.f32 %v476_v53, %v1545_v47  ;;  %v358_v56 = vpop.f32.mrb[2].mxu0  ;;  %v478_v57 = vpop.f32.mrb[2].mxu1 }
  0xf8   :  { %v359_v58 = vadd.f32 %v358_v56, %v1542_v46  ;;  %v479_v59 = vadd.f32 %v478_v57, %v1542_v46  ;;  %v360_v60 = vpop.f32.mrb[3].mxu0  ;;  %v480_v61 = vpop.f32.mrb[3].mxu1 }
  0xf9   :  { %v1166_v62 = vpack.c.bf16 %v357_v54, %v355_v50  ;;  %v1214_v63 = vpack.c.bf16 %v477_v55, %v475_v51  ;;  %v361_v0 = vadd.f32 %v360_v60, %v1545_v47  ;;  %v481_v1 = vadd.f32 %v480_v61, %v1545_v47 }
  0xfa   :  { %v91_v54 = vsub.s32 2, %v1532_v42 }
  0xfb   :  { %994 = vst [vmem:[%s1842_s3] sm:$0xff] %v1166_v62  ;;  %1042 = vst [vmem:[%s1842_s3 + $0x120] sm:$0xff] %v1214_v63  ;;  %v1168_v2 = vpack.c.bf16 %v361_v0, %v359_v58  ;;  %v1216_v3 = vpack.c.bf16 %v481_v1, %v479_v59 }
  0xfc   :  { %v1617_v42 = vrot.slane %v1538_v44, %v91_v54 }
  0xfd   :  { %996 = vst [vmem:[%s1842_s3 + $0xc] sm:$0xff] %v1168_v2  ;;  %1044 = vst [vmem:[%s1842_s3 + $0x12c] sm:$0xff] %v1216_v3  ;;  %v364_v4 = vpop.f32.mrb[4].mxu0  ;;  %v484_v5 = vpop.f32.mrb[4].mxu1 }
  0xfe   :  { %v365_v6 = vadd.f32 %v364_v4, %v1542_v46  ;;  %v485_v7 = vadd.f32 %v484_v5, %v1542_v46  ;;  %v366_v8 = vpop.f32.mrb[5].mxu0  ;;  %v486_v9 = vpop.f32.mrb[5].mxu1 }
  0xff   :  { %v367_v10 = vadd.f32 %v366_v8, %v1545_v47  ;;  %v487_v11 = vadd.f32 %v486_v9, %v1545_v47  ;;  %v368_v12 = vpop.f32.mrb[6].mxu0  ;;  %v488_v13 = vpop.f32.mrb[6].mxu1 }
 0x100   :  { %v369_v14 = vadd.f32 %v368_v12, %v1542_v46  ;;  %v489_v15 = vadd.f32 %v488_v13, %v1542_v46  ;;  %v370_v16 = vpop.f32.mrb[7].mxu0  ;;  %v490_v17 = vpop.f32.mrb[7].mxu1 }
 0x101   :  { %v1170_v18 = vpack.c.bf16 %v367_v10, %v365_v6  ;;  %v1218_v19 = vpack.c.bf16 %v487_v11, %v485_v7  ;;  %v371_v20 = vadd.f32 %v370_v16, %v1545_v47  ;;  %v491_v21 = vadd.f32 %v490_v17, %v1545_v47 }
 0x103   :  { %998 = vst [vmem:[%s1842_s3 + $0x18] sm:$0xff] %v1170_v18  ;;  %1046 = vst [vmem:[%s1842_s3 + $0x138] sm:$0xff] %v1218_v19  ;;  %v1172_v22 = vpack.c.bf16 %v371_v20, %v369_v14  ;;  %v1220_v23 = vpack.c.bf16 %v491_v21, %v489_v15 }
 0x105   :  { %1000 = vst [vmem:[%s1842_s3 + $0x24] sm:$0xff] %v1172_v22  ;;  %1048 = vst [vmem:[%s1842_s3 + $0x144] sm:$0xff] %v1220_v23  ;;  %v374_v24 = vpop.f32.mrb[8].mxu0  ;;  %v494_v25 = vpop.f32.mrb[8].mxu1 }
 0x106   :  { %v375_v26 = vadd.f32 %v374_v24, %v1542_v46  ;;  %v495_v27 = vadd.f32 %v494_v25, %v1542_v46  ;;  %v376_v28 = vpop.f32.mrb[9].mxu0  ;;  %v496_v29 = vpop.f32.mrb[9].mxu1 }
 0x107   :  { %v377_v30 = vadd.f32 %v376_v28, %v1545_v47  ;;  %v497_v31 = vadd.f32 %v496_v29, %v1545_v47  ;;  %v378_v32 = vpop.f32.mrb[10].mxu0  ;;  %v498_v33 = vpop.f32.mrb[10].mxu1 }
 0x108   :  { %v379_v34 = vadd.f32 %v378_v32, %v1542_v46  ;;  %v499_v35 = vadd.f32 %v498_v33, %v1542_v46  ;;  %v380_v36 = vpop.f32.mrb[11].mxu0  ;;  %v500_v37 = vpop.f32.mrb[11].mxu1 }
 0x109   :  { %v1174_v38 = vpack.c.bf16 %v377_v30, %v375_v26  ;;  %v1222_v39 = vpack.c.bf16 %v497_v31, %v495_v27  ;;  %v381_v40 = vadd.f32 %v380_v36, %v1545_v47  ;;  %v501_v41 = vadd.f32 %v500_v37, %v1545_v47 }
 0x10b   :  { %1002 = vst [vmem:[%s1842_s3 + $0x30] sm:$0xff] %v1174_v38  ;;  %1050 = vst [vmem:[%s1842_s3 + $0x150] sm:$0xff] %v1222_v39  ;;  %v1176_v43 = vpack.c.bf16 %v381_v40, %v379_v34  ;;  %v1224_v45 = vpack.c.bf16 %v501_v41, %v499_v35 }
 0x10d   :  { %1004 = vst [vmem:[%s1842_s3 + $0x3c] sm:$0xff] %v1176_v43  ;;  %1052 = vst [vmem:[%s1842_s3 + $0x15c] sm:$0xff] %v1224_v45  ;;  %v384_v48 = vpop.f32.mrb[12].mxu0  ;;  %v504_v49 = vpop.f32.mrb[12].mxu1 }
 0x10e   :  { %v385_v50 = vadd.f32 %v384_v48, %v1542_v46  ;;  %v505_v51 = vadd.f32 %v504_v49, %v1542_v46  ;;  %v386_v52 = vpop.f32.mrb[13].mxu0  ;;  %v506_v53 = vpop.f32.mrb[13].mxu1 }
 0x10f   :  { %v387_v55 = vadd.f32 %v386_v52, %v1545_v47  ;;  %v507_v56 = vadd.f32 %v506_v53, %v1545_v47  ;;  %v388_v57 = vpop.f32.mrb[14].mxu0  ;;  %v508_v58 = vpop.f32.mrb[14].mxu1 }
 0x110   :  { %v389_v59 = vadd.f32 %v388_v57, %v1542_v46  ;;  %v509_v60 = vadd.f32 %v508_v58, %v1542_v46  ;;  %v390_v61 = vpop.f32.mrb[15].mxu0  ;;  %v510_v62 = vpop.f32.mrb[15].mxu1 }
 0x111   :  { %v1178_v63 = vpack.c.bf16 %v387_v55, %v385_v50  ;;  %v1226_v0 = vpack.c.bf16 %v507_v56, %v505_v51  ;;  %v391_v1 = vadd.f32 %v390_v61, %v1545_v47  ;;  %v511_v2 = vadd.f32 %v510_v62, %v1545_v47 }
 0x113   :  { %1006 = vst [vmem:[%s1842_s3 + $0x48] sm:$0xff] %v1178_v63  ;;  %1054 = vst [vmem:[%s1842_s3 + $0x168] sm:$0xff] %v1226_v0  ;;  %v1180_v3 = vpack.c.bf16 %v391_v1, %v389_v59  ;;  %v1228_v4 = vpack.c.bf16 %v511_v2, %v509_v60 }
 0x115   :  { %1008 = vst [vmem:[%s1842_s3 + $0x54] sm:$0xff] %v1180_v3  ;;  %1056 = vst [vmem:[%s1842_s3 + $0x174] sm:$0xff] %v1228_v4  ;;  %v394_v44 = vpop.f32.mrb[16].mxu0  ;;  %v1272_v5 = vpop.f32.mrb[16].mxu1 }
 0x116   :  { %v395_v6 = vadd.f32 %v394_v44, %v1542_v46  ;;  %v556_v7 = vadd.f32 %v1272_v5, %v1617_v42  ;;  %v396_v8 = vpop.f32.mrb[17].mxu0  ;;  %v547_v9 = vpop.f32.mrb[17].mxu1 }
 0x117   :  { %v397_v10 = vadd.f32 %v396_v8, %v1545_v47  ;;  %v548_v11 = vadd.f32 %v547_v9, %v1617_v42  ;;  %v398_v12 = vpop.f32.mrb[18].mxu0  ;;  %v1273_v13 = vpop.f32.mrb[18].mxu1 }
 0x118   :  { %v1171_v14 = vpack.c.bf16 %v556_v7, %v556_v7  ;;  %v399_v15 = vadd.f32 %v398_v12, %v1542_v46  ;;  %v559_v16 = vadd.f32 %v1273_v13, %v1617_v42  ;;  %v400_v17 = vpop.f32.mrb[19].mxu0  ;;  %v550_v18 = vpop.f32.mrb[19].mxu1 }
 0x119   :  { %v1182_v19 = vpack.c.bf16 %v397_v10, %v395_v6  ;;  %v1167_v20 = vpack.c.bf16 %v548_v11, %v548_v11  ;;  %v401_v21 = vadd.f32 %v400_v17, %v1545_v47  ;;  %v551_v22 = vadd.f32 %v550_v18, %v1617_v42 }
 0x11a   :  { %999 = vst [vmem:[%s1842_s3 + $0x20] sm:$0xf] %v1171_v14  ;;  %v1173_v23 = vpack.c.bf16 %v559_v16, %v559_v16 }
 0x11b   :  { %1010 = vst [vmem:[%s1842_s3 + $0x60] sm:$0xff] %v1182_v19  ;;  %995 = vst [vmem:[%s1842_s3 + $0x8] sm:$0xf] %v1167_v20  ;;  %v1184_v24 = vpack.c.bf16 %v401_v21, %v399_v15  ;;  %v1169_v25 = vpack.c.bf16 %v551_v22, %v551_v22 }
 0x11c   :  { %1001 = vst [vmem:[%s1842_s3 + $0x2c] sm:$0xf] %v1173_v23 }
 0x11d   :  { %1012 = vst [vmem:[%s1842_s3 + $0x6c] sm:$0xff] %v1184_v24  ;;  %997 = vst [vmem:[%s1842_s3 + $0x14] sm:$0xf] %v1169_v25  ;;  %v404_v26 = vpop.f32.mrb[20].mxu0  ;;  %v1276_v27 = vpop.f32.mrb[20].mxu1 }
 0x11e   :  { %v405_v28 = vadd.f32 %v404_v26, %v1542_v46  ;;  %v572_v29 = vadd.f32 %v1276_v27, %v1617_v42  ;;  %v406_v30 = vpop.f32.mrb[21].mxu0  ;;  %v563_v31 = vpop.f32.mrb[21].mxu1 }
 0x11f   :  { %v407_v32 = vadd.f32 %v406_v30, %v1545_v47  ;;  %v564_v33 = vadd.f32 %v563_v31, %v1617_v42  ;;  %v408_v34 = vpop.f32.mrb[22].mxu0  ;;  %v1277_v35 = vpop.f32.mrb[22].mxu1 }
 0x120   :  { %v1179_v36 = vpack.c.bf16 %v572_v29, %v572_v29  ;;  %v409_v37 = vadd.f32 %v408_v34, %v1542_v46  ;;  %v575_v38 = vadd.f32 %v1277_v35, %v1617_v42  ;;  %v410_v39 = vpop.f32.mrb[23].mxu0  ;;  %v566_v40 = vpop.f32.mrb[23].mxu1 }
 0x121   :  { %v1186_v41 = vpack.c.bf16 %v407_v32, %v405_v28  ;;  %v1175_v43 = vpack.c.bf16 %v564_v33, %v564_v33  ;;  %v411_v45 = vadd.f32 %v410_v39, %v1545_v47  ;;  %v567_v48 = vadd.f32 %v566_v40, %v1617_v42 }
 0x122   :  { %1007 = vst [vmem:[%s1842_s3 + $0x50] sm:$0xf] %v1179_v36  ;;  %v1181_v49 = vpack.c.bf16 %v575_v38, %v575_v38 }
 0x123   :  { %1014 = vst [vmem:[%s1842_s3 + $0x78] sm:$0xff] %v1186_v41  ;;  %1003 = vst [vmem:[%s1842_s3 + $0x38] sm:$0xf] %v1175_v43  ;;  %v1188_v50 = vpack.c.bf16 %v411_v45, %v409_v37  ;;  %v1177_v51 = vpack.c.bf16 %v567_v48, %v567_v48 }
 0x124   :  { %1009 = vst [vmem:[%s1842_s3 + $0x5c] sm:$0xf] %v1181_v49 }
 0x125   :  { %1016 = vst [vmem:[%s1842_s3 + $0x84] sm:$0xff] %v1188_v50  ;;  %1005 = vst [vmem:[%s1842_s3 + $0x44] sm:$0xf] %v1177_v51  ;;  %v414_v52 = vpop.f32.mrb[24].mxu0  ;;  %v1280_v53 = vpop.f32.mrb[24].mxu1 }
 0x126   :  { %v415_v54 = vadd.f32 %v414_v52, %v1542_v46  ;;  %v588_v55 = vadd.f32 %v1280_v53, %v1617_v42  ;;  %v416_v56 = vpop.f32.mrb[25].mxu0  ;;  %v579_v57 = vpop.f32.mrb[25].mxu1 }
 0x127   :  { %v417_v58 = vadd.f32 %v416_v56, %v1545_v47  ;;  %v580_v59 = vadd.f32 %v579_v57, %v1617_v42  ;;  %v418_v60 = vpop.f32.mrb[26].mxu0  ;;  %v1281_v61 = vpop.f32.mrb[26].mxu1 }
 0x128   :  { %v1187_v62 = vpack.c.bf16 %v588_v55, %v588_v55  ;;  %v419_v63 = vadd.f32 %v418_v60, %v1542_v46  ;;  %v591_v0 = vadd.f32 %v1281_v61, %v1617_v42  ;;  %v420_v1 = vpop.f32.mrb[27].mxu0  ;;  %v582_v2 = vpop.f32.mrb[27].mxu1 }
 0x129   :  { %v1190_v3 = vpack.c.bf16 %v417_v58, %v415_v54  ;;  %v1183_v4 = vpack.c.bf16 %v580_v59, %v580_v59  ;;  %v421_v44 = vadd.f32 %v420_v1, %v1545_v47  ;;  %v583_v5 = vadd.f32 %v582_v2, %v1617_v42 }
 0x12a   :  { %1015 = vst [vmem:[%s1842_s3 + $0x80] sm:$0xf] %v1187_v62  ;;  %v1189_v6 = vpack.c.bf16 %v591_v0, %v591_v0 }
 0x12b   :  { %1018 = vst [vmem:[%s1842_s3 + $0x90] sm:$0xff] %v1190_v3  ;;  %1011 = vst [vmem:[%s1842_s3 + $0x68] sm:$0xf] %v1183_v4  ;;  %v1192_v7 = vpack.c.bf16 %v421_v44, %v419_v63  ;;  %v1185_v8 = vpack.c.bf16 %v583_v5, %v583_v5 }
 0x12c   :  { %1017 = vst [vmem:[%s1842_s3 + $0x8c] sm:$0xf] %v1189_v6 }
 0x12d   :  { %1020 = vst [vmem:[%s1842_s3 + $0x9c] sm:$0xff] %v1192_v7  ;;  %1013 = vst [vmem:[%s1842_s3 + $0x74] sm:$0xf] %v1185_v8  ;;  %v424_v9 = vpop.f32.mrb[28].mxu0  ;;  %v1284_v10 = vpop.f32.mrb[28].mxu1 }
 0x12e   :  { %v425_v11 = vadd.f32 %v424_v9, %v1542_v46  ;;  %v604_v12 = vadd.f32 %v1284_v10, %v1617_v42  ;;  %v426_v13 = vpop.f32.mrb[29].mxu0  ;;  %v595_v14 = vpop.f32.mrb[29].mxu1 }
 0x12f   :  { %v427_v15 = vadd.f32 %v426_v13, %v1545_v47  ;;  %v596_v16 = vadd.f32 %v595_v14, %v1617_v42  ;;  %v428_v17 = vpop.f32.mrb[30].mxu0  ;;  %v1285_v18 = vpop.f32.mrb[30].mxu1 }
 0x130   :  { %v1195_v19 = vpack.c.bf16 %v604_v12, %v604_v12  ;;  %v429_v20 = vadd.f32 %v428_v17, %v1542_v46  ;;  %v607_v21 = vadd.f32 %v1285_v18, %v1617_v42  ;;  %v430_v22 = vpop.f32.mrb[31].mxu0  ;;  %v598_v23 = vpop.f32.mrb[31].mxu1 }
 0x131   :  { %v1194_v24 = vpack.c.bf16 %v427_v15, %v425_v11  ;;  %v1191_v25 = vpack.c.bf16 %v596_v16, %v596_v16  ;;  %v431_v26 = vadd.f32 %v430_v22, %v1545_v47  ;;  %v599_v27 = vadd.f32 %v598_v23, %v1617_v42 }
 0x132   :  { %1023 = vst [vmem:[%s1842_s3 + $0xb0] sm:$0xf] %v1195_v19  ;;  %v1197_v28 = vpack.c.bf16 %v607_v21, %v607_v21 }
 0x133   :  { %1022 = vst [vmem:[%s1842_s3 + $0xa8] sm:$0xff] %v1194_v24  ;;  %1019 = vst [vmem:[%s1842_s3 + $0x98] sm:$0xf] %v1191_v25  ;;  %v1196_v29 = vpack.c.bf16 %v431_v26, %v429_v20  ;;  %v1193_v30 = vpack.c.bf16 %v599_v27, %v599_v27 }
 0x134   :  { %1025 = vst [vmem:[%s1842_s3 + $0xbc] sm:$0xf] %v1197_v28 }
 0x135   :  { %1024 = vst [vmem:[%s1842_s3 + $0xb4] sm:$0xff] %v1196_v29  ;;  %1021 = vst [vmem:[%s1842_s3 + $0xa4] sm:$0xf] %v1193_v30  ;;  %v434_v31 = vpop.f32.mrb[32].mxu0  ;;  %v1288_v32 = vpop.f32.mrb[32].mxu1 }
 0x136   :  { %v435_v33 = vadd.f32 %v434_v31, %v1542_v46  ;;  %v620_v34 = vadd.f32 %v1288_v32, %v1617_v42  ;;  %v436_v35 = vpop.f32.mrb[33].mxu0  ;;  %v611_v36 = vpop.f32.mrb[33].mxu1 }
 0x137   :  { %v437_v37 = vadd.f32 %v436_v35, %v1545_v47  ;;  %v612_v38 = vadd.f32 %v611_v36, %v1617_v42  ;;  %v438_v39 = vpop.f32.mrb[34].mxu0  ;;  %v1289_v40 = vpop.f32.mrb[34].mxu1 }
 0x138   :  { %v1203_v41 = vpack.c.bf16 %v620_v34, %v620_v34  ;;  %v439_v43 = vadd.f32 %v438_v39, %v1542_v46  ;;  %v623_v45 = vadd.f32 %v1289_v40, %v1617_v42  ;;  %v440_v48 = vpop.f32.mrb[35].mxu0  ;;  %v614_v49 = vpop.f32.mrb[35].mxu1 }
 0x139   :  { %v1198_v50 = vpack.c.bf16 %v437_v37, %v435_v33  ;;  %v1199_v51 = vpack.c.bf16 %v612_v38, %v612_v38  ;;  %v441_v52 = vadd.f32 %v440_v48, %v1545_v47  ;;  %v615_v53 = vadd.f32 %v614_v49, %v1617_v42 }
 0x13a   :  { %1031 = vst [vmem:[%s1842_s3 + $0xe0] sm:$0xf] %v1203_v41  ;;  %v1205_v54 = vpack.c.bf16 %v623_v45, %v623_v45 }
 0x13b   :  { %1026 = vst [vmem:[%s1842_s3 + $0xc0] sm:$0xff] %v1198_v50  ;;  %1027 = vst [vmem:[%s1842_s3 + $0xc8] sm:$0xf] %v1199_v51  ;;  %v1200_v55 = vpack.c.bf16 %v441_v52, %v439_v43  ;;  %v1201_v56 = vpack.c.bf16 %v615_v53, %v615_v53 }
 0x13c   :  { %1033 = vst [vmem:[%s1842_s3 + $0xec] sm:$0xf] %v1205_v54 }
 0x13d   :  { %1028 = vst [vmem:[%s1842_s3 + $0xcc] sm:$0xff] %v1200_v55  ;;  %1029 = vst [vmem:[%s1842_s3 + $0xd4] sm:$0xf] %v1201_v56  ;;  %v444_v57 = vpop.f32.mrb[36].mxu0  ;;  %v1292_v58 = vpop.f32.mrb[36].mxu1 }
 0x13e   :  { %v445_v59 = vadd.f32 %v444_v57, %v1542_v46  ;;  %v636_v60 = vadd.f32 %v1292_v58, %v1617_v42  ;;  %v446_v61 = vpop.f32.mrb[37].mxu0  ;;  %v627_v62 = vpop.f32.mrb[37].mxu1 }
 0x13f   :  { %v447_v63 = vadd.f32 %v446_v61, %v1545_v47  ;;  %v628_v0 = vadd.f32 %v627_v62, %v1617_v42  ;;  %v448_v1 = vpop.f32.mrb[38].mxu0  ;;  %v1293_v2 = vpop.f32.mrb[38].mxu1 }
 0x140   :  { %v1211_v3 = vpack.c.bf16 %v636_v60, %v636_v60  ;;  %v449_v4 = vadd.f32 %v448_v1, %v1542_v46  ;;  %v639_v44 = vadd.f32 %v1293_v2, %v1617_v42  ;;  %v450_v5 = vpop.f32.mrb[39].mxu0  ;;  %v630_v6 = vpop.f32.mrb[39].mxu1 }
 0x141   :  { %v1202_v7 = vpack.c.bf16 %v447_v63, %v445_v59  ;;  %v1207_v8 = vpack.c.bf16 %v628_v0, %v628_v0  ;;  %v451_v9 = vadd.f32 %v450_v5, %v1545_v47  ;;  %v631_v10 = vadd.f32 %v630_v6, %v1617_v42 }
 0x142   :  { %1039 = vst [vmem:[%s1842_s3 + $0x110] sm:$0xf] %v1211_v3  ;;  %v1213_v11 = vpack.c.bf16 %v639_v44, %v639_v44 }
 0x143   :  { %1030 = vst [vmem:[%s1842_s3 + $0xd8] sm:$0xff] %v1202_v7  ;;  %1035 = vst [vmem:[%s1842_s3 + $0xf8] sm:$0xf] %v1207_v8  ;;  %v1204_v12 = vpack.c.bf16 %v451_v9, %v449_v4  ;;  %v1209_v13 = vpack.c.bf16 %v631_v10, %v631_v10 }
 0x144   :  { %1041 = vst [vmem:[%s1842_s3 + $0x11c] sm:$0xf] %v1213_v11 }
 0x145   :  { %1032 = vst [vmem:[%s1842_s3 + $0xe4] sm:$0xff] %v1204_v12  ;;  %1037 = vst [vmem:[%s1842_s3 + $0x104] sm:$0xf] %v1209_v13  ;;  %v454_v14 = vpop.f32.mrb[40].mxu0  ;;  %v1296_v15 = vpop.f32.mrb[40].mxu1 }
 0x146   :  { %v455_v16 = vadd.f32 %v454_v14, %v1542_v46  ;;  %v652_v17 = vadd.f32 %v1296_v15, %v1617_v42  ;;  %v456_v18 = vpop.f32.mrb[41].mxu0  ;;  %v643_v19 = vpop.f32.mrb[41].mxu1 }
 0x147   :  { %v457_v20 = vadd.f32 %v456_v18, %v1545_v47  ;;  %v644_v21 = vadd.f32 %v643_v19, %v1617_v42  ;;  %v458_v22 = vpop.f32.mrb[42].mxu0  ;;  %v1297_v23 = vpop.f32.mrb[42].mxu1 }
 0x148   :  { %v1219_v24 = vpack.c.bf16 %v652_v17, %v652_v17  ;;  %v459_v25 = vadd.f32 %v458_v22, %v1542_v46  ;;  %v655_v26 = vadd.f32 %v1297_v23, %v1617_v42  ;;  %v460_v27 = vpop.f32.mrb[43].mxu0  ;;  %v646_v28 = vpop.f32.mrb[43].mxu1 }
 0x149   :  { %v1206_v29 = vpack.c.bf16 %v457_v20, %v455_v16  ;;  %v1215_v30 = vpack.c.bf16 %v644_v21, %v644_v21  ;;  %v461_v31 = vadd.f32 %v460_v27, %v1545_v47  ;;  %v647_v32 = vadd.f32 %v646_v28, %v1617_v42 }
 0x14a   :  { %1047 = vst [vmem:[%s1842_s3 + $0x140] sm:$0xf] %v1219_v24  ;;  %v1221_v33 = vpack.c.bf16 %v655_v26, %v655_v26 }
 0x14b   :  { %1034 = vst [vmem:[%s1842_s3 + $0xf0] sm:$0xff] %v1206_v29  ;;  %1043 = vst [vmem:[%s1842_s3 + $0x128] sm:$0xf] %v1215_v30  ;;  %v1208_v34 = vpack.c.bf16 %v461_v31, %v459_v25  ;;  %v1217_v35 = vpack.c.bf16 %v647_v32, %v647_v32 }
 0x14c   :  { %1049 = vst [vmem:[%s1842_s3 + $0x14c] sm:$0xf] %v1221_v33 }
 0x14d   :  { %1036 = vst [vmem:[%s1842_s3 + $0xfc] sm:$0xff] %v1208_v34  ;;  %1045 = vst [vmem:[%s1842_s3 + $0x134] sm:$0xf] %v1217_v35  ;;  %v464_v36 = vpop.f32.mrb[44].mxu0  ;;  %v1300_v37 = vpop.f32.mrb[44].mxu1 }
 0x14e   :  { %v465_v38 = vadd.f32 %v464_v36, %v1542_v46  ;;  %v668_v39 = vadd.f32 %v1300_v37, %v1617_v42  ;;  %v466_v40 = vpop.f32.mrb[45].mxu0  ;;  %v659_v41 = vpop.f32.mrb[45].mxu1 }
 0x14f   :  { %v467_v43 = vadd.f32 %v466_v40, %v1545_v47  ;;  %v660_v45 = vadd.f32 %v659_v41, %v1617_v42  ;;  %v468_v48 = vpop.f32.mrb[46].mxu0  ;;  %v1301_v49 = vpop.f32.mrb[46].mxu1 }
 0x150   :  { %v1227_v50 = vpack.c.bf16 %v668_v39, %v668_v39  ;;  %v469_v51 = vadd.f32 %v468_v48, %v1542_v46  ;;  %v671_v52 = vadd.f32 %v1301_v49, %v1617_v42  ;;  %v470_v53 = vpop.f32.mrb[47].mxu0  ;;  %v662_v54 = vpop.f32.mrb[47].mxu1 }
 0x151   :  { %v1210_v55 = vpack.c.bf16 %v467_v43, %v465_v38  ;;  %v1223_v56 = vpack.c.bf16 %v660_v45, %v660_v45  ;;  %v471_v57 = vadd.f32 %v470_v53, %v1545_v47  ;;  %v663_v58 = vadd.f32 %v662_v54, %v1617_v42 }
 0x152   :  { %1055 = vst [vmem:[%s1842_s3 + $0x170] sm:$0xf] %v1227_v50  ;;  %v1229_v59 = vpack.c.bf16 %v671_v52, %v671_v52 }
 0x153   :  { %1038 = vst [vmem:[%s1842_s3 + $0x108] sm:$0xff] %v1210_v55  ;;  %1051 = vst [vmem:[%s1842_s3 + $0x158] sm:$0xf] %v1223_v56  ;;  %v1212_v46 = vpack.c.bf16 %v471_v57, %v469_v51  ;;  %v1225_v60 = vpack.c.bf16 %v663_v58, %v663_v58 }
 0x154   :  { %1057 = vst [vmem:[%s1842_s3 + $0x17c] sm:$0xf] %v1229_v59 }
 0x155   :  { %1040 = vst [vmem:[%s1842_s3 + $0x114] sm:$0xff] %v1212_v46  ;;  %1053 = vst [vmem:[%s1842_s3 + $0x164] sm:$0xf] %v1225_v60 }

// kernel: text_classifier_forward.14
= control target key start
LH: loop header
LB: loop body
LE: loop exit
PB: predicated region body
PF: predicated region fallthrough
CT: control target
= control target key end

     0   :  { %s2058_s12 = smov 0   ;;  %s2060_s13 = smov 0   ;;  %s2599_s0 = inlined_call_operand.vmem [shape: bf16[3,4,128,64], index: 0, kind: input, shape index: {}, may-alias: {0,1,2}]   ;;  %s2600_s1 = inlined_call_operand.vmem [shape: bf16[3,4,128,64], index: 1, kind: input, shape index: {}, may-alias: {0,1,2}]   ;;  %s2601_s2 = inlined_call_operand.vmem [shape: bf16[3,4,128,64], index: 2, kind: input, shape index: {}, may-alias: {0,1,2}]   ;;  %s2602_s3 = inlined_call_operand.vmem [shape: bf16[4,128,64], index: 3, kind: output, shape index: {}]  }
   0x1   :  { %s2062_s14 = smov 0  }
   0x2 LB: > { %s32_s15 = sadd.s32 1, %s2029_s13  ;;  %p1655_p0 = scmp.ge.s32.totalorder %s2033_s14, 1  ;;  %s2033_s14 = sphi %s2062_s14, %s13_s14   ;;  %s2029_s13 = sphi %s2060_s13, %s2618_s13   ;;  %s2025_s12 = sphi %s2058_s12, %s2617_s12  }
   0x3   : > { %p34_p1 = scmp.ge.s32.totalorder %s32_s15, 4  ;;  %p201_p2 = scmp.lt.s32.totalorder %s2033_s14, 5 }
   0x5   : > { %s2620_s15 = smov (%p34_p1, %s32_s15), 0  ;;  %p202_p3 = pnand %p1655_p0, %p201_p2 }
   0x6   : > { %p254_p4 = scmp.lt.s32.totalorder (!%p202_p3), %s2025_s12, 3  ;;  %vm334_vm0 = vcmask (!%p202_p3), 523264   ;;  %vm301_vm1 = vcmask (!%p202_p3), 7168   ;;  %v2035_v56 = vmov (!%p202_p3), -inf   ;;  %vm1502_vm2 = vcmask (!%p202_p3), 519168  }
   0x7   : > { %205 = sbr.rel (%p202_p3) target bundleno = 927 (0x39f), region = 32  ;;  %304 = vst.msk [vmem:[#allocation2 + $0x10] sm:$0xff] (!%p202_p3), %vm301_vm1, %v2035_v56  ;;  %302 = vst.msk [vmem:[#allocation2] sm:$0xff] (!%p202_p3), %vm301_vm1, %v2035_v56 }
   0x8   : > { %303 = vst.msk [vmem:[#allocation2 + $0x8] sm:$0xff] (!%p202_p3), %vm301_vm1, %v2035_v56  ;;  %305 = vst.msk [vmem:[#allocation2 + $0x18] sm:$0xff] (!%p202_p3), %vm301_vm1, %v2035_v56 }
   0x9   : > { %306 = vst.msk [vmem:[#allocation2 + $0x20] sm:$0xff] (!%p202_p3), %vm301_vm1, %v2035_v56  ;;  %307 = vst.msk [vmem:[#allocation2 + $0x28] sm:$0xff] (!%p202_p3), %vm301_vm1, %v2035_v56 }
   0xa   : > { %308 = vst.msk [vmem:[#allocation2 + $0x30] sm:$0xff] (!%p202_p3), %vm301_vm1, %v2035_v56  ;;  %309 = vst.msk [vmem:[#allocation2 + $0x38] sm:$0xff] (!%p202_p3), %vm301_vm1, %v2035_v56 }
   0xb   : > { %310 = vst.msk [vmem:[#allocation2 + $0x40] sm:$0xff] (!%p202_p3), %vm301_vm1, %v2035_v56  ;;  %311 = vst.msk [vmem:[#allocation2 + $0x48] sm:$0xff] (!%p202_p3), %vm301_vm1, %v2035_v56 }
   0xc   : > { %312 = vst.msk [vmem:[#allocation2 + $0x50] sm:$0xff] (!%p202_p3), %vm301_vm1, %v2035_v56  ;;  %313 = vst.msk [vmem:[#allocation2 + $0x58] sm:$0xff] (!%p202_p3), %vm301_vm1, %v2035_v56 }
   0xd   : > { %314 = vst.msk [vmem:[#allocation2 + $0x60] sm:$0xff] (!%p202_p3), %vm301_vm1, %v2035_v56  ;;  %315 = vst.msk [vmem:[#allocation2 + $0x68] sm:$0xff] (!%p202_p3), %vm301_vm1, %v2035_v56 }
   0xe   : > { %s2622_s12 = smov (!%p254_p4, %s2025_s12), 3  ;;  %316 = vst.msk [vmem:[#allocation2 + $0x70] sm:$0xff] %vm301_vm1, %v2035_v56  ;;  %317 = vst.msk [vmem:[#allocation2 + $0x78] sm:$0xff] %vm301_vm1, %v2035_v56 }
   0xf   : > { %s2076_s16 = sshll.u32 %s2622_s12, 6 }
  0x10   : > { %s2082_s19 = scalar_lea.vmem %s2600_s1, %s2076_s16  ;;  %s2093_s22 = scalar_lea.vmem %s2599_s0, %s2076_s16 }
  0x11   : > { %v1899_v0 = vld [vmem:[%s2082_s19 + $0x100] sm:$0xff]   ;;  %v1900_v1 = vld [vmem:[%s2082_s19 + $0x108] sm:$0xff]   ;;  %v1901_v4 = vld [vmem:[%s2082_s19 + $0x110] sm:$0xff]   ;;  %s2238_s25 = scalar_lea.vmem %s2601_s2, %s2076_s16  ;;  %s2556_s28 = scalar_lea.vmem %s2602_s3, %s2076_s16 }
  0x12   : > { %1862 = vmatprep.subr.msk.bf16.mxu0 %vm334_vm0, %v1899_v0  ;;  %v521_v2 = vsel %vm334_vm0, %v1899_v0, 0  ;;  %v524_v3 = vsel %vm334_vm0, %v1900_v1, 0  ;;  %v351_v5 = vld [vmem:[%s2093_s22] sm:$0xf]  ;;  %v352_v6 = vld [vmem:[%s2093_s22 + $0x4] sm:$0xf] }
  0x13   : > { %1799 = vmatpush3.bf16.xpose.msra.mxu0 %v521_v2  ;;  %v367_v7 = vmul.bf16 1040203264, %v351_v5  ;;  %v368_v8 = vmul.bf16 1040203264, %v352_v6  ;;  %v527_v10 = vsel %vm334_vm0, %v1901_v4, 0  ;;  %v1902_v11 = vld [vmem:[%s2082_s19 + $0x118] sm:$0xff]  }
  0x14   : > { %1863 = vmatprep.subr.msk.bf16.mxu0 %vm334_vm0, %v1900_v1  ;;  %v530_v12 = vsel %vm334_vm0, %v1902_v11, 0  ;;  %v1903_v13 = vld [vmem:[%s2082_s19 + $0x120] sm:$0xff]   ;;  %v1904_v15 = vld [vmem:[%s2082_s19 + $0x128] sm:$0xff]   ;;  %v1905_v17 = vld [vmem:[%s2082_s19 + $0x130] sm:$0xff]   ;;  %v2036_v2 = vmov 0  }
  0x15   : > { %v1696_v9 = vcombine.low %v367_v7, %v368_v8  ;;  %v533_v14 = vsel %vm334_vm0, %v1903_v13, 0  ;;  %v536_v16 = vsel %vm334_vm0, %v1904_v15, 0  ;;  %v539_v18 = vsel %vm334_vm0, %v1905_v17, 0  ;;  %v1906_v19 = vld [vmem:[%s2082_s19 + $0x138] sm:$0xff]   ;;  %v353_v20 = vld [vmem:[%s2093_s22 + $0x8] sm:$0xf]  ;;  %1898 = vset.pattern.permute.xlu1 %v2036_v2  ;;  %1897 = vset.pattern.permute.xlu0 %v2036_v2 }
  0x16   : > { %v354_v21 = vld [vmem:[%s2093_s22 + $0xc] sm:$0xf]  ;;  %v542_v22 = vsel %vm334_vm0, %v1906_v19, 0  ;;  %v355_v23 = vld [vmem:[%s2093_s22 + $0x10] sm:$0xf]  ;;  %v2037_v7 = vmov 0.0  }
  0x17   : > { %1814 = vmatprep.mubr.msk.bf16.mxu0 %vm334_vm0, %v1696_v9  ;;  %v356_v24 = vld [vmem:[%s2093_s22 + $0x14] sm:$0xf]  ;;  %v369_v25 = vmul.bf16 1040203264, %v353_v20  ;;  %v370_v26 = vmul.bf16 1040203264, %v354_v21 }
  0x18   : > { %v371_v27 = vmul.bf16 1040203264, %v355_v23  ;;  %v372_v28 = vmul.bf16 1040203264, %v356_v24  ;;  %v357_v31 = vld [vmem:[%s2093_s22 + $0x18] sm:$0xf] }
  0x19   : > { %v1697_v29 = vcombine.low %v369_v25, %v370_v26  ;;  %v358_v32 = vld [vmem:[%s2093_s22 + $0x1c] sm:$0xf]  ;;  %v359_v33 = vld [vmem:[%s2093_s22 + $0x20] sm:$0xf]  ;;  %v360_v34 = vld [vmem:[%s2093_s22 + $0x24] sm:$0xf] }
  0x1a   : > { %v1698_v30 = vcombine.low %v371_v27, %v372_v28  ;;  %v373_v35 = vmul.bf16 1040203264, %v357_v31  ;;  %v374_v36 = vmul.bf16 1040203264, %v358_v32  ;;  %v375_v37 = vmul.bf16 1040203264, %v359_v33 }
  0x1b   : > { %1801 = vmatpush3.bf16.xpose.msra.mxu0 %v524_v3  ;;  %v376_v38 = vmul.bf16 1040203264, %v360_v34  ;;  %v361_v41 = vld [vmem:[%s2093_s22 + $0x28] sm:$0xf]  ;;  %v362_v42 = vld [vmem:[%s2093_s22 + $0x2c] sm:$0xf] }
  0x1c   : > { %1864 = vmatprep.subr.msk.bf16.mxu0 %vm334_vm0, %v1901_v4  ;;  %v1699_v39 = vcombine.low %v373_v35, %v374_v36  ;;  %v363_v43 = vld [vmem:[%s2093_s22 + $0x30] sm:$0xf]  ;;  %v364_v44 = vld [vmem:[%s2093_s22 + $0x34] sm:$0xf]  ;;  %v377_v45 = vmul.bf16 1040203264, %v361_v41 }
  0x1d   : > { %v1700_v40 = vcombine.low %v375_v37, %v376_v38  ;;  %v378_v46 = vmul.bf16 1040203264, %v362_v42  ;;  %v379_v47 = vmul.bf16 1040203264, %v363_v43  ;;  %v380_v48 = vmul.bf16 1040203264, %v364_v44 }
  0x1e   : > { %v365_v51 = vld [vmem:[%s2093_s22 + $0x38] sm:$0xf]  ;;  %v366_v52 = vld [vmem:[%s2093_s22 + $0x3c] sm:$0xf]  ;;  %320 = vst.msk [vmem:[#allocation3 + $0x10] sm:$0xff] %vm301_vm1, %v2037_v7  ;;  %318 = vst.msk [vmem:[#allocation3] sm:$0xff] %vm301_vm1, %v2037_v7 }
  0x1f   : > { %v1701_v49 = vcombine.low %v377_v45, %v378_v46  ;;  %v1702_v50 = vcombine.low %v379_v47, %v380_v48  ;;  %v381_v53 = vmul.bf16 1040203264, %v365_v51  ;;  %v382_v54 = vmul.bf16 1040203264, %v366_v52  ;;  %319 = vst.msk [vmem:[#allocation3 + $0x8] sm:$0xff] %vm301_vm1, %v2037_v7  ;;  %321 = vst.msk [vmem:[#allocation3 + $0x18] sm:$0xff] %vm301_vm1, %v2037_v7 }
  0x20   : > { %322 = vst.msk [vmem:[#allocation3 + $0x20] sm:$0xff] %vm301_vm1, %v2037_v7  ;;  %323 = vst.msk [vmem:[#allocation3 + $0x28] sm:$0xff] %vm301_vm1, %v2037_v7  ;;  %v2259_v21 = vld [vmem:[#allocation2 + $0x8] sm:$0xff]  ;;  %v2285_v32 = vld [vmem:[#allocation2 + $0x38] sm:$0xff] }
  0x21   : > { %v1703_v55 = vcombine.low %v381_v53, %v382_v54  ;;  %324 = vst.msk [vmem:[#allocation3 + $0x30] sm:$0xff] %vm301_vm1, %v2037_v7  ;;  %325 = vst.msk [vmem:[#allocation3 + $0x38] sm:$0xff] %vm301_vm1, %v2037_v7  ;;  %v2294_v37 = vld [vmem:[#allocation2 + $0x30] sm:$0xff]  ;;  %v1911_v38 = vld [vmem:[%s2238_s25 + $0x220] sm:$0xff]  }
  0x22   : > { %326 = vst.msk [vmem:[#allocation3 + $0x40] sm:$0xff] %vm301_vm1, %v2037_v7  ;;  %327 = vst.msk [vmem:[#allocation3 + $0x48] sm:$0xff] %vm301_vm1, %v2037_v7  ;;  %v2313_v46 = vld [vmem:[#allocation2 + $0x40] sm:$0xff]  ;;  %v1912_v47 = vld [vmem:[%s2238_s25 + $0x228] sm:$0xff]  }
  0x23   : > { %1803 = vmatpush3.bf16.xpose.msra.mxu0 %v527_v10  ;;  %328 = vst.msk [vmem:[#allocation3 + $0x50] sm:$0xff] %vm301_vm1, %v2037_v7  ;;  %329 = vst.msk [vmem:[#allocation3 + $0x58] sm:$0xff] %vm301_vm1, %v2037_v7  ;;  %v1913_v56 = vld [vmem:[%s2238_s25 + $0x230] sm:$0xff]  }
  0x24   : > { %1865 = vmatprep.subr.msk.bf16.mxu0 %vm334_vm0, %v1902_v11  ;;  %330 = vst.msk [vmem:[#allocation3 + $0x60] sm:$0xff] %vm301_vm1, %v2037_v7  ;;  %331 = vst.msk [vmem:[#allocation3 + $0x68] sm:$0xff] %vm301_vm1, %v2037_v7  ;;  %v1907_v11 = vld [vmem:[%s2238_s25 + $0x200] sm:$0xff]  }
  0x25   : > { %332 = vst.msk [vmem:[#allocation3 + $0x70] sm:$0xff] %vm301_vm1, %v2037_v7  ;;  %333 = vst.msk [vmem:[#allocation3 + $0x78] sm:$0xff] %vm301_vm1, %v2037_v7  ;;  %1830 = vmatprep.subr.bf16.mxu1 %v1907_v11 }
  0x26   : > { %335 = vst.msk [vmem:[#allocation4] sm:$0xff] %vm334_vm0, %v2037_v7  ;;  %336 = vst.msk [vmem:[#allocation4 + $0x8] sm:$0xff] %vm334_vm0, %v2037_v7  ;;  %1831 = vmatpush3.bf16.msra.mxu1 %v1907_v11 }
  0x27   : > { %337 = vst.msk [vmem:[#allocation4 + $0x10] sm:$0xff] %vm334_vm0, %v2037_v7  ;;  %338 = vst.msk [vmem:[#allocation4 + $0x18] sm:$0xff] %vm334_vm0, %v2037_v7 }
  0x28   : > { %339 = vst.msk [vmem:[#allocation4 + $0x20] sm:$0xff] %vm334_vm0, %v2037_v7  ;;  %340 = vst.msk [vmem:[#allocation4 + $0x28] sm:$0xff] %vm334_vm0, %v2037_v7 }
  0x29   : > { %341 = vst.msk [vmem:[#allocation4 + $0x30] sm:$0xff] %vm334_vm0, %v2037_v7  ;;  %342 = vst.msk [vmem:[#allocation4 + $0x38] sm:$0xff] %vm334_vm0, %v2037_v7 }
  0x2a   : > { %343 = vst.msk [vmem:[#allocation4 + $0x40] sm:$0xff] %vm334_vm0, %v2037_v7  ;;  %344 = vst.msk [vmem:[#allocation4 + $0x48] sm:$0xff] %vm334_vm0, %v2037_v7 }
  0x2b   : > { %1805 = vmatpush3.bf16.xpose.msra.mxu0 %v530_v12  ;;  %345 = vst.msk [vmem:[#allocation4 + $0x50] sm:$0xff] %vm334_vm0, %v2037_v7  ;;  %346 = vst.msk [vmem:[#allocation4 + $0x58] sm:$0xff] %vm334_vm0, %v2037_v7  ;;  %v1908_v12 = vld [vmem:[%s2238_s25 + $0x208] sm:$0xff]  }
  0x2c   : > { %1866 = vmatprep.subr.msk.bf16.mxu0 %vm334_vm0, %v1903_v13  ;;  %347 = vst.msk [vmem:[#allocation4 + $0x60] sm:$0xff] %vm334_vm0, %v2037_v7  ;;  %348 = vst.msk [vmem:[#allocation4 + $0x68] sm:$0xff] %vm334_vm0, %v2037_v7  ;;  %1832 = vmatprep.subr.bf16.mxu1 %v1908_v12  ;;  %v2242_v13 = vld [vmem:[#allocation2 + $0x10] sm:$0xff] }
  0x2d   : > { %349 = vst.msk [vmem:[#allocation4 + $0x70] sm:$0xff] %vm334_vm0, %v2037_v7  ;;  %350 = vst.msk [vmem:[#allocation4 + $0x78] sm:$0xff] %vm334_vm0, %v2037_v7  ;;  %1833 = vmatpush3.bf16.msra.mxu1 %v1908_v12  ;;  %v2341_v7 = vld [vmem:[#allocation2 + $0x48] sm:$0xff] }
  0x33   : > { %1807 = vmatpush3.bf16.xpose.msra.mxu0 %v533_v14  ;;  %v2244_v14 = vld [vmem:[#allocation2] sm:$0xff] }
  0x34   : > { %1867 = vmatprep.subr.msk.bf16.mxu0 %vm334_vm0, %v1904_v15 }
  0x3b   : > { %1809 = vmatpush3.bf16.xpose.msra.mxu0 %v536_v16 }
  0x3c   : > { %1868 = vmatprep.subr.msk.bf16.mxu0 %vm334_vm0, %v1905_v17 }
  0x43   : > { %1811 = vmatpush3.bf16.xpose.msra.mxu0 %v539_v18 }
  0x44   : > { %1869 = vmatprep.subr.msk.bf16.mxu0 %vm334_vm0, %v1906_v19  ;;  %v2252_v19 = vld [vmem:[#allocation2 + $0x18] sm:$0xff] }
  0x4b   : > { %1813 = vmatpush3.bf16.xpose.msra.mxu0 %v542_v22  ;;  %v1909_v22 = vld [vmem:[%s2238_s25 + $0x210] sm:$0xff]  }
  0x4c   : > { %1834 = vmatprep.subr.bf16.mxu1 %v1909_v22 }
  0x4d   : > { %1835 = vmatpush3.bf16.msra.mxu1 %v1909_v22 }
  0x52   : > { %1815 = vmatmul.mubr.msk.bf16.vlgmr.msra.gmra.mrb[0].mxu0 %vm334_vm0, %v1697_v29  ;;  %v2278_v29 = vld [vmem:[#allocation2 + $0x20] sm:$0xff] }
  0x53   : > { %1818 = vmatprep.mubr.msk.bf16.mxu0 %vm334_vm0, %v1698_v30  ;;  %v1910_v30 = vld [vmem:[%s2238_s25 + $0x218] sm:$0xff]  }
  0x54   : > { %1836 = vmatprep.subr.bf16.mxu1 %v1910_v30 }
  0x55   : > { %1837 = vmatpush3.bf16.msra.mxu1 %v1910_v30 }
  0x56   : > { %1838 = vmatprep.subr.bf16.mxu1 %v1911_v38 }
  0x59   : > { %1839 = vmatpush3.bf16.msra.mxu1 %v1911_v38 }
  0x5a   : > { %1819 = vmatmul.mubr.msk.bf16.gmra.mrb[4].mxu0 %vm334_vm0, %v1699_v39  ;;  %1840 = vmatprep.subr.bf16.mxu1 %v1912_v47 }
  0x5b   : > { %1822 = vmatprep.mubr.msk.bf16.mxu0 %vm334_vm0, %v1700_v40  ;;  %v2301_v40 = vld [vmem:[#allocation2 + $0x28] sm:$0xff] }
  0x5d   : > { %1841 = vmatpush3.bf16.msra.mxu1 %v1912_v47 }
  0x5e   : > { %1842 = vmatprep.subr.bf16.mxu1 %v1913_v56 }
  0x61   : > { %1843 = vmatpush3.bf16.msra.mxu1 %v1913_v56  ;;  %v2381_v56 = vld [vmem:[#allocation2 + $0x68] sm:$0xff] }
  0x62   : > { %1823 = vmatmul.mubr.msk.bf16.gmra.mrb[8].mxu0 %vm334_vm0, %v1701_v49  ;;  %v2321_v49 = vld [vmem:[#allocation2 + $0x58] sm:$0xff] }
  0x63   : > { %1826 = vmatprep.mubr.msk.bf16.mxu0 %vm334_vm0, %v1702_v50 }
  0x6a   : > { %1827 = vmatmul.mubr.msk.bf16.gmra.mrb[12].mxu0 %vm334_vm0, %v1703_v55  ;;  %v2333_v55 = vld [vmem:[#allocation2 + $0x50] sm:$0xff] }
 0x125   : > { %v2154_v57 = vpop.f32.mrb[0].mxu0 }
 0x126   : > { %661 = vmax.xlane.f32.xlu1 %v2154_v57  ;;  %v2157_v58 = vpop.f32.mrb[1].mxu0 }
 0x127   : > { %657 = vmax.xlane.f32.xlu0 %v2157_v58  ;;  %v2160_v59 = vpop.f32.mrb[2].mxu0 }
 0x128   : > { %v2162_v60 = vpop.f32.mrb[3].mxu0 }
 0x12a   : > { %663 = vmax.xlane.f32.xlu1 %v2160_v59 }
 0x12b   : > { %659 = vmax.xlane.f32.xlu0 %v2162_v60 }
 0x12d   : > { %v2166_v61 = vpop.f32.mrb[4].mxu0 }
 0x12e   : > { %v2168_v62 = vpop.f32.mrb[5].mxu0 }
 0x12f   : > { %665 = vmax.xlane.f32.xlu0 %v2168_v62  ;;  %v2171_v63 = vpop.f32.mrb[6].mxu0 }
 0x130   : > { %671 = vmax.xlane.f32.xlu1 %v2171_v63  ;;  %v2174_v0 = vpop.f32.mrb[7].mxu0 }
 0x133   : > { %669 = vmax.xlane.f32.xlu0 %v2166_v61 }
 0x134   : > { %667 = vmax.xlane.f32.xlu1 %v2174_v0 }
 0x135   : > { %v2178_v1 = vpop.f32.mrb[8].mxu0 }
 0x136   : > { %v2180_v3 = vpop.f32.mrb[9].mxu0 }
 0x137   : > { %v2182_v4 = vpop.f32.mrb[10].mxu0  ;;  %673 = vmax.xlane.f32.xlu0 %v2180_v3 }
 0x138   : > { %679 = vmax.xlane.f32.xlu1 %v2182_v4  ;;  %v2186_v5 = vpop.f32.mrb[11].mxu0 }
 0x13b   : > { %677 = vmax.xlane.f32.xlu0 %v2178_v1 }
 0x13c   : > { %675 = vmax.xlane.f32.xlu1 %v2186_v5 }
 0x13d   : > { %v2190_v6 = vpop.f32.mrb[12].mxu0 }
 0x13e   : > { %v2224_v8 = vpop.f32.mrb[13].mxu0 }
 0x13f   : > { %v2226_v9 = vpop.f32.mrb[14].mxu0  ;;  %681 = vmax.xlane.f32.xlu0 %v2224_v8 }
 0x140   : > { %687 = vmax.xlane.f32.xlu1 %v2226_v9  ;;  %v2230_v10 = vpop.f32.mrb[15].mxu0 }
 0x143   : > { %685 = vmax.xlane.f32.xlu0 %v2190_v6 }
 0x144   : > { %683 = vmax.xlane.f32.xlu1 %v2230_v10 }
 0x1b3   : > { %v662_v15 = vpop.xlane.xlu1 %661 }
 0x1b4   : > { %v2247_v16 = vmax.f32 %v2242_v13, %v662_v15  ;;  %v658_v17 = vpop.xlane.xlu0 %657 }
 0x1b5   : > { %v2250_v18 = vmax.f32 %v2244_v14, %v658_v17 }
 0x1b6   : > { %v707_v20 = vsub.f32 %v2242_v13, %v2247_v16  ;;  %1277 = vst.msk [vmem:[#allocation2 + $0x10] sm:$0xff] %vm301_vm1, %v2247_v16  ;;  %765 = vperm.xlu1 %1898, %v2247_v16  }
 0x1b7   : > { %1275 = vst.msk [vmem:[#allocation2] sm:$0xff] %vm301_vm1, %v2250_v18  ;;  %v664_v24 = vpop.xlane.xlu1 %663  ;;  %755 = vperm.xlu0 %1897, %v2250_v18  }
 0x1b8   : > { %v2268_v25 = vmax.f32 %v2252_v19, %v664_v24  ;;  %v660_v26 = vpop.xlane.xlu0 %659  ;;  %v2353_v24 = vld [vmem:[#allocation2 + $0x60] sm:$0xff] }
 0x1b9   : > { %v2271_v27 = vmax.f32 %v2259_v21, %v660_v26  ;;  %v1914_v26 = vld [vmem:[%s2238_s25 + $0x238] sm:$0xff]  }
 0x1ba   : > { %1278 = vst.msk [vmem:[#allocation2 + $0x18] sm:$0xff] %vm301_vm1, %v2268_v25  ;;  %770 = vperm.xlu1 %1898, %v2268_v25   ;;  %1844 = vmatprep.subr.bf16.mxu1 %v1914_v26 }
 0x1bb   : > { %v706_v31 = vsub.f32 %v2259_v21, %v2271_v27  ;;  %1276 = vst.msk [vmem:[#allocation2 + $0x8] sm:$0xff] %vm301_vm1, %v2271_v27  ;;  %1845 = vmatpush3.bf16.msra.mxu1 %v1914_v26 }
 0x1bc   : > { %v666_v33 = vpop.xlane.xlu0 %665 }
 0x1bd   : > { %v2288_v34 = vmax.f32 %v2278_v29, %v666_v33  ;;  %v672_v35 = vpop.xlane.xlu1 %671  ;;  %v2361_v33 = vld [vmem:[#allocation2 + $0x78] sm:$0xff] }
 0x1be   : > { %v2291_v36 = vmax.f32 %v2285_v32, %v672_v35  ;;  %760 = vperm.xlu1 %1898, %v2271_v27  }
 0x1bf   : > { %1279 = vst.msk [vmem:[#allocation2 + $0x20] sm:$0xff] %vm301_vm1, %v2288_v34 }
 0x1c0   : > { %1282 = vst.msk [vmem:[#allocation2 + $0x38] sm:$0xff] %vm301_vm1, %v2291_v36  ;;  %v670_v42 = vpop.xlane.xlu0 %669 }
 0x1c1   : > { %v2308_v43 = vmax.f32 %v2294_v37, %v670_v42  ;;  %v668_v44 = vpop.xlane.xlu1 %667 }
 0x1c2   : > { %v2311_v45 = vmax.f32 %v2301_v40, %v668_v44 }
 0x1c3   : > { %1281 = vst.msk [vmem:[#allocation2 + $0x30] sm:$0xff] %vm301_vm1, %v2308_v43  ;;  %785 = vperm.xlu1 %1898, %v2308_v43   ;;  %v2606_v13 = vsub.f32 %v2294_v37, %v2308_v43 }
 0x1c4   : > { %1280 = vst.msk [vmem:[#allocation2 + $0x28] sm:$0xff] %vm301_vm1, %v2311_v45  ;;  %v674_v51 = vpop.xlane.xlu0 %673 }
 0x1c5   : > { %v680_v52 = vpop.xlane.xlu1 %679  ;;  %v2328_v53 = vmax.f32 %v2313_v46, %v674_v51  ;;  %v2374_v51 = vld [vmem:[#allocation2 + $0x70] sm:$0xff]  ;;  %v733_v16 = vmul.f32 1.442695, %v2606_v13 }
 0x1c6   : > { %v2331_v54 = vmax.f32 %v2321_v49, %v680_v52 }
 0x1c7   : > { %1283 = vst.msk [vmem:[#allocation2 + $0x40] sm:$0xff] %vm301_vm1, %v2328_v53  ;;  %775 = vperm.xlu1 %1898, %v2288_v34   ;;  %v2608_v27 = vsub.f32 %v2313_v46, %v2328_v53 }
 0x1c8   : > { %1286 = vst.msk [vmem:[#allocation2 + $0x58] sm:$0xff] %vm301_vm1, %v2331_v54  ;;  %v678_v12 = vpop.xlane.xlu0 %677 }
 0x1c9   : > { %v676_v15 = vpop.xlane.xlu1 %675  ;;  %v2348_v17 = vmax.f32 %v2333_v55, %v678_v12 }
 0x1ca   : > { %v2351_v22 = vmax.f32 %v2341_v7, %v676_v15 }
 0x1cb   : > { %1285 = vst.msk [vmem:[#allocation2 + $0x50] sm:$0xff] %vm301_vm1, %v2348_v17  ;;  %780 = vperm.xlu1 %1898, %v2311_v45   ;;  %v2610_v37 = vsub.f32 %v2333_v55, %v2348_v17  ;;  %v2613_v55 = vsub.f32 %v2321_v49, %v2331_v54 }
 0x1cc   : > { %1284 = vst.msk [vmem:[#allocation2 + $0x48] sm:$0xff] %vm301_vm1, %v2351_v22  ;;  %800 = vperm.xlu0 %1897, %v2351_v22   ;;  %v682_v38 = vpop.xlane.xlu0 %681  ;;  %v2611_v43 = vsub.f32 %v2341_v7, %v2351_v22 }
 0x1cd   : > { %v688_v42 = vpop.xlane.xlu1 %687  ;;  %v2369_v44 = vmax.f32 %v2353_v24, %v682_v38 }
 0x1ce   : > { %v2372_v47 = vmax.f32 %v2361_v33, %v688_v42 }
 0x1cf   : > { %1287 = vst.msk [vmem:[#allocation2 + $0x60] sm:$0xff] %vm301_vm1, %v2369_v44  ;;  %790 = vperm.xlu1 %1898, %v2291_v36  }
 0x1d0   : > { %1290 = vst.msk [vmem:[#allocation2 + $0x78] sm:$0xff] %vm301_vm1, %v2372_v47  ;;  %810 = vperm.xlu0 %1897, %v2331_v54   ;;  %v686_v15 = vpop.xlane.xlu0 %685  ;;  %v2616_v54 = vsub.f32 %v2361_v33, %v2372_v47 }
 0x1d1   : > { %v684_v26 = vpop.xlane.xlu1 %683  ;;  %v2389_v38 = vmax.f32 %v2374_v51, %v686_v15 }
 0x1d2   : > { %v2392_v42 = vmax.f32 %v2381_v56, %v684_v26 }
 0x1d3   : > { %1289 = vst.msk [vmem:[#allocation2 + $0x70] sm:$0xff] %vm301_vm1, %v2389_v38  ;;  %795 = vperm.xlu1 %1898, %v2328_v53   ;;  %v2614_v7 = vsub.f32 %v2374_v51, %v2389_v38  ;;  %v751_v51 = vmul.f32 1.442695, %v2616_v54 }
 0x1d4   : > { %1288 = vst.msk [vmem:[#allocation2 + $0x68] sm:$0xff] %vm301_vm1, %v2392_v42  ;;  %820 = vperm.xlu0 %1897, %v2392_v42  }
 0x1d5   : > { %v749_v22 = vmul.f32 1.442695, %v2614_v7  ;;  %v889_v7 = vld [vmem:[#allocation3 + $0x40] sm:$0xff] }
 0x1d7   : > { %805 = vperm.xlu1 %1898, %v2348_v17   ;;  %v743_v17 = vmul.f32 1.442695, %v2613_v55 }
 0x1d8   : > { %830 = vperm.xlu0 %1897, %v2372_v47  }
 0x1db   : > { %815 = vperm.xlu1 %1898, %v2369_v44  }
 0x1df   : > { %825 = vperm.xlu1 %1898, %v2389_v38  }
 0x235   : > { %v766_v15 = vpop.permute.xlu1 %765 }
 0x236   : > { %v835_v26 = vsub.f32 %v2154_v57, %v766_v15  ;;  %v756_v11 = vpop.permute.xlu0 %755 }
 0x237   : > { %v833_v52 = vsub.f32 %v2157_v58, %v756_v11 }
 0x238   : > { %v853_v12 = vmul.f32 1.442695, %v835_v26 }
 0x239   : > { %v849_v35 = vmul.f32 1.442695, %v833_v52  ;;  %v771_v30 = vpop.permute.xlu1 %770 }
 0x23a   : > { %1915 = vpow2.f32 %v853_v12  ;;  %v836_v41 = vsub.f32 %v2160_v59, %v771_v30 }
 0x23b   : > { %1917 = vpow2.f32 %v849_v35 }
 0x23c   : > { %v855_v2 = vmul.f32 1.442695, %v836_v41 }
 0x23d   : > { %v761_v50 = vpop.permute.xlu1 %760 }
 0x23e   : > { %1919 = vpow2.f32 %v855_v2  ;;  %v834_v48 = vsub.f32 %v2162_v60, %v761_v50 }
 0x240   : > { %v851_v28 = vmul.f32 1.442695, %v834_v48 }
 0x242   : > { %1921 = vpow2.f32 %v851_v28  ;;  %v786_v39 = vpop.permute.xlu1 %785 }
 0x243   : > { %v839_v57 = vsub.f32 %v2166_v61, %v786_v39 }
 0x244   : > { %v1916_v15 = vpop.eup %1915 }
 0x245   : > { %v1918_v23 = vpop.eup %1917  ;;  %v861_v58 = vmul.f32 1.442695, %v839_v57  ;;  %917 = vadd.xlane.f32.xlu0 %v1916_v15 }
 0x246   : > { %913 = vadd.xlane.f32.xlu1 %v1918_v23  ;;  %v776_v11 = vpop.permute.xlu1 %775 }
 0x247   : > { %1923 = vpow2.f32 %v861_v58  ;;  %v837_v59 = vsub.f32 %v2168_v62, %v776_v11 }
 0x248   : > { %v1920_v30 = vpop.eup %1919 }
 0x249   : > { %v857_v41 = vmul.f32 1.442695, %v837_v59  ;;  %v1091_v35 = vpack.c.bf16 %v1920_v30, %v1916_v15 }
 0x24a   : > { %919 = vadd.xlane.f32.xlu1 %v1920_v30  ;;  %v781_v2 = vpop.permute.xlu1 %780 }
 0x24b   : > { %1925 = vpow2.f32 %v857_v41  ;;  %v838_v60 = vsub.f32 %v2174_v0, %v781_v2  ;;  %v801_v28 = vpop.permute.xlu0 %800 }
 0x24c   : > { %v1922_v48 = vpop.eup %1921  ;;  %v842_v50 = vsub.f32 %v2186_v5, %v801_v28 }
 0x24d   : > { %v859_v61 = vmul.f32 1.442695, %v838_v60  ;;  %915 = vadd.xlane.f32.xlu0 %v1922_v48  ;;  %v1090_v39 = vpack.c.bf16 %v1922_v48, %v1918_v23 }
 0x24e   : > { %v791_v52 = vpop.permute.xlu1 %790  ;;  %v867_v15 = vmul.f32 1.442695, %v842_v50 }
 0x24f   : > { %1927 = vpow2.f32 %v859_v61  ;;  %v840_v12 = vsub.f32 %v2171_v63, %v791_v52  ;;  %v811_v62 = vpop.permute.xlu0 %810  ;;  %1846 = vmatprep.mubr.bf16.mxu1 %v1090_v39 }
 0x250   : > { %1847 = vmatmul.mubr.bf16.vlgmr.msra.gmra.mrb[0].mxu1 %v1091_v35  ;;  %v844_v58 = vsub.f32 %v2182_v4, %v811_v62 }
 0x251   : > { %v1924_v26 = vpop.eup %1923  ;;  %v863_v57 = vmul.f32 1.442695, %v840_v12 }
 0x252   : > { %925 = vadd.xlane.f32.xlu0 %v1924_v26  ;;  %v796_v0 = vpop.permute.xlu1 %795  ;;  %v871_v30 = vmul.f32 1.442695, %v844_v58 }
 0x253   : > { %1929 = vpow2.f32 %v863_v57  ;;  %v841_v11 = vsub.f32 %v2180_v3, %v796_v0  ;;  %v821_v23 = vpop.permute.xlu0 %820 }
 0x254   : > { %1931 = vpow2.f32 %v867_v15  ;;  %v846_v63 = vsub.f32 %v2230_v10, %v821_v23 }
 0x255   : > { %v1926_v59 = vpop.eup %1925  ;;  %v865_v5 = vmul.f32 1.442695, %v841_v11 }
 0x256   : > { %921 = vadd.xlane.f32.xlu0 %v1926_v59  ;;  %v806_v41 = vpop.permute.xlu1 %805  ;;  %v875_v28 = vmul.f32 1.442695, %v846_v63  ;;  %v723_v63 = vmul.f32 1.442695, %v706_v31 }
 0x257   : > { %1933 = vpow2.f32 %v865_v5  ;;  %v843_v35 = vsub.f32 %v2178_v1, %v806_v41  ;;  %v831_v2 = vpop.permute.xlu0 %830  ;;  %v725_v41 = vmul.f32 1.442695, %v707_v20 }
 0x258   : > { %1935 = vpow2.f32 %v871_v30  ;;  %v848_v48 = vsub.f32 %v2226_v9, %v831_v2 }
 0x259   : > { %v1928_v60 = vpop.eup %1927  ;;  %v869_v4 = vmul.f32 1.442695, %v843_v35  ;;  %v2603_v35 = vsub.f32 %v2244_v14, %v2250_v18  ;;  %v2607_v14 = vsub.f32 %v2301_v40, %v2311_v45  ;;  %v741_v40 = vmul.f32 1.442695, %v2610_v37 }
 0x25a   : > { %v816_v3 = vpop.permute.xlu1 %815  ;;  %v1092_v61 = vpack.c.bf16 %v1928_v60, %v1926_v59  ;;  %v879_v52 = vmul.f32 1.442695, %v848_v48  ;;  %v739_v45 = vmul.f32 1.442695, %v2611_v43 }
 0x25b   : > { %1937 = vpow2.f32 %v869_v4  ;;  %v845_v39 = vsub.f32 %v2224_v8, %v816_v3  ;;  %v721_v2 = vmul.f32 1.442695, %v2603_v35  ;;  %v731_v18 = vmul.f32 1.442695, %v2607_v14 }
 0x25c   : > { %1850 = vmatprep.mubr.bf16.mxu1 %v1092_v61  ;;  %1939 = vpow2.f32 %v875_v28  ;;  %v2605_v28 = vsub.f32 %v2252_v19, %v2268_v25  ;;  %v737_v19 = vmul.f32 1.442695, %v2608_v27  ;;  %v2609_v25 = vsub.f32 %v2285_v32, %v2291_v36 }
 0x25d   : > { %v1930_v50 = vpop.eup %1929  ;;  %v873_v10 = vmul.f32 1.442695, %v845_v39  ;;  %v2612_v32 = vsub.f32 %v2353_v24, %v2369_v44  ;;  %v2615_v24 = vsub.f32 %v2381_v56, %v2392_v42 }
 0x25e   : > { %927 = vadd.xlane.f32.xlu1 %v1930_v50  ;;  %v826_v12 = vpop.permute.xlu1 %825  ;;  %v1093_v1 = vpack.c.bf16 %v1930_v50, %v1924_v26  ;;  %v1932_v57 = vpop.eup %1931  ;;  %v727_v21 = vmul.f32 1.442695, %v2605_v28 }
 0x25f   : > { %1941 = vpow2.f32 %v873_v10  ;;  %v847_v62 = vsub.f32 %v2190_v6, %v826_v12  ;;  %v745_v36 = vmul.f32 1.442695, %v2612_v32  ;;  %v747_v44 = vmul.f32 1.442695, %v2615_v24  ;;  %v883_v10 = vld [vmem:[#allocation3 + $0x10] sm:$0xff] }
 0x260   : > { %1851 = vmatmul.mubr.bf16.gmra.mrb[4].mxu1 %v1093_v1  ;;  %1943 = vpow2.f32 %v879_v52  ;;  %v881_v52 = vld [vmem:[#allocation3] sm:$0xff] }
 0x261   : > { %v1934_v15 = vpop.eup %1933  ;;  %v877_v9 = vmul.f32 1.442695, %v847_v62 }
 0x262   : > { %923 = vadd.xlane.f32.xlu1 %v1928_v60  ;;  %v1094_v58 = vpack.c.bf16 %v1932_v57, %v1934_v15  ;;  %v1936_v8 = vpop.eup %1935  ;;  %v2604_v60 = vsub.f32 %v2278_v29, %v2288_v34  ;;  %v735_v29 = vmul.f32 1.442695, %v2609_v25 }
 0x263   : > { %1945 = vpow2.f32 %v877_v9  ;;  %v884_v9 = vld [vmem:[#allocation3 + $0x18] sm:$0xff] }
 0x264   : > { %1854 = vmatprep.mubr.bf16.mxu1 %v1094_v58  ;;  %1947 = vpow2.f32 %v723_v63  ;;  %v729_v4 = vmul.f32 1.442695, %v2604_v60 }
 0x265   : > { %v1938_v0 = vpop.eup %1937  ;;  %1949 = vpow2.f32 %v725_v41 }
 0x266   : > { %935 = vadd.xlane.f32.xlu1 %v1936_v8  ;;  %933 = vadd.xlane.f32.xlu0 %v1938_v0  ;;  %v1095_v11 = vpack.c.bf16 %v1936_v8, %v1938_v0  ;;  %v1940_v23 = vpop.eup %1939  ;;  %1951 = vpow2.f32 %v721_v2  ;;  %v882_v0 = vld [vmem:[#allocation3 + $0x8] sm:$0xff]  ;;  %v885_v2 = vld [vmem:[#allocation3 + $0x20] sm:$0xff] }
 0x267   : > { %1953 = vpow2.f32 %v729_v4 }
 0x268   : > { %1855 = vmatmul.mubr.bf16.gmra.mrb[8].mxu1 %v1095_v11  ;;  %1955 = vpow2.f32 %v727_v21 }
 0x269   : > { %v1942_v26 = vpop.eup %1941  ;;  %1957 = vpow2.f32 %v733_v16 }
 0x26a   : > { %931 = vadd.xlane.f32.xlu1 %v1932_v57  ;;  %929 = vadd.xlane.f32.xlu0 %v1934_v15  ;;  %v1096_v6 = vpack.c.bf16 %v1940_v23, %v1942_v26  ;;  %v1944_v59 = vpop.eup %1943  ;;  %1959 = vpow2.f32 %v731_v18  ;;  %v888_v18 = vld [vmem:[#allocation3 + $0x38] sm:$0xff] }
 0x26b   : > { %1961 = vpow2.f32 %v737_v19 }
 0x26c   : > { %1858 = vmatprep.mubr.bf16.mxu1 %v1096_v6  ;;  %1963 = vpow2.f32 %v735_v29  ;;  %v886_v29 = vld [vmem:[#allocation3 + $0x28] sm:$0xff] }
 0x26d   : > { %v1946_v5 = vpop.eup %1945  ;;  %1965 = vpow2.f32 %v741_v40 }
 0x26e   : > { %943 = vadd.xlane.f32.xlu1 %v1944_v59  ;;  %937 = vadd.xlane.f32.xlu0 %v1942_v26  ;;  %v1097_v30 = vpack.c.bf16 %v1944_v59, %v1946_v5  ;;  %v2445_v20 = vpop.eup %1947  ;;  %1967 = vpow2.f32 %v739_v45 }
 0x26f   : > { %v1950_v31 = vpop.eup %1949  ;;  %1969 = vpow2.f32 %v745_v36  ;;  %v898_v26 = vmul.f32 %v2445_v20, %v882_v0 }
 0x270   : > { %1859 = vmatmul.mubr.bf16.gmra.mrb[12].mxu1 %v1097_v30  ;;  %v1952_v34 = vpop.eup %1951  ;;  %1971 = vpow2.f32 %v743_v17  ;;  %v899_v12 = vmul.f32 %v1950_v31, %v883_v10  ;;  %v893_v10 = vld [vmem:[#allocation3 + $0x60] sm:$0xff] }
 0x271   : > { %v2460_v46 = vpop.eup %1953  ;;  %1973 = vpow2.f32 %v749_v22  ;;  %v897_v62 = vmul.f32 %v1952_v34, %v881_v52  ;;  %v890_v22 = vld [vmem:[#allocation3 + $0x48] sm:$0xff]  ;;  %v896_v52 = vld [vmem:[#allocation3 + $0x78] sm:$0xff] }
 0x272   : > { %939 = vadd.xlane.f32.xlu1 %v1940_v23  ;;  %941 = vadd.xlane.f32.xlu0 %v1946_v5  ;;  %v1956_v53 = vpop.eup %1955  ;;  %1975 = vpow2.f32 %v747_v44  ;;  %v887_v5 = vld [vmem:[#allocation3 + $0x30] sm:$0xff]  ;;  %v901_v28 = vmul.f32 %v2460_v46, %v885_v2 }
 0x273   : > { %v1958_v48 = vpop.eup %1957  ;;  %1977 = vpow2.f32 %v751_v51  ;;  %v900_v8 = vmul.f32 %v1956_v53, %v884_v9 }
 0x274   : > { %v2469_v3 = vpop.eup %1959  ;;  %v903_v63 = vmul.f32 %v1958_v48, %v887_v5 }
 0x275   : > { %v2478_v61 = vpop.eup %1961  ;;  %v902_v40 = vmul.f32 %v2469_v3, %v886_v29 }
 0x276   : > { %v2480_v49 = vpop.eup %1963  ;;  %v905_v54 = vmul.f32 %v2478_v61, %v889_v7 }
 0x277   : > { %v2487_v38 = vpop.eup %1965  ;;  %v904_v27 = vmul.f32 %v2480_v49, %v888_v18 }
 0x278   : > { %v2489_v39 = vpop.eup %1967 }
 0x279   : > { %v2493_v56 = vpop.eup %1969  ;;  %v906_v51 = vmul.f32 %v2489_v39, %v890_v22 }
 0x27a   : > { %v2495_v42 = vpop.eup %1971 }
 0x27b   : > { %v2499_v33 = vpop.eup %1973 }
 0x27c   : > { %v2501_v47 = vpop.eup %1975 }
 0x27d   : > { %v2505_v50 = vpop.eup %1977 }
 0x283   : > { %1001 = vperm.xlu1 %1898, %v2445_v20  }
 0x287   : > { %1006 = vperm.xlu1 %1898, %v1950_v31  }
 0x288   : > { %996 = vperm.xlu0 %1897, %v1952_v34  }
 0x28b   : > { %1016 = vperm.xlu1 %1898, %v2460_v46   ;;  %v891_v46 = vld [vmem:[#allocation3 + $0x50] sm:$0xff] }
 0x28c   : > { %1011 = vperm.xlu0 %1897, %v1956_v53   ;;  %v892_v53 = vld [vmem:[#allocation3 + $0x58] sm:$0xff]  ;;  %v907_v36 = vmul.f32 %v2487_v38, %v891_v46 }
 0x28d   : > { %v908_v55 = vmul.f32 %v2495_v42, %v892_v53 }
 0x28f   : > { %1026 = vperm.xlu1 %1898, %v1958_v48  }
 0x290   : > { %1021 = vperm.xlu0 %1897, %v2469_v3  }
 0x293   : > { %1036 = vperm.xlu1 %1898, %v2478_v61   ;;  %v912_v61 = vmul.f32 %v2505_v50, %v896_v52  ;;  %v982_v52 = vld [vmem:[#allocation4 + $0x20] sm:$0xff] }
 0x294   : > { %1031 = vperm.xlu0 %1897, %v2480_v49  }
 0x297   : > { %1046 = vperm.xlu1 %1898, %v2487_v38  }
 0x298   : > { %1041 = vperm.xlu0 %1897, %v2489_v39  }
 0x29b   : > { %1056 = vperm.xlu1 %1898, %v2493_v56  }
 0x29c   : > { %1051 = vperm.xlu0 %1897, %v2495_v42  }
 0x29f   : > { %1066 = vperm.xlu1 %1898, %v2499_v33  }
 0x2a0   : > { %1061 = vperm.xlu0 %1897, %v2501_v47  }
 0x2a4   : > { %1071 = vperm.xlu0 %1897, %v2505_v50  }
 0x2d2   : > { %v918_v1 = vpop.xlane.xlu0 %917 }
 0x2d3   : > { %v947_v57 = vadd.f32 %v918_v1, %v899_v12  ;;  %v914_v15 = vpop.xlane.xlu1 %913 }
 0x2d4   : > { %v945_v58 = vadd.f32 %v914_v15, %v897_v62  ;;  %v909_v15 = vmul.f32 %v2493_v56, %v893_v10 }
 0x2d5   : > { %964 = vst.msk [vmem:[#allocation3 + $0x10] sm:$0xff] %vm301_vm1, %v947_v57 }
 0x2d6   : > { %962 = vst.msk [vmem:[#allocation3] sm:$0xff] %vm301_vm1, %v945_v58  ;;  %v895_v58 = vld [vmem:[#allocation3 + $0x70] sm:$0xff] }
 0x2d7   : > { %v920_v11 = vpop.xlane.xlu1 %919 }
 0x2d8   : > { %v948_v23 = vadd.f32 %v920_v11, %v900_v8  ;;  %v894_v8 = vld [vmem:[#allocation3 + $0x68] sm:$0xff] }
 0x2da   : > { %965 = vst.msk [vmem:[#allocation3 + $0x18] sm:$0xff] %vm301_vm1, %v948_v23  ;;  %v916_v6 = vpop.xlane.xlu0 %915 }
 0x2db   : > { %v946_v59 = vadd.f32 %v916_v6, %v898_v26  ;;  %v911_v6 = vmul.f32 %v2499_v33, %v895_v58 }
 0x2dc   : > { %v1296_v30 = vld [vmem:[#allocation3 + $0x10] sm:$0xff] }
 0x2dd   : > { %963 = vst.msk [vmem:[#allocation3 + $0x8] sm:$0xff] %vm301_vm1, %v946_v59  ;;  %1979 = vrcp.f32 %v1296_v30  ;;  %v1294_v41 = vld [vmem:[#allocation3] sm:$0xff]  ;;  %v910_v59 = vmul.f32 %v2501_v47, %v894_v8 }
 0x2de   : > { %1981 = vrcp.f32 %v1294_v41 }
 0x2df   : > { %v926_v35 = vpop.xlane.xlu0 %925 }
 0x2e0   : > { %v951_v60 = vadd.f32 %v926_v35, %v903_v63 }
 0x2e1   : > { %v1297_v4 = vld [vmem:[#allocation3 + $0x18] sm:$0xff] }
 0x2e2   : > { %968 = vst.msk [vmem:[#allocation3 + $0x30] sm:$0xff] %vm301_vm1, %v951_v60  ;;  %1983 = vrcp.f32 %v1297_v4 }
 0x2e3   : > { %v922_v21 = vpop.xlane.xlu0 %921 }
 0x2e4   : > { %v949_v13 = vadd.f32 %v922_v21, %v901_v28  ;;  %v1295_v16 = vld [vmem:[#allocation3 + $0x8] sm:$0xff] }
 0x2e5   : > { %1985 = vrcp.f32 %v1295_v16 }
 0x2e6   : > { %966 = vst.msk [vmem:[#allocation3 + $0x20] sm:$0xff] %vm301_vm1, %v949_v13 }
 0x2e7   : > { %v1980_v14 = vpop.eup %1979 }
 0x2e8   : > { %1354 = vperm.xlu1 %1898, %v1980_v14   ;;  %v1982_v19 = vpop.eup %1981 }
 0x2e9   : > { %v1300_v20 = vld [vmem:[#allocation3 + $0x30] sm:$0xff] }
 0x2ea   : > { %1987 = vrcp.f32 %v1300_v20 }
 0x2eb   : > { %v928_v25 = vpop.xlane.xlu1 %927 }
 0x2ec   : > { %v1984_v31 = vpop.eup %1983  ;;  %v952_v34 = vadd.f32 %v928_v25, %v904_v27  ;;  %1344 = vperm.xlu1 %1898, %v1982_v19  }
 0x2ed   : > { %1359 = vperm.xlu0 %1897, %v1984_v31   ;;  %v1298_v37 = vld [vmem:[#allocation3 + $0x20] sm:$0xff] }
 0x2ee   : > { %969 = vst.msk [vmem:[#allocation3 + $0x38] sm:$0xff] %vm301_vm1, %v952_v34  ;;  %1989 = vrcp.f32 %v1298_v37  ;;  %v980_v34 = vld [vmem:[#allocation4 + $0x10] sm:$0xff]  ;;  %v978_v37 = vld [vmem:[#allocation4] sm:$0xff] }
 0x2ef   : > { %v1986_v43 = vpop.eup %1985  ;;  %v924_v45 = vpop.xlane.xlu1 %923 }
 0x2f0   : > { %v950_v32 = vadd.f32 %v924_v45, %v902_v40  ;;  %v981_v40 = vld [vmem:[#allocation4 + $0x18] sm:$0xff]  ;;  %v979_v45 = vld [vmem:[#allocation4 + $0x8] sm:$0xff] }
 0x2f1   : > { %1349 = vperm.xlu0 %1897, %v1986_v43  }
 0x2f2   : > { %967 = vst.msk [vmem:[#allocation3 + $0x28] sm:$0xff] %vm301_vm1, %v950_v32 }
 0x2f3   : > { %v934_v17 = vpop.xlane.xlu0 %933  ;;  %v936_v48 = vpop.xlane.xlu1 %935 }
 0x2f4   : > { %v1988_v24 = vpop.eup %1987  ;;  %v955_v44 = vadd.f32 %v934_v17, %v907_v36  ;;  %v956_v3 = vadd.f32 %v936_v48, %v908_v55 }
 0x2f5   : > { %1374 = vperm.xlu1 %1898, %v1988_v24   ;;  %v1301_v49 = vld [vmem:[#allocation3 + $0x38] sm:$0xff] }
 0x2f6   : > { %972 = vst.msk [vmem:[#allocation3 + $0x50] sm:$0xff] %vm301_vm1, %v955_v44  ;;  %973 = vst.msk [vmem:[#allocation3 + $0x58] sm:$0xff] %vm301_vm1, %v956_v3  ;;  %1991 = vrcp.f32 %v1301_v49 }
 0x2f7   : > { %v930_v38 = vpop.xlane.xlu0 %929  ;;  %v932_v42 = vpop.xlane.xlu1 %931 }
 0x2f8   : > { %v1990_v12 = vpop.eup %1989  ;;  %v953_v1 = vadd.f32 %v930_v38, %v905_v54  ;;  %v954_v62 = vadd.f32 %v932_v42, %v906_v51  ;;  %v984_v42 = vld [vmem:[#allocation4 + $0x30] sm:$0xff] }
 0x2f9   : > { %1364 = vperm.xlu1 %1898, %v1990_v12   ;;  %v1299_v57 = vld [vmem:[#allocation3 + $0x28] sm:$0xff]  ;;  %v985_v12 = vld [vmem:[#allocation4 + $0x38] sm:$0xff] }
 0x2fa   : > { %970 = vst.msk [vmem:[#allocation3 + $0x40] sm:$0xff] %vm301_vm1, %v953_v1  ;;  %971 = vst.msk [vmem:[#allocation3 + $0x48] sm:$0xff] %vm301_vm1, %v954_v62  ;;  %1993 = vrcp.f32 %v1299_v57  ;;  %v983_v1 = vld [vmem:[#allocation4 + $0x28] sm:$0xff] }
 0x2fb   : > { %v938_v39 = vpop.xlane.xlu0 %937  ;;  %v944_v9 = vpop.xlane.xlu1 %943 }
 0x2fc   : > { %v957_v0 = vadd.f32 %v938_v39, %v909_v15  ;;  %v960_v11 = vadd.f32 %v944_v9, %v912_v61 }
 0x2fd   : > { %v1304_v23 = vld [vmem:[#allocation3 + $0x50] sm:$0xff]  ;;  %v1305_v26 = vld [vmem:[#allocation3 + $0x58] sm:$0xff] }
 0x2fe   : > { %974 = vst.msk [vmem:[#allocation3 + $0x60] sm:$0xff] %vm301_vm1, %v957_v0  ;;  %977 = vst.msk [vmem:[#allocation3 + $0x78] sm:$0xff] %vm301_vm1, %v960_v11  ;;  %1995 = vrcp.f32 %v1304_v23 }
 0x2ff   : > { %v942_v56 = vpop.xlane.xlu0 %941  ;;  %v940_v50 = vpop.xlane.xlu1 %939  ;;  %1997 = vrcp.f32 %v1305_v26 }
 0x300   : > { %v1992_v5 = vpop.eup %1991  ;;  %v959_v30 = vadd.f32 %v942_v56, %v911_v6  ;;  %v958_v63 = vadd.f32 %v940_v50, %v910_v59  ;;  %v988_v59 = vld [vmem:[#allocation4 + $0x50] sm:$0xff]  ;;  %v986_v50 = vld [vmem:[#allocation4 + $0x40] sm:$0xff] }
 0x301   : > { %1379 = vperm.xlu0 %1897, %v1992_v5   ;;  %v1302_v41 = vld [vmem:[#allocation3 + $0x40] sm:$0xff]  ;;  %v1303_v35 = vld [vmem:[#allocation3 + $0x48] sm:$0xff]  ;;  %v989_v5 = vld [vmem:[#allocation4 + $0x58] sm:$0xff] }
 0x302   : > { %976 = vst.msk [vmem:[#allocation3 + $0x70] sm:$0xff] %vm301_vm1, %v959_v30  ;;  %975 = vst.msk [vmem:[#allocation3 + $0x68] sm:$0xff] %vm301_vm1, %v958_v63  ;;  %1999 = vrcp.f32 %v1302_v41  ;;  %v987_v63 = vld [vmem:[#allocation4 + $0x48] sm:$0xff] }
 0x303   : > { %2001 = vrcp.f32 %v1303_v35  ;;  %v1002_v27 = vpop.permute.xlu1 %1001 }
 0x304   : > { %v1994_v2 = vpop.eup %1993  ;;  %v1075_v7 = vmul.f32 %v1002_v27, %v979_v45 }
 0x305   : > { %1369 = vperm.xlu0 %1897, %v1994_v2   ;;  %v1306_v33 = vld [vmem:[#allocation3 + $0x60] sm:$0xff]  ;;  %v1309_v13 = vld [vmem:[#allocation3 + $0x78] sm:$0xff] }
 0x306   : > { %2003 = vrcp.f32 %v1306_v33 }
 0x307   : > { %v997_v19 = vpop.permute.xlu0 %996  ;;  %v1007_v29 = vpop.permute.xlu1 %1006 }
 0x308   : > { %v1996_v47 = vpop.eup %1995  ;;  %v1076_v46 = vmul.f32 %v1007_v29, %v980_v34  ;;  %v1074_v53 = vmul.f32 %v997_v19, %v978_v37  ;;  %v990_v19 = vld [vmem:[#allocation4 + $0x60] sm:$0xff] }
 0x309   : > { %v1998_v60 = vpop.eup %1997  ;;  %1394 = vperm.xlu1 %1898, %v1996_v47   ;;  %v1308_v4 = vld [vmem:[#allocation3 + $0x70] sm:$0xff]  ;;  %v1307_v28 = vld [vmem:[#allocation3 + $0x68] sm:$0xff] }
 0x30a   : > { %1399 = vperm.xlu0 %1897, %v1998_v60   ;;  %2005 = vrcp.f32 %v1308_v4 }
 0x30b   : > { %2007 = vrcp.f32 %v1307_v28  ;;  %v1012_v31 = vpop.permute.xlu0 %1011  ;;  %v1017_v43 = vpop.permute.xlu1 %1016 }
 0x30c   : > { %v2000_v21 = vpop.eup %1999  ;;  %2009 = vrcp.f32 %v1309_v13  ;;  %v1077_v55 = vmul.f32 %v1012_v31, %v981_v40  ;;  %v1078_v57 = vmul.f32 %v1017_v43, %v982_v52  ;;  %v991_v31 = vld [vmem:[#allocation4 + $0x68] sm:$0xff] }
 0x30d   : > { %v2002_v16 = vpop.eup %2001  ;;  %1384 = vperm.xlu1 %1898, %v2000_v21  }
 0x30e   : > { %1389 = vperm.xlu0 %1897, %v2002_v16  }
 0x30f   : > { %v1022_v32 = vpop.permute.xlu0 %1021  ;;  %v1027_v49 = vpop.permute.xlu1 %1026 }
 0x310   : > { %v2004_v14 = vpop.eup %2003  ;;  %v1080_v62 = vmul.f32 %v1027_v49, %v984_v42  ;;  %v1079_v8 = vmul.f32 %v1022_v32, %v983_v1 }
 0x311   : > { %1404 = vperm.xlu1 %1898, %v2004_v14  }
 0x313   : > { %v1032_v51 = vpop.permute.xlu0 %1031  ;;  %v1037_v38 = vpop.permute.xlu1 %1036 }
 0x314   : > { %v2006_v18 = vpop.eup %2005  ;;  %v1081_v39 = vmul.f32 %v1032_v51, %v985_v12  ;;  %v1082_v35 = vmul.f32 %v1037_v38, %v986_v50 }
 0x315   : > { %v2008_v20 = vpop.eup %2007  ;;  %1414 = vperm.xlu1 %1898, %v2006_v18   ;;  %v992_v18 = vld [vmem:[#allocation4 + $0x70] sm:$0xff] }
 0x316   : > { %1409 = vperm.xlu0 %1897, %v2008_v20   ;;  %v2010_v25 = vpop.eup %2009 }
 0x317   : > { %v1042_v10 = vpop.permute.xlu0 %1041  ;;  %v1047_v15 = vpop.permute.xlu1 %1046 }
 0x318   : > { %v1084_v41 = vmul.f32 %v1047_v15, %v988_v59  ;;  %v1083_v28 = vmul.f32 %v1042_v10, %v987_v63 }
 0x31a   : > { %1419 = vperm.xlu0 %1897, %v2010_v25   ;;  %v993_v25 = vld [vmem:[#allocation4 + $0x78] sm:$0xff] }
 0x31b   : > { %v1052_v0 = vpop.permute.xlu0 %1051  ;;  %v1057_v30 = vpop.permute.xlu1 %1056 }
 0x31c   : > { %v1085_v47 = vmul.f32 %v1052_v0, %v989_v5  ;;  %v1086_v37 = vmul.f32 %v1057_v30, %v990_v19 }
 0x31f   : > { %v1062_v2 = vpop.permute.xlu0 %1061  ;;  %v1067_v20 = vpop.permute.xlu1 %1066 }
 0x320   : > { %v1088_v34 = vmul.f32 %v1067_v20, %v992_v18 }
 0x323   : > { %v1848_v36 = vpop.f32.mrb[0].mxu1  ;;  %v1072_v29 = vpop.permute.xlu0 %1071 }
 0x324   : > { %v1245_v17 = vadd.f32 %v1848_v36, %v1076_v46  ;;  %v1180_v48 = vpop.f32.mrb[1].mxu1  ;;  %v1089_v43 = vmul.f32 %v1072_v29, %v993_v25 }
 0x325   : > { %v1243_v22 = vadd.f32 %v1180_v48, %v1074_v53  ;;  %v1849_v24 = vpop.f32.mrb[2].mxu1  ;;  %v1087_v53 = vmul.f32 %v1062_v2, %v991_v31 }
 0x326   : > { %1261 = vst.msk [vmem:[#allocation4 + $0x10] sm:$0xff] %vm334_vm0, %v1245_v17  ;;  %v1246_v44 = vadd.f32 %v1849_v24, %v1077_v55  ;;  %v1183_v3 = vpop.f32.mrb[3].mxu1 }
 0x327   : > { %1259 = vst.msk [vmem:[#allocation4] sm:$0xff] %vm334_vm0, %v1243_v22  ;;  %v1244_v54 = vadd.f32 %v1183_v3, %v1075_v7 }
 0x328   : > { %1262 = vst.msk [vmem:[#allocation4 + $0x18] sm:$0xff] %vm334_vm0, %v1246_v44 }
 0x329   : > { %1260 = vst.msk [vmem:[#allocation4 + $0x8] sm:$0xff] %vm334_vm0, %v1244_v54 }
 0x32d   : > { %v1328_v7 = vld [vmem:[#allocation4 + $0x10] sm:$0xff] }
 0x32e   : > { %v1326_v3 = vld [vmem:[#allocation4] sm:$0xff] }
 0x32f   : > { %v1329_v51 = vld [vmem:[#allocation4 + $0x18] sm:$0xff] }
 0x330   : > { %v1327_v1 = vld [vmem:[#allocation4 + $0x8] sm:$0xff] }
 0x333   : > { %v1852_v61 = vpop.f32.mrb[4].mxu1 }
 0x334   : > { %v1249_v9 = vadd.f32 %v1852_v61, %v1080_v62  ;;  %v1196_v58 = vpop.f32.mrb[5].mxu1 }
 0x335   : > { %v1247_v11 = vadd.f32 %v1196_v58, %v1078_v57  ;;  %v1853_v23 = vpop.f32.mrb[6].mxu1 }
 0x336   : > { %1265 = vst.msk [vmem:[#allocation4 + $0x30] sm:$0xff] %vm334_vm0, %v1249_v9  ;;  %v1250_v26 = vadd.f32 %v1853_v23, %v1081_v39  ;;  %v1199_v6 = vpop.f32.mrb[7].mxu1 }
 0x337   : > { %1263 = vst.msk [vmem:[#allocation4 + $0x20] sm:$0xff] %vm334_vm0, %v1247_v11  ;;  %v1248_v56 = vadd.f32 %v1199_v6, %v1079_v8 }
 0x338   : > { %1266 = vst.msk [vmem:[#allocation4 + $0x38] sm:$0xff] %vm334_vm0, %v1250_v26 }
 0x339   : > { %1264 = vst.msk [vmem:[#allocation4 + $0x28] sm:$0xff] %vm334_vm0, %v1248_v56 }
 0x33b   : > { %v1856_v33 = vpop.f32.mrb[8].mxu1 }
 0x33c   : > { %v1253_v60 = vadd.f32 %v1856_v33, %v1084_v41  ;;  %v1212_v4 = vpop.f32.mrb[9].mxu1 }
 0x33d   : > { %v1251_v21 = vadd.f32 %v1212_v4, %v1082_v35  ;;  %v1857_v13 = vpop.f32.mrb[10].mxu1  ;;  %v1332_v15 = vld [vmem:[#allocation4 + $0x30] sm:$0xff] }
 0x33e   : > { %1269 = vst.msk [vmem:[#allocation4 + $0x50] sm:$0xff] %vm334_vm0, %v1253_v60  ;;  %v1254_v16 = vadd.f32 %v1857_v13, %v1085_v47  ;;  %v1215_v14 = vpop.f32.mrb[11].mxu1  ;;  %v1330_v58 = vld [vmem:[#allocation4 + $0x20] sm:$0xff] }
 0x33f   : > { %1267 = vst.msk [vmem:[#allocation4 + $0x40] sm:$0xff] %vm334_vm0, %v1251_v21  ;;  %v1252_v27 = vadd.f32 %v1215_v14, %v1083_v28  ;;  %v1333_v23 = vld [vmem:[#allocation4 + $0x38] sm:$0xff] }
 0x340   : > { %1270 = vst.msk [vmem:[#allocation4 + $0x58] sm:$0xff] %vm334_vm0, %v1254_v16  ;;  %v1331_v56 = vld [vmem:[#allocation4 + $0x28] sm:$0xff] }
 0x341   : > { %1268 = vst.msk [vmem:[#allocation4 + $0x48] sm:$0xff] %vm334_vm0, %v1252_v27 }
 0x343   : > { %v1860_v40 = vpop.f32.mrb[12].mxu1 }
 0x344   : > { %v1257_v45 = vadd.f32 %v1860_v40, %v1088_v34  ;;  %v1228_v46 = vpop.f32.mrb[13].mxu1 }
 0x345   : > { %v1255_v32 = vadd.f32 %v1228_v46, %v1086_v37  ;;  %v1861_v36 = vpop.f32.mrb[14].mxu1  ;;  %v1336_v63 = vld [vmem:[#allocation4 + $0x50] sm:$0xff] }
 0x346   : > { %1273 = vst.msk [vmem:[#allocation4 + $0x70] sm:$0xff] %vm334_vm0, %v1257_v45  ;;  %v1258_v55 = vadd.f32 %v1861_v36, %v1089_v43  ;;  %v1231_v17 = vpop.f32.mrb[15].mxu1  ;;  %v1334_v28 = vld [vmem:[#allocation4 + $0x40] sm:$0xff] }
 0x347   : > { %1271 = vst.msk [vmem:[#allocation4 + $0x60] sm:$0xff] %vm334_vm0, %v1255_v32  ;;  %v1256_v48 = vadd.f32 %v1231_v17, %v1087_v53  ;;  %v1337_v35 = vld [vmem:[#allocation4 + $0x58] sm:$0xff] }
 0x348   : > { %1274 = vst.msk [vmem:[#allocation4 + $0x78] sm:$0xff] %vm334_vm0, %v1258_v55  ;;  %v1335_v13 = vld [vmem:[#allocation4 + $0x48] sm:$0xff] }
 0x349   : > { %1272 = vst.msk [vmem:[#allocation4 + $0x68] sm:$0xff] %vm334_vm0, %v1256_v48 }
 0x34d   : > { %v1340_v34 = vld [vmem:[#allocation4 + $0x70] sm:$0xff] }
 0x34e   : > { %v1338_v19 = vld [vmem:[#allocation4 + $0x60] sm:$0xff] }
 0x34f   : > { %v1341_v36 = vld [vmem:[#allocation4 + $0x78] sm:$0xff] }
 0x350   : > { %v1339_v40 = vld [vmem:[#allocation4 + $0x68] sm:$0xff] }
 0x367   : > { %v1355_v22 = vpop.permute.xlu1 %1354 }
 0x368   : > { %v1424_v24 = vmul.f32 %v1355_v22, %v1328_v7 }
 0x36a   : > { %v1752_v44 = vpack.c.bf16 %v1424_v24, %v1424_v24 }
 0x36b   : > { %v1345_v49 = vpop.permute.xlu1 %1344 }
 0x36c   : > { %1505 = vst.msk [vmem:[%s2556_s28 + $0x8] sm:$0xf] %vm1502_vm2, %v1752_v44  ;;  %v1422_v54 = vmul.f32 %v1345_v49, %v1326_v3  ;;  %v1360_v38 = vpop.permute.xlu0 %1359 }
 0x36d   : > { %v1425_v42 = vmul.f32 %v1360_v38, %v1329_v51 }
 0x36e   : > { %v1750_v10 = vpack.c.bf16 %v1422_v54, %v1422_v54 }
 0x36f   : > { %v1753_v52 = vpack.c.bf16 %v1425_v42, %v1425_v42 }
 0x370   : > { %1503 = vst.msk [vmem:[%s2556_s28] sm:$0xf] %vm1502_vm2, %v1750_v10  ;;  %v1350_v12 = vpop.permute.xlu0 %1349 }
 0x371   : > { %1506 = vst.msk [vmem:[%s2556_s28 + $0xc] sm:$0xf] %vm1502_vm2, %v1753_v52  ;;  %v1423_v62 = vmul.f32 %v1350_v12, %v1327_v1 }
 0x373   : > { %v1751_v57 = vpack.c.bf16 %v1423_v62, %v1423_v62 }
 0x374   : > { %v1375_v61 = vpop.permute.xlu1 %1374 }
 0x375   : > { %1504 = vst.msk [vmem:[%s2556_s28 + $0x4] sm:$0xf] %vm1502_vm2, %v1751_v57  ;;  %v1428_v39 = vmul.f32 %v1375_v61, %v1332_v15 }
 0x377   : > { %v1756_v9 = vpack.c.bf16 %v1428_v39, %v1428_v39 }
 0x378   : > { %v1365_v8 = vpop.permute.xlu1 %1364 }
 0x379   : > { %1509 = vst.msk [vmem:[%s2556_s28 + $0x18] sm:$0xf] %vm1502_vm2, %v1756_v9  ;;  %v1426_v0 = vmul.f32 %v1365_v8, %v1330_v58 }
 0x37b   : > { %v1754_v11 = vpack.c.bf16 %v1426_v0, %v1426_v0 }
 0x37d   : > { %1507 = vst.msk [vmem:[%s2556_s28 + $0x10] sm:$0xf] %vm1502_vm2, %v1754_v11 }
 0x380   : > { %v1380_v26 = vpop.permute.xlu0 %1379 }
 0x381   : > { %v1429_v6 = vmul.f32 %v1380_v26, %v1333_v23 }
 0x383   : > { %v1757_v59 = vpack.c.bf16 %v1429_v6, %v1429_v6 }
 0x384   : > { %v1370_v50 = vpop.permute.xlu0 %1369 }
 0x385   : > { %1510 = vst.msk [vmem:[%s2556_s28 + $0x1c] sm:$0xf] %vm1502_vm2, %v1757_v59  ;;  %v1427_v5 = vmul.f32 %v1370_v50, %v1331_v56 }
 0x387   : > { %v1755_v30 = vpack.c.bf16 %v1427_v5, %v1427_v5 }
 0x388   : > { %v1395_v41 = vpop.permute.xlu1 %1394 }
 0x389   : > { %1508 = vst.msk [vmem:[%s2556_s28 + $0x14] sm:$0xf] %vm1502_vm2, %v1755_v30  ;;  %v1400_v2 = vpop.permute.xlu0 %1399  ;;  %v1432_v33 = vmul.f32 %v1395_v41, %v1336_v63 }
 0x38a   : > { %v1433_v47 = vmul.f32 %v1400_v2, %v1337_v35 }
 0x38b   : > { %v1760_v60 = vpack.c.bf16 %v1432_v33, %v1432_v33 }
 0x38c   : > { %v1761_v4 = vpack.c.bf16 %v1433_v47, %v1433_v47  ;;  %v1385_v21 = vpop.permute.xlu1 %1384 }
 0x38d   : > { %1513 = vst.msk [vmem:[%s2556_s28 + $0x28] sm:$0xf] %vm1502_vm2, %v1760_v60  ;;  %v1390_v16 = vpop.permute.xlu0 %1389  ;;  %v1430_v14 = vmul.f32 %v1385_v21, %v1334_v28 }
 0x38e   : > { %1514 = vst.msk [vmem:[%s2556_s28 + $0x2c] sm:$0xf] %vm1502_vm2, %v1761_v4  ;;  %v1431_v18 = vmul.f32 %v1390_v16, %v1335_v13 }
 0x38f   : > { %v1758_v20 = vpack.c.bf16 %v1430_v14, %v1430_v14 }
 0x390   : > { %v1759_v27 = vpack.c.bf16 %v1431_v18, %v1431_v18  ;;  %v1405_v25 = vpop.permute.xlu1 %1404 }
 0x391   : > { %1511 = vst.msk [vmem:[%s2556_s28 + $0x20] sm:$0xf] %vm1502_vm2, %v1758_v20  ;;  %v1434_v29 = vmul.f32 %v1405_v25, %v1338_v19 }
 0x392   : > { %1512 = vst.msk [vmem:[%s2556_s28 + $0x24] sm:$0xf] %vm1502_vm2, %v1759_v27 }
 0x393   : > { %v1762_v31 = vpack.c.bf16 %v1434_v29, %v1434_v29 }
 0x394   : > { %v1415_v37 = vpop.permute.xlu1 %1414 }
 0x395   : > { %1515 = vst.msk [vmem:[%s2556_s28 + $0x30] sm:$0xf] %vm1502_vm2, %v1762_v31  ;;  %v1410_v43 = vpop.permute.xlu0 %1409  ;;  %v1436_v45 = vmul.f32 %v1415_v37, %v1340_v34 }
 0x396   : > { %v1435_v46 = vmul.f32 %v1410_v43, %v1339_v40 }
 0x397   : > { %v1764_v53 = vpack.c.bf16 %v1436_v45, %v1436_v45 }
 0x398   : > { %v1763_v32 = vpack.c.bf16 %v1435_v46, %v1435_v46 }
 0x399   : > { %1517 = vst.msk [vmem:[%s2556_s28 + $0x38] sm:$0xf] %vm1502_vm2, %v1764_v53  ;;  %v1420_v55 = vpop.permute.xlu0 %1419 }
 0x39a   : > { %1516 = vst.msk [vmem:[%s2556_s28 + $0x34] sm:$0xf] %vm1502_vm2, %v1763_v32  ;;  %v1437_v17 = vmul.f32 %v1420_v55, %v1341_v36 }
 0x39c   : > { %v1765_v48 = vpack.c.bf16 %v1437_v17, %v1437_v17 }
 0x39e   : > { %1518 = vst.msk [vmem:[%s2556_s28 + $0x3c] sm:$0xf] %vm1502_vm2, %v1765_v48 }
 0x39f PF: > { %s13_s14 = sadd.s32 1, %s2033_s14   ;;  %s2617_s12 = smov %s2029_s13 }
 0x3a0   : > { %p10_p5 = scmp.ge.s32.totalorder %s13_s14, 6   ;;  %s2618_s13 = smov %s2620_s15 }
 0x3a2   :  { %12 = sbr.rel (!%p10_p5) target bundleno = 2 (0x2), region = 76 }

// kernel: text_classifier_forward.15
= control target key start
LH: loop header
LB: loop body
LE: loop exit
PB: predicated region body
PF: predicated region fallthrough
CT: control target
= control target key end

     0   :  { %s2133_s1 = inlined_call_operand.vmem [shape: bf16[128,128], index: 1, kind: input, shape index: {}]   ;;  %s2134_s0 = inlined_call_operand.vmem [shape: bf16[256,128], index: 0, kind: input, shape index: {}]   ;;  %s2135_s3 = inlined_call_operand.vmem [shape: bf16[256,128], index: 3, kind: input, shape index: {}]   ;;  %s2136_s2 = inlined_call_operand.vmem [shape: f32[1,128], index: 2, kind: input, shape index: {}]   ;;  %s2137_s4 = inlined_call_operand.vmem [shape: f32[1,128], index: 4, kind: input, shape index: {}]   ;;  %s2138_s5 = inlined_call_operand.vmem [shape: f32[1,128], index: 5, kind: input, shape index: {}]   ;;  %s2139_s6 = inlined_call_operand.vmem [shape: bf16[256,128], index: 6, kind: output, shape index: {}]  }
   0x1   :  { %v1428_v0 = vld [vmem:[%s2133_s1] sm:$0xff]   ;;  %v1429_v1 = vld [vmem:[%s2133_s1 + $0x8] sm:$0xff]   ;;  %v1430_v2 = vld [vmem:[%s2133_s1 + $0x10] sm:$0xff]  }
   0x2   :  { %1364 = vmatprep.subr.bf16.mxu0 %v1428_v0  ;;  %1412 = vmatprep.subr.bf16.mxu1 %v1428_v0  ;;  %v1431_v3 = vld [vmem:[%s2133_s1 + $0x18] sm:$0xff]   ;;  %v1436_v4 = vld [vmem:[%s2134_s0] sm:$0xff]   ;;  %v1433_v7 = vld [vmem:[%s2133_s1 + $0x28] sm:$0xff]  }
   0x3   :  { %1365 = vmatpush3.bf16.msra.mxu0 %v1428_v0  ;;  %1420 = vmatpush3.bf16.msra.mxu1 %v1428_v0  ;;  %v1437_v5 = vld [vmem:[%s2134_s0 + $0x40] sm:$0xff]   ;;  %v1434_v8 = vld [vmem:[%s2133_s1 + $0x30] sm:$0xff]   ;;  %v1435_v9 = vld [vmem:[%s2133_s1 + $0x38] sm:$0xff]  }
   0x4   :  { %1366 = vmatprep.subr.bf16.mxu0 %v1429_v1  ;;  %1413 = vmatprep.subr.bf16.mxu1 %v1429_v1  ;;  %v1432_v6 = vld [vmem:[%s2133_s1 + $0x20] sm:$0xff]   ;;  %v1438_v10 = vld [vmem:[%s2134_s0 + $0x8] sm:$0xff]   ;;  %v1440_v12 = vld [vmem:[%s2134_s0 + $0x10] sm:$0xff]  }
   0x5   :  { %1380 = vmatprep.mubr.bf16.mxu0 %v1436_v4  ;;  %1396 = vmatprep.mubr.bf16.mxu1 %v1437_v5  ;;  %v1439_v11 = vld [vmem:[%s2134_s0 + $0x48] sm:$0xff]   ;;  %v1442_v13 = vld [vmem:[%s2134_s0 + $0x50] sm:$0xff]   ;;  %v1441_v14 = vld [vmem:[%s2134_s0 + $0x18] sm:$0xff]  }
   0x6   :  { %v1443_v15 = vld [vmem:[%s2134_s0 + $0x58] sm:$0xff]   ;;  %v1444_v16 = vld [vmem:[%s2134_s0 + $0x20] sm:$0xff]   ;;  %v1445_v18 = vld [vmem:[%s2134_s0 + $0x28] sm:$0xff]  }
   0x7   :  { %1367 = vmatpush3.bf16.msra.mxu0 %v1429_v1  ;;  %1421 = vmatpush3.bf16.msra.mxu1 %v1429_v1  ;;  %v1446_v17 = vld [vmem:[%s2134_s0 + $0x60] sm:$0xff]   ;;  %v1447_v19 = vld [vmem:[%s2134_s0 + $0x68] sm:$0xff]   ;;  %v1448_v20 = vld [vmem:[%s2134_s0 + $0x30] sm:$0xff]  }
   0x8   :  { %1368 = vmatprep.subr.bf16.mxu0 %v1430_v2  ;;  %1414 = vmatprep.subr.bf16.mxu1 %v1430_v2  ;;  %v1450_v21 = vld [vmem:[%s2134_s0 + $0x70] sm:$0xff]   ;;  %v1449_v22 = vld [vmem:[%s2134_s0 + $0x38] sm:$0xff]   ;;  %v1318_v24 = vld [vmem:[%s2135_s3 + $0x48] sm:$0xff]  }
   0x9   :  { %v1451_v23 = vld [vmem:[%s2134_s0 + $0x78] sm:$0xff]   ;;  %v1310_v25 = vld [vmem:[%s2135_s3 + $0x8] sm:$0xff]   ;;  %v1632_v26 = vld [vmem:[%s2136_s2] ss:$0 sm:$0xff]  ;;  %v1204_v27 = vunpack.c.l.bf16 %v1318_v24  ;;  %v1205_v47 = vunpack.c.h.bf16 %v1318_v24 }
   0xa   :  { %v1172_v28 = vunpack.c.l.bf16 %v1310_v25  ;;  %v1167_v29 = vld [vmem:[%s2135_s3] sm:$0xff]   ;;  %v1173_v38 = vunpack.c.h.bf16 %v1310_v25  ;;  %v1312_v61 = vld [vmem:[%s2135_s3 + $0x18] sm:$0xff]   ;;  %v1311_v25 = vld [vmem:[%s2135_s3 + $0x10] sm:$0xff]  }
   0xb   :  { %1369 = vmatpush3.bf16.msra.mxu0 %v1430_v2  ;;  %1422 = vmatpush3.bf16.msra.mxu1 %v1430_v2  ;;  %v1168_v39 = vunpack.c.l.bf16 %v1167_v29  ;;  %v1317_v46 = vld [vmem:[%s2135_s3 + $0x40] sm:$0xff]   ;;  %v1169_v59 = vunpack.c.h.bf16 %v1167_v29 }
   0xc   :  { %1370 = vmatprep.subr.bf16.mxu0 %v1431_v3  ;;  %1415 = vmatprep.subr.bf16.mxu1 %v1431_v3  ;;  %v1200_v48 = vunpack.c.l.bf16 %v1317_v46  ;;  %v1201_v58 = vunpack.c.h.bf16 %v1317_v46 }
   0xf   :  { %1371 = vmatpush3.bf16.msra.mxu0 %v1431_v3  ;;  %1423 = vmatpush3.bf16.msra.mxu1 %v1431_v3 }
  0x10   :  { %1372 = vmatprep.subr.bf16.mxu0 %v1432_v6  ;;  %1416 = vmatprep.subr.bf16.mxu1 %v1432_v6 }
  0x13   :  { %1373 = vmatpush3.bf16.msra.mxu0 %v1432_v6  ;;  %1424 = vmatpush3.bf16.msra.mxu1 %v1432_v6  ;;  %v1181_v6 = vunpack.c.h.bf16 %v1312_v61 }
  0x14   :  { %1374 = vmatprep.subr.bf16.mxu0 %v1433_v7  ;;  %1417 = vmatprep.subr.bf16.mxu1 %v1433_v7 }
  0x17   :  { %1375 = vmatpush3.bf16.msra.mxu0 %v1433_v7  ;;  %1425 = vmatpush3.bf16.msra.mxu1 %v1433_v7  ;;  %v1180_v7 = vunpack.c.l.bf16 %v1312_v61 }
  0x18   :  { %1376 = vmatprep.subr.bf16.mxu0 %v1434_v8  ;;  %1418 = vmatprep.subr.bf16.mxu1 %v1434_v8 }
  0x1b   :  { %1377 = vmatpush3.bf16.msra.mxu0 %v1434_v8  ;;  %1426 = vmatpush3.bf16.msra.mxu1 %v1434_v8  ;;  %v1320_v8 = vld [vmem:[%s2135_s3 + $0x58] sm:$0xff]  }
  0x1c   :  { %1378 = vmatprep.subr.bf16.mxu0 %v1435_v9  ;;  %1419 = vmatprep.subr.bf16.mxu1 %v1435_v9 }
  0x1f   :  { %1379 = vmatpush3.bf16.msra.mxu0 %v1435_v9  ;;  %1427 = vmatpush3.bf16.msra.mxu1 %v1435_v9 }
  0x22   :  { %1381 = vmatmul.mubr.bf16.vlgmr.msra.gmra.mrb[0].mxu0 %v1438_v10  ;;  %1397 = vmatmul.mubr.bf16.vlgmr.msra.gmra.mrb[0].mxu1 %v1439_v11 }
  0x23   :  { %1384 = vmatprep.mubr.bf16.mxu0 %v1440_v12  ;;  %1400 = vmatprep.mubr.bf16.mxu1 %v1442_v13  ;;  %v1213_v12 = vunpack.c.h.bf16 %v1320_v8 }
  0x2a   :  { %1385 = vmatmul.mubr.bf16.gmra.mrb[4].mxu0 %v1441_v14  ;;  %1401 = vmatmul.mubr.bf16.gmra.mrb[4].mxu1 %v1443_v15 }
  0x2b   :  { %1388 = vmatprep.mubr.bf16.mxu0 %v1444_v16  ;;  %1404 = vmatprep.mubr.bf16.mxu1 %v1446_v17 }
  0x32   :  { %1389 = vmatmul.mubr.bf16.gmra.mrb[8].mxu0 %v1445_v18  ;;  %1405 = vmatmul.mubr.bf16.gmra.mrb[8].mxu1 %v1447_v19  ;;  %v1212_v18 = vunpack.c.l.bf16 %v1320_v8 }
  0x33   :  { %1392 = vmatprep.mubr.bf16.mxu0 %v1448_v20  ;;  %1408 = vmatprep.mubr.bf16.mxu1 %v1450_v21 }
  0x3a   :  { %1393 = vmatmul.mubr.bf16.gmra.mrb[12].mxu0 %v1449_v22  ;;  %1409 = vmatmul.mubr.bf16.gmra.mrb[12].mxu1 %v1451_v23 }
  0xf5   :  { %v1382_v30 = vpop.f32.mrb[0].mxu0  ;;  %v1398_v31 = vpop.f32.mrb[0].mxu1 }
  0xf6   :  { %v266_v32 = vadd.f32 %v1382_v30, %v1632_v26  ;;  %v330_v33 = vadd.f32 %v1398_v31, %v1632_v26  ;;  %v257_v34 = vpop.f32.mrb[1].mxu0  ;;  %v321_v35 = vpop.f32.mrb[1].mxu1  ;;  %v1177_v31 = vunpack.c.h.bf16 %v1311_v25 }
  0xf7   :  { %v1383_v36 = vpop.f32.mrb[2].mxu0  ;;  %v1399_v37 = vpop.f32.mrb[2].mxu1  ;;  %v258_v40 = vadd.f32 %v1632_v26, %v257_v34  ;;  %v322_v49 = vadd.f32 %v1632_v26, %v321_v35 }
  0xf8   :  { %v269_v41 = vadd.f32 %v1383_v36, %v1632_v26  ;;  %v260_v42 = vpop.f32.mrb[3].mxu0  ;;  %v324_v43 = vpop.f32.mrb[3].mxu1  ;;  %v1641_v44 = vadd.f32 %v1204_v27, %v330_v33  ;;  %v1643_v45 = vadd.f32 %v1172_v28, %v266_v32  ;;  %v333_v50 = vadd.f32 %v1399_v37, %v1632_v26  ;;  %v1319_v33 = vld [vmem:[%s2135_s3 + $0x50] sm:$0xff]  }
  0xf9   :  { %v1654_v52 = vadd.f32 %v1168_v39, %v258_v40  ;;  %v261_v62 = vadd.f32 %v1632_v26, %v260_v42  ;;  %v325_v63 = vadd.f32 %v1632_v26, %v324_v43  ;;  %v1665_v1 = vadd.f32 %v1200_v48, %v322_v49  ;;  %v1314_v40 = vld [vmem:[%s2135_s3 + $0x28] sm:$0xff]  }
  0xfa   :  { %516 = vadd.xlane.f32.xlu0 %v1641_v44  ;;  %484 = vadd.xlane.f32.xlu1 %v1643_v45  ;;  %v1652_v51 = vadd.f32 %v1173_v38, %v269_v41  ;;  %v1663_v0 = vadd.f32 %v1205_v47, %v333_v50  ;;  %v1176_v32 = vunpack.c.l.bf16 %v1311_v25  ;;  %v1209_v38 = vunpack.c.h.bf16 %v1319_v33 }
  0xfb   :  { %v1674_v9 = vadd.f32 %v1201_v58, %v325_v63  ;;  %v1676_v10 = vadd.f32 %v1169_v59, %v261_v62  ;;  %v1208_v39 = vunpack.c.l.bf16 %v1319_v33 }
  0xfd   :  { %v1386_v53 = vpop.f32.mrb[4].mxu0  ;;  %v1402_v54 = vpop.f32.mrb[4].mxu1 }
  0xfe   :  { %486 = vadd.xlane.f32.xlu1 %v1652_v51  ;;  %480 = vadd.xlane.f32.xlu0 %v1654_v52  ;;  %v273_v55 = vpop.f32.mrb[5].mxu0  ;;  %v337_v56 = vpop.f32.mrb[5].mxu1  ;;  %v282_v4 = vadd.f32 %v1386_v53, %v1632_v26  ;;  %v346_v11 = vadd.f32 %v1402_v54, %v1632_v26 }
  0xff   :  { %v1387_v57 = vpop.f32.mrb[6].mxu0  ;;  %v1403_v60 = vpop.f32.mrb[6].mxu1  ;;  %v274_v29 = vadd.f32 %v1632_v26, %v273_v55  ;;  %v338_v43 = vadd.f32 %v1632_v26, %v337_v56  ;;  %v1189_v55 = vunpack.c.h.bf16 %v1314_v40  ;;  %v1322_v56 = vld [vmem:[%s2135_s3 + $0x68] sm:$0xff]  }
 0x100   :  { %v276_v2 = vpop.f32.mrb[7].mxu0  ;;  %v340_v3 = vpop.f32.mrb[7].mxu1  ;;  %v285_v5 = vadd.f32 %v1387_v57, %v1632_v26  ;;  %v349_v15 = vadd.f32 %v1403_v60, %v1632_v26  ;;  %v1684_v17 = vadd.f32 %v1180_v7, %v282_v4  ;;  %v1695_v28 = vadd.f32 %v1212_v18, %v346_v11  ;;  %v1313_v4 = vld [vmem:[%s2135_s3 + $0x20] sm:$0xff]   ;;  %v1316_v18 = vld [vmem:[%s2135_s3 + $0x38] sm:$0xff]  }
 0x101   :  { %v277_v30 = vadd.f32 %v1632_v26, %v276_v2  ;;  %v341_v46 = vadd.f32 %v1632_v26, %v340_v3  ;;  %v1719_v48 = vadd.f32 %v1176_v32, %v274_v29  ;;  %v1188_v57 = vunpack.c.l.bf16 %v1314_v40 }
 0x102   :  { %518 = vadd.xlane.f32.xlu1 %v1663_v0  ;;  %512 = vadd.xlane.f32.xlu0 %v1665_v1  ;;  %v1682_v16 = vadd.f32 %v1181_v6, %v285_v5  ;;  %v1693_v27 = vadd.f32 %v1213_v12, %v349_v15  ;;  %v1730_v59 = vadd.f32 %v1208_v39, %v338_v43  ;;  %v1221_v61 = vunpack.c.h.bf16 %v1322_v56 }
 0x103   :  { %v1717_v47 = vadd.f32 %v1177_v31, %v277_v30  ;;  %v1728_v58 = vadd.f32 %v1209_v38, %v341_v46  ;;  %v1220_v3 = vunpack.c.l.bf16 %v1322_v56  ;;  %v1185_v11 = vunpack.c.h.bf16 %v1313_v4 }
 0x104   :  { %v1184_v12 = vunpack.c.l.bf16 %v1313_v4  ;;  %v1197_v30 = vunpack.c.h.bf16 %v1316_v18  ;;  %v1196_v31 = vunpack.c.l.bf16 %v1316_v18 }
 0x105   :  { %v1390_v13 = vpop.f32.mrb[8].mxu0  ;;  %v1406_v14 = vpop.f32.mrb[8].mxu1 }
 0x106   :  { %514 = vadd.xlane.f32.xlu1 %v1674_v9  ;;  %482 = vadd.xlane.f32.xlu0 %v1676_v10  ;;  %v289_v19 = vpop.f32.mrb[9].mxu0  ;;  %v1686_v20 = vpop.f32.mrb[9].mxu1  ;;  %v298_v53 = vadd.f32 %v1390_v13, %v1632_v26  ;;  %v362_v60 = vadd.f32 %v1406_v14, %v1632_v26  ;;  %v1321_v13 = vld [vmem:[%s2135_s3 + $0x60] sm:$0xff]  }
 0x107   :  { %v1391_v21 = vpop.f32.mrb[10].mxu0  ;;  %v1407_v22 = vpop.f32.mrb[10].mxu1  ;;  %v290_v7 = vadd.f32 %v1632_v26, %v289_v19  ;;  %v1217_v14 = vunpack.c.h.bf16 %v1321_v13  ;;  %v1216_v15 = vunpack.c.l.bf16 %v1321_v13  ;;  %v354_v19 = vadd.f32 %v1632_v26, %v1686_v20  ;;  %v1315_v20 = vld [vmem:[%s2135_s3 + $0x30] sm:$0xff]  }
 0x108   :  { %v292_v23 = vpop.f32.mrb[11].mxu0  ;;  %v356_v24 = vpop.f32.mrb[11].mxu1  ;;  %v301_v54 = vadd.f32 %v1391_v21, %v1632_v26  ;;  %v365_v62 = vadd.f32 %v1407_v22, %v1632_v26  ;;  %v1738_v2 = vadd.f32 %v1188_v57, %v298_v53  ;;  %v1747_v6 = vadd.f32 %v1220_v3, %v362_v60 }
 0x109   :  { %v293_v8 = vadd.f32 %v1632_v26, %v292_v23  ;;  %v357_v21 = vadd.f32 %v1632_v26, %v356_v24  ;;  %v1764_v23 = vadd.f32 %v1184_v12, %v290_v7  ;;  %v1772_v33 = vadd.f32 %v1216_v15, %v354_v19 }
 0x10a   :  { %494 = vadd.xlane.f32.xlu1 %v1682_v16  ;;  %492 = vadd.xlane.f32.xlu0 %v1684_v17  ;;  %v1736_v63 = vadd.f32 %v1189_v55, %v301_v54  ;;  %v1745_v5 = vadd.f32 %v1221_v61, %v365_v62  ;;  %v1192_v43 = vunpack.c.l.bf16 %v1315_v20 }
 0x10b   :  { %v1762_v22 = vadd.f32 %v1185_v11, %v293_v8  ;;  %v1770_v32 = vadd.f32 %v1217_v14, %v357_v21 }
 0x10d   :  { %v1394_v34 = vpop.f32.mrb[12].mxu0  ;;  %v1702_v35 = vpop.f32.mrb[12].mxu1 }
 0x10e   :  { %526 = vadd.xlane.f32.xlu1 %v1693_v27  ;;  %524 = vadd.xlane.f32.xlu0 %v1695_v28  ;;  %v1706_v36 = vpop.f32.mrb[13].mxu0  ;;  %v1708_v37 = vpop.f32.mrb[13].mxu1  ;;  %v314_v25 = vadd.f32 %v1394_v34, %v1632_v26  ;;  %v1323_v34 = vld [vmem:[%s2135_s3 + $0x70] sm:$0xff]  }
 0x10f   :  { %v1395_v41 = vpop.f32.mrb[14].mxu0  ;;  %v1713_v42 = vpop.f32.mrb[14].mxu1  ;;  %v306_v39 = vadd.f32 %v1632_v26, %v1706_v36  ;;  %v370_v46 = vadd.f32 %v1632_v26, %v1708_v37  ;;  %v1225_v54 = vunpack.c.h.bf16 %v1323_v34  ;;  %v1224_v55 = vunpack.c.l.bf16 %v1323_v34  ;;  %v1324_v36 = vld [vmem:[%s2135_s3 + $0x78] sm:$0xff]  }
 0x110   :  { %v308_v49 = vpop.f32.mrb[15].mxu0  ;;  %v372_v50 = vpop.f32.mrb[15].mxu1  ;;  %v317_v29 = vadd.f32 %v1395_v41, %v1632_v26  ;;  %v1781_v38 = vadd.f32 %v1196_v31, %v314_v25  ;;  %v1193_v41 = vunpack.c.h.bf16 %v1315_v20  ;;  %v378_v37 = vadd.f32 %v1702_v35, %v1632_v26 }
 0x111   :  { %v309_v40 = vadd.f32 %v1632_v26, %v308_v49  ;;  %v373_v53 = vadd.f32 %v1632_v26, %v372_v50  ;;  %v1796_v56 = vadd.f32 %v1192_v43, %v306_v39  ;;  %v1805_v60 = vadd.f32 %v1224_v55, %v370_v46 }
 0x112   :  { %490 = vadd.xlane.f32.xlu1 %v1717_v47  ;;  %488 = vadd.xlane.f32.xlu0 %v1719_v48  ;;  %v1779_v24 = vadd.f32 %v1197_v30, %v317_v29  ;;  %v381_v50 = vadd.f32 %v1713_v42, %v1632_v26  ;;  %v1229_v61 = vunpack.c.h.bf16 %v1324_v36  ;;  %v1228_v62 = vunpack.c.l.bf16 %v1324_v36 }
 0x113   :  { %v1794_v57 = vadd.f32 %v1193_v41, %v309_v40  ;;  %v1803_v49 = vadd.f32 %v1225_v54, %v373_v53 }
 0x114   :  { %v1813_v3 = vadd.f32 %v1229_v61, %v381_v50  ;;  %v1815_v4 = vadd.f32 %v1228_v62, %v378_v37 }
 0x116   :  { %522 = vadd.xlane.f32.xlu1 %v1728_v58  ;;  %520 = vadd.xlane.f32.xlu0 %v1730_v59 }
 0x11a   :  { %502 = vadd.xlane.f32.xlu1 %v1736_v63  ;;  %500 = vadd.xlane.f32.xlu0 %v1738_v2 }
 0x11e   :  { %534 = vadd.xlane.f32.xlu1 %v1745_v5  ;;  %532 = vadd.xlane.f32.xlu0 %v1747_v6 }
 0x122   :  { %498 = vadd.xlane.f32.xlu1 %v1762_v22  ;;  %496 = vadd.xlane.f32.xlu0 %v1764_v23 }
 0x126   :  { %530 = vadd.xlane.f32.xlu1 %v1770_v32  ;;  %528 = vadd.xlane.f32.xlu0 %v1772_v33 }
 0x12a   :  { %510 = vadd.xlane.f32.xlu1 %v1779_v24  ;;  %508 = vadd.xlane.f32.xlu0 %v1781_v38 }
 0x12e   :  { %506 = vadd.xlane.f32.xlu1 %v1794_v57  ;;  %504 = vadd.xlane.f32.xlu0 %v1796_v56 }
 0x132   :  { %538 = vadd.xlane.f32.xlu1 %v1803_v49  ;;  %536 = vadd.xlane.f32.xlu0 %v1805_v60 }
 0x136   :  { %542 = vadd.xlane.f32.xlu1 %v1813_v3  ;;  %540 = vadd.xlane.f32.xlu0 %v1815_v4 }
 0x187   :  { %v517_v7 = vpop.xlane.xlu0 %516  ;;  %v485_v8 = vpop.xlane.xlu1 %484 }
 0x188   :  { %v563_v35 = vmul.f32 0.0078125, %v517_v7  ;;  %v547_v11 = vmul.f32 0.0078125, %v485_v8 }
 0x18a   :  { %v1820_v26 = vsub.f32 %v1643_v45, %v547_v11  ;;  %v1823_v13 = vsub.f32 %v1641_v44, %v563_v35 }
 0x18b   :  { %v487_v42 = vpop.xlane.xlu1 %486  ;;  %v481_v12 = vpop.xlane.xlu0 %480 }
 0x18c   :  { %v548_v14 = vmul.f32 0.0078125, %v487_v42  ;;  %v545_v15 = vmul.f32 0.0078125, %v481_v12  ;;  %v611_v18 = vmul.f32 %v1820_v26, %v1820_v26  ;;  %v627_v31 = vmul.f32 %v1823_v13, %v1823_v13 }
 0x18e   :  { %v1828_v19 = vsub.f32 %v1652_v51, %v548_v14  ;;  %645 = vadd.xlane.f32.xlu0 %v611_v18  ;;  %v1831_v21 = vsub.f32 %v1654_v52, %v545_v15 }
 0x18f   :  { %v519_v25 = vpop.xlane.xlu1 %518  ;;  %v513_v45 = vpop.xlane.xlu0 %512 }
 0x190   :  { %v564_v29 = vmul.f32 0.0078125, %v519_v25  ;;  %v561_v30 = vmul.f32 0.0078125, %v513_v45  ;;  %v612_v44 = vmul.f32 %v1828_v19, %v1828_v19  ;;  %v609_v52 = vmul.f32 %v1831_v21, %v1831_v21 }
 0x192   :  { %v1838_v20 = vsub.f32 %v1663_v0, %v564_v29  ;;  %647 = vadd.xlane.f32.xlu1 %v612_v44  ;;  %677 = vadd.xlane.f32.xlu0 %v627_v31  ;;  %v1843_v39 = vsub.f32 %v1665_v1, %v561_v30 }
 0x193   :  { %v515_v51 = vpop.xlane.xlu1 %514  ;;  %v483_v34 = vpop.xlane.xlu0 %482 }
 0x194   :  { %v562_v40 = vmul.f32 0.0078125, %v515_v51  ;;  %v546_v41 = vmul.f32 0.0078125, %v483_v34  ;;  %v628_v43 = vmul.f32 %v1838_v20, %v1838_v20  ;;  %v625_v1 = vmul.f32 %v1843_v39, %v1843_v39 }
 0x196   :  { %v1848_v46 = vsub.f32 %v1676_v10, %v546_v41  ;;  %679 = vadd.xlane.f32.xlu1 %v628_v43  ;;  %641 = vadd.xlane.f32.xlu0 %v609_v52  ;;  %v1851_v0 = vsub.f32 %v1674_v9, %v562_v40 }
 0x197   :  { %v495_v53 = vpop.xlane.xlu1 %494  ;;  %v493_v54 = vpop.xlane.xlu0 %492 }
 0x198   :  { %v552_v55 = vmul.f32 0.0078125, %v495_v53  ;;  %v551_v36 = vmul.f32 0.0078125, %v493_v54  ;;  %v610_v37 = vmul.f32 %v1848_v46, %v1848_v46  ;;  %v626_v9 = vmul.f32 %v1851_v0, %v1851_v0 }
 0x19a   :  { %v1858_v50 = vsub.f32 %v1684_v17, %v551_v36  ;;  %673 = vadd.xlane.f32.xlu0 %v625_v1  ;;  %643 = vadd.xlane.f32.xlu1 %v610_v37  ;;  %v1863_v62 = vsub.f32 %v1682_v16, %v552_v55 }
 0x19b   :  { %v527_v10 = vpop.xlane.xlu1 %526  ;;  %v525_v61 = vpop.xlane.xlu0 %524 }
 0x19c   :  { %v568_v7 = vmul.f32 0.0078125, %v527_v10  ;;  %v567_v8 = vmul.f32 0.0078125, %v525_v61  ;;  %v615_v35 = vmul.f32 %v1858_v50, %v1858_v50  ;;  %v616_v16 = vmul.f32 %v1863_v62, %v1863_v62 }
 0x19e   :  { %v1868_v11 = vsub.f32 %v1695_v28, %v567_v8  ;;  %675 = vadd.xlane.f32.xlu1 %v626_v9  ;;  %653 = vadd.xlane.f32.xlu0 %v615_v35  ;;  %v1871_v17 = vsub.f32 %v1693_v27, %v568_v7 }
 0x19f   :  { %v491_v42 = vpop.xlane.xlu1 %490  ;;  %v489_v12 = vpop.xlane.xlu0 %488 }
 0x1a0   :  { %v550_v14 = vmul.f32 0.0078125, %v491_v42  ;;  %v549_v15 = vmul.f32 0.0078125, %v489_v12  ;;  %v631_v18 = vmul.f32 %v1868_v11, %v1868_v11  ;;  %v632_v27 = vmul.f32 %v1871_v17, %v1871_v17 }
 0x1a2   :  { %v1878_v25 = vsub.f32 %v1719_v48, %v549_v15  ;;  %655 = vadd.xlane.f32.xlu1 %v616_v16  ;;  %685 = vadd.xlane.f32.xlu0 %v631_v18  ;;  %v1883_v29 = vsub.f32 %v1717_v47, %v550_v14 }
 0x1a3   :  { %v523_v28 = vpop.xlane.xlu1 %522  ;;  %v521_v45 = vpop.xlane.xlu0 %520 }
 0x1a4   :  { %v566_v30 = vmul.f32 0.0078125, %v523_v28  ;;  %v565_v44 = vmul.f32 0.0078125, %v521_v45  ;;  %v613_v31 = vmul.f32 %v1878_v25, %v1878_v25  ;;  %v614_v47 = vmul.f32 %v1883_v29, %v1883_v29 }
 0x1a6   :  { %v1888_v51 = vsub.f32 %v1730_v59, %v565_v44  ;;  %687 = vadd.xlane.f32.xlu1 %v632_v27  ;;  %649 = vadd.xlane.f32.xlu0 %v613_v31  ;;  %v1891_v48 = vsub.f32 %v1728_v58, %v566_v30 }
 0x1a7   :  { %v503_v34 = vpop.xlane.xlu1 %502  ;;  %v501_v52 = vpop.xlane.xlu0 %500 }
 0x1a8   :  { %v556_v40 = vmul.f32 0.0078125, %v503_v34  ;;  %v555_v41 = vmul.f32 0.0078125, %v501_v52  ;;  %v629_v43 = vmul.f32 %v1888_v51, %v1888_v51  ;;  %v630_v58 = vmul.f32 %v1891_v48, %v1891_v48 }
 0x1aa   :  { %v1898_v53 = vsub.f32 %v1738_v2, %v555_v41  ;;  %651 = vadd.xlane.f32.xlu1 %v614_v47  ;;  %681 = vadd.xlane.f32.xlu0 %v629_v43  ;;  %v1903_v55 = vsub.f32 %v1736_v63, %v556_v40 }
 0x1ab   :  { %v535_v59 = vpop.xlane.xlu1 %534  ;;  %v533_v54 = vpop.xlane.xlu0 %532 }
 0x1ac   :  { %v572_v36 = vmul.f32 0.0078125, %v535_v59  ;;  %v571_v1 = vmul.f32 0.0078125, %v533_v54  ;;  %v619_v37 = vmul.f32 %v1898_v53, %v1898_v53  ;;  %v620_v63 = vmul.f32 %v1903_v55, %v1903_v55 }
 0x1ae   :  { %v1908_v10 = vsub.f32 %v1747_v6, %v571_v1  ;;  %683 = vadd.xlane.f32.xlu1 %v630_v58  ;;  %661 = vadd.xlane.f32.xlu0 %v619_v37  ;;  %v1911_v2 = vsub.f32 %v1745_v5, %v572_v36 }
 0x1af   :  { %v499_v61 = vpop.xlane.xlu1 %498  ;;  %v497_v9 = vpop.xlane.xlu0 %496 }
 0x1b0   :  { %v554_v7 = vmul.f32 0.0078125, %v499_v61  ;;  %v553_v8 = vmul.f32 0.0078125, %v497_v9  ;;  %v635_v35 = vmul.f32 %v1908_v10, %v1908_v10  ;;  %v636_v5 = vmul.f32 %v1911_v2, %v1911_v2 }
 0x1b2   :  { %v1918_v42 = vsub.f32 %v1764_v23, %v553_v8  ;;  %663 = vadd.xlane.f32.xlu1 %v620_v63  ;;  %693 = vadd.xlane.f32.xlu0 %v635_v35  ;;  %v1923_v14 = vsub.f32 %v1762_v22, %v554_v7 }
 0x1b3   :  { %v531_v6 = vpop.xlane.xlu1 %530  ;;  %v529_v12 = vpop.xlane.xlu0 %528 }
 0x1b4   :  { %v570_v15 = vmul.f32 0.0078125, %v531_v6  ;;  %v569_v16 = vmul.f32 0.0078125, %v529_v12  ;;  %v617_v18 = vmul.f32 %v1918_v42, %v1918_v42  ;;  %v618_v22 = vmul.f32 %v1923_v14, %v1923_v14 }
 0x1b6   :  { %v1928_v28 = vsub.f32 %v1772_v33, %v569_v16  ;;  %695 = vadd.xlane.f32.xlu1 %v636_v5  ;;  %657 = vadd.xlane.f32.xlu0 %v617_v18  ;;  %v1931_v23 = vsub.f32 %v1770_v32, %v570_v15 }
 0x1b7   :  { %v511_v45 = vpop.xlane.xlu1 %510  ;;  %v509_v27 = vpop.xlane.xlu0 %508 }
 0x1b8   :  { %v560_v30 = vmul.f32 0.0078125, %v511_v45  ;;  %v559_v44 = vmul.f32 0.0078125, %v509_v27  ;;  %v633_v31 = vmul.f32 %v1928_v28, %v1928_v28  ;;  %v634_v32 = vmul.f32 %v1931_v23, %v1931_v23 }
 0x1ba   :  { %v1938_v34 = vsub.f32 %v1781_v38, %v559_v44  ;;  %659 = vadd.xlane.f32.xlu1 %v618_v22  ;;  %689 = vadd.xlane.f32.xlu0 %v633_v31  ;;  %v1943_v40 = vsub.f32 %v1779_v24, %v560_v30 }
 0x1bb   :  { %v507_v33 = vpop.xlane.xlu1 %506  ;;  %v505_v52 = vpop.xlane.xlu0 %504 }
 0x1bc   :  { %v558_v41 = vmul.f32 0.0078125, %v507_v33  ;;  %v557_v47 = vmul.f32 0.0078125, %v505_v52  ;;  %v623_v43 = vmul.f32 %v1938_v34, %v1938_v34  ;;  %v624_v24 = vmul.f32 %v1943_v40, %v1943_v40 }
 0x1be   :  { %v1948_v59 = vsub.f32 %v1796_v56, %v557_v47  ;;  %691 = vadd.xlane.f32.xlu1 %v634_v32  ;;  %669 = vadd.xlane.f32.xlu0 %v623_v43  ;;  %v1951_v38 = vsub.f32 %v1794_v57, %v558_v41 }
 0x1bf   :  { %v539_v54 = vpop.xlane.xlu1 %538  ;;  %v537_v58 = vpop.xlane.xlu0 %536 }
 0x1c0   :  { %v574_v36 = vmul.f32 0.0078125, %v539_v54  ;;  %v573_v1 = vmul.f32 0.0078125, %v537_v58  ;;  %v621_v37 = vmul.f32 %v1948_v59, %v1948_v59  ;;  %v622_v57 = vmul.f32 %v1951_v38, %v1951_v38 }
 0x1c2   :  { %v1958_v61 = vsub.f32 %v1805_v60, %v573_v1  ;;  %671 = vadd.xlane.f32.xlu1 %v624_v24  ;;  %665 = vadd.xlane.f32.xlu0 %v621_v37  ;;  %v1963_v7 = vsub.f32 %v1803_v49, %v574_v36 }
 0x1c3   :  { %v543_v56 = vpop.xlane.xlu1 %542  ;;  %v541_v9 = vpop.xlane.xlu0 %540 }
 0x1c4   :  { %v576_v8 = vmul.f32 0.0078125, %v543_v56  ;;  %v575_v63 = vmul.f32 0.0078125, %v541_v9  ;;  %v637_v35 = vmul.f32 %v1958_v61, %v1958_v61  ;;  %v638_v12 = vmul.f32 %v1963_v7, %v1963_v7 }
 0x1c6   :  { %v1968_v6 = vsub.f32 %v1815_v4, %v575_v63  ;;  %667 = vadd.xlane.f32.xlu1 %v622_v57  ;;  %697 = vadd.xlane.f32.xlu0 %v637_v35  ;;  %v1971_v60 = vsub.f32 %v1813_v3, %v576_v8  ;;  %v1983_v57 = vld [vmem:[%s2137_s4] ss:$0 sm:$0xff] }
 0x1c8   :  { %v639_v49 = vmul.f32 %v1968_v6, %v1968_v6  ;;  %v640_v5 = vmul.f32 %v1971_v60, %v1971_v60 }
 0x1ca   :  { %699 = vadd.xlane.f32.xlu1 %v638_v12  ;;  %701 = vadd.xlane.f32.xlu0 %v639_v49 }
 0x1ce   :  { %703 = vadd.xlane.f32.xlu1 %v640_v5 }
 0x21b   :  { %v646_v15 = vpop.xlane.xlu0 %645 }
 0x21c   :  { %v707_v4 = vmul.f32 0.0078125, %v646_v15 }
 0x21e   :  { %v739_v16 = vadd.f32 1e-12, %v707_v4 }
 0x21f   :  { %v648_v18 = vpop.xlane.xlu1 %647  ;;  %v678_v45 = vpop.xlane.xlu0 %677 }
 0x220   :  { %1452 = vrsqrt.f32 %v739_v16  ;;  %v708_v3 = vmul.f32 0.0078125, %v648_v18  ;;  %v723_v27 = vmul.f32 0.0078125, %v678_v45  ;;  %v1990_v18 = vld [vmem:[%s2138_s5] ss:$0 sm:$0xff] }
 0x222   :  { %v740_v30 = vadd.f32 1e-12, %v708_v3  ;;  %v755_v44 = vadd.f32 1e-12, %v723_v27 }
 0x223   :  { %v680_v22 = vpop.xlane.xlu1 %679  ;;  %v642_v31 = vpop.xlane.xlu0 %641 }
 0x224   :  { %1454 = vrsqrt.f32 %v740_v30  ;;  %v724_v33 = vmul.f32 0.0078125, %v680_v22  ;;  %v705_v52 = vmul.f32 0.0078125, %v642_v31 }
 0x225   :  { %1456 = vrsqrt.f32 %v755_v44 }
 0x226   :  { %v756_v32 = vadd.f32 1e-12, %v724_v33  ;;  %v737_v41 = vadd.f32 1e-12, %v705_v52 }
 0x227   :  { %v644_v47 = vpop.xlane.xlu1 %643  ;;  %v674_v43 = vpop.xlane.xlu0 %673 }
 0x228   :  { %1458 = vrsqrt.f32 %v756_v32  ;;  %v706_v54 = vmul.f32 0.0078125, %v644_v47  ;;  %v721_v58 = vmul.f32 0.0078125, %v674_v43 }
 0x229   :  { %1460 = vrsqrt.f32 %v737_v41 }
 0x22a   :  { %v1453_v36 = vpop.eup %1452  ;;  %v738_v1 = vadd.f32 1e-12, %v706_v54  ;;  %v753_v24 = vadd.f32 1e-12, %v721_v58 }
 0x22b   :  { %v803_v37 = vmul.f32 %v1453_v36, %v1820_v26  ;;  %v676_v56 = vpop.xlane.xlu1 %675  ;;  %v654_v9 = vpop.xlane.xlu0 %653 }
 0x22c   :  { %1462 = vrsqrt.f32 %v738_v1  ;;  %v722_v8 = vmul.f32 0.0078125, %v676_v56  ;;  %v711_v63 = vmul.f32 0.0078125, %v654_v9 }
 0x22d   :  { %1464 = vrsqrt.f32 %v753_v24  ;;  %v842_v15 = vmul.f32 %v1983_v57, %v803_v37 }
 0x22e   :  { %v1455_v35 = vpop.eup %1454  ;;  %v754_v12 = vadd.f32 1e-12, %v722_v8  ;;  %v743_v49 = vadd.f32 1e-12, %v711_v63 }
 0x22f   :  { %v1457_v5 = vpop.eup %1456  ;;  %v804_v4 = vmul.f32 %v1455_v35, %v1828_v19  ;;  %v656_v26 = vpop.xlane.xlu1 %655  ;;  %v881_v19 = vadd.f32 %v1990_v18, %v842_v15 }
 0x230   :  { %v686_v16 = vpop.xlane.xlu0 %685  ;;  %v819_v45 = vmul.f32 %v1457_v5, %v1823_v13  ;;  %1466 = vrsqrt.f32 %v754_v12  ;;  %v712_v3 = vmul.f32 0.0078125, %v656_v26 }
 0x231   :  { %v727_v27 = vmul.f32 0.0078125, %v686_v16  ;;  %v843_v30 = vmul.f32 %v1983_v57, %v804_v4  ;;  %1468 = vrsqrt.f32 %v743_v49 }
 0x232   :  { %v1459_v44 = vpop.eup %1458  ;;  %v744_v22 = vadd.f32 1e-12, %v712_v3  ;;  %v858_v32 = vmul.f32 %v1983_v57, %v819_v45 }
 0x233   :  { %v759_v31 = vadd.f32 1e-12, %v727_v27  ;;  %v1461_v33 = vpop.eup %1460  ;;  %v882_v52 = vadd.f32 %v1990_v18, %v843_v30  ;;  %v820_v41 = vmul.f32 %v1459_v44, %v1838_v20  ;;  %v688_v47 = vpop.xlane.xlu1 %687 }
 0x234   :  { %v650_v13 = vpop.xlane.xlu0 %649  ;;  %v801_v43 = vmul.f32 %v1461_v33, %v1831_v21  ;;  %1470 = vrsqrt.f32 %v744_v22  ;;  %v728_v54 = vmul.f32 0.0078125, %v688_v47  ;;  %v897_v20 = vadd.f32 %v1990_v18, %v858_v32 }
 0x235   :  { %v1238_v58 = vpack.c.bf16 %v882_v52, %v881_v19  ;;  %v859_v36 = vmul.f32 %v1983_v57, %v820_v41  ;;  %1472 = vrsqrt.f32 %v759_v31  ;;  %v709_v1 = vmul.f32 0.0078125, %v650_v13 }
 0x236   :  { %v1463_v24 = vpop.eup %1462  ;;  %v840_v37 = vmul.f32 %v1983_v57, %v801_v43  ;;  %v760_v56 = vadd.f32 1e-12, %v728_v54 }
 0x237   :  { %v1465_v9 = vpop.eup %1464  ;;  %1325 = vst [vmem:[%s2139_s6 + $0x8] sm:$0xff] %v1238_v58   ;;  %v898_v21 = vadd.f32 %v1990_v18, %v859_v36  ;;  %v802_v8 = vmul.f32 %v1463_v24, %v1848_v46  ;;  %v741_v63 = vadd.f32 1e-12, %v709_v1  ;;  %v652_v35 = vpop.xlane.xlu1 %651 }
 0x238   :  { %v682_v12 = vpop.xlane.xlu0 %681  ;;  %v817_v49 = vmul.f32 %v1465_v9, %v1843_v39  ;;  %1474 = vrsqrt.f32 %v760_v56  ;;  %v710_v5 = vmul.f32 0.0078125, %v652_v35  ;;  %v879_v45 = vadd.f32 %v1990_v18, %v840_v37 }
 0x239   :  { %v1278_v15 = vpack.c.bf16 %v898_v21, %v897_v20  ;;  %v841_v4 = vmul.f32 %v1983_v57, %v802_v8  ;;  %1476 = vrsqrt.f32 %v741_v63  ;;  %v725_v26 = vmul.f32 0.0078125, %v682_v12 }
 0x23a   :  { %v1467_v16 = vpop.eup %1466  ;;  %v742_v3 = vadd.f32 1e-12, %v710_v5  ;;  %v856_v39 = vmul.f32 %v1983_v57, %v817_v49 }
 0x23b   :  { %v1469_v27 = vpop.eup %1468  ;;  %1333 = vst [vmem:[%s2139_s6 + $0x48] sm:$0xff] %v1278_v15   ;;  %v880_v46 = vadd.f32 %v1990_v18, %v841_v4  ;;  %v818_v30 = vmul.f32 %v1467_v16, %v1851_v0  ;;  %v757_v44 = vadd.f32 1e-12, %v725_v26  ;;  %v684_v22 = vpop.xlane.xlu1 %683 }
 0x23c   :  { %v662_v31 = vpop.xlane.xlu0 %661  ;;  %v807_v33 = vmul.f32 %v1469_v27, %v1858_v50  ;;  %1478 = vrsqrt.f32 %v742_v3  ;;  %v726_v19 = vmul.f32 0.0078125, %v684_v22  ;;  %v895_v0 = vadd.f32 %v1990_v18, %v856_v39 }
 0x23d   :  { %v1233_v52 = vpack.c.bf16 %v880_v46, %v879_v45  ;;  %v857_v32 = vmul.f32 %v1983_v57, %v818_v30  ;;  %1480 = vrsqrt.f32 %v757_v44  ;;  %v715_v41 = vmul.f32 0.0078125, %v662_v31 }
 0x23e   :  { %v1471_v47 = vpop.eup %1470  ;;  %v846_v13 = vmul.f32 %v1983_v57, %v807_v33  ;;  %v758_v43 = vadd.f32 1e-12, %v726_v19 }
 0x23f   :  { %v1473_v54 = vpop.eup %1472  ;;  %1234 = vst [vmem:[%s2139_s6] sm:$0xff] %v1233_v52   ;;  %v896_v50 = vadd.f32 %v1990_v18, %v857_v32  ;;  %v808_v58 = vmul.f32 %v1471_v47, %v1863_v62  ;;  %v747_v36 = vadd.f32 1e-12, %v715_v41  ;;  %v664_v1 = vpop.xlane.xlu1 %663 }
 0x240   :  { %v694_v24 = vpop.xlane.xlu0 %693  ;;  %v823_v37 = vmul.f32 %v1473_v54, %v1868_v11  ;;  %1482 = vrsqrt.f32 %v758_v43  ;;  %v716_v56 = vmul.f32 0.0078125, %v664_v1  ;;  %v885_v63 = vadd.f32 %v1990_v18, %v846_v13 }
 0x241   :  { %v1273_v9 = vpack.c.bf16 %v896_v50, %v895_v0  ;;  %v847_v20 = vmul.f32 %v1983_v57, %v808_v58  ;;  %1484 = vrsqrt.f32 %v747_v36  ;;  %v731_v21 = vmul.f32 0.0078125, %v694_v24 }
 0x242   :  { %v1475_v8 = vpop.eup %1474  ;;  %v748_v35 = vadd.f32 1e-12, %v716_v56  ;;  %v862_v11 = vmul.f32 %v1983_v57, %v823_v37 }
 0x243   :  { %v1477_v12 = vpop.eup %1476  ;;  %1332 = vst [vmem:[%s2139_s6 + $0x40] sm:$0xff] %v1273_v9   ;;  %v886_v62 = vadd.f32 %v1990_v18, %v847_v20  ;;  %v824_v49 = vmul.f32 %v1475_v8, %v1871_v17  ;;  %v763_v5 = vadd.f32 1e-12, %v731_v21  ;;  %v696_v15 = vpop.xlane.xlu1 %695 }
 0x244   :  { %v658_v4 = vpop.xlane.xlu0 %657  ;;  %v805_v26 = vmul.f32 %v1477_v12, %v1878_v25  ;;  %1486 = vrsqrt.f32 %v748_v35  ;;  %v732_v16 = vmul.f32 0.0078125, %v696_v15  ;;  %v901_v17 = vadd.f32 %v1990_v18, %v862_v11 }
 0x245   :  { %v1248_v45 = vpack.c.bf16 %v886_v62, %v885_v63  ;;  %v863_v3 = vmul.f32 %v1983_v57, %v824_v49  ;;  %1488 = vrsqrt.f32 %v763_v5  ;;  %v713_v27 = vmul.f32 0.0078125, %v658_v4 }
 0x246   :  { %v1479_v46 = vpop.eup %1478  ;;  %v844_v39 = vmul.f32 %v1983_v57, %v805_v26  ;;  %v764_v30 = vadd.f32 1e-12, %v732_v16 }
 0x247   :  { %v1481_v44 = vpop.eup %1480  ;;  %1327 = vst [vmem:[%s2139_s6 + $0x18] sm:$0xff] %v1248_v45   ;;  %v902_v25 = vadd.f32 %v1990_v18, %v863_v3  ;;  %v806_v22 = vmul.f32 %v1479_v46, %v1883_v29  ;;  %v745_v31 = vadd.f32 1e-12, %v713_v27  ;;  %v660_v33 = vpop.xlane.xlu1 %659 }
 0x248   :  { %v690_v19 = vpop.xlane.xlu0 %689  ;;  %v821_v52 = vmul.f32 %v1481_v44, %v1888_v51  ;;  %1490 = vrsqrt.f32 %v764_v30  ;;  %v714_v32 = vmul.f32 0.0078125, %v660_v33  ;;  %v883_v54 = vadd.f32 %v1990_v18, %v844_v39 }
 0x249   :  { %v1288_v41 = vpack.c.bf16 %v902_v25, %v901_v17  ;;  %v845_v47 = vmul.f32 %v1983_v57, %v806_v22  ;;  %1492 = vrsqrt.f32 %v745_v31  ;;  %v729_v13 = vmul.f32 0.0078125, %v690_v19 }
 0x24a   :  { %v1483_v43 = vpop.eup %1482  ;;  %v746_v0 = vadd.f32 1e-12, %v714_v32  ;;  %v860_v51 = vmul.f32 %v1983_v57, %v821_v52 }
 0x24b   :  { %v1485_v50 = vpop.eup %1484  ;;  %1335 = vst [vmem:[%s2139_s6 + $0x58] sm:$0xff] %v1288_v41   ;;  %v884_v29 = vadd.f32 %v1990_v18, %v845_v47  ;;  %v822_v58 = vmul.f32 %v1483_v43, %v1891_v48  ;;  %v761_v36 = vadd.f32 1e-12, %v729_v13  ;;  %v692_v1 = vpop.xlane.xlu1 %691 }
 0x24c   :  { %v670_v24 = vpop.xlane.xlu0 %669  ;;  %v811_v37 = vmul.f32 %v1485_v50, %v1898_v53  ;;  %1494 = vrsqrt.f32 %v746_v0  ;;  %v730_v56 = vmul.f32 0.0078125, %v692_v1  ;;  %v899_v48 = vadd.f32 %v1990_v18, %v860_v51 }
 0x24d   :  { %v1243_v9 = vpack.c.bf16 %v884_v29, %v883_v54  ;;  %v861_v20 = vmul.f32 %v1983_v57, %v822_v58  ;;  %1496 = vrsqrt.f32 %v761_v36  ;;  %v719_v21 = vmul.f32 0.0078125, %v670_v24 }
 0x24e   :  { %v1487_v8 = vpop.eup %1486  ;;  %v850_v63 = vmul.f32 %v1983_v57, %v811_v37  ;;  %v762_v35 = vadd.f32 1e-12, %v730_v56 }
 0x24f   :  { %v1489_v12 = vpop.eup %1488  ;;  %1326 = vst [vmem:[%s2139_s6 + $0x10] sm:$0xff] %v1243_v9   ;;  %v900_v53 = vadd.f32 %v1990_v18, %v861_v20  ;;  %v812_v62 = vmul.f32 %v1487_v8, %v1903_v55  ;;  %v751_v11 = vadd.f32 1e-12, %v719_v21  ;;  %v672_v49 = vpop.xlane.xlu1 %671 }
 0x250   :  { %v666_v5 = vpop.xlane.xlu0 %665  ;;  %v827_v15 = vmul.f32 %v1489_v12, %v1908_v10  ;;  %1498 = vrsqrt.f32 %v762_v35  ;;  %v720_v4 = vmul.f32 0.0078125, %v672_v49  ;;  %v889_v27 = vadd.f32 %v1990_v18, %v850_v63 }
 0x251   :  { %v1283_v26 = vpack.c.bf16 %v900_v53, %v899_v48  ;;  %v851_v16 = vmul.f32 %v1983_v57, %v812_v62  ;;  %1500 = vrsqrt.f32 %v751_v11  ;;  %v717_v45 = vmul.f32 0.0078125, %v666_v5 }
 0x252   :  { %v1491_v3 = vpop.eup %1490  ;;  %v752_v46 = vadd.f32 1e-12, %v720_v4  ;;  %v866_v10 = vmul.f32 %v1983_v57, %v827_v15 }
 0x253   :  { %v1493_v39 = vpop.eup %1492  ;;  %1334 = vst [vmem:[%s2139_s6 + $0x50] sm:$0xff] %v1283_v26   ;;  %v890_v55 = vadd.f32 %v1990_v18, %v851_v16  ;;  %v828_v30 = vmul.f32 %v1491_v3, %v1911_v2  ;;  %v749_v44 = vadd.f32 1e-12, %v717_v45  ;;  %v668_v17 = vpop.xlane.xlu1 %667 }
 0x254   :  { %v698_v25 = vpop.xlane.xlu0 %697  ;;  %v809_v22 = vmul.f32 %v1493_v39, %v1918_v42  ;;  %1502 = vrsqrt.f32 %v752_v46  ;;  %v718_v31 = vmul.f32 0.0078125, %v668_v17  ;;  %v905_v2 = vadd.f32 %v1990_v18, %v866_v10 }
 0x255   :  { %v1258_v33 = vpack.c.bf16 %v890_v55, %v889_v27  ;;  %v867_v19 = vmul.f32 %v1983_v57, %v828_v30  ;;  %1504 = vrsqrt.f32 %v749_v44  ;;  %v733_v52 = vmul.f32 0.0078125, %v698_v25 }
 0x256   :  { %v1495_v32 = vpop.eup %1494  ;;  %v848_v41 = vmul.f32 %v1983_v57, %v809_v22  ;;  %v750_v47 = vadd.f32 1e-12, %v718_v31 }
 0x257   :  { %v1497_v13 = vpop.eup %1496  ;;  %1329 = vst [vmem:[%s2139_s6 + $0x28] sm:$0xff] %v1258_v33   ;;  %v906_v42 = vadd.f32 %v1990_v18, %v867_v19  ;;  %v810_v43 = vmul.f32 %v1495_v32, %v1923_v14  ;;  %v765_v54 = vadd.f32 1e-12, %v733_v52  ;;  %v700_v0 = vpop.xlane.xlu1 %699 }
 0x258   :  { %v702_v50 = vpop.xlane.xlu0 %701  ;;  %v825_v29 = vmul.f32 %v1497_v13, %v1928_v28  ;;  %1506 = vrsqrt.f32 %v750_v47  ;;  %v734_v51 = vmul.f32 0.0078125, %v700_v0  ;;  %v887_v37 = vadd.f32 %v1990_v18, %v848_v41 }
 0x259   :  { %v1298_v58 = vpack.c.bf16 %v906_v42, %v905_v2  ;;  %v849_v36 = vmul.f32 %v1983_v57, %v810_v43  ;;  %1508 = vrsqrt.f32 %v765_v54  ;;  %v735_v1 = vmul.f32 0.0078125, %v702_v50 }
 0x25a   :  { %v1499_v24 = vpop.eup %1498  ;;  %v766_v56 = vadd.f32 1e-12, %v734_v51  ;;  %v864_v28 = vmul.f32 %v1983_v57, %v825_v29 }
 0x25b   :  { %v1501_v9 = vpop.eup %1500  ;;  %1337 = vst [vmem:[%s2139_s6 + $0x68] sm:$0xff] %v1298_v58   ;;  %v888_v14 = vadd.f32 %v1990_v18, %v849_v36  ;;  %v826_v20 = vmul.f32 %v1499_v24, %v1931_v23  ;;  %v767_v21 = vadd.f32 1e-12, %v735_v1  ;;  %v704_v8 = vpop.xlane.xlu1 %703 }
 0x25c   :  { %v815_v63 = vmul.f32 %v1501_v9, %v1938_v34  ;;  %1510 = vrsqrt.f32 %v766_v56  ;;  %v736_v35 = vmul.f32 0.0078125, %v704_v8  ;;  %v903_v49 = vadd.f32 %v1990_v18, %v864_v28 }
 0x25d   :  { %v1253_v12 = vpack.c.bf16 %v888_v14, %v887_v37  ;;  %v865_v48 = vmul.f32 %v1983_v57, %v826_v20  ;;  %1512 = vrsqrt.f32 %v767_v21 }
 0x25e   :  { %v1503_v53 = vpop.eup %1502  ;;  %v768_v62 = vadd.f32 1e-12, %v736_v35  ;;  %v854_v5 = vmul.f32 %v1983_v57, %v815_v63 }
 0x25f   :  { %v1505_v11 = vpop.eup %1504  ;;  %1328 = vst [vmem:[%s2139_s6 + $0x20] sm:$0xff] %v1253_v12   ;;  %v904_v23 = vadd.f32 %v1990_v18, %v865_v48  ;;  %v816_v34 = vmul.f32 %v1503_v53, %v1943_v40 }
 0x260   :  { %v813_v15 = vmul.f32 %v1505_v11, %v1948_v59  ;;  %1514 = vrsqrt.f32 %v768_v62  ;;  %v893_v3 = vadd.f32 %v1990_v18, %v854_v5 }
 0x261   :  { %v1293_v4 = vpack.c.bf16 %v904_v23, %v903_v49  ;;  %v855_v26 = vmul.f32 %v1983_v57, %v816_v34 }
 0x262   :  { %v1507_v16 = vpop.eup %1506  ;;  %v852_v46 = vmul.f32 %v1983_v57, %v813_v15 }
 0x263   :  { %v1509_v45 = vpop.eup %1508  ;;  %1336 = vst [vmem:[%s2139_s6 + $0x60] sm:$0xff] %v1293_v4   ;;  %v894_v27 = vadd.f32 %v1990_v18, %v855_v26  ;;  %v814_v40 = vmul.f32 %v1507_v16, %v1951_v38 }
 0x264   :  { %v829_v59 = vmul.f32 %v1509_v45, %v1958_v61  ;;  %v891_v44 = vadd.f32 %v1990_v18, %v852_v46 }
 0x265   :  { %v1268_v39 = vpack.c.bf16 %v894_v27, %v893_v3  ;;  %v853_v55 = vmul.f32 %v1983_v57, %v814_v40 }
 0x266   :  { %v1511_v10 = vpop.eup %1510  ;;  %v868_v25 = vmul.f32 %v1983_v57, %v829_v59 }
 0x267   :  { %v1513_v30 = vpop.eup %1512  ;;  %1331 = vst [vmem:[%s2139_s6 + $0x38] sm:$0xff] %v1268_v39   ;;  %v892_v17 = vadd.f32 %v1990_v18, %v853_v55  ;;  %v830_v22 = vmul.f32 %v1511_v10, %v1963_v7 }
 0x268   :  { %v831_v38 = vmul.f32 %v1513_v30, %v1968_v6  ;;  %v907_v19 = vadd.f32 %v1990_v18, %v868_v25 }
 0x269   :  { %v1263_v61 = vpack.c.bf16 %v892_v17, %v891_v44  ;;  %v869_v31 = vmul.f32 %v1983_v57, %v830_v22 }
 0x26a   :  { %v1515_v33 = vpop.eup %1514  ;;  %v870_v32 = vmul.f32 %v1983_v57, %v831_v38 }
 0x26b   :  { %1330 = vst [vmem:[%s2139_s6 + $0x30] sm:$0xff] %v1263_v61   ;;  %v908_v52 = vadd.f32 %v1990_v18, %v869_v31  ;;  %v832_v41 = vmul.f32 %v1515_v33, %v1971_v60 }
 0x26c   :  { %v909_v6 = vadd.f32 %v1990_v18, %v870_v32 }
 0x26d   :  { %v1303_v47 = vpack.c.bf16 %v908_v52, %v907_v19  ;;  %v871_v7 = vmul.f32 %v1983_v57, %v832_v41 }
 0x26f   :  { %1338 = vst [vmem:[%s2139_s6 + $0x70] sm:$0xff] %v1303_v47   ;;  %v910_v13 = vadd.f32 %v1990_v18, %v871_v7 }
 0x271   :  { %v1308_v2 = vpack.c.bf16 %v910_v13, %v909_v6 }
 0x273   :  { %1339 = vst [vmem:[%s2139_s6 + $0x78] sm:$0xff] %v1308_v2  }

// kernel: text_classifier_forward.16
= control target key start
LH: loop header
LB: loop body
LE: loop exit
PB: predicated region body
PF: predicated region fallthrough
CT: control target
= control target key end

     0   :  { %v2844_v1 = vmov 0   ;;  %v81_v49 = vlaneseq  ;;  %s4606_s1 = inlined_call_operand.vmem [shape: bf16[128,512], index: 1, kind: input, shape index: {}]   ;;  %s4607_s0 = inlined_call_operand.vmem [shape: bf16[256,128], index: 0, kind: input, shape index: {}]   ;;  %s4608_s2 = inlined_call_operand.vmem [shape: f32[1,512], index: 2, kind: input, shape index: {}]   ;;  %s4609_s3 = inlined_call_operand.vmem [shape: bf16[256,512], index: 3, kind: output, shape index: {}]  }
   0x1   :  { %v2524_v0 = vld [vmem:[%s4606_s1 + $0x4] ss:$16 sps:$4 sm:$0xff]   ;;  %389 = vmatprep.mubr.bf16.mxu0 %v2844_v1  ;;  %582 = vmatprep.mubr.bf16.mxu1 %v2844_v1  ;;  %v2526_v2 = vld [vmem:[%s4606_s1 + $0xc] ss:$16 sps:$4 sm:$0xff]   ;;  %v2528_v3 = vld [vmem:[%s4606_s1] ss:$16 sps:$4 sm:$0xff]  }
   0x2   :  { %357 = vmatprep.subr.bf16.mxu0 %v2524_v0  ;;  %v2529_v4 = vld [vmem:[%s4606_s1 + $0x8] ss:$16 sps:$4 sm:$0xff]   ;;  %550 = vmatprep.subr.bf16.mxu1 %v2526_v2  ;;  %v2530_v5 = vld [vmem:[%s4606_s1 + $0x24] ss:$16 sps:$4 sm:$0xff]   ;;  %v2532_v6 = vld [vmem:[%s4606_s1 + $0x2c] ss:$16 sps:$4 sm:$0xff]  }
   0x3   :  { %358 = vmatpush1.bf16.msra.mxu0 %v2528_v3  ;;  %551 = vmatpush1.bf16.msra.mxu1 %v2529_v4  ;;  %v2534_v7 = vld [vmem:[%s4606_s1 + $0x20] ss:$16 sps:$4 sm:$0xff]   ;;  %v2535_v8 = vld [vmem:[%s4606_s1 + $0x28] ss:$16 sps:$4 sm:$0xff]   ;;  %v2536_v9 = vld [vmem:[%s4606_s1 + $0x44] ss:$16 sps:$4 sm:$0xff]  }
   0x4   :  { %359 = vmatprep.subr.bf16.mxu0 %v2530_v5  ;;  %552 = vmatprep.subr.bf16.mxu1 %v2532_v6  ;;  %v2538_v10 = vld [vmem:[%s4606_s1 + $0x4c] ss:$16 sps:$4 sm:$0xff]   ;;  %v2540_v11 = vld [vmem:[%s4606_s1 + $0x40] ss:$16 sps:$4 sm:$0xff]   ;;  %v2541_v12 = vld [vmem:[%s4606_s1 + $0x48] ss:$16 sps:$4 sm:$0xff]  }
   0x5   :  { %v2542_v13 = vld [vmem:[%s4606_s1 + $0x64] ss:$16 sps:$4 sm:$0xff]   ;;  %v2544_v14 = vld [vmem:[%s4606_s1 + $0x6c] ss:$16 sps:$4 sm:$0xff]   ;;  %v2546_v15 = vld [vmem:[%s4606_s1 + $0x60] ss:$16 sps:$4 sm:$0xff]  }
   0x6   :  { %v2547_v16 = vld [vmem:[%s4606_s1 + $0x68] ss:$16 sps:$4 sm:$0xff]   ;;  %v2548_v17 = vld [vmem:[%s4606_s1 + $0x84] ss:$16 sps:$4 sm:$0xff]   ;;  %v2550_v18 = vld [vmem:[%s4606_s1 + $0x8c] ss:$16 sps:$4 sm:$0xff]  }
   0x7   :  { %360 = vmatpush1.bf16.msra.mxu0 %v2534_v7  ;;  %553 = vmatpush1.bf16.msra.mxu1 %v2535_v8  ;;  %v2552_v19 = vld [vmem:[%s4606_s1 + $0x80] ss:$16 sps:$4 sm:$0xff]   ;;  %v2553_v20 = vld [vmem:[%s4606_s1 + $0x88] ss:$16 sps:$4 sm:$0xff]   ;;  %v2554_v21 = vld [vmem:[%s4606_s1 + $0xa4] ss:$16 sps:$4 sm:$0xff]  }
   0x8   :  { %361 = vmatprep.subr.bf16.mxu0 %v2536_v9  ;;  %554 = vmatprep.subr.bf16.mxu1 %v2538_v10  ;;  %v2556_v22 = vld [vmem:[%s4606_s1 + $0xac] ss:$16 sps:$4 sm:$0xff]   ;;  %v2558_v23 = vld [vmem:[%s4606_s1 + $0xa0] ss:$16 sps:$4 sm:$0xff]   ;;  %v2559_v24 = vld [vmem:[%s4606_s1 + $0xa8] ss:$16 sps:$4 sm:$0xff]  }
   0x9   :  { %v2560_v25 = vld [vmem:[%s4606_s1 + $0xc4] ss:$16 sps:$4 sm:$0xff]   ;;  %v2562_v26 = vld [vmem:[%s4606_s1 + $0xcc] ss:$16 sps:$4 sm:$0xff]   ;;  %v2564_v27 = vld [vmem:[%s4606_s1 + $0xc0] ss:$16 sps:$4 sm:$0xff]  }
   0xa   :  { %v2565_v28 = vld [vmem:[%s4606_s1 + $0xc8] ss:$16 sps:$4 sm:$0xff]   ;;  %v2566_v29 = vld [vmem:[%s4606_s1 + $0xe4] ss:$16 sps:$4 sm:$0xff]   ;;  %v2568_v30 = vld [vmem:[%s4606_s1 + $0xec] ss:$16 sps:$4 sm:$0xff]  }
   0xb   :  { %362 = vmatpush1.bf16.msra.mxu0 %v2540_v11  ;;  %555 = vmatpush1.bf16.msra.mxu1 %v2541_v12  ;;  %v2570_v31 = vld [vmem:[%s4606_s1 + $0xe0] ss:$16 sps:$4 sm:$0xff]   ;;  %v2571_v32 = vld [vmem:[%s4606_s1 + $0xe8] ss:$16 sps:$4 sm:$0xff]   ;;  %v82_v50 = vshrl.u32 %v81_v49, 7 }
   0xc   :  { %363 = vmatprep.subr.bf16.mxu0 %v2542_v13  ;;  %556 = vmatprep.subr.bf16.mxu1 %v2544_v14  ;;  %v2572_v33 = vld [vmem:[%s4607_s0] sm:$0xff]   ;;  %v2573_v34 = vld [vmem:[%s4607_s0 + $0x8] sm:$0xff]   ;;  %v2574_v35 = vld [vmem:[%s4607_s0 + $0x10] sm:$0xff]  }
   0xd   :  { %v2575_v36 = vld [vmem:[%s4607_s0 + $0x18] sm:$0xff]   ;;  %v2576_v37 = vld [vmem:[%s4607_s0 + $0x20] sm:$0xff]   ;;  %v2577_v38 = vld [vmem:[%s4607_s0 + $0x28] sm:$0xff]   ;;  %v83_v51 = vsub.s32 0, %v82_v50  ;;  %v91_v52 = vsub.s32 2, %v82_v50  ;;  %v87_v54 = vsub.s32 1, %v82_v50 }
   0xe   :  { %v2578_v39 = vld [vmem:[%s4607_s0 + $0x30] sm:$0xff]   ;;  %v2579_v40 = vld [vmem:[%s4607_s0 + $0x38] sm:$0xff]   ;;  %v2580_v41 = vld [vmem:[%s4607_s0 + $0x40] sm:$0xff]   ;;  %v95_v55 = vsub.s32 3, %v82_v50 }
   0xf   :  { %364 = vmatpush1.bf16.msra.mxu0 %v2546_v15  ;;  %557 = vmatpush1.bf16.msra.mxu1 %v2547_v16  ;;  %v2581_v42 = vld [vmem:[%s4607_s0 + $0x48] sm:$0xff]   ;;  %v2582_v43 = vld [vmem:[%s4607_s0 + $0x50] sm:$0xff]   ;;  %v2583_v44 = vld [vmem:[%s4607_s0 + $0x58] sm:$0xff]  }
  0x10   :  { %365 = vmatprep.subr.bf16.mxu0 %v2548_v17  ;;  %558 = vmatprep.subr.bf16.mxu1 %v2550_v18  ;;  %v2584_v45 = vld [vmem:[%s4607_s0 + $0x60] sm:$0xff]   ;;  %v2585_v46 = vld [vmem:[%s4607_s0 + $0x68] sm:$0xff]   ;;  %v2586_v47 = vld [vmem:[%s4607_s0 + $0x70] sm:$0xff]  }
  0x11   :  { %v2587_v48 = vld [vmem:[%s4607_s0 + $0x78] sm:$0xff]   ;;  %v79_v53 = vld [vmem:[%s4608_s2] sm:$0xf] }
  0x12   :  { %v3044_v56 = vrot.slane %v79_v53, %v83_v51  ;;  %v3046_v57 = vrot.slane %v79_v53, %v91_v52  ;;  %v3048_v58 = vrot.slane %v79_v53, %v87_v54  ;;  %v3050_v59 = vrot.slane %v79_v53, %v95_v55 }
  0x13   :  { %366 = vmatpush1.bf16.msra.mxu0 %v2552_v19  ;;  %559 = vmatpush1.bf16.msra.mxu1 %v2553_v20 }
  0x14   :  { %367 = vmatprep.subr.bf16.mxu0 %v2554_v21  ;;  %560 = vmatprep.subr.bf16.mxu1 %v2556_v22 }
  0x17   :  { %368 = vmatpush1.bf16.msra.mxu0 %v2558_v23  ;;  %561 = vmatpush1.bf16.msra.mxu1 %v2559_v24 }
  0x18   :  { %369 = vmatprep.subr.bf16.mxu0 %v2560_v25  ;;  %562 = vmatprep.subr.bf16.mxu1 %v2562_v26 }
  0x1b   :  { %370 = vmatpush1.bf16.msra.mxu0 %v2564_v27  ;;  %563 = vmatpush1.bf16.msra.mxu1 %v2565_v28 }
  0x1c   :  { %371 = vmatprep.subr.bf16.mxu0 %v2566_v29  ;;  %564 = vmatprep.subr.bf16.mxu1 %v2568_v30 }
  0x1f   :  { %372 = vmatpush1.bf16.msra.mxu0 %v2570_v31  ;;  %565 = vmatpush1.bf16.msra.mxu1 %v2571_v32 }
  0x22   :  { %390 = vmatmul.mubr.bf16.vlgmr.msra.gmra.mrb[0].mxu0 %v2572_v33  ;;  %583 = vmatmul.mubr.bf16.vlgmr.msra.gmra.mrb[0].mxu1 %v2572_v33 }
  0x23   :  { %399 = vmatprep.mubr.bf16.mxu0 %v2844_v1  ;;  %592 = vmatprep.mubr.bf16.mxu1 %v2844_v1 }
  0x2a   :  { %400 = vmatmul.mubr.bf16.gmra.mrb[4].mxu0 %v2573_v34  ;;  %593 = vmatmul.mubr.bf16.gmra.mrb[4].mxu1 %v2573_v34 }
  0x2b   :  { %409 = vmatprep.mubr.bf16.mxu0 %v2844_v1  ;;  %602 = vmatprep.mubr.bf16.mxu1 %v2844_v1 }
  0x32   :  { %410 = vmatmul.mubr.bf16.gmra.mrb[8].mxu0 %v2574_v35  ;;  %603 = vmatmul.mubr.bf16.gmra.mrb[8].mxu1 %v2574_v35 }
  0x33   :  { %419 = vmatprep.mubr.bf16.mxu0 %v2844_v1  ;;  %612 = vmatprep.mubr.bf16.mxu1 %v2844_v1 }
  0x3a   :  { %420 = vmatmul.mubr.bf16.gmra.mrb[12].mxu0 %v2575_v36  ;;  %613 = vmatmul.mubr.bf16.gmra.mrb[12].mxu1 %v2575_v36 }
  0x3b   :  { %429 = vmatprep.mubr.bf16.mxu0 %v2844_v1  ;;  %622 = vmatprep.mubr.bf16.mxu1 %v2844_v1 }
  0x42   :  { %430 = vmatmul.mubr.bf16.gmra.mrb[16].mxu0 %v2576_v37  ;;  %623 = vmatmul.mubr.bf16.gmra.mrb[16].mxu1 %v2576_v37 }
  0x43   :  { %439 = vmatprep.mubr.bf16.mxu0 %v2844_v1  ;;  %632 = vmatprep.mubr.bf16.mxu1 %v2844_v1 }
  0x4a   :  { %440 = vmatmul.mubr.bf16.gmra.mrb[20].mxu0 %v2577_v38  ;;  %633 = vmatmul.mubr.bf16.gmra.mrb[20].mxu1 %v2577_v38 }
  0x4b   :  { %449 = vmatprep.mubr.bf16.mxu0 %v2844_v1  ;;  %642 = vmatprep.mubr.bf16.mxu1 %v2844_v1 }
  0x52   :  { %450 = vmatmul.mubr.bf16.gmra.mrb[24].mxu0 %v2578_v39  ;;  %643 = vmatmul.mubr.bf16.gmra.mrb[24].mxu1 %v2578_v39 }
  0x53   :  { %459 = vmatprep.mubr.bf16.mxu0 %v2844_v1  ;;  %652 = vmatprep.mubr.bf16.mxu1 %v2844_v1 }
  0x5a   :  { %460 = vmatmul.mubr.bf16.gmra.mrb[28].mxu0 %v2579_v40  ;;  %653 = vmatmul.mubr.bf16.gmra.mrb[28].mxu1 %v2579_v40 }
  0x5b   :  { %469 = vmatprep.mubr.bf16.mxu0 %v2844_v1  ;;  %662 = vmatprep.mubr.bf16.mxu1 %v2844_v1 }
  0x62   :  { %470 = vmatmul.mubr.bf16.gmra.mrb[32].mxu0 %v2580_v41  ;;  %663 = vmatmul.mubr.bf16.gmra.mrb[32].mxu1 %v2580_v41 }
  0x63   :  { %479 = vmatprep.mubr.bf16.mxu0 %v2844_v1  ;;  %672 = vmatprep.mubr.bf16.mxu1 %v2844_v1 }
  0x6a   :  { %480 = vmatmul.mubr.bf16.gmra.mrb[36].mxu0 %v2581_v42  ;;  %673 = vmatmul.mubr.bf16.gmra.mrb[36].mxu1 %v2581_v42 }
  0x6b   :  { %489 = vmatprep.mubr.bf16.mxu0 %v2844_v1  ;;  %682 = vmatprep.mubr.bf16.mxu1 %v2844_v1 }
  0x72   :  { %490 = vmatmul.mubr.bf16.gmra.mrb[40].mxu0 %v2582_v43  ;;  %683 = vmatmul.mubr.bf16.gmra.mrb[40].mxu1 %v2582_v43 }
  0x73   :  { %499 = vmatprep.mubr.bf16.mxu0 %v2844_v1  ;;  %692 = vmatprep.mubr.bf16.mxu1 %v2844_v1 }
  0x7a   :  { %500 = vmatmul.mubr.bf16.gmra.mrb[44].mxu0 %v2583_v44  ;;  %693 = vmatmul.mubr.bf16.gmra.mrb[44].mxu1 %v2583_v44 }
  0x7b   :  { %509 = vmatprep.mubr.bf16.mxu0 %v2844_v1  ;;  %702 = vmatprep.mubr.bf16.mxu1 %v2844_v1 }
  0x82   :  { %510 = vmatmul.mubr.bf16.gmra.mrb[48].mxu0 %v2584_v45  ;;  %703 = vmatmul.mubr.bf16.gmra.mrb[48].mxu1 %v2584_v45 }
  0x83   :  { %519 = vmatprep.mubr.bf16.mxu0 %v2844_v1  ;;  %712 = vmatprep.mubr.bf16.mxu1 %v2844_v1 }
  0x8a   :  { %520 = vmatmul.mubr.bf16.gmra.mrb[52].mxu0 %v2585_v46  ;;  %713 = vmatmul.mubr.bf16.gmra.mrb[52].mxu1 %v2585_v46 }
  0x8b   :  { %529 = vmatprep.mubr.bf16.mxu0 %v2844_v1  ;;  %722 = vmatprep.mubr.bf16.mxu1 %v2844_v1 }
  0x92   :  { %530 = vmatmul.mubr.bf16.gmra.mrb[56].mxu0 %v2586_v47  ;;  %723 = vmatmul.mubr.bf16.gmra.mrb[56].mxu1 %v2586_v47 }
  0x93   :  { %539 = vmatprep.mubr.bf16.mxu0 %v2844_v1  ;;  %732 = vmatprep.mubr.bf16.mxu1 %v2844_v1 }
  0x9a   :  { %540 = vmatmul.mubr.bf16.gmra.mrb[60].mxu0 %v2587_v48  ;;  %733 = vmatmul.mubr.bf16.gmra.mrb[60].mxu1 %v2587_v48 }
  0xf5   :  { %v391_v60 = vpop.f32.mrb[0].mxu0  ;;  %v584_v61 = vpop.f32.mrb[0].mxu1 }
  0xf6   :  { %v392_v62 = vadd.f32 %v391_v60, %v3044_v56  ;;  %v585_v63 = vadd.f32 %v584_v61, %v3046_v57  ;;  %v393_v0 = vpop.f32.mrb[1].mxu0  ;;  %v586_v1 = vpop.f32.mrb[1].mxu1 }
  0xf7   :  { %v3055_v2 = vadd.f32 %v393_v0, %v3048_v58  ;;  %v3058_v3 = vadd.f32 %v586_v1, %v3050_v59  ;;  %v395_v4 = vpop.f32.mrb[2].mxu0  ;;  %v588_v5 = vpop.f32.mrb[2].mxu1 }
  0xf8   :  { %v871_v6 = vmul.f32 0.044715, %v392_v62  ;;  %v873_v7 = vmul.f32 0.044715, %v585_v63  ;;  %v3063_v12 = vadd.f32 %v395_v4, %v3044_v56  ;;  %v3066_v13 = vadd.f32 %v588_v5, %v3046_v57  ;;  %v397_v14 = vpop.f32.mrb[3].mxu0  ;;  %v590_v15 = vpop.f32.mrb[3].mxu1 }
  0xf9   :  { %v872_v8 = vmul.f32 0.044715, %v3055_v2  ;;  %v874_v9 = vmul.f32 0.044715, %v3058_v3  ;;  %v3071_v18 = vadd.f32 %v397_v14, %v3048_v58  ;;  %v3079_v30 = vadd.f32 %v590_v15, %v3050_v59 }
  0xfa   :  { %v999_v10 = vmul.f32 %v871_v6, %v392_v62  ;;  %v1001_v11 = vmul.f32 %v873_v7, %v585_v63  ;;  %v875_v21 = vmul.f32 0.044715, %v3063_v12  ;;  %v877_v24 = vmul.f32 0.044715, %v3066_v13 }
  0xfb   :  { %v1000_v16 = vmul.f32 %v872_v8, %v3055_v2  ;;  %v1002_v17 = vmul.f32 %v874_v9, %v3058_v3  ;;  %v876_v36 = vmul.f32 0.044715, %v3071_v18  ;;  %v3087_v39 = vmul.f32 0.5, %v392_v62 }
  0xfc   :  { %v1127_v19 = vmul.f32 %v999_v10, %v392_v62  ;;  %v1129_v20 = vmul.f32 %v1001_v11, %v585_v63  ;;  %v1003_v29 = vmul.f32 %v875_v21, %v3063_v12  ;;  %v1005_v35 = vmul.f32 %v877_v24, %v3066_v13 }
  0xfd   :  { %v1128_v22 = vmul.f32 %v1000_v16, %v3055_v2  ;;  %v1130_v23 = vmul.f32 %v1002_v17, %v3058_v3  ;;  %v401_v25 = vpop.f32.mrb[4].mxu0  ;;  %v594_v26 = vpop.f32.mrb[4].mxu1  ;;  %v1004_v47 = vmul.f32 %v876_v36, %v3071_v18  ;;  %v878_v50 = vmul.f32 0.044715, %v3079_v30 }
  0xfe   :  { %v1255_v27 = vadd.f32 %v1127_v19, %v392_v62  ;;  %v1257_v28 = vadd.f32 %v1129_v20, %v585_v63  ;;  %v403_v31 = vpop.f32.mrb[5].mxu0  ;;  %v596_v32 = vpop.f32.mrb[5].mxu1  ;;  %v1131_v42 = vmul.f32 %v1003_v29, %v3063_v12  ;;  %v1133_v46 = vmul.f32 %v1005_v35, %v3066_v13 }
  0xff   :  { %v1256_v33 = vadd.f32 %v1128_v22, %v3055_v2  ;;  %v1258_v34 = vadd.f32 %v1130_v23, %v3058_v3  ;;  %v405_v37 = vpop.f32.mrb[6].mxu0  ;;  %v3085_v38 = vpop.f32.mrb[6].mxu1  ;;  %v3099_v51 = vadd.f32 %v401_v25, %v3044_v56  ;;  %v1132_v53 = vmul.f32 %v1004_v47, %v3071_v18 }
 0x100   :  { %v1383_v40 = vmul.f32 0.7978846, %v1255_v27  ;;  %v1385_v41 = vmul.f32 0.7978846, %v1257_v28  ;;  %v3090_v43 = vpop.f32.mrb[7].mxu0  ;;  %v3094_v48 = vpop.f32.mrb[7].mxu1  ;;  %v1259_v49 = vadd.f32 %v1131_v42, %v3063_v12  ;;  %v1261_v52 = vadd.f32 %v1133_v46, %v3066_v13 }
 0x101   :  { %v1384_v44 = vmul.f32 0.7978846, %v1256_v33  ;;  %v1386_v45 = vmul.f32 0.7978846, %v1258_v34  ;;  %v3104_v54 = vadd.f32 %v594_v26, %v3046_v57  ;;  %v3106_v55 = vmul.f32 0.5, %v585_v63 }
 0x102   :  { %2588 = vtanh.f32 %v1383_v40  ;;  %v1387_v60 = vmul.f32 0.7978846, %v1259_v49  ;;  %v1006_v61 = vmul.f32 %v878_v50, %v3079_v30  ;;  %v1389_v62 = vmul.f32 0.7978846, %v1261_v52 }
 0x103   :  { %2590 = vtanh.f32 %v1385_v41  ;;  %v1260_v0 = vadd.f32 %v1132_v53, %v3071_v18  ;;  %v879_v1 = vmul.f32 0.044715, %v3099_v51  ;;  %v3116_v6 = vmul.f32 0.5, %v3055_v2 }
 0x104   :  { %2592 = vtanh.f32 %v1384_v44  ;;  %v1134_v63 = vmul.f32 %v1006_v61, %v3079_v30  ;;  %v881_v7 = vmul.f32 0.044715, %v3104_v54  ;;  %v3126_v14 = vadd.f32 %v403_v31, %v3048_v58 }
 0x105   :  { %2594 = vtanh.f32 %v1386_v45  ;;  %v3111_v4 = vpop.f32.mrb[8].mxu0  ;;  %v3113_v5 = vpop.f32.mrb[8].mxu1  ;;  %v1388_v10 = vmul.f32 0.7978846, %v1260_v0  ;;  %v1007_v11 = vmul.f32 %v879_v1, %v3099_v51  ;;  %v3135_v19 = vadd.f32 %v596_v32, %v3050_v59 }
 0x106   :  { %2596 = vtanh.f32 %v1387_v60  ;;  %v3120_v8 = vpop.f32.mrb[9].mxu0  ;;  %v3122_v9 = vpop.f32.mrb[9].mxu1  ;;  %v1262_v16 = vadd.f32 %v1134_v63, %v3079_v30  ;;  %v1009_v17 = vmul.f32 %v881_v7, %v3104_v54  ;;  %v3138_v20 = vadd.f32 %v405_v37, %v3044_v56 }
 0x107   :  { %2598 = vtanh.f32 %v1389_v62  ;;  %v3128_v15 = vpop.f32.mrb[10].mxu0  ;;  %v3130_v2 = vpop.f32.mrb[10].mxu1  ;;  %v746_v23 = vmul.f32 0.5, %v3058_v3  ;;  %v1135_v24 = vmul.f32 %v1007_v11, %v3099_v51  ;;  %v880_v25 = vmul.f32 0.044715, %v3126_v14 }
 0x108   :  { %v3140_v21 = vpop.f32.mrb[11].mxu0  ;;  %v3142_v22 = vpop.f32.mrb[11].mxu1  ;;  %2600 = vtanh.f32 %v1388_v10  ;;  %v747_v26 = vmul.f32 0.5, %v3063_v12  ;;  %v1390_v27 = vmul.f32 0.7978846, %v1262_v16  ;;  %v1137_v28 = vmul.f32 %v1009_v17, %v3104_v54 }
 0x109   :  { %v882_v29 = vmul.f32 0.044715, %v3135_v19  ;;  %v3151_v31 = vmul.f32 0.5, %v3066_v13  ;;  %v1263_v32 = vadd.f32 %v1135_v24, %v3099_v51  ;;  %v1008_v33 = vmul.f32 %v880_v25, %v3126_v14 }
 0x10a   :  { %v883_v3 = vmul.f32 0.044715, %v3138_v20  ;;  %v748_v35 = vmul.f32 0.5, %v3071_v18  ;;  %2602 = vtanh.f32 %v1390_v27  ;;  %v1265_v12 = vadd.f32 %v1137_v28, %v3104_v54 }
 0x10b   :  { %v1010_v36 = vmul.f32 %v882_v29, %v3135_v19  ;;  %v1391_v41 = vmul.f32 0.7978846, %v1263_v32  ;;  %v1136_v13 = vmul.f32 %v1008_v33, %v3126_v14  ;;  %v3168_v50 = vadd.f32 %v3085_v38, %v3046_v57 }
 0x10c   :  { %v2589_v34 = vpop.eup %2588  ;;  %v1011_v42 = vmul.f32 %v883_v3, %v3138_v20  ;;  %v1393_v49 = vmul.f32 0.7978846, %v1265_v12  ;;  %v750_v32 = vmul.f32 0.5, %v3079_v30 }
 0x10d   :  { %v2591_v37 = vpop.eup %2590  ;;  %v1639_v40 = vadd.f32 1.0, %v2589_v34  ;;  %v3161_v44 = vpop.f32.mrb[12].mxu0  ;;  %v1138_v18 = vmul.f32 %v1010_v36, %v3135_v19  ;;  %2604 = vtanh.f32 %v1391_v41  ;;  %v1264_v0 = vadd.f32 %v1136_v13, %v3126_v14 }
 0x10e   :  { %v3163_v45 = vpop.f32.mrb[12].mxu1  ;;  %v2593_v46 = vpop.eup %2592  ;;  %v1641_v47 = vadd.f32 1.0, %v2591_v37  ;;  %2606 = vtanh.f32 %v1393_v49  ;;  %v1139_v28 = vmul.f32 %v1011_v42, %v3138_v20  ;;  %v3201_v13 = vadd.f32 %v3094_v48, %v3050_v59 }
 0x10f   :  { %v3170_v52 = vpop.f32.mrb[13].mxu0  ;;  %v3172_v53 = vpop.f32.mrb[13].mxu1  ;;  %v1767_v61 = vmul.f32 %v1639_v40, %v3087_v39  ;;  %v1640_v62 = vadd.f32 1.0, %v2593_v46  ;;  %v1266_v11 = vadd.f32 %v1138_v18, %v3135_v19  ;;  %v1392_v27 = vmul.f32 0.7978846, %v1264_v0 }
 0x110   :  { %v2595_v60 = vpop.eup %2594  ;;  %v3176_v1 = vpop.f32.mrb[14].mxu0  ;;  %v1769_v10 = vmul.f32 %v1641_v47, %v3106_v55  ;;  %v885_v55 = vmul.f32 0.044715, %v3168_v50  ;;  %v1267_v36 = vadd.f32 %v1139_v28, %v3138_v20  ;;  %v751_v49 = vmul.f32 0.5, %v3099_v51 }
 0x111   :  { %v3178_v63 = vpop.f32.mrb[14].mxu1  ;;  %v2597_v7 = vpop.eup %2596  ;;  %v1642_v38 = vadd.f32 1.0, %v2595_v60  ;;  %v1768_v24 = vmul.f32 %v1640_v62, %v3116_v6  ;;  %v1394_v33 = vmul.f32 0.7978846, %v1266_v11  ;;  %2608 = vtanh.f32 %v1392_v27 }
 0x112   :  { %v3182_v16 = vpop.f32.mrb[15].mxu0  ;;  %v3184_v17 = vpop.f32.mrb[15].mxu1  ;;  %v1643_v25 = vadd.f32 1.0, %v2597_v7  ;;  %v1395_v6 = vmul.f32 0.7978846, %v1267_v36  ;;  %v1013_v30 = vmul.f32 %v885_v55, %v3168_v50  ;;  %v753_v18 = vmul.f32 0.5, %v3104_v54 }
 0x113   :  { %v2599_v39 = vpop.eup %2598  ;;  %v1770_v29 = vmul.f32 %v1642_v38, %v746_v23  ;;  %v2459_v34 = vpack.c.bf16 %v1768_v24, %v1767_v61  ;;  %2610 = vtanh.f32 %v1394_v33  ;;  %v3197_v23 = vadd.f32 %v3090_v43, %v3048_v58 }
 0x114   :  { %v2601_v3 = vpop.eup %2600  ;;  %v1645_v12 = vadd.f32 1.0, %v2599_v39  ;;  %v1771_v40 = vmul.f32 %v1643_v25, %v747_v26  ;;  %v3214_v43 = vadd.f32 %v3111_v4, %v3044_v56  ;;  %v752_v0 = vmul.f32 0.5, %v3126_v14 }
 0x115   :  { %v2460_v37 = vpack.c.bf16 %v1770_v29, %v1769_v10  ;;  %v1644_v41 = vadd.f32 1.0, %v2601_v3  ;;  %2279 = vst [vmem:[%s4609_s3] sm:$0xff] %v2459_v34  ;;  %v3203_v42 = vpop.f32.mrb[16].mxu0  ;;  %v3205_v26 = vpop.f32.mrb[16].mxu1  ;;  %v1141_v7 = vmul.f32 %v1013_v30, %v3168_v50  ;;  %v884_v10 = vmul.f32 0.044715, %v3197_v23 }
 0x116   :  { %v2603_v46 = vpop.eup %2602  ;;  %v3216_v48 = vpop.f32.mrb[17].mxu0  ;;  %v1773_v61 = vmul.f32 %v1645_v12, %v3151_v31  ;;  %v886_v4 = vmul.f32 0.044715, %v3201_v13  ;;  %v3231_v38 = vadd.f32 %v3113_v5, %v3046_v57  ;;  %2612 = vtanh.f32 %v1395_v6 }
 0x117   :  { %2280 = vst [vmem:[%s4609_s3 + $0x8] sm:$0xff] %v2460_v37  ;;  %v1772_v47 = vmul.f32 %v1644_v41, %v748_v35  ;;  %v3218_v60 = vpop.f32.mrb[17].mxu1  ;;  %v1646_v62 = vadd.f32 1.0, %v2603_v46  ;;  %v3223_v35 = vpop.f32.mrb[18].mxu0  ;;  %v1269_v14 = vadd.f32 %v1141_v7, %v3168_v50  ;;  %v887_v24 = vmul.f32 0.044715, %v3214_v43 }
 0x118   :  { %v3225_v51 = vpop.f32.mrb[18].mxu1  ;;  %v3233_v11 = vpop.f32.mrb[19].mxu0  ;;  %v1012_v5 = vmul.f32 %v884_v10, %v3197_v23  ;;  %v1014_v29 = vmul.f32 %v886_v4, %v3201_v13  ;;  %v754_v12 = vmul.f32 0.5, %v3135_v19 }
 0x119   :  { %v2461_v54 = vpack.c.bf16 %v1772_v47, %v1771_v40  ;;  %v2605_v31 = vpop.eup %2604  ;;  %v1774_v39 = vmul.f32 %v1646_v62, %v750_v32  ;;  %v3237_v25 = vpop.f32.mrb[19].mxu1  ;;  %v3246_v32 = vadd.f32 %v3120_v8, %v3048_v58  ;;  %v1397_v3 = vmul.f32 0.7978846, %v1269_v14 }
 0x11a   :  { %v2607_v27 = vpop.eup %2606  ;;  %v1647_v28 = vadd.f32 1.0, %v2605_v31  ;;  %v1015_v34 = vmul.f32 %v887_v24, %v3214_v43  ;;  %v1140_v36 = vmul.f32 %v1012_v5, %v3197_v23  ;;  %v1142_v37 = vmul.f32 %v1014_v29, %v3201_v13 }
 0x11b   :  { %2281 = vst [vmem:[%s4609_s3 + $0x10] sm:$0xff] %v2461_v54  ;;  %v2462_v33 = vpack.c.bf16 %v1774_v39, %v1773_v61  ;;  %v1649_v55 = vadd.f32 1.0, %v2607_v27  ;;  %v889_v40 = vmul.f32 0.044715, %v3231_v38  ;;  %v2609_v41 = vpop.eup %2608  ;;  %2614 = vtanh.f32 %v1397_v3 }
 0x11c   :  { %v1775_v8 = vmul.f32 %v1647_v28, %v751_v49  ;;  %v1143_v30 = vmul.f32 %v1015_v34, %v3214_v43  ;;  %v1648_v61 = vadd.f32 1.0, %v2609_v41  ;;  %v1268_v62 = vadd.f32 %v1140_v36, %v3197_v23 }
 0x11d   :  { %2282 = vst [vmem:[%s4609_s3 + $0x18] sm:$0xff] %v2462_v33  ;;  %v1777_v6 = vmul.f32 %v1649_v55, %v753_v18  ;;  %v3257_v46 = vpop.f32.mrb[20].mxu0  ;;  %v3259_v47 = vpop.f32.mrb[20].mxu1  ;;  %v1270_v7 = vadd.f32 %v1142_v37, %v3201_v13  ;;  %v1017_v54 = vmul.f32 %v889_v40, %v3231_v38  ;;  %v888_v31 = vmul.f32 0.044715, %v3246_v32 }
 0x11e   :  { %v2611_v19 = vpop.eup %2610  ;;  %v3264_v10 = vpop.f32.mrb[21].mxu0  ;;  %v1271_v18 = vadd.f32 %v1143_v30, %v3214_v43  ;;  %v3272_v39 = vadd.f32 %v3122_v9, %v3050_v59  ;;  %v1776_v27 = vmul.f32 %v1648_v61, %v752_v0  ;;  %v1396_v28 = vmul.f32 0.7978846, %v1268_v62 }
 0x11f   :  { %v3266_v4 = vpop.f32.mrb[21].mxu1  ;;  %v1650_v49 = vadd.f32 1.0, %v2611_v19  ;;  %v3274_v14 = vpop.f32.mrb[22].mxu0  ;;  %v1398_v5 = vmul.f32 0.7978846, %v1270_v7  ;;  %v1145_v29 = vmul.f32 %v1017_v54, %v3231_v38  ;;  %v755_v34 = vmul.f32 0.5, %v3138_v20 }
 0x120   :  { %v3276_v24 = vpop.f32.mrb[22].mxu1  ;;  %v3279_v33 = vpop.f32.mrb[23].mxu0  ;;  %v1399_v36 = vmul.f32 0.7978846, %v1271_v18  ;;  %v1016_v9 = vmul.f32 %v888_v31, %v3246_v32  ;;  %v2463_v37 = vpack.c.bf16 %v1776_v27, %v1775_v8  ;;  %v757_v40 = vmul.f32 0.5, %v3168_v50 }
 0x121   :  { %v3281_v55 = vpop.f32.mrb[23].mxu1  ;;  %v1778_v3 = vmul.f32 %v1650_v49, %v754_v12  ;;  %2616 = vtanh.f32 %v1396_v28  ;;  %v1273_v0 = vadd.f32 %v1145_v29, %v3231_v38  ;;  %v2613_v41 = vpop.eup %2612  ;;  %v890_v61 = vmul.f32 0.044715, %v3272_v39 }
 0x122   :  { %2618 = vtanh.f32 %v1398_v5  ;;  %v1144_v19 = vmul.f32 %v1016_v9, %v3246_v32  ;;  %2283 = vst [vmem:[%s4609_s3 + $0x20] sm:$0xff] %v2463_v37  ;;  %v756_v20 = vmul.f32 0.5, %v3197_v23  ;;  %v3295_v50 = vadd.f32 %v3128_v15, %v3044_v56 }
 0x123   :  { %v2464_v30 = vpack.c.bf16 %v1778_v3, %v1777_v6  ;;  %2620 = vtanh.f32 %v1399_v36  ;;  %v1401_v12 = vmul.f32 0.7978846, %v1273_v0  ;;  %v1018_v6 = vmul.f32 %v890_v61, %v3272_v39 }
 0x124   :  { %v1272_v8 = vadd.f32 %v1144_v19, %v3246_v32  ;;  %v3304_v62 = vadd.f32 %v3130_v2, %v3046_v57  ;;  %v3308_v23 = vadd.f32 %v3140_v21, %v3048_v58  ;;  %v1651_v54 = vadd.f32 1.0, %v2613_v41 }
 0x125   :  { %2284 = vst [vmem:[%s4609_s3 + $0x28] sm:$0xff] %v2464_v30  ;;  %v3310_v7 = vpop.f32.mrb[24].mxu0  ;;  %v3312_v15 = vpop.f32.mrb[24].mxu1  ;;  %2622 = vtanh.f32 %v1401_v12  ;;  %v891_v49 = vmul.f32 0.044715, %v3295_v50  ;;  %v3317_v18 = vadd.f32 %v3142_v22, %v3050_v59  ;;  %v758_v21 = vmul.f32 0.5, %v3201_v13 }
 0x126   :  { %v3319_v31 = vpop.f32.mrb[25].mxu0  ;;  %v3321_v2 = vpop.f32.mrb[25].mxu1  ;;  %v1400_v28 = vmul.f32 0.7978846, %v1272_v8  ;;  %v1146_v5 = vmul.f32 %v1018_v6, %v3272_v39  ;;  %v893_v29 = vmul.f32 0.044715, %v3304_v62  ;;  %v1779_v12 = vmul.f32 %v1651_v54, %v755_v34 }
 0x127   :  { %v2615_v27 = vpop.eup %2614  ;;  %v3326_v3 = vpop.f32.mrb[26].mxu0  ;;  %v759_v9 = vmul.f32 0.5, %v3214_v43  ;;  %v1019_v22 = vmul.f32 %v891_v49, %v3295_v50  ;;  %v892_v37 = vmul.f32 0.044715, %v3308_v23  ;;  %v3336_v13 = vmul.f32 0.5, %v3231_v38 }
 0x128   :  { %4610 = vst [vmem:[#allocation2_spill] sm:$0xff] %v3326_v3  ;;  %v1653_v36 = vadd.f32 1.0, %v2615_v27  ;;  %v3331_v0 = vpop.f32.mrb[26].mxu1  ;;  %v3333_v41 = vpop.f32.mrb[27].mxu0  ;;  %2624 = vtanh.f32 %v1400_v28  ;;  %v1274_v30 = vadd.f32 %v1146_v5, %v3272_v39  ;;  %v1021_v19 = vmul.f32 %v893_v29, %v3304_v62 }
 0x129   :  { %4611 = vst [vmem:[#allocation3_spill] sm:$0xff] %v3331_v0  ;;  %4612 = vst [vmem:[#allocation4_spill] sm:$0xff] %v3333_v41  ;;  %v3340_v61 = vpop.f32.mrb[27].mxu1  ;;  %v1147_v43 = vmul.f32 %v1019_v22, %v3295_v50  ;;  %v1020_v8 = vmul.f32 %v892_v37, %v3308_v23  ;;  %v894_v6 = vmul.f32 0.044715, %v3317_v18  ;;  %v3348_v38 = vadd.f32 %v3161_v44, %v3044_v56 }
 0x12a   :  { %4613 = vst [vmem:[#allocation5_spill] sm:$0xff] %v3340_v61  ;;  %v1781_v49 = vmul.f32 %v1653_v36, %v757_v40  ;;  %v1402_v27 = vmul.f32 0.7978846, %v1274_v30  ;;  %v1149_v41 = vmul.f32 %v1021_v19, %v3304_v62  ;;  %v3355_v54 = vadd.f32 %v3163_v45, %v3046_v57 }
 0x12b   :  { %v2617_v28 = vpop.eup %2616  ;;  %v1275_v5 = vadd.f32 %v1147_v43, %v3295_v50  ;;  %v1148_v29 = vmul.f32 %v1020_v8, %v3308_v23  ;;  %v1022_v34 = vmul.f32 %v894_v6, %v3317_v18  ;;  %v3360_v44 = vadd.f32 %v3170_v52, %v3048_v58 }
 0x12c   :  { %v2619_v22 = vpop.eup %2618  ;;  %v1652_v40 = vadd.f32 1.0, %v2617_v28  ;;  %2626 = vtanh.f32 %v1402_v27  ;;  %v1277_v36 = vadd.f32 %v1149_v41, %v3304_v62  ;;  %v895_v52 = vmul.f32 0.044715, %v3348_v38 }
 0x12d   :  { %v3362_v37 = vpop.f32.mrb[28].mxu0  ;;  %v3364_v30 = vpop.f32.mrb[28].mxu1  ;;  %v1654_v43 = vadd.f32 1.0, %v2619_v22  ;;  %v1403_v8 = vmul.f32 0.7978846, %v1275_v5  ;;  %v1276_v6 = vadd.f32 %v1148_v29, %v3308_v23  ;;  %v1150_v45 = vmul.f32 %v1022_v34, %v3317_v18 }
 0x12e   :  { %4614 = vst [vmem:[#allocation6_spill] sm:$0xff] %v3362_v37  ;;  %4615 = vst [vmem:[#allocation7_spill] sm:$0xff] %v3364_v30  ;;  %v2621_v19 = vpop.eup %2620  ;;  %v3368_v61 = vpop.f32.mrb[29].mxu0  ;;  %v1780_v41 = vmul.f32 %v1652_v40, %v756_v20  ;;  %v1405_v0 = vmul.f32 0.7978846, %v1277_v36  ;;  %v762_v20 = vmul.f32 0.5, %v3272_v39 }
 0x12f   :  { %4616 = vst [vmem:[#allocation8_spill] sm:$0xff] %v3368_v61  ;;  %v3370_v27 = vpop.f32.mrb[29].mxu1  ;;  %v1655_v28 = vadd.f32 1.0, %v2621_v19  ;;  %v3373_v3 = vpop.f32.mrb[30].mxu0  ;;  %v1782_v30 = vmul.f32 %v1654_v43, %v758_v21  ;;  %2628 = vtanh.f32 %v1403_v8  ;;  %v1404_v22 = vmul.f32 0.7978846, %v1276_v6 }
 0x130   :  { %4617 = vst [vmem:[#allocation9_spill] sm:$0xff] %v3370_v27  ;;  %v2623_v37 = vpop.eup %2622  ;;  %v1278_v5 = vadd.f32 %v1150_v45, %v3317_v18  ;;  %v3376_v29 = vpop.f32.mrb[30].mxu1  ;;  %v2465_v61 = vpack.c.bf16 %v1780_v41, %v1779_v12  ;;  %v760_v27 = vmul.f32 0.5, %v3246_v32  ;;  %2630 = vtanh.f32 %v1405_v0 }
 0x131   :  { %v3378_v34 = vpop.f32.mrb[31].mxu0  ;;  %v3382_v40 = vpop.f32.mrb[31].mxu1  ;;  %v2466_v36 = vpack.c.bf16 %v1782_v30, %v1781_v49  ;;  %2632 = vtanh.f32 %v1404_v22  ;;  %v1023_v21 = vmul.f32 %v895_v52, %v3348_v38  ;;  %v1783_v8 = vmul.f32 %v1655_v28, %v759_v9 }
 0x132   :  { %v1406_v19 = vmul.f32 0.7978846, %v1278_v5  ;;  %v2625_v43 = vpop.eup %2624  ;;  %2285 = vst [vmem:[%s4609_s3 + $0x30] sm:$0xff] %v2465_v61  ;;  %v1657_v6 = vadd.f32 1.0, %v2623_v37  ;;  %v763_v12 = vmul.f32 0.5, %v3295_v50  ;;  %v765_v30 = vmul.f32 0.5, %v3304_v62 }
 0x133   :  { %v897_v32 = vmul.f32 0.044715, %v3355_v54  ;;  %2286 = vst [vmem:[%s4609_s3 + $0x38] sm:$0xff] %v2466_v36  ;;  %v1656_v39 = vadd.f32 1.0, %v2625_v43  ;;  %v1151_v0 = vmul.f32 %v1023_v21, %v3348_v38  ;;  %v896_v49 = vmul.f32 0.044715, %v3360_v44 }
 0x134   :  { %2634 = vtanh.f32 %v1406_v19  ;;  %v3399_v9 = vadd.f32 %v3172_v53, %v3050_v59  ;;  %v3403_v50 = vadd.f32 %v3176_v1, %v3044_v56  ;;  %v3413_v62 = vadd.f32 %v3178_v63, %v3046_v57 }
 0x135   :  { %v1025_v61 = vmul.f32 %v897_v32, %v3355_v54  ;;  %v3405_v37 = vpop.f32.mrb[32].mxu0  ;;  %v3407_v45 = vpop.f32.mrb[32].mxu1  ;;  %v1784_v41 = vmul.f32 %v1656_v39, %v760_v27  ;;  %v1279_v28 = vadd.f32 %v1151_v0, %v3348_v38  ;;  %v1024_v52 = vmul.f32 %v896_v49, %v3360_v44 }
 0x136   :  { %4618 = vst [vmem:[#allocation10_spill] sm:$0xff] %v3407_v45  ;;  %v3415_v22 = vpop.f32.mrb[33].mxu0  ;;  %v3417_v53 = vpop.f32.mrb[33].mxu1  ;;  %v1785_v1 = vmul.f32 %v1657_v6, %v3336_v13  ;;  %v764_v36 = vmul.f32 0.5, %v3308_v23  ;;  %v898_v27 = vmul.f32 0.044715, %v3399_v9 }
 0x137   :  { %4619 = vst [vmem:[#allocation11_spill] sm:$0xff] %v3415_v22  ;;  %4620 = vst [vmem:[#allocation12_spill] sm:$0xff] %v3417_v53  ;;  %v2627_v5 = vpop.eup %2626  ;;  %v1153_v19 = vmul.f32 %v1025_v61, %v3355_v54  ;;  %v3423_v21 = vpop.f32.mrb[34].mxu0  ;;  %v2467_v32 = vpack.c.bf16 %v1784_v41, %v1783_v8  ;;  %v1407_v39 = vmul.f32 0.7978846, %v1279_v28  ;;  %v1152_v0 = vmul.f32 %v1024_v52, %v3360_v44 }
 0x138   :  { %4621 = vst [vmem:[#allocation13_spill] sm:$0xff] %v3423_v21  ;;  %v3425_v43 = vpop.f32.mrb[34].mxu1  ;;  %v1658_v63 = vadd.f32 1.0, %v2627_v5  ;;  %v3428_v49 = vpop.f32.mrb[35].mxu0  ;;  %v1026_v23 = vmul.f32 %v898_v27, %v3399_v9  ;;  %v899_v6 = vmul.f32 0.044715, %v3403_v50  ;;  %v3437_v61 = vadd.f32 %v3182_v16, %v3048_v58 }
 0x139   :  { %4622 = vst [vmem:[#allocation14_spill] sm:$0xff] %v3425_v43  ;;  %4623 = vst [vmem:[#allocation15_spill] sm:$0xff] %v3428_v49  ;;  %v3430_v53 = vpop.f32.mrb[35].mxu1  ;;  %v1281_v13 = vadd.f32 %v1153_v19, %v3355_v54  ;;  %v2629_v43 = vpop.eup %2628  ;;  %2636 = vtanh.f32 %v1407_v39  ;;  %v1280_v41 = vadd.f32 %v1152_v0, %v3360_v44  ;;  %v901_v28 = vmul.f32 0.044715, %v3413_v62 }
 0x13a   :  { %4624 = vst [vmem:[#allocation16_spill] sm:$0xff] %v3430_v53  ;;  %2287 = vst [vmem:[%s4609_s3 + $0x40] sm:$0xff] %v2467_v32  ;;  %v1786_v8 = vmul.f32 %v1658_v63, %v762_v20  ;;  %v2631_v52 = vpop.eup %2630  ;;  %v1659_v5 = vadd.f32 1.0, %v2629_v43  ;;  %v1154_v27 = vmul.f32 %v1026_v23, %v3399_v9  ;;  %v1027_v53 = vmul.f32 %v899_v6, %v3403_v50 }
 0x13b   :  { %v1409_v19 = vmul.f32 0.7978846, %v1281_v13  ;;  %v2633_v16 = vpop.eup %2632  ;;  %v1661_v21 = vadd.f32 1.0, %v2631_v52  ;;  %v1408_v22 = vmul.f32 0.7978846, %v1280_v41  ;;  %v1029_v45 = vmul.f32 %v901_v28, %v3413_v62 }
 0x13c   :  { %v2468_v49 = vpack.c.bf16 %v1786_v8, %v1785_v1  ;;  %v1787_v32 = vmul.f32 %v1659_v5, %v763_v12  ;;  %v1660_v20 = vadd.f32 1.0, %v2633_v16  ;;  %v1282_v63 = vadd.f32 %v1154_v27, %v3399_v9 }
 0x13d   :  { %2638 = vtanh.f32 %v1409_v19  ;;  %v3448_v39 = vpop.f32.mrb[36].mxu0  ;;  %v3450_v0 = vpop.f32.mrb[36].mxu1  ;;  %v766_v1 = vmul.f32 0.5, %v3317_v18  ;;  %v1155_v13 = vmul.f32 %v1027_v53, %v3403_v50  ;;  %v1157_v12 = vmul.f32 %v1029_v45, %v3413_v62 }
 0x13e   :  { %v2635_v43 = vpop.eup %2634  ;;  %2288 = vst [vmem:[%s4609_s3 + $0x48] sm:$0xff] %v2468_v49  ;;  %2640 = vtanh.f32 %v1408_v22  ;;  %v3458_v23 = vpop.f32.mrb[37].mxu0  ;;  %v1789_v8 = vmul.f32 %v1661_v21, %v765_v30  ;;  %v1788_v41 = vmul.f32 %v1660_v20, %v764_v36  ;;  %v1410_v52 = vmul.f32 0.7978846, %v1282_v63 }
 0x13f   :  { %v3460_v6 = vpop.f32.mrb[37].mxu1  ;;  %v1662_v28 = vadd.f32 1.0, %v2635_v43  ;;  %v3462_v5 = vpop.f32.mrb[38].mxu0  ;;  %v1283_v49 = vadd.f32 %v1155_v13, %v3403_v50  ;;  %v1285_v18 = vadd.f32 %v1157_v12, %v3413_v62  ;;  %v900_v22 = vmul.f32 0.044715, %v3437_v61 }
 0x140   :  { %v3464_v19 = vpop.f32.mrb[38].mxu1  ;;  %v3471_v45 = vadd.f32 %v3184_v17, %v3050_v59  ;;  %v3473_v53 = vpop.f32.mrb[39].mxu0  ;;  %v2469_v36 = vpack.c.bf16 %v1788_v41, %v1787_v32  ;;  %2642 = vtanh.f32 %v1410_v52  ;;  %v3479_v27 = vadd.f32 %v3203_v42, %v3044_v56 }
 0x141   :  { %v3475_v30 = vpop.f32.mrb[39].mxu1  ;;  %v1790_v21 = vmul.f32 %v1662_v28, %v766_v1  ;;  %v767_v16 = vmul.f32 0.5, %v3348_v38  ;;  %v1411_v20 = vmul.f32 0.7978846, %v1283_v49  ;;  %v1413_v63 = vmul.f32 0.7978846, %v1285_v18 }
 0x142   :  { %4625 = vst [vmem:[#allocation17_spill] sm:$0xff] %v3475_v30  ;;  %v1028_v43 = vmul.f32 %v900_v22, %v3437_v61  ;;  %2289 = vst [vmem:[%s4609_s3 + $0x50] sm:$0xff] %v2469_v36  ;;  %v769_v13 = vmul.f32 0.5, %v3355_v54  ;;  %v902_v32 = vmul.f32 0.044715, %v3471_v45  ;;  %v3492_v38 = vadd.f32 %v3205_v26, %v3046_v57 }
 0x143   :  { %v2470_v17 = vpack.c.bf16 %v1790_v21, %v1789_v8  ;;  %v903_v1 = vmul.f32 0.044715, %v3479_v27  ;;  %v2637_v12 = vpop.eup %2636  ;;  %2644 = vtanh.f32 %v1411_v20  ;;  %v3496_v41 = vadd.f32 %v3216_v48, %v3048_v58 }
 0x144   :  { %v1156_v42 = vmul.f32 %v1028_v43, %v3437_v61  ;;  %v1663_v54 = vadd.f32 1.0, %v2637_v12  ;;  %v768_v8 = vmul.f32 0.5, %v3360_v44  ;;  %v1030_v28 = vmul.f32 %v902_v32, %v3471_v45 }
 0x145   :  { %2290 = vst [vmem:[%s4609_s3 + $0x58] sm:$0xff] %v2470_v17  ;;  %v1031_v52 = vmul.f32 %v903_v1, %v3479_v27  ;;  %v3504_v49 = vpop.f32.mrb[40].mxu0  ;;  %v3506_v18 = vpop.f32.mrb[40].mxu1  ;;  %v770_v26 = vmul.f32 0.5, %v3399_v9  ;;  %2646 = vtanh.f32 %v1413_v63  ;;  %v905_v22 = vmul.f32 0.044715, %v3492_v38 }
 0x146   :  { %4626 = vst [vmem:[#allocation18_spill] sm:$0xff] %v3504_v49  ;;  %4627 = vst [vmem:[#allocation19_spill] sm:$0xff] %v3506_v18  ;;  %v1284_v48 = vadd.f32 %v1156_v42, %v3437_v61  ;;  %v3511_v36 = vpop.f32.mrb[41].mxu0  ;;  %v3513_v21 = vpop.f32.mrb[41].mxu1  ;;  %v1791_v20 = vmul.f32 %v1663_v54, %v767_v16  ;;  %v1158_v43 = vmul.f32 %v1030_v28, %v3471_v45  ;;  %v904_v32 = vmul.f32 0.044715, %v3496_v41 }
 0x147   :  { %4628 = vst [vmem:[#allocation20_spill] sm:$0xff] %v3511_v36  ;;  %4629 = vst [vmem:[#allocation21_spill] sm:$0xff] %v3513_v21  ;;  %v2639_v44 = vpop.eup %2638  ;;  %v1159_v17 = vmul.f32 %v1031_v52, %v3479_v27  ;;  %v3518_v1 = vpop.f32.mrb[42].mxu0  ;;  %v1033_v42 = vmul.f32 %v905_v22, %v3492_v38  ;;  %v3523_v36 = vadd.f32 %v3218_v60, %v3050_v59 }
 0x148   :  { %4630 = vst [vmem:[#allocation22_spill] sm:$0xff] %v3518_v1  ;;  %v2641_v9 = vpop.eup %2640  ;;  %v1665_v63 = vadd.f32 1.0, %v2639_v44  ;;  %v1412_v12 = vmul.f32 0.7978846, %v1284_v48  ;;  %v1286_v16 = vadd.f32 %v1158_v43, %v3471_v45  ;;  %v1032_v28 = vmul.f32 %v904_v32, %v3496_v41  ;;  %v3528_v52 = vpop.f32.mrb[42].mxu1 }
 0x149   :  { %v1664_v21 = vadd.f32 1.0, %v2641_v9  ;;  %v1287_v54 = vadd.f32 %v1159_v17, %v3479_v27  ;;  %v771_v1 = vmul.f32 0.5, %v3403_v50  ;;  %v1161_v48 = vmul.f32 %v1033_v42, %v3492_v38  ;;  %v3533_v30 = vpop.f32.mrb[43].mxu0 }
 0x14a   :  { %v1793_v18 = vmul.f32 %v1665_v63, %v769_v13  ;;  %2648 = vtanh.f32 %v1412_v12  ;;  %v2643_v22 = vpop.eup %2642  ;;  %v1414_v49 = vmul.f32 0.7978846, %v1286_v16  ;;  %v1160_v9 = vmul.f32 %v1032_v28, %v3496_v41 }
 0x14b   :  { %v1792_v44 = vmul.f32 %v1664_v21, %v768_v8  ;;  %v1415_v60 = vmul.f32 0.7978846, %v1287_v54  ;;  %v1666_v43 = vadd.f32 1.0, %v2643_v22  ;;  %v1289_v17 = vadd.f32 %v1161_v48, %v3492_v38  ;;  %v3555_v22 = vpop.f32.mrb[43].mxu1 }
 0x14c   :  { %v906_v32 = vmul.f32 0.044715, %v3523_v36  ;;  %v3539_v13 = vadd.f32 %v3223_v35, %v3044_v56  ;;  %2650 = vtanh.f32 %v1414_v49  ;;  %v1288_v63 = vadd.f32 %v1160_v9, %v3496_v41 }
 0x14d   :  { %v2471_v50 = vpack.c.bf16 %v1792_v44, %v1791_v20  ;;  %v3544_v8 = vadd.f32 %v3225_v51, %v3046_v57  ;;  %v2645_v21 = vpop.eup %2644  ;;  %v1794_v12 = vmul.f32 %v1666_v43, %v770_v26  ;;  %2652 = vtanh.f32 %v1415_v60 }
 0x14e   :  { %v1417_v42 = vmul.f32 0.7978846, %v1289_v17  ;;  %v1034_v16 = vmul.f32 %v906_v32, %v3523_v36  ;;  %v773_v35 = vmul.f32 0.5, %v3413_v62  ;;  %v772_v49 = vmul.f32 0.5, %v3437_v61 }
 0x14f   :  { %2291 = vst [vmem:[%s4609_s3 + $0x60] sm:$0xff] %v2471_v50  ;;  %v1416_v20 = vmul.f32 0.7978846, %v1288_v63  ;;  %v907_v54 = vmul.f32 0.044715, %v3539_v13  ;;  %v2647_v28 = vpop.eup %2646  ;;  %v2472_v51 = vpack.c.bf16 %v1794_v12, %v1793_v18  ;;  %v774_v48 = vmul.f32 0.5, %v3471_v45 }
 0x150   :  { %2654 = vtanh.f32 %v1417_v42  ;;  %v1162_v26 = vmul.f32 %v1034_v16, %v3523_v36  ;;  %v1667_v44 = vadd.f32 1.0, %v2645_v21  ;;  %v775_v60 = vmul.f32 0.5, %v3479_v27 }
 0x151   :  { %2656 = vtanh.f32 %v1416_v20  ;;  %v1035_v62 = vmul.f32 %v907_v54, %v3539_v13  ;;  %2292 = vst [vmem:[%s4609_s3 + $0x68] sm:$0xff] %v2472_v51  ;;  %v3563_v61 = vmul.f32 0.5, %v3492_v38  ;;  %v909_v18 = vmul.f32 0.044715, %v3544_v8 }
 0x152   :  { %v1290_v45 = vadd.f32 %v1162_v26, %v3523_v36  ;;  %v3569_v9 = vadd.f32 %v3233_v11, %v3048_v58  ;;  %v776_v27 = vmul.f32 0.5, %v3496_v41  ;;  %v3575_v17 = vadd.f32 %v3237_v25, %v3050_v59 }
 0x153   :  { %v1163_v43 = vmul.f32 %v1035_v62, %v3539_v13  ;;  %v3579_v38 = vadd.f32 %v3257_v46, %v3044_v56  ;;  %v1669_v50 = vadd.f32 1.0, %v2647_v28  ;;  %v1037_v21 = vmul.f32 %v909_v18, %v3544_v8 }
 0x154   :  { %v2649_v32 = vpop.eup %2648  ;;  %v1418_v63 = vmul.f32 0.7978846, %v1290_v45  ;;  %v908_v11 = vmul.f32 0.044715, %v3569_v9  ;;  %v1795_v12 = vmul.f32 %v1667_v44, %v771_v1  ;;  %v910_v16 = vmul.f32 0.044715, %v3575_v17 }
 0x155   :  { %v1668_v42 = vadd.f32 1.0, %v2649_v32  ;;  %v1291_v41 = vadd.f32 %v1163_v43, %v3539_v13  ;;  %v1165_v25 = vmul.f32 %v1037_v21, %v3544_v8  ;;  %v3589_v46 = vadd.f32 %v3259_v47, %v3046_v57  ;;  %v3596_v21 = vpop.f32.mrb[44].mxu0 }
 0x156   :  { %2658 = vtanh.f32 %v1418_v63  ;;  %v1036_v20 = vmul.f32 %v908_v11, %v3569_v9  ;;  %v2651_v54 = vpop.eup %2650  ;;  %v1038_v26 = vmul.f32 %v910_v16, %v3575_v17  ;;  %v911_v1 = vmul.f32 0.044715, %v3579_v38 }
 0x157   :  { %v1796_v28 = vmul.f32 %v1668_v42, %v772_v49  ;;  %v1419_v51 = vmul.f32 0.7978846, %v1291_v41  ;;  %v2653_v44 = vpop.eup %2652  ;;  %v1797_v62 = vmul.f32 %v1669_v50, %v773_v35  ;;  %v1670_v45 = vadd.f32 1.0, %v2651_v54  ;;  %v3598_v49 = vpop.f32.mrb[44].mxu1 }
 0x158   :  { %v1293_v18 = vadd.f32 %v1165_v25, %v3544_v8  ;;  %v1164_v43 = vmul.f32 %v1036_v20, %v3569_v9  ;;  %v1671_v63 = vadd.f32 1.0, %v2653_v44  ;;  %v1166_v47 = vmul.f32 %v1038_v26, %v3575_v17  ;;  %v3602_v50 = vpop.f32.mrb[45].mxu0  ;;  %v3604_v25 = vpop.f32.mrb[45].mxu1 }
 0x159   :  { %v2473_v32 = vpack.c.bf16 %v1796_v28, %v1795_v12  ;;  %2660 = vtanh.f32 %v1419_v51  ;;  %v1798_v42 = vmul.f32 %v1670_v45, %v774_v48  ;;  %v1039_v35 = vmul.f32 %v911_v1, %v3579_v38  ;;  %4631 = vst [vmem:[#allocation23_spill] sm:$0xff] %v3604_v25  ;;  %v3614_v25 = vpop.f32.mrb[46].mxu0 }
 0x15a   :  { %v2655_v11 = vpop.eup %2654  ;;  %v1421_v41 = vmul.f32 0.7978846, %v1293_v18  ;;  %v1292_v16 = vadd.f32 %v1164_v43, %v3569_v9  ;;  %v1799_v20 = vmul.f32 %v1671_v63, %v775_v60  ;;  %v1294_v28 = vadd.f32 %v1166_v47, %v3575_v17 }
 0x15b   :  { %v2657_v12 = vpop.eup %2656  ;;  %2293 = vst [vmem:[%s4609_s3 + $0x70] sm:$0xff] %v2473_v32  ;;  %v1673_v54 = vadd.f32 1.0, %v2655_v11  ;;  %v913_v48 = vmul.f32 0.044715, %v3589_v46  ;;  %v2474_v51 = vpack.c.bf16 %v1798_v42, %v1797_v62  ;;  %v778_v1 = vmul.f32 0.5, %v3523_v36  ;;  %v3627_v32 = vpop.f32.mrb[46].mxu1 }
 0x15c   :  { %v1672_v26 = vadd.f32 1.0, %v2657_v12  ;;  %2662 = vtanh.f32 %v1421_v41  ;;  %v1420_v44 = vmul.f32 0.7978846, %v1292_v16  ;;  %v1422_v45 = vmul.f32 0.7978846, %v1294_v28 }
 0x15d   :  { %v1167_v18 = vmul.f32 %v1039_v35, %v3579_v38  ;;  %v1041_v43 = vmul.f32 %v913_v48, %v3589_v46  ;;  %2294 = vst [vmem:[%s4609_s3 + $0x78] sm:$0xff] %v2474_v51  ;;  %v3621_v62 = vadd.f32 %v3264_v10, %v3048_v58  ;;  %v3625_v36 = vadd.f32 %v3266_v4, %v3050_v59 }
 0x15e   :  { %v1800_v60 = vmul.f32 %v1672_v26, %v776_v27  ;;  %2664 = vtanh.f32 %v1420_v44  ;;  %v3633_v11 = vadd.f32 %v3274_v14, %v3044_v56  ;;  %v1801_v42 = vmul.f32 %v1673_v54, %v3563_v61 }
 0x15f   :  { %2666 = vtanh.f32 %v1422_v45  ;;  %v1295_v63 = vadd.f32 %v1167_v18, %v3579_v38  ;;  %v1169_v47 = vmul.f32 %v1041_v43, %v3589_v46  ;;  %v779_v41 = vmul.f32 0.5, %v3539_v13  ;;  %v3654_v43 = vpop.f32.mrb[47].mxu0 }
 0x160   :  { %v2659_v27 = vpop.eup %2658  ;;  %v2475_v10 = vpack.c.bf16 %v1800_v60, %v1799_v20  ;;  %v912_v4 = vmul.f32 0.044715, %v3621_v62  ;;  %v914_v28 = vmul.f32 0.044715, %v3625_v36  ;;  %v781_v14 = vmul.f32 0.5, %v3544_v8  ;;  %v3656_v60 = vpop.f32.mrb[47].mxu1 }
 0x161   :  { %v1674_v16 = vadd.f32 1.0, %v2659_v27  ;;  %v1423_v35 = vmul.f32 0.7978846, %v1295_v63  ;;  %v1297_v12 = vadd.f32 %v1169_v47, %v3589_v46  ;;  %v915_v61 = vmul.f32 0.044715, %v3633_v11 }
 0x162   :  { %2295 = vst [vmem:[%s4609_s3 + $0x80] sm:$0xff] %v2475_v10  ;;  %v1040_v48 = vmul.f32 %v912_v4, %v3621_v62  ;;  %v3648_v13 = vadd.f32 %v3276_v24, %v3046_v57  ;;  %v1042_v26 = vmul.f32 %v914_v28, %v3625_v36  ;;  %v780_v45 = vmul.f32 0.5, %v3569_v9 }
 0x163   :  { %v2661_v20 = vpop.eup %2660  ;;  %v1802_v54 = vmul.f32 %v1674_v16, %v778_v1  ;;  %2668 = vtanh.f32 %v1423_v35  ;;  %v1425_v51 = vmul.f32 0.7978846, %v1297_v12  ;;  %v1043_v8 = vmul.f32 %v915_v61, %v3633_v11 }
 0x164   :  { %v1675_v44 = vadd.f32 1.0, %v2661_v20  ;;  %v1168_v18 = vmul.f32 %v1040_v48, %v3621_v62  ;;  %v1170_v24 = vmul.f32 %v1042_v26, %v3625_v36  ;;  %v917_v1 = vmul.f32 0.044715, %v3648_v13 }
 0x165   :  { %v2476_v63 = vpack.c.bf16 %v1802_v54, %v1801_v42  ;;  %2670 = vtanh.f32 %v1425_v51  ;;  %v782_v27 = vmul.f32 0.5, %v3575_v17  ;;  %v1171_v9 = vmul.f32 %v1043_v8, %v3633_v11 }
 0x166   :  { %v2663_v47 = vpop.eup %2662  ;;  %v1296_v10 = vadd.f32 %v1168_v18, %v3621_v62  ;;  %v3665_v4 = vadd.f32 %v3279_v33, %v3048_v58  ;;  %v1803_v42 = vmul.f32 %v1675_v44, %v779_v41  ;;  %v1298_v35 = vadd.f32 %v1170_v24, %v3625_v36  ;;  %v3682_v24 = vpop.f32.mrb[48].mxu1 }
 0x167   :  { %2296 = vst [vmem:[%s4609_s3 + $0x88] sm:$0xff] %v2476_v63  ;;  %v1677_v16 = vadd.f32 1.0, %v2663_v47  ;;  %v1045_v12 = vmul.f32 %v917_v1, %v3648_v13  ;;  %v1299_v48 = vadd.f32 %v1171_v9, %v3633_v11  ;;  %v3676_v33 = vadd.f32 %v3281_v55, %v3050_v59  ;;  %v3680_v63 = vpop.f32.mrb[48].mxu0 }
 0x168   :  { %v2665_v28 = vpop.eup %2664  ;;  %v1424_v17 = vmul.f32 0.7978846, %v1296_v10  ;;  %v916_v61 = vmul.f32 0.044715, %v3665_v4  ;;  %v1426_v26 = vmul.f32 0.7978846, %v1298_v35 }
 0x169   :  { %v2667_v20 = vpop.eup %2666  ;;  %v1805_v54 = vmul.f32 %v1677_v16, %v781_v14  ;;  %v1676_v51 = vadd.f32 1.0, %v2665_v28  ;;  %v1173_v41 = vmul.f32 %v1045_v12, %v3648_v13  ;;  %v1427_v18 = vmul.f32 0.7978846, %v1299_v48  ;;  %v3686_v14 = vpop.f32.mrb[49].mxu0 }
 0x16a   :  { %v1678_v44 = vadd.f32 1.0, %v2667_v20  ;;  %2672 = vtanh.f32 %v1424_v17  ;;  %v1044_v8 = vmul.f32 %v916_v61, %v3665_v4  ;;  %v783_v47 = vmul.f32 0.5, %v3579_v38 }
 0x16b   :  { %v1804_v1 = vmul.f32 %v1676_v51, %v780_v45  ;;  %2674 = vtanh.f32 %v1426_v26  ;;  %v1301_v55 = vadd.f32 %v1173_v41, %v3648_v13  ;;  %v918_v16 = vmul.f32 0.044715, %v3676_v33  ;;  %v3707_v51 = vpop.f32.mrb[49].mxu1 }
 0x16c   :  { %v1806_v10 = vmul.f32 %v1678_v44, %v782_v27  ;;  %2676 = vtanh.f32 %v1427_v18  ;;  %v1172_v9 = vmul.f32 %v1044_v8, %v3665_v4  ;;  %v3692_v17 = vadd.f32 %v3310_v7, %v3044_v56 }
 0x16d   :  { %v2669_v35 = vpop.eup %2668  ;;  %v2477_v12 = vpack.c.bf16 %v1804_v1, %v1803_v42  ;;  %v1429_v28 = vmul.f32 0.7978846, %v1301_v55  ;;  %v3696_v38 = vadd.f32 %v3312_v15, %v3046_v57  ;;  %v785_v48 = vmul.f32 0.5, %v3589_v46  ;;  %v4632_v55 = vld [vmem:[#allocation2_spill] sm:$0xff] }
 0x16e   :  { %v2478_v45 = vpack.c.bf16 %v1806_v10, %v1805_v54  ;;  %v1300_v27 = vadd.f32 %v1172_v9, %v3665_v4  ;;  %v1046_v61 = vmul.f32 %v918_v16, %v3676_v33  ;;  %v784_v42 = vmul.f32 0.5, %v3621_v62  ;;  %v3729_v9 = vpop.f32.mrb[50].mxu0 }
 0x16f   :  { %v2671_v20 = vpop.eup %2670  ;;  %2297 = vst [vmem:[%s4609_s3 + $0x90] sm:$0xff] %v2477_v12  ;;  %v786_v7 = vmul.f32 0.5, %v3625_v36  ;;  %2678 = vtanh.f32 %v1429_v28  ;;  %v919_v15 = vmul.f32 0.044715, %v3692_v17  ;;  %v1679_v46 = vadd.f32 1.0, %v2669_v35  ;;  %4633 = vst [vmem:[#allocation2_spill] sm:$0xff] %v3729_v9 }
 0x170   :  { %2298 = vst [vmem:[%s4609_s3 + $0x98] sm:$0xff] %v2478_v45  ;;  %v1681_v54 = vadd.f32 1.0, %v2671_v20  ;;  %v1428_v26 = vmul.f32 0.7978846, %v1300_v27  ;;  %v1174_v41 = vmul.f32 %v1046_v61, %v3676_v33  ;;  %v921_v62 = vmul.f32 0.044715, %v3696_v38 }
 0x171   :  { %v1047_v44 = vmul.f32 %v919_v15, %v3692_v17  ;;  %v3717_v36 = vadd.f32 %v3319_v31, %v3048_v58  ;;  %v3721_v18 = vadd.f32 %v3321_v2, %v3050_v59  ;;  %v787_v8 = vmul.f32 0.5, %v3633_v11 }
 0x172   :  { %2680 = vtanh.f32 %v1428_v26  ;;  %v1302_v1 = vadd.f32 %v1174_v41, %v3676_v33  ;;  %v3727_v10 = vadd.f32 %v4632_v55, %v3044_v56  ;;  %v789_v16 = vmul.f32 0.5, %v3648_v13  ;;  %v3739_v41 = vpop.f32.mrb[50].mxu1 }
 0x173   :  { %v1175_v31 = vmul.f32 %v1047_v44, %v3692_v17  ;;  %v1049_v35 = vmul.f32 %v921_v62, %v3696_v38  ;;  %v920_v2 = vmul.f32 0.044715, %v3717_v36  ;;  %v1807_v28 = vmul.f32 %v1679_v46, %v783_v47  ;;  %4634 = vst [vmem:[#allocation24_spill] sm:$0xff] %v3739_v41 }
 0x174   :  { %v2673_v12 = vpop.eup %2672  ;;  %v1809_v11 = vmul.f32 %v1681_v54, %v785_v48  ;;  %v1430_v45 = vmul.f32 0.7978846, %v1302_v1  ;;  %v922_v27 = vmul.f32 0.044715, %v3721_v18  ;;  %v923_v47 = vmul.f32 0.044715, %v3727_v10 }
 0x175   :  { %v2675_v61 = vpop.eup %2674  ;;  %v1680_v20 = vadd.f32 1.0, %v2673_v12  ;;  %v1303_v15 = vadd.f32 %v1175_v31, %v3692_v17  ;;  %v1177_v26 = vmul.f32 %v1049_v35, %v3696_v38  ;;  %v1048_v13 = vmul.f32 %v920_v2, %v3717_v36  ;;  %v3745_v31 = vpop.f32.mrb[51].mxu0 }
 0x176   :  { %v2677_v44 = vpop.eup %2676  ;;  %v1682_v62 = vadd.f32 1.0, %v2675_v61  ;;  %2682 = vtanh.f32 %v1430_v45  ;;  %v1050_v55 = vmul.f32 %v922_v27, %v3721_v18  ;;  %v788_v46 = vmul.f32 0.5, %v3665_v4  ;;  %v3747_v35 = vpop.f32.mrb[51].mxu1 }
 0x177   :  { %v1808_v48 = vmul.f32 %v1680_v20, %v784_v42  ;;  %v1431_v54 = vmul.f32 0.7978846, %v1303_v15  ;;  %v1305_v1 = vadd.f32 %v1177_v26, %v3696_v38  ;;  %v1176_v12 = vmul.f32 %v1048_v13, %v3717_v36  ;;  %v4635_v13 = vld [vmem:[#allocation3_spill] sm:$0xff] }
 0x178   :  { %v1810_v2 = vmul.f32 %v1682_v62, %v786_v7  ;;  %v1178_v61 = vmul.f32 %v1050_v55, %v3721_v18  ;;  %v1051_v45 = vmul.f32 %v923_v47, %v3727_v10  ;;  %v1683_v9 = vadd.f32 1.0, %v2677_v44 }
 0x179   :  { %v2679_v27 = vpop.eup %2678  ;;  %v2479_v41 = vpack.c.bf16 %v1808_v48, %v1807_v28  ;;  %2684 = vtanh.f32 %v1431_v54  ;;  %v1433_v42 = vmul.f32 0.7978846, %v1305_v1  ;;  %v1304_v15 = vadd.f32 %v1176_v12, %v3717_v36  ;;  %v4636_v28 = vld [vmem:[#allocation4_spill] sm:$0xff]  ;;  %v4637_v48 = vld [vmem:[#allocation5_spill] sm:$0xff] }
 0x17a   :  { %v2480_v4 = vpack.c.bf16 %v1810_v2, %v1809_v11  ;;  %v1685_v20 = vadd.f32 1.0, %v2679_v27  ;;  %v1306_v26 = vadd.f32 %v1178_v61, %v3721_v18  ;;  %v1179_v7 = vmul.f32 %v1051_v45, %v3727_v10 }
 0x17b   :  { %2299 = vst [vmem:[%s4609_s3 + $0xa0] sm:$0xff] %v2479_v41  ;;  %2686 = vtanh.f32 %v1433_v42  ;;  %v3760_v62 = vadd.f32 %v4635_v13, %v3046_v57  ;;  %v3764_v44 = vadd.f32 %v4636_v28, %v3048_v58  ;;  %v790_v55 = vmul.f32 0.5, %v3676_v33 }
 0x17c   :  { %v2681_v11 = vpop.eup %2680  ;;  %2300 = vst [vmem:[%s4609_s3 + $0xa8] sm:$0xff] %v2480_v4  ;;  %v1432_v47 = vmul.f32 0.7978846, %v1304_v15  ;;  %v1434_v41 = vmul.f32 0.7978846, %v1306_v26  ;;  %v3772_v54 = vadd.f32 %v4637_v48, %v3050_v59  ;;  %v1811_v1 = vmul.f32 %v1683_v9, %v787_v8  ;;  %v4638_v9 = vld [vmem:[#allocation6_spill] sm:$0xff] }
 0x17d   :  { %v1684_v2 = vadd.f32 1.0, %v2681_v11  ;;  %v1307_v12 = vadd.f32 %v1179_v7, %v3727_v10  ;;  %v925_v61 = vmul.f32 0.044715, %v3760_v62  ;;  %v1813_v45 = vmul.f32 %v1685_v20, %v789_v16  ;;  %v4639_v16 = vld [vmem:[#allocation7_spill] sm:$0xff]  ;;  %v3790_v11 = vpop.f32.mrb[52].mxu0 }
 0x17e   :  { %v791_v27 = vmul.f32 0.5, %v3692_v17  ;;  %2688 = vtanh.f32 %v1432_v47  ;;  %v924_v42 = vmul.f32 0.044715, %v3764_v44  ;;  %v926_v8 = vmul.f32 0.044715, %v3772_v54  ;;  %v3792_v47 = vpop.f32.mrb[52].mxu1 }
 0x17f   :  { %v1812_v4 = vmul.f32 %v1684_v2, %v788_v46  ;;  %2690 = vtanh.f32 %v1434_v41  ;;  %v1435_v33 = vmul.f32 0.7978846, %v1307_v12  ;;  %v1053_v15 = vmul.f32 %v925_v61, %v3760_v62  ;;  %4640 = vst [vmem:[#allocation3_spill] sm:$0xff] %v3792_v47 }
 0x180   :  { %v2683_v26 = vpop.eup %2682  ;;  %v1052_v13 = vmul.f32 %v924_v42, %v3764_v44  ;;  %v3783_v7 = vadd.f32 %v4638_v9, %v3044_v56  ;;  %v3787_v17 = vadd.f32 %v4639_v16, %v3046_v57  ;;  %v793_v41 = vmul.f32 0.5, %v3696_v38  ;;  %v3806_v38 = vpop.f32.mrb[53].mxu1 }
 0x181   :  { %v2481_v20 = vpack.c.bf16 %v1812_v4, %v1811_v1  ;;  %v1686_v28 = vadd.f32 1.0, %v2683_v26  ;;  %2692 = vtanh.f32 %v1435_v33  ;;  %v1181_v46 = vmul.f32 %v1053_v15, %v3760_v62  ;;  %v3804_v15 = vpop.f32.mrb[53].mxu0  ;;  %4642 = vst [vmem:[#allocation5_spill] sm:$0xff] %v3806_v38 }
 0x182   :  { %v1180_v48 = vmul.f32 %v1052_v13, %v3764_v44  ;;  %v1054_v2 = vmul.f32 %v926_v8, %v3772_v54  ;;  %v927_v12 = vmul.f32 0.044715, %v3783_v7  ;;  %v792_v42 = vmul.f32 0.5, %v3717_v36  ;;  %4641 = vst [vmem:[#allocation4_spill] sm:$0xff] %v3804_v15  ;;  %v3816_v47 = vpop.f32.mrb[54].mxu0 }
 0x183   :  { %v2685_v61 = vpop.eup %2684  ;;  %2301 = vst [vmem:[%s4609_s3 + $0xb0] sm:$0xff] %v2481_v20  ;;  %v1814_v1 = vmul.f32 %v1686_v28, %v790_v55  ;;  %v1309_v4 = vadd.f32 %v1181_v46, %v3760_v62  ;;  %v929_v33 = vmul.f32 0.044715, %v3787_v17  ;;  %v4643_v28 = vld [vmem:[#allocation8_spill] sm:$0xff]  ;;  %4644 = vst [vmem:[#allocation6_spill] sm:$0xff] %v3816_v47 }
 0x184   :  { %v1687_v26 = vadd.f32 1.0, %v2685_v61  ;;  %v1308_v13 = vadd.f32 %v1180_v48, %v3764_v44  ;;  %v1182_v8 = vmul.f32 %v1054_v2, %v3772_v54  ;;  %v1055_v9 = vmul.f32 %v927_v12, %v3783_v7 }
 0x185   :  { %v2687_v16 = vpop.eup %2686  ;;  %v2482_v20 = vpack.c.bf16 %v1814_v1, %v1813_v45  ;;  %v1437_v55 = vmul.f32 0.7978846, %v1309_v4  ;;  %v1057_v36 = vmul.f32 %v929_v33, %v3787_v17  ;;  %v3814_v46 = vadd.f32 %v4643_v28, %v3048_v58 }
 0x186   :  { %v1689_v15 = vadd.f32 1.0, %v2687_v16  ;;  %v794_v61 = vmul.f32 0.5, %v3721_v18  ;;  %v1436_v38 = vmul.f32 0.7978846, %v1308_v13  ;;  %v1310_v48 = vadd.f32 %v1182_v8, %v3772_v54  ;;  %v3826_v18 = vpop.f32.mrb[54].mxu1 }
 0x187   :  { %2302 = vst [vmem:[%s4609_s3 + $0xb8] sm:$0xff] %v2482_v20  ;;  %v1815_v45 = vmul.f32 %v1687_v26, %v791_v27  ;;  %2694 = vtanh.f32 %v1437_v55  ;;  %v1183_v2 = vmul.f32 %v1055_v9, %v3783_v7  ;;  %v1185_v12 = vmul.f32 %v1057_v36, %v3787_v17  ;;  %4645 = vst [vmem:[#allocation7_spill] sm:$0xff] %v3826_v18  ;;  %v4646_v27 = vld [vmem:[#allocation9_spill] sm:$0xff] }
 0x188   :  { %v2689_v1 = vpop.eup %2688  ;;  %v1817_v4 = vmul.f32 %v1689_v15, %v793_v41  ;;  %2696 = vtanh.f32 %v1436_v38  ;;  %v1438_v33 = vmul.f32 0.7978846, %v1310_v48  ;;  %v928_v16 = vmul.f32 0.044715, %v3814_v46 }
 0x189   :  { %v2691_v13 = vpop.eup %2690  ;;  %v1688_v8 = vadd.f32 1.0, %v2689_v1  ;;  %v1311_v28 = vadd.f32 %v1183_v2, %v3783_v7  ;;  %v1313_v20 = vadd.f32 %v1185_v12, %v3787_v17  ;;  %v3832_v26 = vadd.f32 %v4646_v27, %v3050_v59 }
 0x18a   :  { %v1690_v9 = vadd.f32 1.0, %v2691_v13  ;;  %2698 = vtanh.f32 %v1438_v33  ;;  %v1056_v41 = vmul.f32 %v928_v16, %v3814_v46  ;;  %v3837_v15 = vadd.f32 %v3373_v3, %v3044_v56  ;;  %v3844_v3 = vpop.f32.mrb[55].mxu0 }
 0x18b   :  { %v2693_v38 = vpop.eup %2692  ;;  %v1816_v55 = vmul.f32 %v1688_v8, %v792_v42  ;;  %v795_v36 = vmul.f32 0.5, %v3727_v10  ;;  %v1439_v48 = vmul.f32 0.7978846, %v1311_v28  ;;  %v1441_v2 = vmul.f32 0.7978846, %v1313_v20 }
 0x18c   :  { %v1818_v1 = vmul.f32 %v1690_v9, %v794_v61  ;;  %v797_v12 = vmul.f32 0.5, %v3760_v62  ;;  %v1184_v27 = vmul.f32 %v1056_v41, %v3814_v46  ;;  %v930_v13 = vmul.f32 0.044715, %v3832_v26 }
 0x18d   :  { %v2483_v33 = vpack.c.bf16 %v1816_v55, %v1815_v45  ;;  %v1691_v18 = vadd.f32 1.0, %v2693_v38  ;;  %2700 = vtanh.f32 %v1439_v48  ;;  %v931_v16 = vmul.f32 0.044715, %v3837_v15 }
 0x18e   :  { %v2484_v47 = vpack.c.bf16 %v1818_v1, %v1817_v4  ;;  %v796_v42 = vmul.f32 0.5, %v3764_v44  ;;  %2702 = vtanh.f32 %v1441_v2  ;;  %v1312_v10 = vadd.f32 %v1184_v27, %v3814_v46  ;;  %v3861_v44 = vpop.f32.mrb[55].mxu1 }
 0x18f   :  { %2303 = vst [vmem:[%s4609_s3 + $0xc0] sm:$0xff] %v2483_v33  ;;  %v1058_v62 = vmul.f32 %v930_v13, %v3832_v26  ;;  %v1059_v61 = vmul.f32 %v931_v16, %v3837_v15  ;;  %v3855_v45 = vadd.f32 %v3376_v29, %v3046_v57  ;;  %v3859_v4 = vadd.f32 %v3378_v34, %v3048_v58 }
 0x190   :  { %2304 = vst [vmem:[%s4609_s3 + $0xc8] sm:$0xff] %v2484_v47  ;;  %v798_v8 = vmul.f32 0.5, %v3772_v54  ;;  %v799_v28 = vmul.f32 0.5, %v3783_v7  ;;  %v1440_v20 = vmul.f32 0.7978846, %v1312_v10  ;;  %v3870_v9 = vadd.f32 %v3382_v40, %v3050_v59 }
 0x191   :  { %v2695_v29 = vpop.eup %2694  ;;  %v1819_v41 = vmul.f32 %v1691_v18, %v795_v36  ;;  %v1186_v34 = vmul.f32 %v1058_v62, %v3832_v26  ;;  %v1187_v38 = vmul.f32 %v1059_v61, %v3837_v15  ;;  %v933_v55 = vmul.f32 0.044715, %v3855_v45 }
 0x192   :  { %v2697_v48 = vpop.eup %2696  ;;  %v1693_v2 = vadd.f32 1.0, %v2695_v29  ;;  %2704 = vtanh.f32 %v1440_v20  ;;  %v932_v54 = vmul.f32 0.044715, %v3859_v4  ;;  %v3878_v7 = vadd.f32 %v3405_v37, %v3044_v56  ;;  %v3886_v20 = vpop.f32.mrb[56].mxu0 }
 0x193   :  { %v1692_v47 = vadd.f32 1.0, %v2697_v48  ;;  %v1314_v40 = vadd.f32 %v1186_v34, %v3832_v26  ;;  %v1315_v18 = vadd.f32 %v1187_v38, %v3837_v15  ;;  %v1061_v36 = vmul.f32 %v933_v55, %v3855_v45  ;;  %v3897_v48 = vpop.f32.mrb[57].mxu0 }
 0x194   :  { %v2699_v1 = vpop.eup %2698  ;;  %v1821_v27 = vmul.f32 %v1693_v2, %v797_v12  ;;  %v801_v13 = vmul.f32 0.5, %v3787_v17  ;;  %v1060_v33 = vmul.f32 %v932_v54, %v3859_v4  ;;  %v934_v16 = vmul.f32 0.044715, %v3870_v9  ;;  %v4647_v12 = vld [vmem:[#allocation10_spill] sm:$0xff]  ;;  %v3895_v17 = vpop.f32.mrb[56].mxu1 }
 0x195   :  { %v1820_v10 = vmul.f32 %v1692_v47, %v796_v42  ;;  %v1694_v62 = vadd.f32 1.0, %v2699_v1  ;;  %v1442_v61 = vmul.f32 0.7978846, %v1314_v40  ;;  %v1443_v37 = vmul.f32 0.7978846, %v1315_v18 }
 0x196   :  { %v1189_v29 = vmul.f32 %v1061_v36, %v3855_v45  ;;  %v1188_v34 = vmul.f32 %v1060_v33, %v3859_v4  ;;  %v1062_v38 = vmul.f32 %v934_v16, %v3870_v9  ;;  %v3893_v55 = vadd.f32 %v4647_v12, %v3046_v57 }
 0x197   :  { %v2701_v42 = vpop.eup %2700  ;;  %v2485_v2 = vpack.c.bf16 %v1820_v10, %v1819_v41  ;;  %v1822_v54 = vmul.f32 %v1694_v62, %v798_v8  ;;  %2706 = vtanh.f32 %v1442_v61  ;;  %v935_v47 = vmul.f32 0.044715, %v3878_v7  ;;  %v3908_v10 = vpop.f32.mrb[57].mxu1 }
 0x198   :  { %v2703_v40 = vpop.eup %2702  ;;  %v1695_v18 = vadd.f32 1.0, %v2701_v42  ;;  %2708 = vtanh.f32 %v1443_v37  ;;  %v1317_v36 = vadd.f32 %v1189_v29, %v3855_v45  ;;  %v1316_v1 = vadd.f32 %v1188_v34, %v3859_v4  ;;  %4648 = vst [vmem:[#allocation8_spill] sm:$0xff] %v3908_v10  ;;  %v4649_v42 = vld [vmem:[#allocation11_spill] sm:$0xff]  ;;  %v4654_v10 = vld [vmem:[#allocation14_spill] sm:$0xff] }
 0x199   :  { %2305 = vst [vmem:[%s4609_s3 + $0xd0] sm:$0xff] %v2485_v2  ;;  %v2486_v33 = vpack.c.bf16 %v1822_v54, %v1821_v27  ;;  %v800_v16 = vmul.f32 0.5, %v3814_v46  ;;  %v1190_v41 = vmul.f32 %v1062_v38, %v3870_v9  ;;  %v1063_v8 = vmul.f32 %v935_v47, %v3878_v7  ;;  %v4651_v47 = vld [vmem:[#allocation13_spill] sm:$0xff] }
 0x19a   :  { %v1697_v62 = vadd.f32 1.0, %v2703_v40  ;;  %v802_v61 = vmul.f32 0.5, %v3832_v26  ;;  %v1445_v37 = vmul.f32 0.7978846, %v1317_v36  ;;  %v1444_v29 = vmul.f32 0.7978846, %v1316_v1 }
 0x19b   :  { %2306 = vst [vmem:[%s4609_s3 + $0xd8] sm:$0xff] %v2486_v33  ;;  %v1823_v34 = vmul.f32 %v1695_v18, %v799_v28  ;;  %v1318_v27 = vadd.f32 %v1190_v41, %v3870_v9  ;;  %v1191_v46 = vmul.f32 %v1063_v8, %v3878_v7  ;;  %v937_v38 = vmul.f32 0.044715, %v3893_v55  ;;  %v4650_v26 = vld [vmem:[#allocation12_spill] sm:$0xff]  ;;  %v3929_v28 = vpop.f32.mrb[58].mxu0 }
 0x19c   :  { %v2705_v12 = vpop.eup %2704  ;;  %2710 = vtanh.f32 %v1445_v37  ;;  %v3919_v2 = vadd.f32 %v4649_v42, %v3048_v58  ;;  %v3923_v54 = vadd.f32 %v4650_v26, %v3050_v59  ;;  %v3927_v40 = vadd.f32 %v4651_v47, %v3044_v56  ;;  %4652 = vst [vmem:[#allocation9_spill] sm:$0xff] %v3929_v28  ;;  %v3936_v42 = vpop.f32.mrb[58].mxu1 }
 0x19d   :  { %v1696_v18 = vadd.f32 1.0, %v2705_v12  ;;  %2712 = vtanh.f32 %v1444_v29  ;;  %v1446_v36 = vmul.f32 0.7978846, %v1318_v27  ;;  %v1319_v1 = vadd.f32 %v1191_v46, %v3878_v7  ;;  %4653 = vst [vmem:[#allocation10_spill] sm:$0xff] %v3936_v42 }
 0x19e   :  { %v803_v33 = vmul.f32 0.5, %v3837_v15  ;;  %v805_v41 = vmul.f32 0.5, %v3855_v45  ;;  %v1065_v8 = vmul.f32 %v937_v38, %v3893_v55  ;;  %v936_v37 = vmul.f32 0.044715, %v3919_v2 }
 0x19f   :  { %v1824_v26 = vmul.f32 %v1696_v18, %v800_v16  ;;  %2714 = vtanh.f32 %v1446_v36  ;;  %v1447_v47 = vmul.f32 0.7978846, %v1319_v1  ;;  %v938_v28 = vmul.f32 0.044715, %v3923_v54  ;;  %v3947_v16 = vpop.f32.mrb[59].mxu0 }
 0x1a0   :  { %v1825_v12 = vmul.f32 %v1697_v62, %v801_v13  ;;  %v1193_v29 = vmul.f32 %v1065_v8, %v3893_v55  ;;  %v1064_v27 = vmul.f32 %v936_v37, %v3919_v2  ;;  %v939_v15 = vmul.f32 0.044715, %v3927_v40  ;;  %4655 = vst [vmem:[#allocation11_spill] sm:$0xff] %v3947_v16  ;;  %v3952_v8 = vpop.f32.mrb[59].mxu1 }
 0x1a1   :  { %v2707_v46 = vpop.eup %2706  ;;  %v2487_v45 = vpack.c.bf16 %v1824_v26, %v1823_v34  ;;  %2716 = vtanh.f32 %v1447_v47  ;;  %v1066_v38 = vmul.f32 %v938_v28, %v3923_v54  ;;  %v3945_v42 = vadd.f32 %v4654_v10, %v3046_v57  ;;  %4656 = vst [vmem:[#allocation12_spill] sm:$0xff] %v3952_v8 }
 0x1a2   :  { %v2709_v18 = vpop.eup %2708  ;;  %v1698_v36 = vadd.f32 1.0, %v2707_v46  ;;  %v1321_v13 = vadd.f32 %v1193_v29, %v3893_v55  ;;  %v1192_v62 = vmul.f32 %v1064_v27, %v3919_v2  ;;  %v1067_v1 = vmul.f32 %v939_v15, %v3927_v40 }
 0x1a3   :  { %2307 = vst [vmem:[%s4609_s3 + $0xe0] sm:$0xff] %v2487_v45  ;;  %v1699_v34 = vadd.f32 1.0, %v2709_v18  ;;  %v804_v10 = vmul.f32 0.5, %v3859_v4  ;;  %v1194_v28 = vmul.f32 %v1066_v38, %v3923_v54  ;;  %v941_v37 = vmul.f32 0.044715, %v3945_v42  ;;  %v4657_v45 = vld [vmem:[#allocation15_spill] sm:$0xff] }
 0x1a4   :  { %v1826_v26 = vmul.f32 %v1698_v36, %v802_v61  ;;  %v1449_v47 = vmul.f32 0.7978846, %v1321_v13  ;;  %v1320_v29 = vadd.f32 %v1192_v62, %v3919_v2  ;;  %v1195_v27 = vmul.f32 %v1067_v1, %v3927_v40 }
 0x1a5   :  { %v806_v15 = vmul.f32 0.5, %v3870_v9  ;;  %v1322_v46 = vadd.f32 %v1194_v28, %v3923_v54  ;;  %v1069_v8 = vmul.f32 %v941_v37, %v3945_v42  ;;  %v3967_v18 = vadd.f32 %v4657_v45, %v3048_v58 }
 0x1a6   :  { %v2711_v4 = vpop.eup %2710  ;;  %v2488_v38 = vpack.c.bf16 %v1826_v26, %v1825_v12  ;;  %2718 = vtanh.f32 %v1449_v47  ;;  %v1448_v16 = vmul.f32 0.7978846, %v1320_v29  ;;  %v1323_v61 = vadd.f32 %v1195_v27, %v3927_v40  ;;  %v3975_v12 = vpop.f32.mrb[60].mxu0 }
 0x1a7   :  { %v2713_v36 = vpop.eup %2712  ;;  %v1827_v13 = vmul.f32 %v1699_v34, %v803_v33  ;;  %v1701_v62 = vadd.f32 1.0, %v2711_v4  ;;  %v1450_v1 = vmul.f32 0.7978846, %v1322_v46  ;;  %v1197_v9 = vmul.f32 %v1069_v8, %v3945_v42  ;;  %v4658_v34 = vld [vmem:[#allocation16_spill] sm:$0xff]  ;;  %v3984_v4 = vpop.f32.mrb[60].mxu1 }
 0x1a8   :  { %2308 = vst [vmem:[%s4609_s3 + $0xe8] sm:$0xff] %v2488_v38  ;;  %v1700_v28 = vadd.f32 1.0, %v2713_v36  ;;  %2720 = vtanh.f32 %v1448_v16  ;;  %v1451_v37 = vmul.f32 0.7978846, %v1323_v61  ;;  %v940_v45 = vmul.f32 0.044715, %v3967_v18 }
 0x1a9   :  { %v2715_v26 = vpop.eup %2714  ;;  %v807_v47 = vmul.f32 0.5, %v3878_v7  ;;  %2722 = vtanh.f32 %v1450_v1  ;;  %v1325_v33 = vadd.f32 %v1197_v9, %v3945_v42  ;;  %v3981_v8 = vadd.f32 %v4658_v34, %v3050_v59 }
 0x1aa   :  { %v1829_v29 = vmul.f32 %v1701_v62, %v805_v41  ;;  %v1828_v27 = vmul.f32 %v1700_v28, %v804_v10  ;;  %v1702_v46 = vadd.f32 1.0, %v2715_v26  ;;  %v1068_v16 = vmul.f32 %v940_v45, %v3967_v18  ;;  %v3998_v45 = vpop.f32.mrb[61].mxu1 }
 0x1ab   :  { %v2717_v38 = vpop.eup %2716  ;;  %2724 = vtanh.f32 %v1451_v37  ;;  %v1453_v61 = vmul.f32 0.7978846, %v1325_v33  ;;  %v942_v36 = vmul.f32 0.044715, %v3981_v8  ;;  %v3989_v7 = vadd.f32 %v3448_v39, %v3044_v56  ;;  %v3996_v37 = vpop.f32.mrb[61].mxu0 }
 0x1ac   :  { %v2489_v1 = vpack.c.bf16 %v1828_v27, %v1827_v13  ;;  %v1830_v9 = vmul.f32 %v1702_v46, %v806_v15  ;;  %v809_v34 = vmul.f32 0.5, %v3893_v55  ;;  %v1196_v41 = vmul.f32 %v1068_v16, %v3967_v18 }
 0x1ad   :  { %v808_v10 = vmul.f32 0.5, %v3919_v2  ;;  %2726 = vtanh.f32 %v1453_v61  ;;  %v1070_v62 = vmul.f32 %v942_v36, %v3981_v8  ;;  %v943_v28 = vmul.f32 0.044715, %v3989_v7 }
 0x1ae   :  { %2309 = vst [vmem:[%s4609_s3 + $0xf0] sm:$0xff] %v2489_v1  ;;  %v2490_v39 = vpack.c.bf16 %v1830_v9, %v1829_v29  ;;  %v1703_v15 = vadd.f32 1.0, %v2717_v38  ;;  %v1324_v55 = vadd.f32 %v1196_v41, %v3967_v18  ;;  %v4006_v2 = vadd.f32 %v3450_v0, %v3046_v57  ;;  %v4024_v38 = vpop.f32.mrb[62].mxu0 }
 0x1af   :  { %v810_v13 = vmul.f32 0.5, %v3923_v54  ;;  %v1198_v26 = vmul.f32 %v1070_v62, %v3981_v8  ;;  %v1071_v33 = vmul.f32 %v943_v28, %v3989_v7  ;;  %v4013_v27 = vadd.f32 %v3458_v23, %v3048_v58  ;;  %4659 = vst [vmem:[#allocation13_spill] sm:$0xff] %v4024_v38  ;;  %v4031_v28 = vpop.f32.mrb[62].mxu1 }
 0x1b0   :  { %v2719_v46 = vpop.eup %2718  ;;  %2310 = vst [vmem:[%s4609_s3 + $0xf8] sm:$0xff] %v2490_v39  ;;  %v811_v29 = vmul.f32 0.5, %v3927_v40  ;;  %v1452_v16 = vmul.f32 0.7978846, %v1324_v55  ;;  %v945_v0 = vmul.f32 0.044715, %v4006_v2  ;;  %v4022_v54 = vadd.f32 %v3460_v6, %v3050_v59 }
 0x1b1   :  { %v1705_v61 = vadd.f32 1.0, %v2719_v46  ;;  %v813_v23 = vmul.f32 0.5, %v3945_v42  ;;  %v1326_v36 = vadd.f32 %v1198_v26, %v3981_v8  ;;  %v1199_v1 = vmul.f32 %v1071_v33, %v3989_v7  ;;  %4660 = vst [vmem:[#allocation14_spill] sm:$0xff] %v4031_v28 }
 0x1b2   :  { %v2721_v9 = vpop.eup %2720  ;;  %v1831_v41 = vmul.f32 %v1703_v15, %v807_v47  ;;  %2728 = vtanh.f32 %v1452_v16  ;;  %v1073_v40 = vmul.f32 %v945_v0, %v4006_v2  ;;  %v944_v62 = vmul.f32 0.044715, %v4013_v27 }
 0x1b3   :  { %v2723_v6 = vpop.eup %2722  ;;  %v1833_v39 = vmul.f32 %v1705_v61, %v809_v34  ;;  %v1704_v55 = vadd.f32 1.0, %v2721_v9  ;;  %v1454_v38 = vmul.f32 0.7978846, %v1326_v36  ;;  %v1327_v46 = vadd.f32 %v1199_v1, %v3989_v7 }
 0x1b4   :  { %v1706_v42 = vadd.f32 1.0, %v2723_v6  ;;  %v1201_v26 = vmul.f32 %v1073_v40, %v4006_v2  ;;  %v1072_v33 = vmul.f32 %v944_v62, %v4013_v27  ;;  %v946_v47 = vmul.f32 0.044715, %v4022_v54 }
 0x1b5   :  { %v2725_v15 = vpop.eup %2724  ;;  %v1832_v16 = vmul.f32 %v1704_v55, %v808_v10  ;;  %2730 = vtanh.f32 %v1454_v38  ;;  %v1455_v0 = vmul.f32 0.7978846, %v1327_v46  ;;  %v4039_v28 = vadd.f32 %v3462_v5, %v3044_v56  ;;  %v4046_v10 = vpop.f32.mrb[63].mxu0 }
 0x1b6   :  { %v1834_v34 = vmul.f32 %v1706_v42, %v810_v13  ;;  %v1329_v61 = vadd.f32 %v1201_v26, %v4006_v2  ;;  %v1200_v36 = vmul.f32 %v1072_v33, %v4013_v27  ;;  %v1074_v1 = vmul.f32 %v946_v47, %v4022_v54  ;;  %v4049_v46 = vpop.f32.mrb[63].mxu1  ;;  %v4661_v33 = vld [vmem:[#allocation17_spill] sm:$0xff] }
 0x1b7   :  { %v2727_v9 = vpop.eup %2726  ;;  %v2491_v40 = vpack.c.bf16 %v1832_v16, %v1831_v41  ;;  %v812_v62 = vmul.f32 0.5, %v3967_v18  ;;  %v814_v6 = vmul.f32 0.5, %v3981_v8  ;;  %2732 = vtanh.f32 %v1455_v0 }
 0x1b8   :  { %v2492_v38 = vpack.c.bf16 %v1834_v34, %v1833_v39  ;;  %v1707_v55 = vadd.f32 1.0, %v2725_v15  ;;  %v1457_v5 = vmul.f32 0.7978846, %v1329_v61  ;;  %v1328_v13 = vadd.f32 %v1200_v36, %v4013_v27 }
 0x1b9   :  { %2311 = vst [vmem:[%s4609_s3 + $0x100] sm:$0xff] %v2491_v40  ;;  %v1202_v41 = vmul.f32 %v1074_v1, %v4022_v54  ;;  %v947_v18 = vmul.f32 0.044715, %v4039_v28  ;;  %v4058_v8 = vadd.f32 %v3464_v19, %v3046_v57  ;;  %v4062_v39 = vadd.f32 %v3473_v53, %v3048_v58 }
 0x1ba   :  { %2312 = vst [vmem:[%s4609_s3 + $0x108] sm:$0xff] %v2492_v38  ;;  %v1709_v42 = vadd.f32 1.0, %v2727_v9  ;;  %2734 = vtanh.f32 %v1457_v5  ;;  %v1456_v26 = vmul.f32 0.7978846, %v1328_v13  ;;  %v4069_v47 = vadd.f32 %v4661_v33, %v3050_v59 }
 0x1bb   :  { %v815_v15 = vmul.f32 0.5, %v3989_v7  ;;  %v1330_v19 = vadd.f32 %v1202_v41, %v4022_v54  ;;  %v1075_v16 = vmul.f32 %v947_v18, %v4039_v28  ;;  %v949_v53 = vmul.f32 0.044715, %v4058_v8  ;;  %v4662_v41 = vld [vmem:[#allocation18_spill] sm:$0xff] }
 0x1bc   :  { %v2729_v0 = vpop.eup %2728  ;;  %v1835_v34 = vmul.f32 %v1707_v55, %v811_v29  ;;  %v817_v61 = vmul.f32 0.5, %v4006_v2  ;;  %2736 = vtanh.f32 %v1456_v26  ;;  %v948_v36 = vmul.f32 0.044715, %v4062_v39 }
 0x1bd   :  { %v1708_v1 = vadd.f32 1.0, %v2729_v0  ;;  %v1458_v9 = vmul.f32 0.7978846, %v1330_v19  ;;  %v1203_v40 = vmul.f32 %v1075_v16, %v4039_v28  ;;  %v1077_v38 = vmul.f32 %v949_v53, %v4058_v8 }
 0x1be   :  { %v1837_v7 = vmul.f32 %v1709_v42, %v813_v23  ;;  %v1076_v5 = vmul.f32 %v948_v36, %v4062_v39  ;;  %v950_v13 = vmul.f32 0.044715, %v4069_v47  ;;  %v4083_v18 = vadd.f32 %v4662_v41, %v3044_v56  ;;  %v4663_v42 = vld [vmem:[#allocation19_spill] sm:$0xff] }
 0x1bf   :  { %v2731_v29 = vpop.eup %2730  ;;  %v1836_v2 = vmul.f32 %v1708_v1, %v812_v62  ;;  %2738 = vtanh.f32 %v1458_v9  ;;  %v1331_v55 = vadd.f32 %v1203_v40, %v4039_v28  ;;  %v1205_v26 = vmul.f32 %v1077_v38, %v4058_v8 }
 0x1c0   :  { %v1710_v33 = vadd.f32 1.0, %v2731_v29  ;;  %v1204_v19 = vmul.f32 %v1076_v5, %v4062_v39  ;;  %v1078_v23 = vmul.f32 %v950_v13, %v4069_v47  ;;  %v4091_v16 = vadd.f32 %v4663_v42, %v3046_v57 }
 0x1c1   :  { %v2733_v53 = vpop.eup %2732  ;;  %v2493_v0 = vpack.c.bf16 %v1836_v2, %v1835_v34  ;;  %v1459_v36 = vmul.f32 0.7978846, %v1331_v55  ;;  %v1333_v41 = vadd.f32 %v1205_v26, %v4058_v8  ;;  %v951_v62 = vmul.f32 0.044715, %v4083_v18 }
 0x1c2   :  { %v1838_v1 = vmul.f32 %v1710_v33, %v814_v6  ;;  %v816_v9 = vmul.f32 0.5, %v4013_v27  ;;  %v1332_v40 = vadd.f32 %v1204_v19, %v4062_v39  ;;  %v1206_v38 = vmul.f32 %v1078_v23, %v4069_v47 }
 0x1c3   :  { %2313 = vst [vmem:[%s4609_s3 + $0x110] sm:$0xff] %v2493_v0  ;;  %v1711_v5 = vadd.f32 1.0, %v2733_v53  ;;  %2740 = vtanh.f32 %v1459_v36  ;;  %v1461_v13 = vmul.f32 0.7978846, %v1333_v41  ;;  %v1079_v34 = vmul.f32 %v951_v62, %v4083_v18 }
 0x1c4   :  { %v2735_v29 = vpop.eup %2734  ;;  %v2494_v2 = vpack.c.bf16 %v1838_v1, %v1837_v7  ;;  %v818_v55 = vmul.f32 0.5, %v4022_v54  ;;  %v1460_v6 = vmul.f32 0.7978846, %v1332_v40  ;;  %v1334_v27 = vadd.f32 %v1206_v38, %v4069_v47  ;;  %v4664_v7 = vld [vmem:[#allocation20_spill] sm:$0xff]  ;;  %v4665_v54 = vld [vmem:[#allocation21_spill] sm:$0xff] }
 0x1c5   :  { %v1713_v26 = vadd.f32 1.0, %v2735_v29  ;;  %2742 = vtanh.f32 %v1461_v13  ;;  %v1207_v33 = vmul.f32 %v1079_v34, %v4083_v18  ;;  %v953_v19 = vmul.f32 0.044715, %v4091_v16 }
 0x1c6   :  { %v2737_v23 = vpop.eup %2736  ;;  %2314 = vst [vmem:[%s4609_s3 + $0x118] sm:$0xff] %v2494_v2  ;;  %2744 = vtanh.f32 %v1460_v6  ;;  %v1462_v42 = vmul.f32 0.7978846, %v1334_v27  ;;  %v4111_v53 = vadd.f32 %v4664_v7, %v3048_v58  ;;  %v4115_v0 = vadd.f32 %v4665_v54, %v3050_v59 }
 0x1c7   :  { %v1839_v36 = vmul.f32 %v1711_v5, %v815_v15  ;;  %v1712_v41 = vadd.f32 1.0, %v2737_v23  ;;  %v1335_v62 = vadd.f32 %v1207_v33, %v4083_v18  ;;  %v1081_v1 = vmul.f32 %v953_v19, %v4091_v16  ;;  %v4666_v5 = vld [vmem:[#allocation22_spill] sm:$0xff] }
 0x1c8   :  { %v1841_v40 = vmul.f32 %v1713_v26, %v817_v61  ;;  %v819_v38 = vmul.f32 0.5, %v4039_v28  ;;  %2746 = vtanh.f32 %v1462_v42  ;;  %v952_v13 = vmul.f32 0.044715, %v4111_v53 }
 0x1c9   :  { %v2739_v34 = vpop.eup %2738  ;;  %v1840_v29 = vmul.f32 %v1712_v41, %v816_v9  ;;  %v1463_v2 = vmul.f32 0.7978846, %v1335_v62  ;;  %v1209_v6 = vmul.f32 %v1081_v1, %v4091_v16  ;;  %v954_v27 = vmul.f32 0.044715, %v4115_v0 }
 0x1ca   :  { %v1714_v7 = vadd.f32 1.0, %v2739_v34  ;;  %v1080_v15 = vmul.f32 %v952_v13, %v4111_v53  ;;  %v4126_v33 = vadd.f32 %v4666_v5, %v3044_v56  ;;  %v4130_v28 = vadd.f32 %v3528_v52, %v3046_v57 }
 0x1cb   :  { %v2495_v61 = vpack.c.bf16 %v1840_v29, %v1839_v36  ;;  %2748 = vtanh.f32 %v1463_v2  ;;  %v1337_v9 = vadd.f32 %v1209_v6, %v4091_v16  ;;  %v1082_v26 = vmul.f32 %v954_v27, %v4115_v0 }
 0x1cc   :  { %v1842_v19 = vmul.f32 %v1714_v7, %v818_v55  ;;  %v821_v23 = vmul.f32 0.5, %v4058_v8  ;;  %v1208_v42 = vmul.f32 %v1080_v15, %v4111_v53  ;;  %v955_v54 = vmul.f32 0.044715, %v4126_v33 }
 0x1cd   :  { %v2741_v41 = vpop.eup %2740  ;;  %2315 = vst [vmem:[%s4609_s3 + $0x120] sm:$0xff] %v2495_v61  ;;  %v820_v52 = vmul.f32 0.5, %v4062_v39  ;;  %v1465_v36 = vmul.f32 0.7978846, %v1337_v9  ;;  %v1210_v62 = vmul.f32 %v1082_v26, %v4115_v0  ;;  %v957_v1 = vmul.f32 0.044715, %v4130_v28 }
 0x1ce   :  { %v2496_v13 = vpack.c.bf16 %v1842_v19, %v1841_v40  ;;  %v1715_v55 = vadd.f32 1.0, %v2741_v41  ;;  %v1336_v8 = vadd.f32 %v1208_v42, %v4111_v53  ;;  %v1083_v34 = vmul.f32 %v955_v54, %v4126_v33 }
 0x1cf   :  { %v2743_v29 = vpop.eup %2742  ;;  %2750 = vtanh.f32 %v1465_v36  ;;  %v1338_v2 = vadd.f32 %v1210_v62, %v4115_v0  ;;  %v1085_v6 = vmul.f32 %v957_v1, %v4130_v28  ;;  %v4149_v39 = vadd.f32 %v3533_v30, %v3048_v58 }
 0x1d0   :  { %v2745_v27 = vpop.eup %2744  ;;  %2316 = vst [vmem:[%s4609_s3 + $0x128] sm:$0xff] %v2496_v13  ;;  %v1717_v40 = vadd.f32 1.0, %v2743_v29  ;;  %v822_v7 = vmul.f32 0.5, %v4069_v47  ;;  %v1464_v15 = vmul.f32 0.7978846, %v1336_v8  ;;  %v1211_v5 = vmul.f32 %v1083_v34, %v4126_v33 }
 0x1d1   :  { %v1843_v61 = vmul.f32 %v1715_v55, %v819_v38  ;;  %v1716_v9 = vadd.f32 1.0, %v2745_v27  ;;  %v1466_v26 = vmul.f32 0.7978846, %v1338_v2  ;;  %v1213_v19 = vmul.f32 %v1085_v6, %v4130_v28 }
 0x1d2   :  { %v2747_v42 = vpop.eup %2746  ;;  %v1845_v54 = vmul.f32 %v1717_v40, %v821_v23  ;;  %2752 = vtanh.f32 %v1464_v15  ;;  %v1339_v30 = vadd.f32 %v1211_v5, %v4126_v33  ;;  %v956_v41 = vmul.f32 0.044715, %v4149_v39 }
 0x1d3   :  { %v1844_v36 = vmul.f32 %v1716_v9, %v820_v52  ;;  %v1718_v62 = vadd.f32 1.0, %v2747_v42  ;;  %2754 = vtanh.f32 %v1466_v26  ;;  %v1341_v47 = vadd.f32 %v1213_v19, %v4130_v28  ;;  %v4667_v42 = vld [vmem:[#allocation23_spill] sm:$0xff] }
 0x1d4   :  { %v1467_v1 = vmul.f32 0.7978846, %v1339_v30  ;;  %v1084_v13 = vmul.f32 %v956_v41, %v4149_v39  ;;  %v4163_v38 = vadd.f32 %v3555_v22, %v3050_v59  ;;  %v4167_v23 = vadd.f32 %v3596_v21, %v3044_v56 }
 0x1d5   :  { %v2749_v55 = vpop.eup %2748  ;;  %v2497_v8 = vpack.c.bf16 %v1844_v36, %v1843_v61  ;;  %v1846_v34 = vmul.f32 %v1718_v62, %v822_v7  ;;  %v1469_v29 = vmul.f32 0.7978846, %v1341_v47  ;;  %v4171_v52 = vadd.f32 %v3598_v49, %v3046_v57 }
 0x1d6   :  { %v823_v2 = vmul.f32 0.5, %v4083_v18  ;;  %v825_v6 = vmul.f32 0.5, %v4091_v16  ;;  %2756 = vtanh.f32 %v1467_v1  ;;  %v1212_v22 = vmul.f32 %v1084_v13, %v4149_v39 }
 0x1d7   :  { %2317 = vst [vmem:[%s4609_s3 + $0x130] sm:$0xff] %v2497_v8  ;;  %v2498_v21 = vpack.c.bf16 %v1846_v34, %v1845_v54  ;;  %v824_v27 = vmul.f32 0.5, %v4111_v53  ;;  %v826_v40 = vmul.f32 0.5, %v4115_v0  ;;  %v958_v7 = vmul.f32 0.044715, %v4163_v38 }
 0x1d8   :  { %v1719_v49 = vadd.f32 1.0, %v2749_v55  ;;  %2758 = vtanh.f32 %v1469_v29  ;;  %v1340_v18 = vadd.f32 %v1212_v22, %v4149_v39  ;;  %v959_v16 = vmul.f32 0.044715, %v4167_v23 }
 0x1d9   :  { %v2751_v15 = vpop.eup %2750  ;;  %2318 = vst [vmem:[%s4609_s3 + $0x138] sm:$0xff] %v2498_v21  ;;  %v827_v5 = vmul.f32 0.5, %v4126_v33  ;;  %v1086_v61 = vmul.f32 %v958_v7, %v4163_v38  ;;  %v961_v53 = vmul.f32 0.044715, %v4171_v52  ;;  %v4192_v0 = vadd.f32 %v3602_v50, %v3048_v58 }
 0x1da   :  { %v1721_v9 = vadd.f32 1.0, %v2751_v15  ;;  %v1468_v26 = vmul.f32 0.7978846, %v1340_v18  ;;  %v1087_v19 = vmul.f32 %v959_v16, %v4167_v23  ;;  %v4197_v54 = vadd.f32 %v4667_v42, %v3050_v59 }
 0x1db   :  { %v4200_v30 = vmul.f32 0.5, %v4130_v28  ;;  %v1214_v33 = vmul.f32 %v1086_v61, %v4163_v38  ;;  %v1089_v41 = vmul.f32 %v961_v53, %v4171_v52  ;;  %v960_v36 = vmul.f32 0.044715, %v4192_v0 }
 0x1dc   :  { %v2753_v62 = vpop.eup %2752  ;;  %v1847_v50 = vmul.f32 %v1719_v49, %v823_v2  ;;  %2760 = vtanh.f32 %v1468_v26  ;;  %v1215_v47 = vmul.f32 %v1087_v19, %v4167_v23  ;;  %v4208_v1 = vadd.f32 %v3614_v25, %v3044_v56 }
 0x1dd   :  { %v2755_v13 = vpop.eup %2754  ;;  %v1720_v55 = vadd.f32 1.0, %v2753_v62  ;;  %v1342_v28 = vadd.f32 %v1214_v33, %v4163_v38  ;;  %v1217_v8 = vmul.f32 %v1089_v41, %v4171_v52  ;;  %v1088_v34 = vmul.f32 %v960_v36, %v4192_v0 }
 0x1de   :  { %v1849_v29 = vmul.f32 %v1721_v9, %v825_v6  ;;  %v1722_v22 = vadd.f32 1.0, %v2755_v13  ;;  %v1343_v21 = vadd.f32 %v1215_v47, %v4167_v23  ;;  %v962_v2 = vmul.f32 0.044715, %v4197_v54 }
 0x1df   :  { %v1848_v7 = vmul.f32 %v1720_v55, %v824_v27  ;;  %v1470_v49 = vmul.f32 0.7978846, %v1342_v28  ;;  %v1345_v18 = vadd.f32 %v1217_v8, %v4171_v52  ;;  %v1216_v25 = vmul.f32 %v1088_v34, %v4192_v0 }
 0x1e0   :  { %v2757_v16 = vpop.eup %2756  ;;  %v1850_v15 = vmul.f32 %v1722_v22, %v826_v40  ;;  %v1471_v61 = vmul.f32 0.7978846, %v1343_v21  ;;  %v1090_v53 = vmul.f32 %v962_v2, %v4197_v54  ;;  %v963_v26 = vmul.f32 0.044715, %v4208_v1 }
 0x1e1   :  { %v2499_v19 = vpack.c.bf16 %v1848_v7, %v1847_v50  ;;  %v828_v6 = vmul.f32 0.5, %v4149_v39  ;;  %2762 = vtanh.f32 %v1470_v49  ;;  %v1473_v9 = vmul.f32 0.7978846, %v1345_v18 }
 0x1e2   :  { %v2759_v42 = vpop.eup %2758  ;;  %v2500_v33 = vpack.c.bf16 %v1850_v15, %v1849_v29  ;;  %v1723_v27 = vadd.f32 1.0, %v2757_v16  ;;  %2764 = vtanh.f32 %v1471_v61  ;;  %v1344_v41 = vadd.f32 %v1216_v25, %v4192_v0 }
 0x1e3   :  { %2319 = vst [vmem:[%s4609_s3 + $0x140] sm:$0xff] %v2499_v19  ;;  %v830_v40 = vmul.f32 0.5, %v4163_v38  ;;  %2766 = vtanh.f32 %v1473_v9  ;;  %v1218_v36 = vmul.f32 %v1090_v53, %v4197_v54  ;;  %v1091_v62 = vmul.f32 %v963_v26, %v4208_v1 }
 0x1e4   :  { %2320 = vst [vmem:[%s4609_s3 + $0x148] sm:$0xff] %v2500_v33  ;;  %v831_v39 = vmul.f32 0.5, %v4167_v23  ;;  %v1472_v50 = vmul.f32 0.7978846, %v1344_v41  ;;  %v4233_v47 = vadd.f32 %v3627_v32, %v3046_v57  ;;  %v4237_v13 = vadd.f32 %v3654_v43, %v3048_v58 }
 0x1e5   :  { %v1725_v38 = vadd.f32 1.0, %v2759_v42  ;;  %v1346_v55 = vadd.f32 %v1218_v36, %v4197_v54  ;;  %v1219_v28 = vmul.f32 %v1091_v62, %v4208_v1  ;;  %v4243_v8 = vadd.f32 %v3656_v60, %v3050_v59 }
 0x1e6   :  { %v2761_v34 = vpop.eup %2760  ;;  %v1851_v23 = vmul.f32 %v1723_v27, %v827_v5  ;;  %2768 = vtanh.f32 %v1472_v50  ;;  %v965_v29 = vmul.f32 0.044715, %v4233_v47  ;;  %v4248_v32 = vadd.f32 %v3680_v63, %v3044_v56 }
 0x1e7   :  { %v1724_v43 = vadd.f32 1.0, %v2761_v34  ;;  %v1474_v22 = vmul.f32 0.7978846, %v1346_v55  ;;  %v1347_v21 = vadd.f32 %v1219_v28, %v4208_v1  ;;  %v964_v2 = vmul.f32 0.044715, %v4237_v13 }
 0x1e8   :  { %v833_v7 = vmul.f32 0.5, %v4171_v52  ;;  %v832_v60 = vmul.f32 0.5, %v4192_v0  ;;  %v1093_v49 = vmul.f32 %v965_v29, %v4233_v47  ;;  %v966_v5 = vmul.f32 0.044715, %v4243_v8 }
 0x1e9   :  { %v1852_v18 = vmul.f32 %v1724_v43, %v828_v6  ;;  %2770 = vtanh.f32 %v1474_v22  ;;  %v1475_v25 = vmul.f32 0.7978846, %v1347_v21  ;;  %v1092_v63 = vmul.f32 %v964_v2, %v4237_v13 }
 0x1ea   :  { %v1221_v16 = vmul.f32 %v1093_v49, %v4233_v47  ;;  %v1094_v15 = vmul.f32 %v966_v5, %v4243_v8  ;;  %v967_v61 = vmul.f32 0.044715, %v4248_v32  ;;  %v4262_v52 = vadd.f32 %v3682_v24, %v3046_v57 }
 0x1eb   :  { %v2763_v0 = vpop.eup %2762  ;;  %v1853_v53 = vmul.f32 %v1725_v38, %v4200_v30  ;;  %v2501_v26 = vpack.c.bf16 %v1852_v18, %v1851_v23  ;;  %2772 = vtanh.f32 %v1475_v25  ;;  %v1220_v19 = vmul.f32 %v1092_v63, %v4237_v13 }
 0x1ec   :  { %v2765_v6 = vpop.eup %2764  ;;  %v1726_v9 = vadd.f32 1.0, %v2763_v0  ;;  %v1349_v42 = vadd.f32 %v1221_v16, %v4233_v47  ;;  %v1222_v33 = vmul.f32 %v1094_v15, %v4243_v8  ;;  %v1095_v27 = vmul.f32 %v967_v61, %v4248_v32  ;;  %v4668_v61 = vld [vmem:[#allocation2_spill] sm:$0xff] }
 0x1ed   :  { %v2767_v41 = vpop.eup %2766  ;;  %2321 = vst [vmem:[%s4609_s3 + $0x150] sm:$0xff] %v2501_v26  ;;  %v1727_v24 = vadd.f32 1.0, %v2765_v6  ;;  %v834_v30 = vmul.f32 0.5, %v4197_v54  ;;  %v1348_v36 = vadd.f32 %v1220_v19, %v4237_v13  ;;  %v969_v62 = vmul.f32 0.044715, %v4262_v52 }
 0x1ee   :  { %v1854_v50 = vmul.f32 %v1726_v9, %v830_v40  ;;  %v1477_v38 = vmul.f32 0.7978846, %v1349_v42  ;;  %v1350_v55 = vadd.f32 %v1222_v33, %v4243_v8  ;;  %v4278_v28 = vadd.f32 %v3686_v14, %v3048_v58 }
 0x1ef   :  { %v1729_v34 = vadd.f32 1.0, %v2767_v41  ;;  %v1476_v23 = vmul.f32 0.7978846, %v1348_v36  ;;  %v1223_v29 = vmul.f32 %v1095_v27, %v4248_v32  ;;  %v1097_v43 = vmul.f32 %v969_v62, %v4262_v52 }
 0x1f0   :  { %v2769_v22 = vpop.eup %2768  ;;  %v2502_v54 = vpack.c.bf16 %v1854_v50, %v1853_v53  ;;  %v1855_v21 = vmul.f32 %v1727_v24, %v831_v39  ;;  %2774 = vtanh.f32 %v1477_v38  ;;  %v1478_v2 = vmul.f32 0.7978846, %v1350_v55  ;;  %v4669_v24 = vld [vmem:[#allocation24_spill] sm:$0xff] }
 0x1f1   :  { %v1728_v49 = vadd.f32 1.0, %v2769_v22  ;;  %2776 = vtanh.f32 %v1476_v23  ;;  %v1351_v40 = vadd.f32 %v1223_v29, %v4248_v32  ;;  %v1225_v5 = vmul.f32 %v1097_v43, %v4262_v52 }
 0x1f2   :  { %2322 = vst [vmem:[%s4609_s3 + $0x158] sm:$0xff] %v2502_v54  ;;  %v835_v14 = vmul.f32 0.5, %v4208_v1  ;;  %2778 = vtanh.f32 %v1478_v2  ;;  %v968_v18 = vmul.f32 0.044715, %v4278_v28  ;;  %v4291_v39 = vadd.f32 %v3707_v51, %v3050_v59 }
 0x1f3   :  { %v2771_v25 = vpop.eup %2770  ;;  %v1856_v63 = vmul.f32 %v1728_v49, %v832_v60  ;;  %v1479_v16 = vmul.f32 0.7978846, %v1351_v40  ;;  %v1353_v15 = vadd.f32 %v1225_v5, %v4262_v52  ;;  %v4296_v0 = vadd.f32 %v4668_v61, %v3044_v56 }
 0x1f4   :  { %v1857_v53 = vmul.f32 %v1729_v34, %v833_v7  ;;  %v1730_v26 = vadd.f32 1.0, %v2771_v25  ;;  %v1096_v1 = vmul.f32 %v968_v18, %v4278_v28  ;;  %v970_v19 = vmul.f32 0.044715, %v4291_v39 }
 0x1f5   :  { %v2773_v6 = vpop.eup %2772  ;;  %v2503_v9 = vpack.c.bf16 %v1856_v63, %v1855_v21  ;;  %v837_v51 = vmul.f32 0.5, %v4233_v47  ;;  %2780 = vtanh.f32 %v1479_v16  ;;  %v1481_v42 = vmul.f32 0.7978846, %v1353_v15 }
 0x1f6   :  { %v1858_v60 = vmul.f32 %v1730_v26, %v834_v30  ;;  %v1731_v33 = vadd.f32 1.0, %v2773_v6  ;;  %v1224_v27 = vmul.f32 %v1096_v1, %v4278_v28  ;;  %v1098_v41 = vmul.f32 %v970_v19, %v4291_v39 }
 0x1f7   :  { %2323 = vst [vmem:[%s4609_s3 + $0x160] sm:$0xff] %v2503_v9  ;;  %2782 = vtanh.f32 %v1481_v42  ;;  %v971_v7 = vmul.f32 0.044715, %v4296_v0  ;;  %v709_v36 = vadd.f32 %v4669_v24, %v3046_v57  ;;  %v4311_v47 = vadd.f32 %v3745_v31, %v3048_v58 }
 0x1f8   :  { %v2504_v30 = vpack.c.bf16 %v1858_v60, %v1857_v53  ;;  %v836_v62 = vmul.f32 0.5, %v4237_v13  ;;  %v1352_v50 = vadd.f32 %v1224_v27, %v4278_v28  ;;  %v1226_v38 = vmul.f32 %v1098_v41, %v4291_v39 }
 0x1f9   :  { %v838_v55 = vmul.f32 0.5, %v4243_v8  ;;  %v839_v34 = vmul.f32 0.5, %v4248_v32  ;;  %v1099_v23 = vmul.f32 %v971_v7, %v4296_v0  ;;  %v973_v29 = vmul.f32 0.044715, %v709_v36 }
 0x1fa   :  { %v2775_v43 = vpop.eup %2774  ;;  %2324 = vst [vmem:[%s4609_s3 + $0x168] sm:$0xff] %v2504_v30  ;;  %v1859_v31 = vmul.f32 %v1731_v33, %v835_v14  ;;  %v1480_v22 = vmul.f32 0.7978846, %v1352_v50  ;;  %v1354_v13 = vadd.f32 %v1226_v38, %v4291_v39  ;;  %v972_v54 = vmul.f32 0.044715, %v4311_v47  ;;  %v4670_v50 = vld [vmem:[#allocation3_spill] sm:$0xff] }
 0x1fb   :  { %v2777_v21 = vpop.eup %2776  ;;  %v1733_v2 = vadd.f32 1.0, %v2775_v43  ;;  %v1227_v8 = vmul.f32 %v1099_v23, %v4296_v0  ;;  %v1101_v49 = vmul.f32 %v973_v29, %v709_v36  ;;  %v4327_v32 = vadd.f32 %v3747_v35, %v3050_v59  ;;  %v4672_v43 = vld [vmem:[#allocation5_spill] sm:$0xff] }
 0x1fc   :  { %v2779_v40 = vpop.eup %2778  ;;  %v1732_v5 = vadd.f32 1.0, %v2777_v21  ;;  %2784 = vtanh.f32 %v1480_v22  ;;  %v1482_v18 = vmul.f32 0.7978846, %v1354_v13  ;;  %v1100_v14 = vmul.f32 %v972_v54, %v4311_v47 }
 0x1fd   :  { %v1861_v25 = vmul.f32 %v1733_v2, %v837_v51  ;;  %v1734_v63 = vadd.f32 1.0, %v2779_v40  ;;  %v1355_v16 = vadd.f32 %v1227_v8, %v4296_v0  ;;  %v1229_v15 = vmul.f32 %v1101_v49, %v709_v36 }
 0x1fe   :  { %v1860_v61 = vmul.f32 %v1732_v5, %v836_v62  ;;  %2786 = vtanh.f32 %v1482_v18  ;;  %v1228_v53 = vmul.f32 %v1100_v14, %v4311_v47  ;;  %v4334_v26 = vadd.f32 %v3790_v11, %v3044_v56 }
 0x1ff   :  { %v2781_v35 = vpop.eup %2780  ;;  %v1862_v1 = vmul.f32 %v1734_v63, %v838_v55  ;;  %v1483_v19 = vmul.f32 0.7978846, %v1355_v16  ;;  %v1357_v6 = vadd.f32 %v1229_v15, %v709_v36  ;;  %v974_v9 = vmul.f32 0.044715, %v4327_v32  ;;  %v4671_v55 = vld [vmem:[#allocation4_spill] sm:$0xff]  ;;  %v4673_v63 = vld [vmem:[#allocation6_spill] sm:$0xff] }
 0x200   :  { %v2505_v42 = vpack.c.bf16 %v1860_v61, %v1859_v31  ;;  %v841_v51 = vmul.f32 0.5, %v4262_v52  ;;  %v840_v60 = vmul.f32 0.5, %v4278_v28  ;;  %v1356_v33 = vadd.f32 %v1228_v53, %v4311_v47 }
 0x201   :  { %v2783_v27 = vpop.eup %2782  ;;  %v2506_v41 = vpack.c.bf16 %v1862_v1, %v1861_v25  ;;  %2788 = vtanh.f32 %v1483_v19  ;;  %v1485_v7 = vmul.f32 0.7978846, %v1357_v6  ;;  %v1102_v11 = vmul.f32 %v974_v9, %v4327_v32 }
 0x202   :  { %2325 = vst [vmem:[%s4609_s3 + $0x170] sm:$0xff] %v2505_v42  ;;  %v1735_v24 = vadd.f32 1.0, %v2781_v35  ;;  %v842_v30 = vmul.f32 0.5, %v4291_v39  ;;  %v1484_v62 = vmul.f32 0.7978846, %v1356_v33  ;;  %v4352_v38 = vadd.f32 %v4670_v50, %v3046_v57  ;;  %v4674_v42 = vld [vmem:[#allocation7_spill] sm:$0xff] }
 0x203   :  { %v975_v52 = vmul.f32 0.044715, %v4334_v26  ;;  %2326 = vst [vmem:[%s4609_s3 + $0x178] sm:$0xff] %v2506_v41  ;;  %2790 = vtanh.f32 %v1485_v7  ;;  %v1230_v28 = vmul.f32 %v1102_v11, %v4327_v32  ;;  %v4356_v23 = vadd.f32 %v4671_v55, %v3048_v58 }
 0x204   :  { %v1737_v29 = vadd.f32 1.0, %v2783_v27  ;;  %2792 = vtanh.f32 %v1484_v62  ;;  %v4361_v31 = vadd.f32 %v4672_v43, %v3050_v59  ;;  %v843_v22 = vmul.f32 0.5, %v4296_v0 }
 0x205   :  { %v1103_v39 = vmul.f32 %v975_v52, %v4334_v26  ;;  %v845_v13 = vmul.f32 0.5, %v709_v36  ;;  %v1358_v54 = vadd.f32 %v1230_v28, %v4327_v32  ;;  %v977_v21 = vmul.f32 0.044715, %v4352_v38 }
 0x206   :  { %v2785_v2 = vpop.eup %2784  ;;  %v1863_v8 = vmul.f32 %v1735_v24, %v839_v34  ;;  %v976_v40 = vmul.f32 0.044715, %v4356_v23  ;;  %v978_v5 = vmul.f32 0.044715, %v4361_v31  ;;  %v4372_v0 = vadd.f32 %v4673_v63, %v3044_v56 }
 0x207   :  { %v1231_v49 = vmul.f32 %v1103_v39, %v4334_v26  ;;  %v1736_v18 = vadd.f32 1.0, %v2785_v2  ;;  %v1486_v14 = vmul.f32 0.7978846, %v1358_v54  ;;  %v1105_v25 = vmul.f32 %v977_v21, %v4352_v38 }
 0x208   :  { %v2787_v36 = vpop.eup %2786  ;;  %v1865_v16 = vmul.f32 %v1737_v29, %v841_v51  ;;  %v1104_v34 = vmul.f32 %v976_v40, %v4356_v23  ;;  %v1106_v61 = vmul.f32 %v978_v5, %v4361_v31  ;;  %v4382_v33 = vadd.f32 %v4674_v42, %v3046_v57 }
 0x209   :  { %v1359_v15 = vadd.f32 %v1231_v49, %v4334_v26  ;;  %v1864_v53 = vmul.f32 %v1736_v18, %v840_v60  ;;  %v1738_v35 = vadd.f32 1.0, %v2787_v36  ;;  %2794 = vtanh.f32 %v1486_v14 }
 0x20a   :  { %v1233_v1 = vmul.f32 %v1105_v25, %v4352_v38  ;;  %v1232_v6 = vmul.f32 %v1104_v34, %v4356_v23  ;;  %v1234_v9 = vmul.f32 %v1106_v61, %v4361_v31  ;;  %v979_v60 = vmul.f32 0.044715, %v4372_v0 }
 0x20b   :  { %v1487_v19 = vmul.f32 0.7978846, %v1359_v15  ;;  %v2789_v51 = vpop.eup %2788  ;;  %v2507_v27 = vpack.c.bf16 %v1864_v53, %v1863_v8  ;;  %v1866_v41 = vmul.f32 %v1738_v35, %v842_v30  ;;  %v844_v50 = vmul.f32 0.5, %v4311_v47 }
 0x20c   :  { %v1361_v7 = vadd.f32 %v1233_v1, %v4352_v38  ;;  %v1739_v11 = vadd.f32 1.0, %v2789_v51  ;;  %v1360_v24 = vadd.f32 %v1232_v6, %v4356_v23  ;;  %v1362_v62 = vadd.f32 %v1234_v9, %v4361_v31 }
 0x20d   :  { %2796 = vtanh.f32 %v1487_v19  ;;  %v2791_v52 = vpop.eup %2790  ;;  %2327 = vst [vmem:[%s4609_s3 + $0x180] sm:$0xff] %v2507_v27  ;;  %v2508_v28 = vpack.c.bf16 %v1866_v41, %v1865_v16  ;;  %v1107_v30 = vmul.f32 %v979_v60, %v4372_v0  ;;  %v981_v49 = vmul.f32 0.044715, %v4382_v33 }
 0x20e   :  { %v1489_v55 = vmul.f32 0.7978846, %v1361_v7  ;;  %v2793_v29 = vpop.eup %2792  ;;  %v1867_v39 = vmul.f32 %v1739_v11, %v843_v22  ;;  %v1741_v43 = vadd.f32 1.0, %v2791_v52  ;;  %v1488_v54 = vmul.f32 0.7978846, %v1360_v24 }
 0x20f   :  { %v1490_v21 = vmul.f32 0.7978846, %v1362_v62  ;;  %2328 = vst [vmem:[%s4609_s3 + $0x188] sm:$0xff] %v2508_v28  ;;  %v1740_v2 = vadd.f32 1.0, %v2793_v29  ;;  %v1235_v8 = vmul.f32 %v1107_v30, %v4372_v0  ;;  %v846_v47 = vmul.f32 0.5, %v4327_v32 }
 0x210   :  { %2798 = vtanh.f32 %v1489_v55  ;;  %v4401_v40 = vadd.f32 %v3844_v3, %v3048_v58  ;;  %v4405_v22 = vadd.f32 %v3861_v44, %v3050_v59  ;;  %v1109_v14 = vmul.f32 %v981_v49, %v4382_v33  ;;  %v4675_v49 = vld [vmem:[#allocation8_spill] sm:$0xff] }
 0x211   :  { %2800 = vtanh.f32 %v1488_v54  ;;  %v1868_v5 = vmul.f32 %v1740_v2, %v844_v50  ;;  %v1363_v18 = vadd.f32 %v1235_v8, %v4372_v0  ;;  %v1869_v25 = vmul.f32 %v1741_v43, %v845_v13 }
 0x212   :  { %2802 = vtanh.f32 %v1490_v21  ;;  %v847_v63 = vmul.f32 0.5, %v4334_v26  ;;  %v980_v32 = vmul.f32 0.044715, %v4401_v40  ;;  %v982_v36 = vmul.f32 0.044715, %v4405_v22 }
 0x213   :  { %v2795_v16 = vpop.eup %2794  ;;  %v2509_v3 = vpack.c.bf16 %v1868_v5, %v1867_v39  ;;  %v1491_v15 = vmul.f32 0.7978846, %v1363_v18  ;;  %v1237_v34 = vmul.f32 %v1109_v14, %v4382_v33  ;;  %v4415_v44 = vadd.f32 %v3886_v20, %v3044_v56 }
 0x214   :  { %v1742_v61 = vadd.f32 1.0, %v2795_v16  ;;  %v1108_v53 = vmul.f32 %v980_v32, %v4401_v40  ;;  %v1110_v13 = vmul.f32 %v982_v36, %v4405_v22  ;;  %v4421_v26 = vadd.f32 %v3895_v17, %v3046_v57 }
 0x215   :  { %2329 = vst [vmem:[%s4609_s3 + $0x190] sm:$0xff] %v2509_v3  ;;  %v849_v35 = vmul.f32 0.5, %v4352_v38  ;;  %2804 = vtanh.f32 %v1491_v15  ;;  %v1365_v1 = vadd.f32 %v1237_v34, %v4382_v33  ;;  %v983_v20 = vmul.f32 0.044715, %v4415_v44  ;;  %v4676_v34 = vld [vmem:[#allocation9_spill] sm:$0xff] }
 0x216   :  { %v1870_v6 = vmul.f32 %v1742_v61, %v846_v47  ;;  %v848_v9 = vmul.f32 0.5, %v4356_v23  ;;  %v1236_v42 = vmul.f32 %v1108_v53, %v4401_v40  ;;  %v1238_v17 = vmul.f32 %v1110_v13, %v4405_v22 }
 0x217   :  { %v2797_v19 = vpop.eup %2796  ;;  %v1493_v27 = vmul.f32 0.7978846, %v1365_v1  ;;  %v1111_v41 = vmul.f32 %v983_v20, %v4415_v44  ;;  %v985_v7 = vmul.f32 0.044715, %v4421_v26  ;;  %v4438_v24 = vadd.f32 %v3897_v48, %v3048_v58 }
 0x218   :  { %v1743_v51 = vadd.f32 1.0, %v2797_v19  ;;  %v2510_v38 = vpack.c.bf16 %v1870_v6, %v1869_v25  ;;  %v1364_v60 = vadd.f32 %v1236_v42, %v4401_v40  ;;  %v1366_v11 = vadd.f32 %v1238_v17, %v4405_v22  ;;  %v4677_v19 = vld [vmem:[#allocation10_spill] sm:$0xff]  ;;  %v4678_v17 = vld [vmem:[#allocation11_spill] sm:$0xff] }
 0x219   :  { %v850_v62 = vmul.f32 0.5, %v4361_v31  ;;  %2806 = vtanh.f32 %v1493_v27  ;;  %v1239_v52 = vmul.f32 %v1111_v41, %v4415_v44  ;;  %v1113_v28 = vmul.f32 %v985_v7, %v4421_v26 }
 0x21a   :  { %v2799_v23 = vpop.eup %2798  ;;  %2330 = vst [vmem:[%s4609_s3 + $0x198] sm:$0xff] %v2510_v38  ;;  %v1871_v55 = vmul.f32 %v1743_v51, %v847_v63  ;;  %v1492_v29 = vmul.f32 0.7978846, %v1364_v60  ;;  %v1494_v39 = vmul.f32 0.7978846, %v1366_v11  ;;  %v4451_v47 = vadd.f32 %v4675_v49, %v3050_v59  ;;  %v4679_v60 = vld [vmem:[#allocation12_spill] sm:$0xff] }
 0x21b   :  { %v2801_v50 = vpop.eup %2800  ;;  %v1745_v30 = vadd.f32 1.0, %v2799_v23  ;;  %v1367_v54 = vadd.f32 %v1239_v52, %v4415_v44  ;;  %v1241_v31 = vmul.f32 %v1113_v28, %v4421_v26  ;;  %v984_v21 = vmul.f32 0.044715, %v4438_v24 }
 0x21c   :  { %v2803_v43 = vpop.eup %2802  ;;  %v1744_v48 = vadd.f32 1.0, %v2801_v50  ;;  %2808 = vtanh.f32 %v1492_v29  ;;  %v851_v63 = vmul.f32 0.5, %v4372_v0  ;;  %v986_v36 = vmul.f32 0.044715, %v4451_v47 }
 0x21d   :  { %v1873_v2 = vmul.f32 %v1745_v30, %v849_v35  ;;  %v1746_v8 = vadd.f32 1.0, %v2803_v43  ;;  %2810 = vtanh.f32 %v1494_v39  ;;  %v1495_v18 = vmul.f32 0.7978846, %v1367_v54 }
 0x21e   :  { %v1872_v5 = vmul.f32 %v1744_v48, %v848_v9  ;;  %v1369_v14 = vadd.f32 %v1241_v31, %v4421_v26  ;;  %v1112_v32 = vmul.f32 %v984_v21, %v4438_v24  ;;  %v4459_v61 = vadd.f32 %v4676_v34, %v3044_v56 }
 0x21f   :  { %v1874_v25 = vmul.f32 %v1746_v8, %v850_v62  ;;  %v2805_v16 = vpop.eup %2804  ;;  %2812 = vtanh.f32 %v1495_v18  ;;  %v853_v13 = vmul.f32 0.5, %v4382_v33  ;;  %v1114_v1 = vmul.f32 %v986_v36, %v4451_v47 }
 0x220   :  { %v2511_v3 = vpack.c.bf16 %v1872_v5, %v1871_v55  ;;  %v1497_v15 = vmul.f32 0.7978846, %v1369_v14  ;;  %v1240_v35 = vmul.f32 %v1112_v32, %v4438_v24  ;;  %v1747_v0 = vadd.f32 1.0, %v2805_v16 }
 0x221   :  { %v2512_v53 = vpack.c.bf16 %v1874_v25, %v1873_v2  ;;  %v987_v20 = vmul.f32 0.044715, %v4459_v61  ;;  %v4470_v6 = vadd.f32 %v4677_v19, %v3046_v57  ;;  %v852_v33 = vmul.f32 0.5, %v4401_v40 }
 0x222   :  { %2331 = vst [vmem:[%s4609_s3 + $0x1a0] sm:$0xff] %v2511_v3  ;;  %2814 = vtanh.f32 %v1497_v15  ;;  %v1368_v9 = vadd.f32 %v1240_v35, %v4438_v24  ;;  %v1242_v42 = vmul.f32 %v1114_v1, %v4451_v47  ;;  %v4480_v51 = vadd.f32 %v4678_v17, %v3048_v58 }
 0x223   :  { %2332 = vst [vmem:[%s4609_s3 + $0x1a8] sm:$0xff] %v2512_v53  ;;  %v2807_v27 = vpop.eup %2806  ;;  %v854_v41 = vmul.f32 0.5, %v4405_v22  ;;  %v1115_v7 = vmul.f32 %v987_v20, %v4459_v61  ;;  %v989_v38 = vmul.f32 0.044715, %v4470_v6  ;;  %v4487_v11 = vadd.f32 %v4679_v60, %v3050_v59 }
 0x224   :  { %v1749_v40 = vadd.f32 1.0, %v2807_v27  ;;  %v855_v23 = vmul.f32 0.5, %v4415_v44  ;;  %v1496_v62 = vmul.f32 0.7978846, %v1368_v9  ;;  %v1370_v52 = vadd.f32 %v1242_v42, %v4451_v47 }
 0x225   :  { %v1875_v28 = vmul.f32 %v1747_v0, %v851_v63  ;;  %v1243_v50 = vmul.f32 %v1115_v7, %v4459_v61  ;;  %v1117_v55 = vmul.f32 %v989_v38, %v4470_v6  ;;  %v988_v22 = vmul.f32 0.044715, %v4480_v51 }
 0x226   :  { %v2809_v30 = vpop.eup %2808  ;;  %v1877_v29 = vmul.f32 %v1749_v40, %v853_v13  ;;  %2816 = vtanh.f32 %v1496_v62  ;;  %v1498_v39 = vmul.f32 0.7978846, %v1370_v52  ;;  %v990_v43 = vmul.f32 0.044715, %v4487_v11 }
 0x227   :  { %v2811_v48 = vpop.eup %2810  ;;  %v1748_v54 = vadd.f32 1.0, %v2809_v30  ;;  %v1371_v44 = vadd.f32 %v1243_v50, %v4459_v61  ;;  %v1245_v31 = vmul.f32 %v1117_v55, %v4470_v6  ;;  %v1116_v21 = vmul.f32 %v988_v22, %v4480_v51 }
 0x228   :  { %v1750_v2 = vadd.f32 1.0, %v2811_v48  ;;  %2818 = vtanh.f32 %v1498_v39  ;;  %v1118_v8 = vmul.f32 %v990_v43, %v4487_v11  ;;  %v4501_v49 = vadd.f32 %v3975_v12, %v3044_v56 }
 0x229   :  { %v2813_v5 = vpop.eup %2812  ;;  %v1876_v18 = vmul.f32 %v1748_v54, %v852_v33  ;;  %v1499_v14 = vmul.f32 0.7978846, %v1371_v44  ;;  %v1373_v25 = vadd.f32 %v1245_v31, %v4470_v6  ;;  %v1244_v63 = vmul.f32 %v1116_v21, %v4480_v51 }
 0x22a   :  { %v1878_v32 = vmul.f32 %v1750_v2, %v854_v41  ;;  %v857_v36 = vmul.f32 0.5, %v4421_v26  ;;  %v856_v16 = vmul.f32 0.5, %v4438_v24  ;;  %v1246_v3 = vmul.f32 %v1118_v8, %v4487_v11 }
 0x22b   :  { %v2513_v34 = vpack.c.bf16 %v1876_v18, %v1875_v28  ;;  %2820 = vtanh.f32 %v1499_v14  ;;  %v1501_v53 = vmul.f32 0.7978846, %v1373_v25  ;;  %v1372_v12 = vadd.f32 %v1244_v63, %v4480_v51 }
 0x22c   :  { %v2815_v15 = vpop.eup %2814  ;;  %v2514_v13 = vpack.c.bf16 %v1878_v32, %v1877_v29  ;;  %v1751_v35 = vadd.f32 1.0, %v2813_v5  ;;  %v858_v1 = vmul.f32 0.5, %v4451_v47  ;;  %v1374_v0 = vadd.f32 %v1246_v3, %v4487_v11 }
 0x22d   :  { %2333 = vst [vmem:[%s4609_s3 + $0x1b0] sm:$0xff] %v2513_v34  ;;  %2822 = vtanh.f32 %v1501_v53  ;;  %v1500_v26 = vmul.f32 0.7978846, %v1372_v12  ;;  %v991_v24 = vmul.f32 0.044715, %v4501_v49  ;;  %v4517_v20 = vadd.f32 %v3984_v4, %v3046_v57 }
 0x22e   :  { %2334 = vst [vmem:[%s4609_s3 + $0x1b8] sm:$0xff] %v2514_v13  ;;  %v1753_v19 = vadd.f32 1.0, %v2815_v15  ;;  %v1502_v47 = vmul.f32 0.7978846, %v1374_v0  ;;  %v4524_v33 = vadd.f32 %v3996_v37, %v3048_v58  ;;  %v4528_v9 = vadd.f32 %v3998_v45, %v3050_v59 }
 0x22f   :  { %v859_v42 = vmul.f32 0.5, %v4459_v61  ;;  %2824 = vtanh.f32 %v1500_v26  ;;  %v1119_v4 = vmul.f32 %v991_v24, %v4501_v49  ;;  %v993_v17 = vmul.f32 0.044715, %v4517_v20 }
 0x230   :  { %v2817_v27 = vpop.eup %2816  ;;  %v1879_v41 = vmul.f32 %v1751_v35, %v855_v23  ;;  %v861_v7 = vmul.f32 0.5, %v4470_v6  ;;  %2826 = vtanh.f32 %v1502_v47  ;;  %v992_v38 = vmul.f32 0.044715, %v4524_v33  ;;  %v4680_v23 = vld [vmem:[#allocation13_spill] sm:$0xff] }
 0x231   :  { %v1752_v37 = vadd.f32 1.0, %v2817_v27  ;;  %v1247_v60 = vmul.f32 %v1119_v4, %v4501_v49  ;;  %v1121_v45 = vmul.f32 %v993_v17, %v4517_v20  ;;  %v994_v40 = vmul.f32 0.044715, %v4528_v9 }
 0x232   :  { %v2819_v61 = vpop.eup %2818  ;;  %v1881_v62 = vmul.f32 %v1753_v19, %v857_v36  ;;  %v860_v52 = vmul.f32 0.5, %v4480_v51  ;;  %v1120_v28 = vmul.f32 %v992_v38, %v4524_v33  ;;  %v4542_v50 = vadd.f32 %v4680_v23, %v3044_v56  ;;  %v4681_v51 = vld [vmem:[#allocation14_spill] sm:$0xff] }
 0x233   :  { %v1880_v6 = vmul.f32 %v1752_v37, %v856_v16  ;;  %v1754_v55 = vadd.f32 1.0, %v2819_v61  ;;  %v1375_v22 = vadd.f32 %v1247_v60, %v4501_v49  ;;  %v1249_v30 = vmul.f32 %v1121_v45, %v4517_v20 }
 0x234   :  { %v1248_v29 = vmul.f32 %v1120_v28, %v4524_v33  ;;  %v1122_v39 = vmul.f32 %v994_v40, %v4528_v9  ;;  %v995_v43 = vmul.f32 0.044715, %v4542_v50  ;;  %v4551_v48 = vadd.f32 %v4681_v51, %v3046_v57 }
 0x235   :  { %v2821_v54 = vpop.eup %2820  ;;  %v2515_v44 = vpack.c.bf16 %v1880_v6, %v1879_v41  ;;  %v1882_v56 = vmul.f32 %v1754_v55, %v858_v1  ;;  %v1503_v31 = vmul.f32 0.7978846, %v1375_v22  ;;  %v1377_v21 = vadd.f32 %v1249_v30, %v4517_v20 }
 0x236   :  { %v1755_v2 = vadd.f32 1.0, %v2821_v54  ;;  %v1376_v8 = vadd.f32 %v1248_v29, %v4524_v33  ;;  %v1250_v5 = vmul.f32 %v1122_v39, %v4528_v9  ;;  %v1123_v18 = vmul.f32 %v995_v43, %v4542_v50 }
 0x237   :  { %v2823_v14 = vpop.eup %2822  ;;  %2335 = vst [vmem:[%s4609_s3 + $0x1c0] sm:$0xff] %v2515_v44  ;;  %v2516_v57 = vpack.c.bf16 %v1882_v56, %v1881_v62  ;;  %2828 = vtanh.f32 %v1503_v31  ;;  %v1505_v25 = vmul.f32 0.7978846, %v1377_v21  ;;  %v4562_v63 = vadd.f32 %v4046_v10, %v3048_v58 }
 0x238   :  { %v1757_v32 = vadd.f32 1.0, %v2823_v14  ;;  %v862_v36 = vmul.f32 0.5, %v4487_v11  ;;  %v1504_v16 = vmul.f32 0.7978846, %v1376_v8  ;;  %v1378_v3 = vadd.f32 %v1250_v5, %v4528_v9 }
 0x239   :  { %v2825_v15 = vpop.eup %2824  ;;  %2336 = vst [vmem:[%s4609_s3 + $0x1c8] sm:$0xff] %v2516_v57  ;;  %v1883_v34 = vmul.f32 %v1755_v2, %v859_v42  ;;  %2830 = vtanh.f32 %v1505_v25  ;;  %v1251_v53 = vmul.f32 %v1123_v18, %v4542_v50  ;;  %v997_v12 = vmul.f32 0.044715, %v4551_v48 }
 0x23a   :  { %v2827_v13 = vpop.eup %2826  ;;  %v1885_v58 = vmul.f32 %v1757_v32, %v861_v7  ;;  %v1756_v10 = vadd.f32 1.0, %v2825_v15  ;;  %2832 = vtanh.f32 %v1504_v16  ;;  %v1506_v35 = vmul.f32 0.7978846, %v1378_v3 }
 0x23b   :  { %v1758_v11 = vadd.f32 1.0, %v2827_v13  ;;  %v1379_v1 = vadd.f32 %v1251_v53, %v4542_v50  ;;  %v1125_v0 = vmul.f32 %v997_v12, %v4551_v48  ;;  %v996_v26 = vmul.f32 0.044715, %v4562_v63 }
 0x23c   :  { %v1884_v24 = vmul.f32 %v1756_v10, %v860_v52  ;;  %2834 = vtanh.f32 %v1506_v35  ;;  %v741_v19 = vadd.f32 %v4049_v46, %v3050_v59  ;;  %v863_v52 = vmul.f32 0.5, %v4501_v49 }
 0x23d   :  { %v1886_v47 = vmul.f32 %v1758_v11, %v862_v36  ;;  %v1507_v42 = vmul.f32 0.7978846, %v1379_v1  ;;  %v1253_v4 = vmul.f32 %v1125_v0, %v4551_v48  ;;  %v1124_v17 = vmul.f32 %v996_v26, %v4562_v63 }
 0x23e   :  { %v2517_v27 = vpack.c.bf16 %v1884_v24, %v1883_v34  ;;  %v998_v41 = vmul.f32 0.044715, %v741_v19  ;;  %v865_v6 = vmul.f32 0.5, %v4517_v20  ;;  %v864_v29 = vmul.f32 0.5, %v4524_v33 }
 0x23f   :  { %v2518_v7 = vpack.c.bf16 %v1886_v47, %v1885_v58  ;;  %2836 = vtanh.f32 %v1507_v42  ;;  %v1381_v38 = vadd.f32 %v1253_v4, %v4551_v48  ;;  %v1252_v37 = vmul.f32 %v1124_v17, %v4562_v63 }
 0x240   :  { %2337 = vst [vmem:[%s4609_s3 + $0x1d0] sm:$0xff] %v2517_v27  ;;  %v1126_v60 = vmul.f32 %v998_v41, %v741_v19  ;;  %v866_v56 = vmul.f32 0.5, %v4528_v9  ;;  %v867_v5 = vmul.f32 0.5, %v4542_v50  ;;  %v868_v57 = vmul.f32 0.5, %v4562_v63 }
 0x241   :  { %v2829_v59 = vpop.eup %2828  ;;  %2338 = vst [vmem:[%s4609_s3 + $0x1d8] sm:$0xff] %v2518_v7  ;;  %v1509_v46 = vmul.f32 0.7978846, %v1381_v38  ;;  %v1380_v45 = vadd.f32 %v1252_v37, %v4562_v63  ;;  %v869_v32 = vmul.f32 0.5, %v4551_v48  ;;  %v870_v15 = vmul.f32 0.5, %v741_v19 }
 0x242   :  { %v1759_v40 = vadd.f32 1.0, %v2829_v59  ;;  %v1254_v61 = vmul.f32 %v1126_v60, %v741_v19 }
 0x243   :  { %v2831_v62 = vpop.eup %2830  ;;  %2838 = vtanh.f32 %v1509_v46  ;;  %v1508_v28 = vmul.f32 0.7978846, %v1380_v45 }
 0x244   :  { %v2833_v23 = vpop.eup %2832  ;;  %v1761_v55 = vadd.f32 1.0, %v2831_v62  ;;  %v1382_v22 = vadd.f32 %v1254_v61, %v741_v19  ;;  %v1887_v30 = vmul.f32 %v1759_v40, %v863_v52 }
 0x245   :  { %v1760_v39 = vadd.f32 1.0, %v2833_v23  ;;  %2840 = vtanh.f32 %v1508_v28 }
 0x246   :  { %v2835_v43 = vpop.eup %2834  ;;  %v1510_v51 = vmul.f32 0.7978846, %v1382_v22  ;;  %v1889_v54 = vmul.f32 %v1761_v55, %v865_v6 }
 0x247   :  { %v1888_v44 = vmul.f32 %v1760_v39, %v864_v29  ;;  %v1762_v31 = vadd.f32 1.0, %v2835_v43 }
 0x248   :  { %2842 = vtanh.f32 %v1510_v51 }
 0x249   :  { %v2837_v49 = vpop.eup %2836  ;;  %v2519_v21 = vpack.c.bf16 %v1888_v44, %v1887_v30  ;;  %v1890_v2 = vmul.f32 %v1762_v31, %v866_v56 }
 0x24a   :  { %v1763_v8 = vadd.f32 1.0, %v2837_v49 }
 0x24b   :  { %2339 = vst [vmem:[%s4609_s3 + $0x1e0] sm:$0xff] %v2519_v21  ;;  %v2520_v20 = vpack.c.bf16 %v1890_v2, %v1889_v54 }
 0x24c   :  { %v1891_v14 = vmul.f32 %v1763_v8, %v867_v5 }
 0x24d   :  { %v2839_v33 = vpop.eup %2838  ;;  %2340 = vst [vmem:[%s4609_s3 + $0x1e8] sm:$0xff] %v2520_v20 }
 0x24e   :  { %v1765_v9 = vadd.f32 1.0, %v2839_v33 }
 0x24f   :  { %v2841_v18 = vpop.eup %2840 }
 0x250   :  { %v1764_v25 = vadd.f32 1.0, %v2841_v18  ;;  %v1893_v3 = vmul.f32 %v1765_v9, %v869_v32 }
 0x252   :  { %v2843_v36 = vpop.eup %2842  ;;  %v1892_v16 = vmul.f32 %v1764_v25, %v868_v57 }
 0x253   :  { %v1766_v34 = vadd.f32 1.0, %v2843_v36 }
 0x254   :  { %v2521_v53 = vpack.c.bf16 %v1892_v16, %v1891_v14 }
 0x255   :  { %v1894_v12 = vmul.f32 %v1766_v34, %v870_v15 }
 0x256   :  { %2341 = vst [vmem:[%s4609_s3 + $0x1f0] sm:$0xff] %v2521_v53 }
 0x257   :  { %v2522_v50 = vpack.c.bf16 %v1894_v12, %v1893_v3 }
 0x259   :  { %2342 = vst [vmem:[%s4609_s3 + $0x1f8] sm:$0xff] %v2522_v50 }

// kernel: text_classifier_forward.23
= control target key start
LH: loop header
LB: loop body
LE: loop exit
PB: predicated region body
PF: predicated region fallthrough
CT: control target
= control target key end

     0   :  { %v410_v3 = vmov 0.0|0.0   ;;  %vm411_vm0 = vmmov 0   ;;  %v412_v6 = vmov 0.0   ;;  %s577_s0 = inlined_call_operand.vmem [shape: bf16[2,128], index: 0, kind: input, shape index: {}]   ;;  %s578_s1 = inlined_call_operand.vmem [shape: f32[128,128], index: 1, kind: input, shape index: {}]   ;;  %s579_s2 = inlined_call_operand.vmem [shape: f32[1,128], index: 2, kind: input, shape index: {}]   ;;  %s580_s3 = inlined_call_operand.vmem [shape: f32[128,2], index: 3, kind: input, shape index: {}]   ;;  %s581_s4 = inlined_call_operand.vmem [shape: f32[1,2], index: 4, kind: input, shape index: {}]   ;;  %s582_s5 = inlined_call_operand.hbm [shape: f32[2,2], index: 5, kind: output, shape index: {}]  }
   0x1   :  { %v23_v0 = vld [vmem:[%s578_s1] sm:$0xff]  ;;  %v24_v1 = vld [vmem:[%s578_s1 + $0x8] sm:$0xff]  ;;  %v25_v2 = vld [vmem:[%s578_s1 + $0x10] sm:$0xff]  ;;  %332 = vmatprep.subr.bf16.mxu0 %v410_v3  ;;  %294 = vmatprep.mubr.msk.f32.mxu0 %vm411_vm0, %v412_v6 }
   0x2   :  { %v333_v4 = vpack.c.bf16 %v24_v1, %v23_v0  ;;  %v26_v5 = vld [vmem:[%s578_s1 + $0x18] sm:$0xff]  ;;  %356 = vmatprep.subr.bf16.mxu1 %v410_v3  ;;  %329 = vmatprep.mubr.msk.f32.mxu1 %vm411_vm0, %v412_v6  ;;  %v27_v8 = vld [vmem:[%s578_s1 + $0x20] sm:$0xff]  ;;  %v28_v9 = vld [vmem:[%s578_s1 + $0x28] sm:$0xff] }
   0x3   :  { %v336_v7 = vpack.c.bf16 %v26_v5, %v25_v2  ;;  %v117_v10 = vld [vmem:[%s580_s3] sm:$0xff]  ;;  %v118_v11 = vld [vmem:[%s580_s3 + $0x8] sm:$0xff]  ;;  %v119_v12 = vld [vmem:[%s580_s3 + $0x10] sm:$0xff]  ;;  %v339_v14 = vpack.c.bf16 %v28_v9, %v27_v8 }
   0x4   :  { %334 = vmatpush3.bf16.msra.mxu0 %v333_v4  ;;  %v120_v13 = vld [vmem:[%s580_s3 + $0x18] sm:$0xff]  ;;  %v357_v15 = vpack.c.bf16 %v118_v11, %v117_v10  ;;  %v29_v16 = vld [vmem:[%s578_s1 + $0x30] sm:$0xff] }
   0x5   :  { %335 = vmatprep.subr.bf16.mxu0 %v410_v3  ;;  %v30_v17 = vld [vmem:[%s578_s1 + $0x38] sm:$0xff]  ;;  %v360_v18 = vpack.c.bf16 %v120_v13, %v119_v12 }
   0x6   :  { %358 = vmatpush3.bf16.msra.mxu1 %v357_v15 }
   0x8   :  { %337 = vmatpush3.bf16.msra.mxu0 %v336_v7 }
   0x9   :  { %338 = vmatprep.subr.bf16.mxu0 %v410_v3 }
   0xa   :  { %10 = vsyncpa [#allocation3], 0  ;;  %359 = vmatprep.subr.bf16.mxu1 %v410_v3  ;;  %v121_v19 = vld [vmem:[%s580_s3 + $0x20] sm:$0xff]  ;;  %v122_v20 = vld [vmem:[%s580_s3 + $0x28] sm:$0xff]  ;;  %v342_v21 = vpack.c.bf16 %v30_v17, %v29_v16  ;;  %vm210_vm1 = vcmask 9216  }
   0xb   :  { %v31_v22 = vld [vmem:[%s578_s1 + $0x40] sm:$0xff]  ;;  %v32_v23 = vld [vmem:[%s578_s1 + $0x48] sm:$0xff]  ;;  %361 = vmatpush3.bf16.msra.mxu1 %v360_v18  ;;  %v363_v24 = vpack.c.bf16 %v122_v20, %v121_v19  ;;  %v123_v25 = vld [vmem:[%s580_s3 + $0x30] sm:$0xff] }
   0xc   :  { %340 = vmatpush3.bf16.msra.mxu0 %v339_v14  ;;  %362 = vmatprep.subr.bf16.mxu1 %v410_v3  ;;  %v124_v26 = vld [vmem:[%s580_s3 + $0x38] sm:$0xff]  ;;  %v345_v27 = vpack.c.bf16 %v32_v23, %v31_v22  ;;  %v33_v28 = vld [vmem:[%s578_s1 + $0x50] sm:$0xff]  ;;  %v125_v31 = vld [vmem:[%s580_s3 + $0x40] sm:$0xff] }
   0xd   :  { %341 = vmatprep.subr.bf16.mxu0 %v410_v3  ;;  %v34_v29 = vld [vmem:[%s578_s1 + $0x58] sm:$0xff]  ;;  %v366_v30 = vpack.c.bf16 %v124_v26, %v123_v25  ;;  %v126_v32 = vld [vmem:[%s580_s3 + $0x48] sm:$0xff]  ;;  %v35_v34 = vld [vmem:[%s578_s1 + $0x60] sm:$0xff] }
   0xe   :  { %v348_v33 = vpack.c.bf16 %v34_v29, %v33_v28  ;;  %v36_v35 = vld [vmem:[%s578_s1 + $0x68] sm:$0xff]  ;;  %v369_v36 = vpack.c.bf16 %v126_v32, %v125_v31  ;;  %v37_v38 = vld [vmem:[%s578_s1 + $0x70] sm:$0xff]  ;;  %v38_v39 = vld [vmem:[%s578_s1 + $0x78] sm:$0xff] }
   0xf   :  { %364 = vmatpush3.bf16.msra.mxu1 %v363_v24  ;;  %v351_v37 = vpack.c.bf16 %v36_v35, %v35_v34  ;;  %v354_v40 = vpack.c.bf16 %v38_v39, %v37_v38  ;;  %v21_v41 = vld [vmem:[%s577_s0] sm:$0x1]  ;;  %v127_v43 = vld [vmem:[%s580_s3 + $0x50] sm:$0xff]  ;;  %v128_v44 = vld [vmem:[%s580_s3 + $0x58] sm:$0xff] }
  0x10   :  { %343 = vmatpush3.bf16.msra.mxu0 %v342_v21  ;;  %365 = vmatprep.subr.bf16.mxu1 %v410_v3  ;;  %v22_v42 = vunpack.c.l.bf16 %v21_v41  ;;  %v372_v45 = vpack.c.bf16 %v128_v44, %v127_v43  ;;  %v129_v46 = vld [vmem:[%s580_s3 + $0x60] sm:$0xff]  ;;  %v130_v47 = vld [vmem:[%s580_s3 + $0x68] sm:$0xff]  ;;  %v131_v49 = vld [vmem:[%s580_s3 + $0x70] sm:$0xff] }
  0x11   :  { %344 = vmatprep.subr.bf16.mxu0 %v410_v3  ;;  %v375_v48 = vpack.c.bf16 %v130_v47, %v129_v46  ;;  %v132_v50 = vld [vmem:[%s580_s3 + $0x78] sm:$0xff]  ;;  %v226_v52 = vld [vmem:[%s579_s2] ss:$0 sm:$0xff]  ;;  %s413_s3 = smov [#allocation2]  }
  0x12   :  { %v378_v51 = vpack.c.bf16 %v132_v50, %v131_v49  ;;  %v227_v57 = vld [vmem:[%s581_s4] ss:$0 sm:$0xff]  ;;  %s218_s11 = sshll.u32 %s413_s3, 4  ;;  %s219_s11 = int_to_ptr.vmem [resolvable:$true] %s218_s11 }
  0x13   :  { %367 = vmatpush3.bf16.msra.mxu1 %v366_v30  ;;  %s386_s12 = scalar_lea.vmem %s219_s11, 32  ;;  %p391_p1 = scmp.lt.s32.totalorder %s219_s11, %s219_s11 }
  0x14   :  { %346 = vmatpush3.bf16.msra.mxu0 %v345_v27  ;;  %368 = vmatprep.subr.bf16.mxu1 %v410_v3  ;;  %p387_p0 = scmp.ne.s32.totalorder %s219_s11, %s386_s12  ;;  %p392_p2 = scmp.lt.s32.totalorder %s386_s12, %s386_s12 }
  0x15   :  { %347 = vmatprep.subr.bf16.mxu0 %v410_v3 }
  0x16   :  { %p393_p3 = por %p392_p2, %p391_p1 }
  0x17   :  { %370 = vmatpush3.bf16.msra.mxu1 %v369_v36 }
  0x18   :  { %349 = vmatpush3.bf16.msra.mxu0 %v348_v33  ;;  %371 = vmatprep.subr.bf16.mxu1 %v410_v3  ;;  %p394_p4 = pnand %p393_p3, %p387_p0 }
  0x19   :  { %350 = vmatprep.subr.bf16.mxu0 %v410_v3 }
  0x1b   :  { %373 = vmatpush3.bf16.msra.mxu1 %v372_v45 }
  0x1c   :  { %352 = vmatpush3.bf16.msra.mxu0 %v351_v37  ;;  %374 = vmatprep.subr.bf16.mxu1 %v410_v3 }
  0x1d   :  { %353 = vmatprep.subr.bf16.mxu0 %v410_v3 }
  0x1f   :  { %376 = vmatpush3.bf16.msra.mxu1 %v375_v48 }
  0x20   :  { %355 = vmatpush3.bf16.msra.mxu0 %v354_v40  ;;  %377 = vmatprep.subr.bf16.mxu1 %v410_v3 }
  0x23   :  { %295 = vmatmul.mubr.f32.vlgmr.msra.gmra.mrb[0].mxu0 %v22_v42  ;;  %379 = vmatpush3.bf16.msra.mxu1 %v378_v51 }
  0xf6   :  { %v112_v53 = vpop.f32.mrb[0].mxu0 }
  0xf7   :  { %v113_v54 = vadd.f32 %v226_v52, %v112_v53  ;;  %v296_v55 = vpop.f32.mrb[1].mxu0 }
  0xf9   :  { %384 = vtanh.f32 %v113_v54 }
 0x103   :  { %v385_v56 = vpop.eup %384 }
 0x104   :  { %330 = vmatmul.mubr.f32.vlgmr.msra.gmra.mrb[0].mxu1 %v385_v56 }
 0x1d7   :  { %v206_v58 = vpop.f32.mrb[0].mxu1 }
 0x1d8   :  { %v207_v59 = vadd.f32 %v227_v57, %v206_v58  ;;  %v331_v60 = vpop.f32.mrb[1].mxu1 }
 0x1da   :  { %211 = vst.msk [vmem:[#allocation2] sm:$0x3] %vm210_vm1, %v207_v59 }
 0x1db   :  { %397 = shalt.err (!%p394_p4)
}
 0x1dc   :  { %s398_s14 = scalar_lea.hbm %s582_s5, 32 }
 0x1dd   :  { %p399_p5 = scmp.ne.s32.totalorder %s582_s5, %s398_s14  ;;  %p402_p6 = scmp.lt.u32.totalorder %s398_s14, %s582_s5 }
 0x1df   :  { %p404_p7 = pnand %p402_p6, %p399_p5 }
 0x1e1   :  { %407 = shalt.err (!%p404_p7)
}
 0x1e2   :  { %221 = dma.vmem_to_hbm [thread:$0]  %s219_s11, 32, %s582_s5, [#allocation3]  }
 0x1e3   :  { %408 = dma.done.wait [#allocation3], 32  }
 0x1e4   :  { %409 = vsyncadd [#allocation3], 4294967264 }
 0x1e5   :  { %225 = vsyncpa [#allocation3], 1 }

// kernel: text_classifier_forward.17
= control target key start
LH: loop header
LB: loop body
LE: loop exit
PB: predicated region body
PF: predicated region fallthrough
CT: control target
= control target key end

     0   :  { %s3255_s1 = inlined_call_operand.vmem [shape: bf16[512,128], index: 1, kind: input, shape index: {}]   ;;  %s3256_s0 = inlined_call_operand.vmem [shape: bf16[256,512], index: 0, kind: input, shape index: {}]   ;;  %s3257_s2 = inlined_call_operand.vmem [shape: f32[1,128], index: 2, kind: input, shape index: {}]   ;;  %s3258_s3 = inlined_call_operand.vmem [shape: bf16[256,128], index: 3, kind: input, shape index: {}]   ;;  %s3259_s4 = inlined_call_operand.vmem [shape: f32[1,128], index: 4, kind: input, shape index: {}]   ;;  %s3260_s5 = inlined_call_operand.vmem [shape: f32[1,128], index: 5, kind: input, shape index: {}]   ;;  %s3261_s6 = inlined_call_operand.vmem [shape: bf16[256,128], index: 6, kind: output, shape index: {}]  }
   0x1   :  { %v2245_v0 = vld [vmem:[%s3255_s1 + $0x40] sm:$0xff]   ;;  %v2249_v4 = vld [vmem:[%s3255_s1 + $0x48] sm:$0xff]   ;;  %v2253_v8 = vld [vmem:[%s3255_s1 + $0x50] sm:$0xff]  }
   0x2   :  { %v2246_v1 = vld [vmem:[%s3255_s1 + $0xc0] sm:$0xff]   ;;  %2021 = vmatprep.subr.bf16.mxu0 %v2245_v0  ;;  %v2250_v5 = vld [vmem:[%s3255_s1 + $0xc8] sm:$0xff]   ;;  %v2254_v9 = vld [vmem:[%s3255_s1 + $0xd0] sm:$0xff]  }
   0x3   :  { %v2247_v2 = vld [vmem:[%s3255_s1] sm:$0xff]   ;;  %2133 = vmatprep.subr.bf16.mxu1 %v2246_v1  ;;  %v2251_v6 = vld [vmem:[%s3255_s1 + $0x8] sm:$0xff]   ;;  %v2255_v10 = vld [vmem:[%s3255_s1 + $0x10] sm:$0xff]  }
   0x4   :  { %v2248_v3 = vld [vmem:[%s3255_s1 + $0x80] sm:$0xff]   ;;  %2022 = vmatpush3.bf16.msra.mxu0 %v2247_v2  ;;  %v2252_v7 = vld [vmem:[%s3255_s1 + $0x88] sm:$0xff]   ;;  %v2256_v11 = vld [vmem:[%s3255_s1 + $0x90] sm:$0xff]  }
   0x5   :  { %2134 = vmatpush3.bf16.msra.mxu1 %v2248_v3  ;;  %2023 = vmatprep.subr.bf16.mxu0 %v2249_v4  ;;  %v2257_v12 = vld [vmem:[%s3255_s1 + $0x58] sm:$0xff]   ;;  %v2261_v16 = vld [vmem:[%s3255_s1 + $0x60] sm:$0xff]   ;;  %v2265_v20 = vld [vmem:[%s3255_s1 + $0x68] sm:$0xff]  }
   0x6   :  { %2135 = vmatprep.subr.bf16.mxu1 %v2250_v5  ;;  %v2258_v13 = vld [vmem:[%s3255_s1 + $0xd8] sm:$0xff]   ;;  %v2262_v17 = vld [vmem:[%s3255_s1 + $0xe0] sm:$0xff]   ;;  %v2266_v21 = vld [vmem:[%s3255_s1 + $0xe8] sm:$0xff]  }
   0x7   :  { %v2259_v14 = vld [vmem:[%s3255_s1 + $0x18] sm:$0xff]   ;;  %v2263_v18 = vld [vmem:[%s3255_s1 + $0x20] sm:$0xff]   ;;  %v2267_v22 = vld [vmem:[%s3255_s1 + $0x28] sm:$0xff]  }
   0x8   :  { %2024 = vmatpush3.bf16.msra.mxu0 %v2251_v6  ;;  %v2260_v15 = vld [vmem:[%s3255_s1 + $0x98] sm:$0xff]   ;;  %v2264_v19 = vld [vmem:[%s3255_s1 + $0xa0] sm:$0xff]   ;;  %v2268_v23 = vld [vmem:[%s3255_s1 + $0xa8] sm:$0xff]  }
   0x9   :  { %2136 = vmatpush3.bf16.msra.mxu1 %v2252_v7  ;;  %2025 = vmatprep.subr.bf16.mxu0 %v2253_v8  ;;  %v2269_v24 = vld [vmem:[%s3255_s1 + $0x70] sm:$0xff]   ;;  %v2273_v28 = vld [vmem:[%s3255_s1 + $0x78] sm:$0xff]  }
   0xa   :  { %2137 = vmatprep.subr.bf16.mxu1 %v2254_v9  ;;  %v2270_v25 = vld [vmem:[%s3255_s1 + $0xf0] sm:$0xff]   ;;  %v2274_v29 = vld [vmem:[%s3255_s1 + $0xf8] sm:$0xff]  }
   0xb   :  { %v2271_v26 = vld [vmem:[%s3255_s1 + $0x30] sm:$0xff]   ;;  %v2275_v30 = vld [vmem:[%s3255_s1 + $0x38] sm:$0xff]  }
   0xc   :  { %2026 = vmatpush3.bf16.msra.mxu0 %v2255_v10  ;;  %v2272_v27 = vld [vmem:[%s3255_s1 + $0xb0] sm:$0xff]   ;;  %v2276_v31 = vld [vmem:[%s3255_s1 + $0xb8] sm:$0xff]  }
   0xd   :  { %2138 = vmatpush3.bf16.msra.mxu1 %v2256_v11  ;;  %2027 = vmatprep.subr.bf16.mxu0 %v2257_v12  ;;  %v2277_v32 = vld [vmem:[%s3256_s0] ss:$16 sps:$4 sm:$0xff]   ;;  %v2279_v33 = vld [vmem:[%s3256_s0 + $0x4] ss:$16 sps:$4 sm:$0xff]   ;;  %v2280_v34 = vld [vmem:[%s3256_s0 + $0x8] ss:$16 sps:$4 sm:$0xff]  }
   0xe   :  { %2139 = vmatprep.subr.bf16.mxu1 %v2258_v13  ;;  %v2282_v35 = vld [vmem:[%s3256_s0 + $0xc] ss:$16 sps:$4 sm:$0xff]   ;;  %703 = vmatprep.mubr.bf16.mxu0 %v2279_v33  ;;  %v2283_v36 = vld [vmem:[%s3256_s0 + $0x24] ss:$16 sps:$4 sm:$0xff]   ;;  %v2287_v38 = vld [vmem:[%s3256_s0 + $0x20] ss:$16 sps:$4 sm:$0xff]  }
   0xf   :  { %864 = vmatprep.mubr.bf16.mxu1 %v2282_v35  ;;  %v2285_v37 = vld [vmem:[%s3256_s0 + $0x2c] ss:$16 sps:$4 sm:$0xff]   ;;  %v2288_v39 = vld [vmem:[%s3256_s0 + $0x28] ss:$16 sps:$4 sm:$0xff]   ;;  %v2289_v40 = vld [vmem:[%s3256_s0 + $0x44] ss:$16 sps:$4 sm:$0xff]  }
  0x10   :  { %2028 = vmatpush3.bf16.msra.mxu0 %v2259_v14  ;;  %v2291_v41 = vld [vmem:[%s3256_s0 + $0x4c] ss:$16 sps:$4 sm:$0xff]   ;;  %v2293_v42 = vld [vmem:[%s3256_s0 + $0x40] ss:$16 sps:$4 sm:$0xff]   ;;  %v2294_v43 = vld [vmem:[%s3256_s0 + $0x48] ss:$16 sps:$4 sm:$0xff]  }
  0x11   :  { %2140 = vmatpush3.bf16.msra.mxu1 %v2260_v15  ;;  %2029 = vmatprep.subr.bf16.mxu0 %v2261_v16  ;;  %v2295_v44 = vld [vmem:[%s3256_s0 + $0x64] ss:$16 sps:$4 sm:$0xff]   ;;  %v2297_v45 = vld [vmem:[%s3256_s0 + $0x6c] ss:$16 sps:$4 sm:$0xff]   ;;  %v2299_v46 = vld [vmem:[%s3256_s0 + $0x60] ss:$16 sps:$4 sm:$0xff]  }
  0x12   :  { %2141 = vmatprep.subr.bf16.mxu1 %v2262_v17  ;;  %v2300_v47 = vld [vmem:[%s3256_s0 + $0x68] ss:$16 sps:$4 sm:$0xff]   ;;  %v2301_v48 = vld [vmem:[%s3256_s0 + $0x84] ss:$16 sps:$4 sm:$0xff]   ;;  %v2303_v49 = vld [vmem:[%s3256_s0 + $0x8c] ss:$16 sps:$4 sm:$0xff]  }
  0x13   :  { %v2305_v50 = vld [vmem:[%s3256_s0 + $0x80] ss:$16 sps:$4 sm:$0xff]   ;;  %v2306_v51 = vld [vmem:[%s3256_s0 + $0x88] ss:$16 sps:$4 sm:$0xff]   ;;  %v2307_v52 = vld [vmem:[%s3256_s0 + $0xa4] ss:$16 sps:$4 sm:$0xff]  }
  0x14   :  { %2030 = vmatpush3.bf16.msra.mxu0 %v2263_v18  ;;  %v2309_v53 = vld [vmem:[%s3256_s0 + $0xac] ss:$16 sps:$4 sm:$0xff]   ;;  %v2311_v54 = vld [vmem:[%s3256_s0 + $0xa0] ss:$16 sps:$4 sm:$0xff]   ;;  %v2312_v55 = vld [vmem:[%s3256_s0 + $0xa8] ss:$16 sps:$4 sm:$0xff]  }
  0x15   :  { %2142 = vmatpush3.bf16.msra.mxu1 %v2264_v19  ;;  %2031 = vmatprep.subr.bf16.mxu0 %v2265_v20  ;;  %v2313_v56 = vld [vmem:[%s3256_s0 + $0xc4] ss:$16 sps:$4 sm:$0xff]   ;;  %v2315_v57 = vld [vmem:[%s3256_s0 + $0xcc] ss:$16 sps:$4 sm:$0xff]   ;;  %v2317_v58 = vld [vmem:[%s3256_s0 + $0xc0] ss:$16 sps:$4 sm:$0xff]  }
  0x16   :  { %2143 = vmatprep.subr.bf16.mxu1 %v2266_v21  ;;  %v2318_v59 = vld [vmem:[%s3256_s0 + $0xc8] ss:$16 sps:$4 sm:$0xff]   ;;  %v2319_v60 = vld [vmem:[%s3256_s0 + $0xe4] ss:$16 sps:$4 sm:$0xff]   ;;  %v2321_v61 = vld [vmem:[%s3256_s0 + $0xec] ss:$16 sps:$4 sm:$0xff]  }
  0x17   :  { %v2323_v62 = vld [vmem:[%s3256_s0 + $0xe0] ss:$16 sps:$4 sm:$0xff]   ;;  %v2324_v63 = vld [vmem:[%s3256_s0 + $0xe8] ss:$16 sps:$4 sm:$0xff]   ;;  %v2325_v0 = vld [vmem:[%s3256_s0 + $0x104] ss:$16 sps:$4 sm:$0xff]  }
  0x18   :  { %2032 = vmatpush3.bf16.msra.mxu0 %v2267_v22  ;;  %v2327_v1 = vld [vmem:[%s3256_s0 + $0x10c] ss:$16 sps:$4 sm:$0xff]   ;;  %v2329_v2 = vld [vmem:[%s3256_s0 + $0x100] ss:$16 sps:$4 sm:$0xff]   ;;  %v2330_v3 = vld [vmem:[%s3256_s0 + $0x108] ss:$16 sps:$4 sm:$0xff]  }
  0x19   :  { %2144 = vmatpush3.bf16.msra.mxu1 %v2268_v23  ;;  %2033 = vmatprep.subr.bf16.mxu0 %v2269_v24  ;;  %v2331_v4 = vld [vmem:[%s3256_s0 + $0x124] ss:$16 sps:$4 sm:$0xff]   ;;  %v2333_v5 = vld [vmem:[%s3256_s0 + $0x12c] ss:$16 sps:$4 sm:$0xff]   ;;  %v2335_v6 = vld [vmem:[%s3256_s0 + $0x120] ss:$16 sps:$4 sm:$0xff]  }
  0x1a   :  { %2145 = vmatprep.subr.bf16.mxu1 %v2270_v25  ;;  %v2336_v7 = vld [vmem:[%s3256_s0 + $0x128] ss:$16 sps:$4 sm:$0xff]   ;;  %v2337_v8 = vld [vmem:[%s3256_s0 + $0x144] ss:$16 sps:$4 sm:$0xff]   ;;  %v2339_v9 = vld [vmem:[%s3256_s0 + $0x14c] ss:$16 sps:$4 sm:$0xff]  }
  0x1b   :  { %v2341_v10 = vld [vmem:[%s3256_s0 + $0x140] ss:$16 sps:$4 sm:$0xff]   ;;  %v2342_v11 = vld [vmem:[%s3256_s0 + $0x148] ss:$16 sps:$4 sm:$0xff]   ;;  %v2343_v12 = vld [vmem:[%s3256_s0 + $0x164] ss:$16 sps:$4 sm:$0xff]  }
  0x1c   :  { %2034 = vmatpush3.bf16.msra.mxu0 %v2271_v26  ;;  %v2345_v13 = vld [vmem:[%s3256_s0 + $0x16c] ss:$16 sps:$4 sm:$0xff]   ;;  %v2347_v14 = vld [vmem:[%s3256_s0 + $0x160] ss:$16 sps:$4 sm:$0xff]   ;;  %v2348_v15 = vld [vmem:[%s3256_s0 + $0x168] ss:$16 sps:$4 sm:$0xff]  }
  0x1d   :  { %2146 = vmatpush3.bf16.msra.mxu1 %v2272_v27  ;;  %2035 = vmatprep.subr.bf16.mxu0 %v2273_v28  ;;  %v2349_v16 = vld [vmem:[%s3256_s0 + $0x184] ss:$16 sps:$4 sm:$0xff]   ;;  %v2351_v17 = vld [vmem:[%s3256_s0 + $0x18c] ss:$16 sps:$4 sm:$0xff]   ;;  %v2353_v18 = vld [vmem:[%s3256_s0 + $0x180] ss:$16 sps:$4 sm:$0xff]  }
  0x1e   :  { %2147 = vmatprep.subr.bf16.mxu1 %v2274_v29  ;;  %v2354_v19 = vld [vmem:[%s3256_s0 + $0x188] ss:$16 sps:$4 sm:$0xff]   ;;  %v2355_v20 = vld [vmem:[%s3256_s0 + $0x1a4] ss:$16 sps:$4 sm:$0xff]   ;;  %v2357_v21 = vld [vmem:[%s3256_s0 + $0x1ac] ss:$16 sps:$4 sm:$0xff]  }
  0x1f   :  { %v2359_v22 = vld [vmem:[%s3256_s0 + $0x1a0] ss:$16 sps:$4 sm:$0xff]   ;;  %v2360_v23 = vld [vmem:[%s3256_s0 + $0x1a8] ss:$16 sps:$4 sm:$0xff]   ;;  %v2361_v24 = vld [vmem:[%s3256_s0 + $0x1c4] ss:$16 sps:$4 sm:$0xff]  }
  0x20   :  { %2036 = vmatpush3.bf16.msra.mxu0 %v2275_v30  ;;  %v2363_v25 = vld [vmem:[%s3256_s0 + $0x1cc] ss:$16 sps:$4 sm:$0xff]   ;;  %v2365_v26 = vld [vmem:[%s3256_s0 + $0x1c0] ss:$16 sps:$4 sm:$0xff]   ;;  %v2366_v27 = vld [vmem:[%s3256_s0 + $0x1c8] ss:$16 sps:$4 sm:$0xff]  }
  0x21   :  { %2148 = vmatpush3.bf16.msra.mxu1 %v2276_v31  ;;  %v2367_v28 = vld [vmem:[%s3256_s0 + $0x1e4] ss:$16 sps:$4 sm:$0xff]   ;;  %v2369_v29 = vld [vmem:[%s3256_s0 + $0x1ec] ss:$16 sps:$4 sm:$0xff]   ;;  %v2371_v30 = vld [vmem:[%s3256_s0 + $0x1e0] ss:$16 sps:$4 sm:$0xff]  }
  0x22   :  { %v2372_v31 = vld [vmem:[%s3256_s0 + $0x1e8] ss:$16 sps:$4 sm:$0xff]  }
  0x23   :  { %704 = vmatmul.mubr.bf16.vlgmr.msra.gmra.mrb[0].mxu0 %v2277_v32 }
  0x24   :  { %865 = vmatmul.mubr.bf16.vlgmr.msra.gmra.mrb[0].mxu1 %v2280_v34  ;;  %711 = vmatprep.mubr.bf16.mxu0 %v2283_v36  ;;  %v2763_v34 = vld [vmem:[%s3257_s2] ss:$0 sm:$0xff] }
  0x25   :  { %872 = vmatprep.mubr.bf16.mxu1 %v2285_v37  ;;  %v1848_v36 = vld [vmem:[%s3258_s3] sm:$0xff]  }
  0x2b   :  { %712 = vmatmul.mubr.bf16.gmra.mrb[4].mxu0 %v2287_v38 }
  0x2c   :  { %873 = vmatmul.mubr.bf16.gmra.mrb[4].mxu1 %v2288_v39  ;;  %719 = vmatprep.mubr.bf16.mxu0 %v2289_v40 }
  0x2d   :  { %880 = vmatprep.mubr.bf16.mxu1 %v2291_v41 }
  0x33   :  { %720 = vmatmul.mubr.bf16.gmra.mrb[8].mxu0 %v2293_v42 }
  0x34   :  { %881 = vmatmul.mubr.bf16.gmra.mrb[8].mxu1 %v2294_v43  ;;  %727 = vmatprep.mubr.bf16.mxu0 %v2295_v44 }
  0x35   :  { %888 = vmatprep.mubr.bf16.mxu1 %v2297_v45 }
  0x3b   :  { %728 = vmatmul.mubr.bf16.gmra.mrb[12].mxu0 %v2299_v46  ;;  %v1849_v46 = vunpack.c.l.bf16 %v1848_v36 }
  0x3c   :  { %889 = vmatmul.mubr.bf16.gmra.mrb[12].mxu1 %v2300_v47  ;;  %735 = vmatprep.mubr.bf16.mxu0 %v2301_v48 }
  0x3d   :  { %896 = vmatprep.mubr.bf16.mxu1 %v2303_v49 }
  0x43   :  { %736 = vmatmul.mubr.bf16.gmra.mrb[16].mxu0 %v2305_v50 }
  0x44   :  { %897 = vmatmul.mubr.bf16.gmra.mrb[16].mxu1 %v2306_v51  ;;  %743 = vmatprep.mubr.bf16.mxu0 %v2307_v52 }
  0x45   :  { %904 = vmatprep.mubr.bf16.mxu1 %v2309_v53  ;;  %v1850_v53 = vunpack.c.h.bf16 %v1848_v36 }
  0x4b   :  { %744 = vmatmul.mubr.bf16.gmra.mrb[20].mxu0 %v2311_v54 }
  0x4c   :  { %905 = vmatmul.mubr.bf16.gmra.mrb[20].mxu1 %v2312_v55  ;;  %751 = vmatprep.mubr.bf16.mxu0 %v2313_v56  ;;  %v1991_v56 = vld [vmem:[%s3258_s3 + $0x8] sm:$0xff]  }
  0x4d   :  { %912 = vmatprep.mubr.bf16.mxu1 %v2315_v57 }
  0x53   :  { %752 = vmatmul.mubr.bf16.gmra.mrb[24].mxu0 %v2317_v58 }
  0x54   :  { %913 = vmatmul.mubr.bf16.gmra.mrb[24].mxu1 %v2318_v59  ;;  %759 = vmatprep.mubr.bf16.mxu0 %v2319_v60 }
  0x55   :  { %920 = vmatprep.mubr.bf16.mxu1 %v2321_v61 }
  0x5b   :  { %760 = vmatmul.mubr.bf16.gmra.mrb[28].mxu0 %v2323_v62 }
  0x5c   :  { %921 = vmatmul.mubr.bf16.gmra.mrb[28].mxu1 %v2324_v63  ;;  %767 = vmatprep.mubr.bf16.mxu0 %v2325_v0 }
  0x5d   :  { %928 = vmatprep.mubr.bf16.mxu1 %v2327_v1 }
  0x63   :  { %768 = vmatmul.mubr.bf16.gmra.mrb[32].mxu0 %v2329_v2 }
  0x64   :  { %929 = vmatmul.mubr.bf16.gmra.mrb[32].mxu1 %v2330_v3  ;;  %775 = vmatprep.mubr.bf16.mxu0 %v2331_v4  ;;  %v1853_v3 = vunpack.c.l.bf16 %v1991_v56 }
  0x65   :  { %936 = vmatprep.mubr.bf16.mxu1 %v2333_v5 }
  0x6b   :  { %776 = vmatmul.mubr.bf16.gmra.mrb[36].mxu0 %v2335_v6 }
  0x6c   :  { %937 = vmatmul.mubr.bf16.gmra.mrb[36].mxu1 %v2336_v7  ;;  %783 = vmatprep.mubr.bf16.mxu0 %v2337_v8 }
  0x6d   :  { %944 = vmatprep.mubr.bf16.mxu1 %v2339_v9 }
  0x73   :  { %784 = vmatmul.mubr.bf16.gmra.mrb[40].mxu0 %v2341_v10  ;;  %v1854_v10 = vunpack.c.h.bf16 %v1991_v56 }
  0x74   :  { %945 = vmatmul.mubr.bf16.gmra.mrb[40].mxu1 %v2342_v11  ;;  %791 = vmatprep.mubr.bf16.mxu0 %v2343_v12 }
  0x75   :  { %952 = vmatprep.mubr.bf16.mxu1 %v2345_v13  ;;  %v1992_v13 = vld [vmem:[%s3258_s3 + $0x10] sm:$0xff]  }
  0x7b   :  { %792 = vmatmul.mubr.bf16.gmra.mrb[44].mxu0 %v2347_v14 }
  0x7c   :  { %953 = vmatmul.mubr.bf16.gmra.mrb[44].mxu1 %v2348_v15  ;;  %799 = vmatprep.mubr.bf16.mxu0 %v2349_v16 }
  0x7d   :  { %960 = vmatprep.mubr.bf16.mxu1 %v2351_v17 }
  0x83   :  { %800 = vmatmul.mubr.bf16.gmra.mrb[48].mxu0 %v2353_v18 }
  0x84   :  { %961 = vmatmul.mubr.bf16.gmra.mrb[48].mxu1 %v2354_v19  ;;  %807 = vmatprep.mubr.bf16.mxu0 %v2355_v20 }
  0x85   :  { %968 = vmatprep.mubr.bf16.mxu1 %v2357_v21 }
  0x8b   :  { %808 = vmatmul.mubr.bf16.gmra.mrb[52].mxu0 %v2359_v22 }
  0x8c   :  { %969 = vmatmul.mubr.bf16.gmra.mrb[52].mxu1 %v2360_v23  ;;  %815 = vmatprep.mubr.bf16.mxu0 %v2361_v24  ;;  %v1857_v24 = vunpack.c.l.bf16 %v1992_v13 }
  0x8d   :  { %976 = vmatprep.mubr.bf16.mxu1 %v2363_v25 }
  0x93   :  { %816 = vmatmul.mubr.bf16.gmra.mrb[56].mxu0 %v2365_v26 }
  0x94   :  { %977 = vmatmul.mubr.bf16.gmra.mrb[56].mxu1 %v2366_v27  ;;  %823 = vmatprep.mubr.bf16.mxu0 %v2367_v28  ;;  %v1858_v28 = vunpack.c.h.bf16 %v1992_v13 }
  0x95   :  { %984 = vmatprep.mubr.bf16.mxu1 %v2369_v29 }
  0x9b   :  { %824 = vmatmul.mubr.bf16.gmra.mrb[60].mxu0 %v2371_v30 }
  0x9c   :  { %985 = vmatmul.mubr.bf16.gmra.mrb[60].mxu1 %v2372_v31 }
  0xf6   :  { %v2037_v32 = vpop.f32.mrb[0].mxu0 }
  0xf7   :  { %v2149_v33 = vpop.f32.mrb[0].mxu1  ;;  %v2038_v35 = vpop.f32.mrb[1].mxu0 }
  0xf8   :  { %v2039_v37 = vadd.f32 %v2038_v35, %v2037_v32  ;;  %v2150_v38 = vpop.f32.mrb[1].mxu1  ;;  %v2040_v39 = vpop.f32.mrb[2].mxu0  ;;  %v1993_v35 = vld [vmem:[%s3258_s3 + $0x18] sm:$0xff]  }
  0xf9   :  { %v2151_v40 = vadd.f32 %v2150_v38, %v2149_v33  ;;  %v2152_v41 = vpop.f32.mrb[2].mxu1  ;;  %v2041_v42 = vpop.f32.mrb[3].mxu0 }
  0xfa   :  { %v706_v43 = vadd.f32 %v2039_v37, %v2763_v34  ;;  %v2042_v44 = vadd.f32 %v2041_v42, %v2040_v39  ;;  %v2153_v45 = vpop.f32.mrb[3].mxu1 }
  0xfb   :  { %v2154_v47 = vadd.f32 %v2153_v45, %v2152_v41 }
  0xfc   :  { %v867_v48 = vadd.f32 %v2151_v40, %v706_v43  ;;  %v709_v49 = vadd.f32 %v2042_v44, %v2763_v34 }
  0xfe   :  { %v870_v50 = vadd.f32 %v2154_v47, %v709_v49  ;;  %v2043_v51 = vpop.f32.mrb[4].mxu0  ;;  %v2770_v52 = vadd.f32 %v1849_v46, %v867_v48  ;;  %v1861_v46 = vunpack.c.l.bf16 %v1993_v35 }
  0xff   :  { %v2155_v54 = vpop.f32.mrb[4].mxu1  ;;  %v2044_v55 = vpop.f32.mrb[5].mxu0 }
 0x100   :  { %v2045_v57 = vadd.f32 %v2044_v55, %v2043_v51  ;;  %v2156_v58 = vpop.f32.mrb[5].mxu1  ;;  %v2046_v59 = vpop.f32.mrb[6].mxu0  ;;  %1089 = vadd.xlane.f32.xlu0 %v2770_v52  ;;  %v2777_v2 = vadd.f32 %v1850_v53, %v870_v50  ;;  %v1862_v50 = vunpack.c.h.bf16 %v1993_v35 }
 0x101   :  { %v2157_v60 = vadd.f32 %v2156_v58, %v2155_v54  ;;  %v2158_v61 = vpop.f32.mrb[6].mxu1  ;;  %v2047_v62 = vpop.f32.mrb[7].mxu0 }
 0x102   :  { %v714_v63 = vadd.f32 %v2045_v57, %v2763_v34  ;;  %v2048_v0 = vadd.f32 %v2047_v62, %v2046_v59  ;;  %v2159_v1 = vpop.f32.mrb[7].mxu1  ;;  %v1994_v57 = vld [vmem:[%s3258_s3 + $0x20] sm:$0xff]  }
 0x103   :  { %v2160_v4 = vadd.f32 %v2159_v1, %v2158_v61 }
 0x104   :  { %v875_v5 = vadd.f32 %v2157_v60, %v714_v63  ;;  %v717_v6 = vadd.f32 %v2048_v0, %v2763_v34  ;;  %1091 = vadd.xlane.f32.xlu0 %v2777_v2 }
 0x106   :  { %v878_v7 = vadd.f32 %v2160_v4, %v717_v6  ;;  %v2049_v8 = vpop.f32.mrb[8].mxu0  ;;  %v2781_v9 = vadd.f32 %v1853_v3, %v875_v5  ;;  %v1865_v5 = vunpack.c.l.bf16 %v1994_v57 }
 0x107   :  { %v2161_v11 = vpop.f32.mrb[8].mxu1  ;;  %v2050_v12 = vpop.f32.mrb[9].mxu0 }
 0x108   :  { %v2051_v14 = vadd.f32 %v2050_v12, %v2049_v8  ;;  %v2162_v15 = vpop.f32.mrb[9].mxu1  ;;  %v2052_v16 = vpop.f32.mrb[10].mxu0  ;;  %1093 = vadd.xlane.f32.xlu1 %v2781_v9  ;;  %v2788_v23 = vadd.f32 %v1854_v10, %v878_v7  ;;  %v1866_v10 = vunpack.c.h.bf16 %v1994_v57 }
 0x109   :  { %v2163_v17 = vadd.f32 %v2162_v15, %v2161_v11  ;;  %v2164_v18 = vpop.f32.mrb[10].mxu1  ;;  %v2053_v19 = vpop.f32.mrb[11].mxu0 }
 0x10a   :  { %v722_v20 = vadd.f32 %v2051_v14, %v2763_v34  ;;  %v2054_v21 = vadd.f32 %v2053_v19, %v2052_v16  ;;  %v2165_v22 = vpop.f32.mrb[11].mxu1  ;;  %v1995_v16 = vld [vmem:[%s3258_s3 + $0x28] sm:$0xff]  }
 0x10b   :  { %v2166_v25 = vadd.f32 %v2165_v22, %v2164_v18 }
 0x10c   :  { %v883_v26 = vadd.f32 %v2163_v17, %v722_v20  ;;  %v725_v27 = vadd.f32 %v2054_v21, %v2763_v34  ;;  %1095 = vadd.xlane.f32.xlu1 %v2788_v23 }
 0x10e   :  { %v886_v29 = vadd.f32 %v2166_v25, %v725_v27  ;;  %v2055_v30 = vpop.f32.mrb[12].mxu0  ;;  %v2792_v31 = vadd.f32 %v1857_v24, %v883_v26 }
 0x10f   :  { %v2167_v32 = vpop.f32.mrb[12].mxu1  ;;  %v2056_v33 = vpop.f32.mrb[13].mxu0 }
 0x110   :  { %v2057_v36 = vadd.f32 %v2056_v33, %v2055_v30  ;;  %v2168_v37 = vpop.f32.mrb[13].mxu1  ;;  %v2058_v38 = vpop.f32.mrb[14].mxu0  ;;  %1097 = vadd.xlane.f32.xlu0 %v2792_v31  ;;  %v2798_v39 = vadd.f32 %v1858_v28, %v886_v29  ;;  %v1869_v28 = vunpack.c.l.bf16 %v1995_v16  ;;  %v1870_v33 = vunpack.c.h.bf16 %v1995_v16 }
 0x111   :  { %v2169_v40 = vadd.f32 %v2168_v37, %v2167_v32  ;;  %v2170_v41 = vpop.f32.mrb[14].mxu1  ;;  %v2059_v42 = vpop.f32.mrb[15].mxu0 }
 0x112   :  { %v730_v43 = vadd.f32 %v2057_v36, %v2763_v34  ;;  %v2060_v44 = vadd.f32 %v2059_v42, %v2058_v38  ;;  %v2171_v45 = vpop.f32.mrb[15].mxu1  ;;  %1099 = vadd.xlane.f32.xlu1 %v2798_v39 }
 0x113   :  { %v2172_v47 = vadd.f32 %v2171_v45, %v2170_v41  ;;  %v1996_v41 = vld [vmem:[%s3258_s3 + $0x30] sm:$0xff]  }
 0x114   :  { %v891_v48 = vadd.f32 %v2169_v40, %v730_v43  ;;  %v733_v49 = vadd.f32 %v2060_v44, %v2763_v34 }
 0x116   :  { %v894_v51 = vadd.f32 %v2172_v47, %v733_v49  ;;  %v2061_v53 = vpop.f32.mrb[16].mxu0  ;;  %v2803_v54 = vadd.f32 %v1861_v46, %v891_v48 }
 0x117   :  { %v2173_v55 = vpop.f32.mrb[16].mxu1  ;;  %v2062_v56 = vpop.f32.mrb[17].mxu0 }
 0x118   :  { %v2063_v58 = vadd.f32 %v2062_v56, %v2061_v53  ;;  %v2174_v59 = vpop.f32.mrb[17].mxu1  ;;  %v2064_v60 = vpop.f32.mrb[18].mxu0  ;;  %1101 = vadd.xlane.f32.xlu0 %v2803_v54  ;;  %v2809_v61 = vadd.f32 %v1862_v50, %v894_v51  ;;  %v1873_v53 = vunpack.c.l.bf16 %v1996_v41 }
 0x119   :  { %v2175_v62 = vadd.f32 %v2174_v59, %v2173_v55  ;;  %v2176_v63 = vpop.f32.mrb[18].mxu1  ;;  %v2065_v0 = vpop.f32.mrb[19].mxu0 }
 0x11a   :  { %v738_v1 = vadd.f32 %v2063_v58, %v2763_v34  ;;  %v2066_v3 = vadd.f32 %v2065_v0, %v2064_v60  ;;  %v2177_v4 = vpop.f32.mrb[19].mxu1  ;;  %1103 = vadd.xlane.f32.xlu1 %v2809_v61  ;;  %v1874_v58 = vunpack.c.h.bf16 %v1996_v41 }
 0x11b   :  { %v2178_v6 = vadd.f32 %v2177_v4, %v2176_v63 }
 0x11c   :  { %v899_v7 = vadd.f32 %v2175_v62, %v738_v1  ;;  %v741_v8 = vadd.f32 %v2066_v3, %v2763_v34  ;;  %v1997_v1 = vld [vmem:[%s3258_s3 + $0x38] sm:$0xff]  }
 0x11e   :  { %v902_v11 = vadd.f32 %v2178_v6, %v741_v8  ;;  %v2067_v12 = vpop.f32.mrb[20].mxu0  ;;  %v2814_v13 = vadd.f32 %v1865_v5, %v899_v7 }
 0x11f   :  { %v2179_v14 = vpop.f32.mrb[20].mxu1  ;;  %v2068_v15 = vpop.f32.mrb[21].mxu0 }
 0x120   :  { %v2069_v17 = vadd.f32 %v2068_v15, %v2067_v12  ;;  %v2180_v18 = vpop.f32.mrb[21].mxu1  ;;  %v2070_v19 = vpop.f32.mrb[22].mxu0  ;;  %1105 = vadd.xlane.f32.xlu0 %v2814_v13  ;;  %v2820_v20 = vadd.f32 %v1866_v10, %v902_v11  ;;  %v1877_v15 = vunpack.c.l.bf16 %v1997_v1 }
 0x121   :  { %v2181_v21 = vadd.f32 %v2180_v18, %v2179_v14  ;;  %v2182_v22 = vpop.f32.mrb[22].mxu1  ;;  %v2071_v24 = vpop.f32.mrb[23].mxu0 }
 0x122   :  { %v746_v25 = vadd.f32 %v2069_v17, %v2763_v34  ;;  %v2072_v26 = vadd.f32 %v2071_v24, %v2070_v19  ;;  %v2183_v27 = vpop.f32.mrb[23].mxu1  ;;  %1107 = vadd.xlane.f32.xlu1 %v2820_v20  ;;  %v1878_v19 = vunpack.c.h.bf16 %v1997_v1 }
 0x123   :  { %v2184_v29 = vadd.f32 %v2183_v27, %v2182_v22  ;;  %v1998_v27 = vld [vmem:[%s3258_s3 + $0x40] sm:$0xff]  }
 0x124   :  { %v907_v30 = vadd.f32 %v2181_v21, %v746_v25  ;;  %v749_v32 = vadd.f32 %v2072_v26, %v2763_v34 }
 0x126   :  { %v910_v35 = vadd.f32 %v2184_v29, %v749_v32  ;;  %v2073_v36 = vpop.f32.mrb[24].mxu0  ;;  %v2825_v37 = vadd.f32 %v1869_v28, %v907_v30 }
 0x127   :  { %v2185_v38 = vpop.f32.mrb[24].mxu1  ;;  %v2074_v40 = vpop.f32.mrb[25].mxu0 }
 0x128   :  { %v2075_v42 = vadd.f32 %v2074_v40, %v2073_v36  ;;  %v2186_v43 = vpop.f32.mrb[25].mxu1  ;;  %v2076_v44 = vpop.f32.mrb[26].mxu0  ;;  %1109 = vadd.xlane.f32.xlu0 %v2825_v37  ;;  %v2831_v45 = vadd.f32 %v1870_v33, %v910_v35 }
 0x129   :  { %v2187_v46 = vadd.f32 %v2186_v43, %v2185_v38  ;;  %v2188_v47 = vpop.f32.mrb[26].mxu1  ;;  %v2077_v48 = vpop.f32.mrb[27].mxu0 }
 0x12a   :  { %v754_v49 = vadd.f32 %v2075_v42, %v2763_v34  ;;  %v2078_v50 = vadd.f32 %v2077_v48, %v2076_v44  ;;  %v2189_v51 = vpop.f32.mrb[27].mxu1  ;;  %1111 = vadd.xlane.f32.xlu1 %v2831_v45  ;;  %v1881_v42 = vunpack.c.l.bf16 %v1998_v27 }
 0x12b   :  { %v2190_v55 = vadd.f32 %v2189_v51, %v2188_v47  ;;  %v1882_v47 = vunpack.c.h.bf16 %v1998_v27 }
 0x12c   :  { %v915_v56 = vadd.f32 %v2187_v46, %v754_v49  ;;  %v757_v57 = vadd.f32 %v2078_v50, %v2763_v34 }
 0x12e   :  { %v918_v59 = vadd.f32 %v2190_v55, %v757_v57  ;;  %v2079_v60 = vpop.f32.mrb[28].mxu0  ;;  %v2836_v62 = vadd.f32 %v1873_v53, %v915_v56  ;;  %v1999_v55 = vld [vmem:[%s3258_s3 + $0x48] sm:$0xff]  }
 0x12f   :  { %v2191_v63 = vpop.f32.mrb[28].mxu1  ;;  %v2080_v0 = vpop.f32.mrb[29].mxu0 }
 0x130   :  { %v2081_v3 = vadd.f32 %v2080_v0, %v2079_v60  ;;  %v2192_v4 = vpop.f32.mrb[29].mxu1  ;;  %v2082_v5 = vpop.f32.mrb[30].mxu0  ;;  %1113 = vadd.xlane.f32.xlu0 %v2836_v62  ;;  %v2842_v6 = vadd.f32 %v1874_v58, %v918_v59 }
 0x131   :  { %v2193_v7 = vadd.f32 %v2192_v4, %v2191_v63  ;;  %v2194_v8 = vpop.f32.mrb[30].mxu1  ;;  %v2083_v10 = vpop.f32.mrb[31].mxu0 }
 0x132   :  { %v762_v11 = vadd.f32 %v2081_v3, %v2763_v34  ;;  %v2084_v12 = vadd.f32 %v2083_v10, %v2082_v5  ;;  %v2195_v14 = vpop.f32.mrb[31].mxu1  ;;  %1115 = vadd.xlane.f32.xlu1 %v2842_v6  ;;  %v1885_v5 = vunpack.c.l.bf16 %v1999_v55 }
 0x133   :  { %v2196_v16 = vadd.f32 %v2195_v14, %v2194_v8 }
 0x134   :  { %v923_v17 = vadd.f32 %v2193_v7, %v762_v11  ;;  %v765_v18 = vadd.f32 %v2084_v12, %v2763_v34  ;;  %v1886_v11 = vunpack.c.h.bf16 %v1999_v55 }
 0x136   :  { %v926_v21 = vadd.f32 %v2196_v16, %v765_v18  ;;  %v2085_v22 = vpop.f32.mrb[32].mxu0  ;;  %v2847_v24 = vadd.f32 %v1877_v15, %v923_v17  ;;  %v2000_v18 = vld [vmem:[%s3258_s3 + $0x50] sm:$0xff]  }
 0x137   :  { %v2197_v25 = vpop.f32.mrb[32].mxu1  ;;  %v2086_v26 = vpop.f32.mrb[33].mxu0 }
 0x138   :  { %v2087_v28 = vadd.f32 %v2086_v26, %v2085_v22  ;;  %v2198_v29 = vpop.f32.mrb[33].mxu1  ;;  %v2088_v30 = vpop.f32.mrb[34].mxu0  ;;  %1117 = vadd.xlane.f32.xlu0 %v2847_v24  ;;  %v2853_v32 = vadd.f32 %v1878_v19, %v926_v21 }
 0x139   :  { %v2199_v33 = vadd.f32 %v2198_v29, %v2197_v25  ;;  %v2200_v35 = vpop.f32.mrb[34].mxu1  ;;  %v2089_v36 = vpop.f32.mrb[35].mxu0 }
 0x13a   :  { %v770_v38 = vadd.f32 %v2087_v28, %v2763_v34  ;;  %v2090_v40 = vadd.f32 %v2089_v36, %v2088_v30  ;;  %v2201_v41 = vpop.f32.mrb[35].mxu1  ;;  %1119 = vadd.xlane.f32.xlu1 %v2853_v32 }
 0x13b   :  { %v2202_v43 = vadd.f32 %v2201_v41, %v2200_v35  ;;  %v1889_v35 = vunpack.c.l.bf16 %v2000_v18  ;;  %v1890_v41 = vunpack.c.h.bf16 %v2000_v18 }
 0x13c   :  { %v931_v44 = vadd.f32 %v2199_v33, %v770_v38  ;;  %v773_v46 = vadd.f32 %v2090_v40, %v2763_v34 }
 0x13e   :  { %v934_v48 = vadd.f32 %v2202_v43, %v773_v46  ;;  %v2091_v49 = vpop.f32.mrb[36].mxu0  ;;  %v2858_v50 = vadd.f32 %v1881_v42, %v931_v44 }
 0x13f   :  { %v2203_v51 = vpop.f32.mrb[36].mxu1  ;;  %v2092_v53 = vpop.f32.mrb[37].mxu0 }
 0x140   :  { %v2093_v56 = vadd.f32 %v2092_v53, %v2091_v49  ;;  %v2204_v57 = vpop.f32.mrb[37].mxu1  ;;  %v2094_v58 = vpop.f32.mrb[38].mxu0  ;;  %1121 = vadd.xlane.f32.xlu0 %v2858_v50  ;;  %v2864_v59 = vadd.f32 %v1882_v47, %v934_v48  ;;  %v2001_v48 = vld [vmem:[%s3258_s3 + $0x58] sm:$0xff]  }
 0x141   :  { %v2205_v60 = vadd.f32 %v2204_v57, %v2203_v51  ;;  %v2206_v63 = vpop.f32.mrb[38].mxu1  ;;  %v2095_v0 = vpop.f32.mrb[39].mxu0 }
 0x142   :  { %v778_v1 = vadd.f32 %v2093_v56, %v2763_v34  ;;  %v2096_v3 = vadd.f32 %v2095_v0, %v2094_v58  ;;  %v2207_v4 = vpop.f32.mrb[39].mxu1  ;;  %1123 = vadd.xlane.f32.xlu1 %v2864_v59 }
 0x143   :  { %v2208_v7 = vadd.f32 %v2207_v4, %v2206_v63 }
 0x144   :  { %v939_v8 = vadd.f32 %v2205_v60, %v778_v1  ;;  %v781_v10 = vadd.f32 %v2096_v3, %v2763_v34  ;;  %v1893_v1 = vunpack.c.l.bf16 %v2001_v48 }
 0x146   :  { %v942_v12 = vadd.f32 %v2208_v7, %v781_v10  ;;  %v2097_v14 = vpop.f32.mrb[40].mxu0  ;;  %v2869_v15 = vadd.f32 %v1885_v5, %v939_v8  ;;  %v1894_v7 = vunpack.c.h.bf16 %v2001_v48  ;;  %v2003_v48 = vld [vmem:[%s3258_s3 + $0x68] sm:$0xff]  }
 0x147   :  { %v2209_v16 = vpop.f32.mrb[40].mxu1  ;;  %v2098_v17 = vpop.f32.mrb[41].mxu0 }
 0x148   :  { %v2099_v19 = vadd.f32 %v2098_v17, %v2097_v14  ;;  %v2210_v21 = vpop.f32.mrb[41].mxu1  ;;  %v2100_v22 = vpop.f32.mrb[42].mxu0  ;;  %1125 = vadd.xlane.f32.xlu0 %v2869_v15  ;;  %v2875_v25 = vadd.f32 %v1886_v11, %v942_v12 }
 0x149   :  { %v2211_v26 = vadd.f32 %v2210_v21, %v2209_v16  ;;  %v2212_v27 = vpop.f32.mrb[42].mxu1  ;;  %v2101_v28 = vpop.f32.mrb[43].mxu0  ;;  %v2002_v16 = vld [vmem:[%s3258_s3 + $0x60] sm:$0xff]  }
 0x14a   :  { %v786_v29 = vadd.f32 %v2099_v19, %v2763_v34  ;;  %v2102_v30 = vadd.f32 %v2101_v28, %v2100_v22  ;;  %v2213_v33 = vpop.f32.mrb[43].mxu1  ;;  %1127 = vadd.xlane.f32.xlu1 %v2875_v25 }
 0x14b   :  { %v2214_v36 = vadd.f32 %v2213_v33, %v2212_v27  ;;  %v1897_v33 = vunpack.c.l.bf16 %v2002_v16 }
 0x14c   :  { %v947_v38 = vadd.f32 %v2211_v26, %v786_v29  ;;  %v789_v40 = vadd.f32 %v2102_v30, %v2763_v34 }
 0x14e   :  { %v950_v42 = vadd.f32 %v2214_v36, %v789_v40  ;;  %v2103_v43 = vpop.f32.mrb[44].mxu0  ;;  %v2880_v44 = vadd.f32 %v1889_v35, %v947_v38  ;;  %v1898_v40 = vunpack.c.h.bf16 %v2002_v16 }
 0x14f   :  { %v2215_v46 = vpop.f32.mrb[44].mxu1  ;;  %v2104_v47 = vpop.f32.mrb[45].mxu0 }
 0x150   :  { %v2105_v49 = vadd.f32 %v2104_v47, %v2103_v43  ;;  %v2216_v51 = vpop.f32.mrb[45].mxu1  ;;  %v2106_v53 = vpop.f32.mrb[46].mxu0  ;;  %1129 = vadd.xlane.f32.xlu0 %v2880_v44  ;;  %v2886_v55 = vadd.f32 %v1890_v41, %v950_v42 }
 0x151   :  { %v2217_v56 = vadd.f32 %v2216_v51, %v2215_v46  ;;  %v2218_v57 = vpop.f32.mrb[46].mxu1  ;;  %v2107_v58 = vpop.f32.mrb[47].mxu0 }
 0x152   :  { %v794_v60 = vadd.f32 %v2105_v49, %v2763_v34  ;;  %v2108_v63 = vadd.f32 %v2107_v58, %v2106_v53  ;;  %v2219_v0 = vpop.f32.mrb[47].mxu1  ;;  %1131 = vadd.xlane.f32.xlu1 %v2886_v55 }
 0x153   :  { %v2220_v3 = vadd.f32 %v2219_v0, %v2218_v57 }
 0x154   :  { %v955_v4 = vadd.f32 %v2217_v56, %v794_v60  ;;  %v797_v5 = vadd.f32 %v2108_v63, %v2763_v34 }
 0x156   :  { %v958_v8 = vadd.f32 %v2220_v3, %v797_v5  ;;  %v2109_v10 = vpop.f32.mrb[48].mxu0  ;;  %v2891_v11 = vadd.f32 %v1893_v1, %v955_v4  ;;  %v1901_v3 = vunpack.c.l.bf16 %v2003_v48 }
 0x157   :  { %v2221_v12 = vpop.f32.mrb[48].mxu1  ;;  %v2110_v14 = vpop.f32.mrb[49].mxu0 }
 0x158   :  { %v2111_v17 = vadd.f32 %v2110_v14, %v2109_v10  ;;  %v2222_v18 = vpop.f32.mrb[49].mxu1  ;;  %v2112_v19 = vpop.f32.mrb[50].mxu0  ;;  %1133 = vadd.xlane.f32.xlu0 %v2891_v11  ;;  %v2897_v21 = vadd.f32 %v1894_v7, %v958_v8  ;;  %v1902_v8 = vunpack.c.h.bf16 %v2003_v48 }
 0x159   :  { %v2223_v22 = vadd.f32 %v2222_v18, %v2221_v12  ;;  %v2224_v26 = vpop.f32.mrb[50].mxu1  ;;  %v2113_v27 = vpop.f32.mrb[51].mxu0  ;;  %v2004_v18 = vld [vmem:[%s3258_s3 + $0x70] sm:$0xff]  }
 0x15a   :  { %v802_v28 = vadd.f32 %v2111_v17, %v2763_v34  ;;  %v2114_v29 = vadd.f32 %v2113_v27, %v2112_v19  ;;  %v2225_v30 = vpop.f32.mrb[51].mxu1  ;;  %1135 = vadd.xlane.f32.xlu1 %v2897_v21 }
 0x15b   :  { %v2226_v35 = vadd.f32 %v2225_v30, %v2224_v26 }
 0x15c   :  { %v963_v36 = vadd.f32 %v2223_v22, %v802_v28  ;;  %v805_v38 = vadd.f32 %v2114_v29, %v2763_v34 }
 0x15e   :  { %v966_v41 = vadd.f32 %v2226_v35, %v805_v38  ;;  %v2115_v42 = vpop.f32.mrb[52].mxu0  ;;  %v2902_v43 = vadd.f32 %v1897_v33, %v963_v36  ;;  %v1905_v38 = vunpack.c.l.bf16 %v2004_v18 }
 0x15f   :  { %v2227_v46 = vpop.f32.mrb[52].mxu1  ;;  %v2116_v47 = vpop.f32.mrb[53].mxu0 }
 0x160   :  { %v2117_v49 = vadd.f32 %v2116_v47, %v2115_v42  ;;  %v2228_v51 = vpop.f32.mrb[53].mxu1  ;;  %v2118_v53 = vpop.f32.mrb[54].mxu0  ;;  %1137 = vadd.xlane.f32.xlu0 %v2902_v43  ;;  %v2908_v56 = vadd.f32 %v1898_v40, %v966_v41 }
 0x161   :  { %v2229_v57 = vadd.f32 %v2228_v51, %v2227_v46  ;;  %v2230_v58 = vpop.f32.mrb[54].mxu1  ;;  %v2119_v60 = vpop.f32.mrb[55].mxu0  ;;  %v1906_v46 = vunpack.c.h.bf16 %v2004_v18 }
 0x162   :  { %v810_v63 = vadd.f32 %v2117_v49, %v2763_v34  ;;  %v2120_v0 = vadd.f32 %v2119_v60, %v2118_v53  ;;  %v2231_v1 = vpop.f32.mrb[55].mxu1  ;;  %1139 = vadd.xlane.f32.xlu1 %v2908_v56 }
 0x163   :  { %v2232_v4 = vadd.f32 %v2231_v1, %v2230_v58 }
 0x164   :  { %v971_v5 = vadd.f32 %v2229_v57, %v810_v63  ;;  %v813_v7 = vadd.f32 %v2120_v0, %v2763_v34  ;;  %v2005_v57 = vld [vmem:[%s3258_s3 + $0x78] sm:$0xff]  }
 0x165   :  { %v1910_v18 = vunpack.c.h.bf16 %v2005_v57 }
 0x166   :  { %v974_v10 = vadd.f32 %v2232_v4, %v813_v7  ;;  %v2121_v12 = vpop.f32.mrb[56].mxu0  ;;  %v2913_v14 = vadd.f32 %v1901_v3, %v971_v5 }
 0x167   :  { %v2233_v16 = vpop.f32.mrb[56].mxu1  ;;  %v2122_v17 = vpop.f32.mrb[57].mxu0 }
 0x168   :  { %v2123_v19 = vadd.f32 %v2122_v17, %v2121_v12  ;;  %v2234_v22 = vpop.f32.mrb[57].mxu1  ;;  %v2124_v26 = vpop.f32.mrb[58].mxu0  ;;  %1141 = vadd.xlane.f32.xlu0 %v2913_v14  ;;  %v2919_v27 = vadd.f32 %v1902_v8, %v974_v10  ;;  %v1909_v10 = vunpack.c.l.bf16 %v2005_v57 }
 0x169   :  { %v2235_v28 = vadd.f32 %v2234_v22, %v2233_v16  ;;  %v2236_v29 = vpop.f32.mrb[58].mxu1  ;;  %v2125_v30 = vpop.f32.mrb[59].mxu0 }
 0x16a   :  { %v818_v33 = vadd.f32 %v2123_v19, %v2763_v34  ;;  %v2126_v35 = vadd.f32 %v2125_v30, %v2124_v26  ;;  %v2237_v36 = vpop.f32.mrb[59].mxu1  ;;  %1143 = vadd.xlane.f32.xlu1 %v2919_v27 }
 0x16b   :  { %v2238_v40 = vadd.f32 %v2237_v36, %v2236_v29 }
 0x16c   :  { %v979_v41 = vadd.f32 %v2235_v28, %v818_v33  ;;  %v821_v42 = vadd.f32 %v2126_v35, %v2763_v34 }
 0x16e   :  { %v982_v47 = vadd.f32 %v2238_v40, %v821_v42  ;;  %v2127_v48 = vpop.f32.mrb[60].mxu0  ;;  %v2924_v49 = vadd.f32 %v1905_v38, %v979_v41 }
 0x16f   :  { %v2239_v51 = vpop.f32.mrb[60].mxu1  ;;  %v2128_v53 = vpop.f32.mrb[61].mxu0 }
 0x170   :  { %v2129_v58 = vadd.f32 %v2128_v53, %v2127_v48  ;;  %v2240_v60 = vpop.f32.mrb[61].mxu1  ;;  %v2130_v63 = vpop.f32.mrb[62].mxu0  ;;  %1145 = vadd.xlane.f32.xlu0 %v2924_v49  ;;  %v2930_v0 = vadd.f32 %v1906_v46, %v982_v47 }
 0x171   :  { %v2241_v1 = vadd.f32 %v2240_v60, %v2239_v51  ;;  %v2242_v3 = vpop.f32.mrb[62].mxu1  ;;  %v2131_v4 = vpop.f32.mrb[63].mxu0 }
 0x172   :  { %v826_v5 = vadd.f32 %v2129_v58, %v2763_v34  ;;  %v2132_v7 = vadd.f32 %v2131_v4, %v2130_v63  ;;  %v2243_v8 = vpop.f32.mrb[63].mxu1  ;;  %1147 = vadd.xlane.f32.xlu1 %v2930_v0 }
 0x173   :  { %v2244_v12 = vadd.f32 %v2243_v8, %v2242_v3 }
 0x174   :  { %v987_v16 = vadd.f32 %v2241_v1, %v826_v5  ;;  %v829_v17 = vadd.f32 %v2132_v7, %v2763_v34 }
 0x176   :  { %v990_v19 = vadd.f32 %v2244_v12, %v829_v17  ;;  %v2935_v22 = vadd.f32 %v1909_v10, %v987_v16 }
 0x178   :  { %1149 = vadd.xlane.f32.xlu0 %v2935_v22  ;;  %v2938_v26 = vadd.f32 %v1910_v18, %v990_v19 }
 0x17a   :  { %1151 = vadd.xlane.f32.xlu1 %v2938_v26 }
 0x18d   :  { %v1090_v28 = vpop.xlane.xlu0 %1089 }
 0x18e   :  { %v1154_v29 = vmul.f32 0.0078125, %v1090_v28 }
 0x190   :  { %v2942_v30 = vsub.f32 %v2770_v52, %v1154_v29 }
 0x191   :  { %v1092_v33 = vpop.xlane.xlu0 %1091 }
 0x192   :  { %v1155_v35 = vmul.f32 0.0078125, %v1092_v33  ;;  %v1218_v34 = vmul.f32 %v2942_v30, %v2942_v30 }
 0x194   :  { %v2947_v36 = vsub.f32 %v2777_v2, %v1155_v35  ;;  %1250 = vadd.xlane.f32.xlu0 %v1218_v34 }
 0x195   :  { %v1094_v38 = vpop.xlane.xlu1 %1093 }
 0x196   :  { %v1156_v40 = vmul.f32 0.0078125, %v1094_v38  ;;  %v1219_v41 = vmul.f32 %v2947_v36, %v2947_v36 }
 0x198   :  { %v2952_v42 = vsub.f32 %v2781_v9, %v1156_v40  ;;  %1252 = vadd.xlane.f32.xlu1 %v1219_v41 }
 0x199   :  { %v1096_v52 = vpop.xlane.xlu1 %1095 }
 0x19a   :  { %v1157_v46 = vmul.f32 0.0078125, %v1096_v52  ;;  %v1220_v47 = vmul.f32 %v2952_v42, %v2952_v42 }
 0x19c   :  { %v2957_v48 = vsub.f32 %v2788_v23, %v1157_v46  ;;  %1254 = vadd.xlane.f32.xlu0 %v1220_v47 }
 0x19d   :  { %v1098_v2 = vpop.xlane.xlu0 %1097 }
 0x19e   :  { %v1158_v51 = vmul.f32 0.0078125, %v1098_v2  ;;  %v1221_v53 = vmul.f32 %v2957_v48, %v2957_v48 }
 0x19f   :  { %v1100_v57 = vpop.xlane.xlu1 %1099 }
 0x1a0   :  { %v2962_v58 = vsub.f32 %v2792_v31, %v1158_v51  ;;  %v1159_v9 = vmul.f32 0.0078125, %v1100_v57  ;;  %1256 = vadd.xlane.f32.xlu1 %v1221_v53 }
 0x1a2   :  { %v2965_v60 = vsub.f32 %v2798_v39, %v1159_v9  ;;  %v1222_v63 = vmul.f32 %v2962_v58, %v2962_v58 }
 0x1a4   :  { %1258 = vadd.xlane.f32.xlu0 %v1222_v63  ;;  %v1223_v23 = vmul.f32 %v2965_v60, %v2965_v60 }
 0x1a5   :  { %v1102_v1 = vpop.xlane.xlu0 %1101 }
 0x1a6   :  { %v1160_v3 = vmul.f32 0.0078125, %v1102_v1  ;;  %1260 = vadd.xlane.f32.xlu1 %v1223_v23 }
 0x1a7   :  { %v1104_v4 = vpop.xlane.xlu1 %1103 }
 0x1a8   :  { %v2972_v5 = vsub.f32 %v2803_v54, %v1160_v3  ;;  %v1161_v31 = vmul.f32 0.0078125, %v1104_v4 }
 0x1aa   :  { %v2975_v7 = vsub.f32 %v2809_v61, %v1161_v31  ;;  %v1224_v39 = vmul.f32 %v2972_v5, %v2972_v5 }
 0x1ac   :  { %1262 = vadd.xlane.f32.xlu0 %v1224_v39  ;;  %v1225_v8 = vmul.f32 %v2975_v7, %v2975_v7 }
 0x1ad   :  { %v1106_v10 = vpop.xlane.xlu0 %1105 }
 0x1ae   :  { %v1162_v12 = vmul.f32 0.0078125, %v1106_v10  ;;  %1264 = vadd.xlane.f32.xlu1 %v1225_v8 }
 0x1af   :  { %v1108_v16 = vpop.xlane.xlu1 %1107 }
 0x1b0   :  { %v2982_v17 = vsub.f32 %v2814_v13, %v1162_v12  ;;  %v1163_v54 = vmul.f32 0.0078125, %v1108_v16 }
 0x1b2   :  { %v2985_v18 = vsub.f32 %v2820_v20, %v1163_v54  ;;  %v1226_v61 = vmul.f32 %v2982_v17, %v2982_v17 }
 0x1b4   :  { %1266 = vadd.xlane.f32.xlu0 %v1226_v61  ;;  %v1227_v19 = vmul.f32 %v2985_v18, %v2985_v18 }
 0x1b5   :  { %v1110_v28 = vpop.xlane.xlu0 %1109 }
 0x1b6   :  { %v1164_v29 = vmul.f32 0.0078125, %v1110_v28  ;;  %1268 = vadd.xlane.f32.xlu1 %v1227_v19 }
 0x1b7   :  { %v1112_v33 = vpop.xlane.xlu1 %1111 }
 0x1b8   :  { %v2992_v35 = vsub.f32 %v2825_v37, %v1164_v29  ;;  %v1165_v13 = vmul.f32 0.0078125, %v1112_v33 }
 0x1ba   :  { %v2995_v34 = vsub.f32 %v2831_v45, %v1165_v13  ;;  %v1228_v20 = vmul.f32 %v2992_v35, %v2992_v35 }
 0x1bc   :  { %1270 = vadd.xlane.f32.xlu0 %v1228_v20  ;;  %v1229_v38 = vmul.f32 %v2995_v34, %v2995_v34 }
 0x1bd   :  { %v1114_v40 = vpop.xlane.xlu0 %1113 }
 0x1be   :  { %v1166_v41 = vmul.f32 0.0078125, %v1114_v40  ;;  %1272 = vadd.xlane.f32.xlu1 %v1229_v38 }
 0x1bf   :  { %v1116_v52 = vpop.xlane.xlu1 %1115 }
 0x1c0   :  { %v3002_v46 = vsub.f32 %v2836_v62, %v1166_v41  ;;  %v1167_v37 = vmul.f32 0.0078125, %v1116_v52 }
 0x1c2   :  { %v3005_v47 = vsub.f32 %v2842_v6, %v1167_v37  ;;  %v1230_v45 = vmul.f32 %v3002_v46, %v3002_v46 }
 0x1c4   :  { %1274 = vadd.xlane.f32.xlu0 %v1230_v45  ;;  %v1231_v2 = vmul.f32 %v3005_v47, %v3005_v47 }
 0x1c5   :  { %v1118_v51 = vpop.xlane.xlu0 %1117 }
 0x1c6   :  { %v1168_v53 = vmul.f32 0.0078125, %v1118_v51  ;;  %1276 = vadd.xlane.f32.xlu1 %v1231_v2 }
 0x1c7   :  { %v1120_v57 = vpop.xlane.xlu1 %1119 }
 0x1c8   :  { %v3012_v9 = vsub.f32 %v2847_v24, %v1168_v53  ;;  %v1169_v62 = vmul.f32 0.0078125, %v1120_v57 }
 0x1ca   :  { %v3015_v63 = vsub.f32 %v2853_v32, %v1169_v62  ;;  %v1232_v6 = vmul.f32 %v3012_v9, %v3012_v9 }
 0x1cc   :  { %1278 = vadd.xlane.f32.xlu0 %v1232_v6  ;;  %v1233_v23 = vmul.f32 %v3015_v63, %v3015_v63 }
 0x1cd   :  { %v1122_v1 = vpop.xlane.xlu0 %1121 }
 0x1ce   :  { %v1170_v3 = vmul.f32 0.0078125, %v1122_v1  ;;  %1280 = vadd.xlane.f32.xlu1 %v1233_v23 }
 0x1cf   :  { %v1124_v4 = vpop.xlane.xlu1 %1123 }
 0x1d0   :  { %v3022_v31 = vsub.f32 %v2858_v50, %v1170_v3  ;;  %v1171_v24 = vmul.f32 0.0078125, %v1124_v4 }
 0x1d2   :  { %v3025_v39 = vsub.f32 %v2864_v59, %v1171_v24  ;;  %v1234_v32 = vmul.f32 %v3022_v31, %v3022_v31 }
 0x1d4   :  { %1282 = vadd.xlane.f32.xlu0 %v1234_v32  ;;  %v1235_v8 = vmul.f32 %v3025_v39, %v3025_v39 }
 0x1d5   :  { %v1126_v10 = vpop.xlane.xlu0 %1125 }
 0x1d6   :  { %v1172_v12 = vmul.f32 0.0078125, %v1126_v10  ;;  %1284 = vadd.xlane.f32.xlu1 %v1235_v8 }
 0x1d7   :  { %v1128_v16 = vpop.xlane.xlu1 %1127 }
 0x1d8   :  { %v3032_v54 = vsub.f32 %v2869_v15, %v1172_v12  ;;  %v1173_v50 = vmul.f32 0.0078125, %v1128_v16 }
 0x1da   :  { %v3035_v61 = vsub.f32 %v2875_v25, %v1173_v50  ;;  %v1236_v59 = vmul.f32 %v3032_v54, %v3032_v54 }
 0x1dc   :  { %1286 = vadd.xlane.f32.xlu0 %v1236_v59  ;;  %v1237_v19 = vmul.f32 %v3035_v61, %v3035_v61 }
 0x1dd   :  { %v1130_v28 = vpop.xlane.xlu0 %1129 }
 0x1de   :  { %v1174_v29 = vmul.f32 0.0078125, %v1130_v28  ;;  %1288 = vadd.xlane.f32.xlu1 %v1237_v19 }
 0x1df   :  { %v1132_v33 = vpop.xlane.xlu1 %1131 }
 0x1e0   :  { %v3042_v13 = vsub.f32 %v2880_v44, %v1174_v29  ;;  %v1175_v15 = vmul.f32 0.0078125, %v1132_v33 }
 0x1e2   :  { %v3045_v20 = vsub.f32 %v2886_v55, %v1175_v15  ;;  %v1238_v25 = vmul.f32 %v3042_v13, %v3042_v13 }
 0x1e4   :  { %1290 = vadd.xlane.f32.xlu0 %v1238_v25  ;;  %v1239_v38 = vmul.f32 %v3045_v20, %v3045_v20 }
 0x1e5   :  { %v1134_v40 = vpop.xlane.xlu0 %1133 }
 0x1e6   :  { %v1176_v41 = vmul.f32 0.0078125, %v1134_v40  ;;  %1292 = vadd.xlane.f32.xlu1 %v1239_v38 }
 0x1e7   :  { %v1136_v52 = vpop.xlane.xlu1 %1135 }
 0x1e8   :  { %v3052_v37 = vsub.f32 %v2891_v11, %v1176_v41  ;;  %v1177_v44 = vmul.f32 0.0078125, %v1136_v52 }
 0x1ea   :  { %v3055_v45 = vsub.f32 %v2897_v21, %v1177_v44  ;;  %v1240_v55 = vmul.f32 %v3052_v37, %v3052_v37 }
 0x1ec   :  { %1294 = vadd.xlane.f32.xlu0 %v1240_v55  ;;  %v1241_v2 = vmul.f32 %v3055_v45, %v3055_v45 }
 0x1ed   :  { %v1138_v51 = vpop.xlane.xlu0 %1137 }
 0x1ee   :  { %v1178_v53 = vmul.f32 0.0078125, %v1138_v51  ;;  %1296 = vadd.xlane.f32.xlu1 %v1241_v2 }
 0x1ef   :  { %v1140_v57 = vpop.xlane.xlu1 %1139 }
 0x1f0   :  { %v3062_v62 = vsub.f32 %v2902_v43, %v1178_v53  ;;  %v1179_v11 = vmul.f32 0.0078125, %v1140_v57 }
 0x1f2   :  { %v3065_v6 = vsub.f32 %v2908_v56, %v1179_v11  ;;  %v1242_v21 = vmul.f32 %v3062_v62, %v3062_v62 }
 0x1f4   :  { %1298 = vadd.xlane.f32.xlu0 %v1242_v21  ;;  %v1243_v23 = vmul.f32 %v3065_v6, %v3065_v6 }
 0x1f5   :  { %v1142_v1 = vpop.xlane.xlu0 %1141 }
 0x1f6   :  { %v1180_v3 = vmul.f32 0.0078125, %v1142_v1  ;;  %1300 = vadd.xlane.f32.xlu1 %v1243_v23 }
 0x1f7   :  { %v1144_v4 = vpop.xlane.xlu1 %1143 }
 0x1f8   :  { %v3072_v24 = vsub.f32 %v2913_v14, %v1180_v3  ;;  %v1181_v43 = vmul.f32 0.0078125, %v1144_v4  ;;  %v3105_v3 = vld [vmem:[%s3259_s4] ss:$0 sm:$0xff] }
 0x1fa   :  { %v3075_v32 = vsub.f32 %v2919_v27, %v1181_v43  ;;  %v1244_v56 = vmul.f32 %v3072_v24, %v3072_v24 }
 0x1fc   :  { %1302 = vadd.xlane.f32.xlu0 %v1244_v56  ;;  %v1245_v8 = vmul.f32 %v3075_v32, %v3075_v32 }
 0x1fd   :  { %v1146_v10 = vpop.xlane.xlu0 %1145 }
 0x1fe   :  { %v1182_v12 = vmul.f32 0.0078125, %v1146_v10  ;;  %1304 = vadd.xlane.f32.xlu1 %v1245_v8 }
 0x1ff   :  { %v1148_v16 = vpop.xlane.xlu1 %1147 }
 0x200   :  { %v3082_v50 = vsub.f32 %v2924_v49, %v1182_v12  ;;  %v1183_v14 = vmul.f32 0.0078125, %v1148_v16 }
 0x202   :  { %v3085_v59 = vsub.f32 %v2930_v0, %v1183_v14  ;;  %v1246_v27 = vmul.f32 %v3082_v50, %v3082_v50 }
 0x204   :  { %1306 = vadd.xlane.f32.xlu0 %v1246_v27  ;;  %v1247_v19 = vmul.f32 %v3085_v59, %v3085_v59 }
 0x205   :  { %v1150_v28 = vpop.xlane.xlu0 %1149 }
 0x206   :  { %v1184_v29 = vmul.f32 0.0078125, %v1150_v28  ;;  %1308 = vadd.xlane.f32.xlu1 %v1247_v19 }
 0x207   :  { %v1152_v33 = vpop.xlane.xlu1 %1151 }
 0x208   :  { %v3092_v15 = vsub.f32 %v2935_v22, %v1184_v29  ;;  %v1185_v49 = vmul.f32 0.0078125, %v1152_v33 }
 0x20a   :  { %v3095_v25 = vsub.f32 %v2938_v26, %v1185_v49  ;;  %v1248_v0 = vmul.f32 %v3092_v15, %v3092_v15 }
 0x20c   :  { %1310 = vadd.xlane.f32.xlu0 %v1248_v0  ;;  %v1249_v38 = vmul.f32 %v3095_v25, %v3095_v25 }
 0x20e   :  { %1312 = vadd.xlane.f32.xlu1 %v1249_v38 }
 0x221   :  { %v1251_v40 = vpop.xlane.xlu0 %1250 }
 0x222   :  { %v1314_v41 = vmul.f32 0.0078125, %v1251_v40 }
 0x224   :  { %v1346_v52 = vadd.f32 1e-12, %v1314_v41 }
 0x225   :  { %v1253_v44 = vpop.xlane.xlu1 %1252 }
 0x226   :  { %2373 = vrsqrt.f32 %v1346_v52  ;;  %v1315_v55 = vmul.f32 0.0078125, %v1253_v44 }
 0x228   :  { %v1347_v22 = vadd.f32 1e-12, %v1315_v55 }
 0x229   :  { %v1255_v2 = vpop.xlane.xlu0 %1254 }
 0x22a   :  { %2375 = vrsqrt.f32 %v1347_v22  ;;  %v1316_v51 = vmul.f32 0.0078125, %v1255_v2 }
 0x22c   :  { %v1348_v26 = vadd.f32 1e-12, %v1316_v51 }
 0x22d   :  { %v1257_v53 = vpop.xlane.xlu1 %1256 }
 0x22e   :  { %2377 = vrsqrt.f32 %v1348_v26  ;;  %v1317_v57 = vmul.f32 0.0078125, %v1257_v53 }
 0x230   :  { %v2374_v11 = vpop.eup %2373  ;;  %v1349_v21 = vadd.f32 1e-12, %v1317_v57 }
 0x231   :  { %v1410_v23 = vmul.f32 %v2374_v11, %v2942_v30  ;;  %v1259_v1 = vpop.xlane.xlu0 %1258  ;;  %v3112_v30 = vld [vmem:[%s3260_s5] ss:$0 sm:$0xff] }
 0x232   :  { %2379 = vrsqrt.f32 %v1349_v21  ;;  %v1318_v4 = vmul.f32 0.0078125, %v1259_v1 }
 0x233   :  { %v1261_v43 = vpop.xlane.xlu1 %1260  ;;  %v1449_v12 = vmul.f32 %v3105_v3, %v1410_v23 }
 0x234   :  { %v2376_v56 = vpop.eup %2375  ;;  %v1350_v8 = vadd.f32 1e-12, %v1318_v4  ;;  %v1319_v10 = vmul.f32 0.0078125, %v1261_v43 }
 0x235   :  { %v1411_v16 = vmul.f32 %v2376_v56, %v2947_v36  ;;  %v1488_v28 = vadd.f32 %v3112_v30, %v1449_v12 }
 0x236   :  { %2381 = vrsqrt.f32 %v1350_v8  ;;  %v1351_v14 = vadd.f32 1e-12, %v1319_v10 }
 0x237   :  { %v1450_v27 = vmul.f32 %v3105_v3, %v1411_v16 }
 0x238   :  { %v2378_v19 = vpop.eup %2377  ;;  %2383 = vrsqrt.f32 %v1351_v14 }
 0x239   :  { %v1489_v29 = vadd.f32 %v3112_v30, %v1450_v27  ;;  %v1412_v33 = vmul.f32 %v2378_v19, %v2952_v42  ;;  %v1263_v49 = vpop.xlane.xlu0 %1262 }
 0x23a   :  { %v1320_v0 = vmul.f32 0.0078125, %v1263_v49 }
 0x23b   :  { %v1914_v36 = vpack.c.bf16 %v1489_v29, %v1488_v28  ;;  %v1265_v38 = vpop.xlane.xlu1 %1264  ;;  %v1451_v44 = vmul.f32 %v3105_v3, %v1412_v33 }
 0x23c   :  { %v2380_v40 = vpop.eup %2379  ;;  %v1352_v41 = vadd.f32 1e-12, %v1320_v0  ;;  %v1321_v52 = vmul.f32 0.0078125, %v1265_v38 }
 0x23d   :  { %1915 = vst [vmem:[%s3261_s6] sm:$0xff] %v1914_v36   ;;  %v1413_v55 = vmul.f32 %v2380_v40, %v2957_v48  ;;  %v1490_v51 = vadd.f32 %v3112_v30, %v1451_v44 }
 0x23e   :  { %2385 = vrsqrt.f32 %v1352_v41  ;;  %v1353_v22 = vadd.f32 1e-12, %v1321_v52 }
 0x23f   :  { %v1452_v2 = vmul.f32 %v3105_v3, %v1413_v55 }
 0x240   :  { %v2382_v42 = vpop.eup %2381  ;;  %2387 = vrsqrt.f32 %v1353_v22 }
 0x241   :  { %v1491_v26 = vadd.f32 %v3112_v30, %v1452_v2  ;;  %v1414_v53 = vmul.f32 %v2382_v42, %v2962_v58  ;;  %v1267_v57 = vpop.xlane.xlu0 %1266 }
 0x242   :  { %v2384_v11 = vpop.eup %2383  ;;  %v1322_v21 = vmul.f32 0.0078125, %v1267_v57 }
 0x243   :  { %v1919_v23 = vpack.c.bf16 %v1491_v26, %v1490_v51  ;;  %v1453_v1 = vmul.f32 %v3105_v3, %v1414_v53  ;;  %v1415_v48 = vmul.f32 %v2384_v11, %v2965_v60  ;;  %v1269_v4 = vpop.xlane.xlu1 %1268 }
 0x244   :  { %v1354_v43 = vadd.f32 1e-12, %v1322_v21  ;;  %v1323_v56 = vmul.f32 0.0078125, %v1269_v4 }
 0x245   :  { %2006 = vst [vmem:[%s3261_s6 + $0x8] sm:$0xff] %v1919_v23   ;;  %v1454_v8 = vmul.f32 %v3105_v3, %v1415_v48  ;;  %v1492_v58 = vadd.f32 %v3112_v30, %v1453_v1 }
 0x246   :  { %2389 = vrsqrt.f32 %v1354_v43  ;;  %v1355_v10 = vadd.f32 1e-12, %v1323_v56 }
 0x247   :  { %v1493_v12 = vadd.f32 %v3112_v30, %v1454_v8 }
 0x248   :  { %v2386_v16 = vpop.eup %2385  ;;  %2391 = vrsqrt.f32 %v1355_v10 }
 0x249   :  { %v1924_v14 = vpack.c.bf16 %v1493_v12, %v1492_v58  ;;  %v1416_v60 = vmul.f32 %v2386_v16, %v2972_v5  ;;  %v1271_v27 = vpop.xlane.xlu0 %1270 }
 0x24a   :  { %v2388_v19 = vpop.eup %2387  ;;  %v1324_v28 = vmul.f32 0.0078125, %v1271_v27 }
 0x24b   :  { %2007 = vst [vmem:[%s3261_s6 + $0x10] sm:$0xff] %v1924_v14   ;;  %v1455_v29 = vmul.f32 %v3105_v3, %v1416_v60  ;;  %v1417_v33 = vmul.f32 %v2388_v19, %v2975_v7  ;;  %v1273_v49 = vpop.xlane.xlu1 %1272 }
 0x24c   :  { %v1356_v0 = vadd.f32 1e-12, %v1324_v28  ;;  %v1325_v36 = vmul.f32 0.0078125, %v1273_v49 }
 0x24d   :  { %v1456_v38 = vmul.f32 %v3105_v3, %v1417_v33  ;;  %v1494_v5 = vadd.f32 %v3112_v30, %v1455_v29 }
 0x24e   :  { %2393 = vrsqrt.f32 %v1356_v0  ;;  %v1357_v40 = vadd.f32 1e-12, %v1325_v36 }
 0x24f   :  { %v1495_v41 = vadd.f32 %v3112_v30, %v1456_v38 }
 0x250   :  { %v2390_v52 = vpop.eup %2389  ;;  %2395 = vrsqrt.f32 %v1357_v40 }
 0x251   :  { %v1929_v44 = vpack.c.bf16 %v1495_v41, %v1494_v5  ;;  %v1418_v55 = vmul.f32 %v2390_v52, %v2982_v17  ;;  %v1275_v22 = vpop.xlane.xlu0 %1274 }
 0x252   :  { %v2392_v2 = vpop.eup %2391  ;;  %v1326_v42 = vmul.f32 0.0078125, %v1275_v22 }
 0x253   :  { %2008 = vst [vmem:[%s3261_s6 + $0x18] sm:$0xff] %v1929_v44   ;;  %v1457_v7 = vmul.f32 %v3105_v3, %v1418_v55  ;;  %v1419_v51 = vmul.f32 %v2392_v2, %v2985_v18  ;;  %v1277_v26 = vpop.xlane.xlu1 %1276 }
 0x254   :  { %v1358_v53 = vadd.f32 1e-12, %v1326_v42  ;;  %v1327_v57 = vmul.f32 0.0078125, %v1277_v26 }
 0x255   :  { %v1458_v11 = vmul.f32 %v3105_v3, %v1419_v51  ;;  %v1496_v17 = vadd.f32 %v3112_v30, %v1457_v7 }
 0x256   :  { %2397 = vrsqrt.f32 %v1358_v53  ;;  %v1359_v21 = vadd.f32 1e-12, %v1327_v57 }
 0x257   :  { %v1497_v23 = vadd.f32 %v3112_v30, %v1458_v11 }
 0x258   :  { %v2394_v1 = vpop.eup %2393  ;;  %2399 = vrsqrt.f32 %v1359_v21 }
 0x259   :  { %v1934_v48 = vpack.c.bf16 %v1497_v23, %v1496_v17  ;;  %v1420_v4 = vmul.f32 %v2394_v1, %v2992_v35  ;;  %v1279_v43 = vpop.xlane.xlu0 %1278 }
 0x25a   :  { %v2396_v56 = vpop.eup %2395  ;;  %v1328_v8 = vmul.f32 0.0078125, %v1279_v43 }
 0x25b   :  { %2009 = vst [vmem:[%s3261_s6 + $0x20] sm:$0xff] %v1934_v48   ;;  %v1459_v18 = vmul.f32 %v3105_v3, %v1420_v4  ;;  %v1421_v10 = vmul.f32 %v2396_v56, %v2995_v34  ;;  %v1281_v58 = vpop.xlane.xlu1 %1280 }
 0x25c   :  { %v1360_v12 = vadd.f32 1e-12, %v1328_v8  ;;  %v1329_v16 = vmul.f32 0.0078125, %v1281_v58 }
 0x25d   :  { %v1460_v14 = vmul.f32 %v3105_v3, %v1421_v10  ;;  %v1498_v35 = vadd.f32 %v3112_v30, %v1459_v18 }
 0x25e   :  { %2401 = vrsqrt.f32 %v1360_v12  ;;  %v1361_v60 = vadd.f32 1e-12, %v1329_v16 }
 0x25f   :  { %v1499_v27 = vadd.f32 %v3112_v30, %v1460_v14 }
 0x260   :  { %v2398_v19 = vpop.eup %2397  ;;  %2403 = vrsqrt.f32 %v1361_v60 }
 0x261   :  { %v1939_v28 = vpack.c.bf16 %v1499_v27, %v1498_v35  ;;  %v1422_v29 = vmul.f32 %v2398_v19, %v3002_v46  ;;  %v1283_v33 = vpop.xlane.xlu0 %1282 }
 0x262   :  { %v2400_v49 = vpop.eup %2399  ;;  %v1330_v0 = vmul.f32 0.0078125, %v1283_v33 }
 0x263   :  { %2010 = vst [vmem:[%s3261_s6 + $0x28] sm:$0xff] %v1939_v28   ;;  %v1461_v34 = vmul.f32 %v3105_v3, %v1422_v29  ;;  %v1423_v36 = vmul.f32 %v2400_v49, %v3005_v47  ;;  %v1285_v38 = vpop.xlane.xlu1 %1284 }
 0x264   :  { %v1362_v40 = vadd.f32 1e-12, %v1330_v0  ;;  %v1331_v5 = vmul.f32 0.0078125, %v1285_v38 }
 0x265   :  { %v1462_v41 = vmul.f32 %v3105_v3, %v1423_v36  ;;  %v1500_v46 = vadd.f32 %v3112_v30, %v1461_v34 }
 0x266   :  { %2405 = vrsqrt.f32 %v1362_v40  ;;  %v1363_v52 = vadd.f32 1e-12, %v1331_v5 }
 0x267   :  { %v1501_v44 = vadd.f32 %v3112_v30, %v1462_v41 }
 0x268   :  { %v2402_v55 = vpop.eup %2401  ;;  %2407 = vrsqrt.f32 %v1363_v52 }
 0x269   :  { %v1944_v22 = vpack.c.bf16 %v1501_v44, %v1500_v46  ;;  %v1424_v2 = vmul.f32 %v2402_v55, %v3012_v9  ;;  %v1287_v42 = vpop.xlane.xlu0 %1286 }
 0x26a   :  { %v2404_v7 = vpop.eup %2403  ;;  %v1332_v51 = vmul.f32 0.0078125, %v1287_v42 }
 0x26b   :  { %2011 = vst [vmem:[%s3261_s6 + $0x30] sm:$0xff] %v1944_v22   ;;  %v1463_v47 = vmul.f32 %v3105_v3, %v1424_v2  ;;  %v1425_v26 = vmul.f32 %v2404_v7, %v3015_v63  ;;  %v1289_v53 = vpop.xlane.xlu1 %1288 }
 0x26c   :  { %v1364_v57 = vadd.f32 1e-12, %v1332_v51  ;;  %v1333_v11 = vmul.f32 0.0078125, %v1289_v53 }
 0x26d   :  { %v1464_v21 = vmul.f32 %v3105_v3, %v1425_v26  ;;  %v1502_v9 = vadd.f32 %v3112_v30, %v1463_v47 }
 0x26e   :  { %2409 = vrsqrt.f32 %v1364_v57  ;;  %v1365_v17 = vadd.f32 1e-12, %v1333_v11 }
 0x26f   :  { %v1503_v23 = vadd.f32 %v3112_v30, %v1464_v21 }
 0x270   :  { %v2406_v1 = vpop.eup %2405  ;;  %2411 = vrsqrt.f32 %v1365_v17 }
 0x271   :  { %v1949_v48 = vpack.c.bf16 %v1503_v23, %v1502_v9  ;;  %v1426_v4 = vmul.f32 %v2406_v1, %v3022_v31  ;;  %v1291_v43 = vpop.xlane.xlu0 %1290 }
 0x272   :  { %v2408_v56 = vpop.eup %2407  ;;  %v1334_v8 = vmul.f32 0.0078125, %v1291_v43 }
 0x273   :  { %2012 = vst [vmem:[%s3261_s6 + $0x38] sm:$0xff] %v1949_v48   ;;  %v1465_v63 = vmul.f32 %v3105_v3, %v1426_v4  ;;  %v1427_v18 = vmul.f32 %v2408_v56, %v3025_v39  ;;  %v1293_v10 = vpop.xlane.xlu1 %1292 }
 0x274   :  { %v1366_v58 = vadd.f32 1e-12, %v1334_v8  ;;  %v1335_v12 = vmul.f32 0.0078125, %v1293_v10 }
 0x275   :  { %v1466_v16 = vmul.f32 %v3105_v3, %v1427_v18  ;;  %v1504_v31 = vadd.f32 %v3112_v30, %v1465_v63 }
 0x276   :  { %2413 = vrsqrt.f32 %v1366_v58  ;;  %v1367_v14 = vadd.f32 1e-12, %v1335_v12 }
 0x277   :  { %v1505_v60 = vadd.f32 %v3112_v30, %v1466_v16 }
 0x278   :  { %v2410_v35 = vpop.eup %2409  ;;  %2415 = vrsqrt.f32 %v1367_v14 }
 0x279   :  { %v1954_v27 = vpack.c.bf16 %v1505_v60, %v1504_v31  ;;  %v1428_v19 = vmul.f32 %v2410_v35, %v3032_v54  ;;  %v1295_v28 = vpop.xlane.xlu0 %1294 }
 0x27a   :  { %v2412_v29 = vpop.eup %2411  ;;  %v1336_v33 = vmul.f32 0.0078125, %v1295_v28 }
 0x27b   :  { %2013 = vst [vmem:[%s3261_s6 + $0x40] sm:$0xff] %v1954_v27   ;;  %v1467_v39 = vmul.f32 %v3105_v3, %v1428_v19  ;;  %v1429_v49 = vmul.f32 %v2412_v29, %v3035_v61  ;;  %v1297_v0 = vpop.xlane.xlu1 %1296 }
 0x27c   :  { %v1368_v34 = vadd.f32 1e-12, %v1336_v33  ;;  %v1337_v36 = vmul.f32 0.0078125, %v1297_v0 }
 0x27d   :  { %v1468_v38 = vmul.f32 %v3105_v3, %v1429_v49  ;;  %v1506_v54 = vadd.f32 %v3112_v30, %v1467_v39 }
 0x27e   :  { %2417 = vrsqrt.f32 %v1368_v34  ;;  %v1369_v40 = vadd.f32 1e-12, %v1337_v36 }
 0x27f   :  { %v1507_v5 = vadd.f32 %v3112_v30, %v1468_v38 }
 0x280   :  { %v2414_v41 = vpop.eup %2413  ;;  %2419 = vrsqrt.f32 %v1369_v40 }
 0x281   :  { %v1959_v52 = vpack.c.bf16 %v1507_v5, %v1506_v54  ;;  %v1430_v46 = vmul.f32 %v2414_v41, %v3042_v13  ;;  %v1299_v44 = vpop.xlane.xlu0 %1298 }
 0x282   :  { %v2416_v55 = vpop.eup %2415  ;;  %v1338_v22 = vmul.f32 0.0078125, %v1299_v44 }
 0x283   :  { %2014 = vst [vmem:[%s3261_s6 + $0x48] sm:$0xff] %v1959_v52   ;;  %v1469_v61 = vmul.f32 %v3105_v3, %v1430_v46  ;;  %v1431_v2 = vmul.f32 %v2416_v55, %v3045_v20  ;;  %v1301_v42 = vpop.xlane.xlu1 %1300 }
 0x284   :  { %v1370_v7 = vadd.f32 1e-12, %v1338_v22  ;;  %v1339_v51 = vmul.f32 0.0078125, %v1301_v42 }
 0x285   :  { %v1470_v47 = vmul.f32 %v3105_v3, %v1431_v2  ;;  %v1508_v13 = vadd.f32 %v3112_v30, %v1469_v61 }
 0x286   :  { %2421 = vrsqrt.f32 %v1370_v7  ;;  %v1371_v26 = vadd.f32 1e-12, %v1339_v51 }
 0x287   :  { %v1509_v53 = vadd.f32 %v3112_v30, %v1470_v47 }
 0x288   :  { %v2418_v57 = vpop.eup %2417  ;;  %2423 = vrsqrt.f32 %v1371_v26 }
 0x289   :  { %v1964_v11 = vpack.c.bf16 %v1509_v53, %v1508_v13  ;;  %v1432_v21 = vmul.f32 %v2418_v57, %v3052_v37  ;;  %v1303_v17 = vpop.xlane.xlu0 %1302 }
 0x28a   :  { %v2420_v9 = vpop.eup %2419  ;;  %v1340_v23 = vmul.f32 0.0078125, %v1303_v17 }
 0x28b   :  { %2015 = vst [vmem:[%s3261_s6 + $0x50] sm:$0xff] %v1964_v11   ;;  %v1471_v20 = vmul.f32 %v3105_v3, %v1432_v21  ;;  %v1433_v1 = vmul.f32 %v2420_v9, %v3055_v45  ;;  %v1305_v48 = vpop.xlane.xlu1 %1304 }
 0x28c   :  { %v1372_v4 = vadd.f32 1e-12, %v1340_v23  ;;  %v1341_v43 = vmul.f32 0.0078125, %v1305_v48 }
 0x28d   :  { %v1472_v56 = vmul.f32 %v3105_v3, %v1433_v1  ;;  %v1510_v37 = vadd.f32 %v3112_v30, %v1471_v20 }
 0x28e   :  { %2425 = vrsqrt.f32 %v1372_v4  ;;  %v1373_v8 = vadd.f32 1e-12, %v1341_v43 }
 0x28f   :  { %v1511_v63 = vadd.f32 %v3112_v30, %v1472_v56 }
 0x290   :  { %v2422_v18 = vpop.eup %2421  ;;  %2427 = vrsqrt.f32 %v1373_v8 }
 0x291   :  { %v1969_v10 = vpack.c.bf16 %v1511_v63, %v1510_v37  ;;  %v1434_v58 = vmul.f32 %v2422_v18, %v3062_v62  ;;  %v1307_v12 = vpop.xlane.xlu0 %1306 }
 0x292   :  { %v2424_v16 = vpop.eup %2423  ;;  %v1342_v14 = vmul.f32 0.0078125, %v1307_v12 }
 0x293   :  { %2016 = vst [vmem:[%s3261_s6 + $0x58] sm:$0xff] %v1969_v10   ;;  %v1473_v45 = vmul.f32 %v3105_v3, %v1434_v58  ;;  %v1435_v31 = vmul.f32 %v2424_v16, %v3065_v6  ;;  %v1309_v60 = vpop.xlane.xlu1 %1308 }
 0x294   :  { %v1374_v35 = vadd.f32 1e-12, %v1342_v14  ;;  %v1343_v27 = vmul.f32 0.0078125, %v1309_v60 }
 0x295   :  { %v1474_v19 = vmul.f32 %v3105_v3, %v1435_v31  ;;  %v1512_v62 = vadd.f32 %v3112_v30, %v1473_v45 }
 0x296   :  { %2429 = vrsqrt.f32 %v1374_v35  ;;  %v1375_v28 = vadd.f32 1e-12, %v1343_v27 }
 0x297   :  { %v1513_v29 = vadd.f32 %v3112_v30, %v1474_v19 }
 0x298   :  { %v2426_v33 = vpop.eup %2425  ;;  %2431 = vrsqrt.f32 %v1375_v28 }
 0x299   :  { %v1974_v39 = vpack.c.bf16 %v1513_v29, %v1512_v62  ;;  %v1436_v49 = vmul.f32 %v2426_v33, %v3072_v24  ;;  %v1311_v0 = vpop.xlane.xlu0 %1310 }
 0x29a   :  { %v2428_v34 = vpop.eup %2427  ;;  %v1344_v36 = vmul.f32 0.0078125, %v1311_v0 }
 0x29b   :  { %2017 = vst [vmem:[%s3261_s6 + $0x60] sm:$0xff] %v1974_v39   ;;  %v1475_v6 = vmul.f32 %v3105_v3, %v1436_v49  ;;  %v1437_v38 = vmul.f32 %v2428_v34, %v3075_v32  ;;  %v1313_v40 = vpop.xlane.xlu1 %1312 }
 0x29c   :  { %v1376_v54 = vadd.f32 1e-12, %v1344_v36  ;;  %v1345_v5 = vmul.f32 0.0078125, %v1313_v40 }
 0x29d   :  { %v1476_v41 = vmul.f32 %v3105_v3, %v1437_v38  ;;  %v1514_v24 = vadd.f32 %v3112_v30, %v1475_v6 }
 0x29e   :  { %2433 = vrsqrt.f32 %v1376_v54  ;;  %v1377_v52 = vadd.f32 1e-12, %v1345_v5 }
 0x29f   :  { %v1515_v46 = vadd.f32 %v3112_v30, %v1476_v41 }
 0x2a0   :  { %v2430_v44 = vpop.eup %2429  ;;  %2435 = vrsqrt.f32 %v1377_v52 }
 0x2a1   :  { %v1979_v55 = vpack.c.bf16 %v1515_v46, %v1514_v24  ;;  %v1438_v22 = vmul.f32 %v2430_v44, %v3082_v50 }
 0x2a2   :  { %v2432_v61 = vpop.eup %2431 }
 0x2a3   :  { %2018 = vst [vmem:[%s3261_s6 + $0x68] sm:$0xff] %v1979_v55   ;;  %v1477_v32 = vmul.f32 %v3105_v3, %v1438_v22  ;;  %v1439_v2 = vmul.f32 %v2432_v61, %v3085_v59 }
 0x2a5   :  { %v1478_v42 = vmul.f32 %v3105_v3, %v1439_v2  ;;  %v1516_v7 = vadd.f32 %v3112_v30, %v1477_v32 }
 0x2a7   :  { %v1517_v51 = vadd.f32 %v3112_v30, %v1478_v42 }
 0x2a8   :  { %v2434_v47 = vpop.eup %2433 }
 0x2a9   :  { %v1984_v26 = vpack.c.bf16 %v1517_v51, %v1516_v7  ;;  %v1440_v13 = vmul.f32 %v2434_v47, %v3092_v15 }
 0x2aa   :  { %v2436_v50 = vpop.eup %2435 }
 0x2ab   :  { %2019 = vst [vmem:[%s3261_s6 + $0x70] sm:$0xff] %v1984_v26   ;;  %v1479_v53 = vmul.f32 %v3105_v3, %v1440_v13  ;;  %v1441_v57 = vmul.f32 %v2436_v50, %v3095_v25 }
 0x2ad   :  { %v1480_v59 = vmul.f32 %v3105_v3, %v1441_v57  ;;  %v1518_v11 = vadd.f32 %v3112_v30, %v1479_v53 }
 0x2af   :  { %v1519_v21 = vadd.f32 %v3112_v30, %v1480_v59 }
 0x2b1   :  { %v1989_v17 = vpack.c.bf16 %v1519_v21, %v1518_v11 }
 0x2b3   :  { %2020 = vst [vmem:[%s3261_s6 + $0x78] sm:$0xff] %v1989_v17  }

</bundles_post_ra>
